<compile_context>
chip_gen: v6e
topology: v6e:2x2x1
jax: 0.10.0
libtpu: 0.0.40
codegen_flags: <defaults>
</compile_context>

<pallas_src>
import functools

import jax
import jax.numpy as jnp
from jax.experimental import pallas as pl
from jax.experimental.pallas import tpu as pltpu

_L = 8  # sublane-aligned left halo offset inside the padded VMEM scratch


# ----------------------------- fused forward kernel -----------------------------
def _fused_upconv_kernel(fd_ref, fl_ref, w1d_ref, w1l_ref, b1_ref, w2_ref, b2_ref,
                         wu_ref, bu_ref, o_ref,
                         xpd_ref, xpl_ref, apad_ref, acc_ref, *, H, W, Cin, C):
    # fd_ref, fl_ref : (1, H, W, Cin)           one batch element, NHWC
    # w1d_ref, w1l_ref: (9, Cin, C)             conv1 weight split over concat halves, (tap, ci, co)
    # b1_ref, b2_ref : (1, C)
    # w2_ref         : (9, C, C)
    # wu_ref         : (C, 4*C)                 convT weight, columns ordered (di, dj, co)
    # bu_ref         : (1, 4*C)                 convT bias tiled 4x
    # o_ref          : (1, H, W, 4*C)           out[0, h, w, (di, dj, co)]
    # scratch: xpd/xpl (H+2, W+_L+1, Cin), apad (H+2, W+_L+1, C), acc (H*W, C) f32

    # ---- stage 0: in-kernel zero-padding (halo) into VMEM, no HBM pad pass ----
    xpd_ref[...] = jnp.zeros((H + 2, W + _L + 1, Cin), jnp.float32)
    xpl_ref[...] = jnp.zeros((H + 2, W + _L + 1, Cin), jnp.float32)
    xpd_ref[1:H + 1, _L:_L + W, :] = fd_ref[0]
    xpl_ref[1:H + 1, _L:_L + W, :] = fl_ref[0]

    # ---- stage 1: conv1 (2*Cin -> C), tap-accumulated in VMEM, bias+relu once ----
    acc_ref[...] = jnp.zeros((H * W, C), jnp.float32)
    for kh in range(3):
        for kw in range(3):
            t = kh * 3 + kw
            off = _L - 1 + kw
            pd = xpd_ref[kh:kh + H, off:off + W, :].reshape(H * W, Cin)
            pf = xpl_ref[kh:kh + H, off:off + W, :].reshape(H * W, Cin)
            acc_ref[...] += (
                jnp.dot(pd, w1d_ref[t], preferred_element_type=jnp.float32)
                + jnp.dot(pf, w1l_ref[t], preferred_element_type=jnp.float32))
    a1 = jnp.maximum(acc_ref[...] + b1_ref[...], 0.0)                 # (H*W, C)

    # ---- stage 2: re-pad in VMEM, conv2 (C -> C), bias+relu once ----
    apad_ref[...] = jnp.zeros((H + 2, W + _L + 1, C), jnp.float32)
    apad_ref[1:H + 1, _L:_L + W, :] = a1.reshape(H, W, C)
    acc_ref[...] = jnp.zeros((H * W, C), jnp.float32)
    for kh in range(3):
        for kw in range(3):
            off = _L - 1 + kw
            p = apad_ref[kh:kh + H, off:off + W, :].reshape(H * W, C)
            acc_ref[...] += jnp.dot(p, w2_ref[kh * 3 + kw],
                                    preferred_element_type=jnp.float32)
    a2 = jnp.maximum(acc_ref[...] + b2_ref[...], 0.0)                 # (H*W, C)

    # ---- stage 3: ConvTranspose2d k=2 s=2 as ONE matmul (lane-dense N = 4*C) ----
    y = jnp.dot(a2, wu_ref[...], preferred_element_type=jnp.float32)  # (H*W, 4*C)
    y = jnp.maximum(y + bu_ref[...], 0.0)
    o_ref[0] = y.reshape(H, W, 4 * C).astype(o_ref.dtype)


# ---------------------------------- full module -----------------------------------
def my_up_conv_forward(from_down, from_left, params):
    """from_down, from_left: NCHW (N, Cin, H, W). Returns NCHW (N, Cout, 2H, 2W)."""
    N, Cin, H, W = from_down.shape
    C = params["b1"].shape[0]

    # NCHW -> NHWC (only layout glue on the input side)
    fd = jnp.transpose(from_down, (0, 2, 3, 1))
    fl = jnp.transpose(from_left, (0, 2, 3, 1))

    # Weight prep (tiny, constant-folds under jit).
    w1 = params["w1"]                                   # (3, 3, 2*Cin, C) HWIO
    w1d = w1[:, :, :Cin, :].reshape(9, Cin, C)          # applied to from_down channels
    w1l = w1[:, :, Cin:, :].reshape(9, Cin, C)          # applied to from_left channels
    w2 = params["w2"].reshape(9, C, C)
    # ConvT weight (di, dj, ci, co) -> (ci, di, dj, co) -> (C, 4*C); columns ordered (di, dj, co)
    wu = params["wu"].transpose(2, 0, 1, 3).reshape(C, 4 * C)
    b1 = params["b1"].reshape(1, C)
    b2 = params["b2"].reshape(1, C)
    bu4 = jnp.tile(params["bu"], 4).reshape(1, 4 * C)

    kernel = functools.partial(_fused_upconv_kernel, H=H, W=W, Cin=Cin, C=C)
    y = pl.pallas_call(
        kernel,
        out_shape=jax.ShapeDtypeStruct((N, H, W, 4 * C), jnp.float32),
        grid_spec=pltpu.PrefetchScalarGridSpec(
            num_scalar_prefetch=0,
            grid=(N,),
            in_specs=[
                pl.BlockSpec((1, H, W, Cin), lambda n: (n, 0, 0, 0)),    # from_down
                pl.BlockSpec((1, H, W, Cin), lambda n: (n, 0, 0, 0)),    # from_left
                pl.BlockSpec((9, Cin, C), lambda n: (0, 0, 0)),          # w1 (down half)
                pl.BlockSpec((9, Cin, C), lambda n: (0, 0, 0)),          # w1 (left half)
                pl.BlockSpec((1, C), lambda n: (0, 0)),                  # b1
                pl.BlockSpec((9, C, C), lambda n: (0, 0, 0)),            # w2
                pl.BlockSpec((1, C), lambda n: (0, 0)),                  # b2
                pl.BlockSpec((C, 4 * C), lambda n: (0, 0)),              # wu
                pl.BlockSpec((1, 4 * C), lambda n: (0, 0)),              # bu (tiled)
            ],
            out_specs=pl.BlockSpec((1, H, W, 4 * C), lambda n: (n, 0, 0, 0)),
            scratch_shapes=[
                pltpu.VMEM((H + 2, W + _L + 1, Cin), jnp.float32),       # padded from_down
                pltpu.VMEM((H + 2, W + _L + 1, Cin), jnp.float32),       # padded from_left
                pltpu.VMEM((H + 2, W + _L + 1, C), jnp.float32),         # padded conv1 output
                pltpu.VMEM((H * W, C), jnp.float32),                     # tap accumulator
            ],
        ),
        compiler_params=pltpu.CompilerParams(dimension_semantics=("parallel",)),
    )(fd, fl, w1d, w1l, b1, w2, b2, wu, bu4)

    # (N, H, W, 2, 2, C) -> (N, C, 2H, 2W): single transpose that also performs NHWC->NCHW.
    y = y.reshape(N, H, W, 2, 2, C).transpose(0, 5, 1, 3, 2, 4).reshape(N, C, 2 * H, 2 * W)
    return y


def init_params(key, in_channels, out_channels):
    k1, k2, k3, k4, k5, k6 = jax.random.split(key, 6)
    scale = 0.1
    return {
        # conv1: 2*Cin -> Cout, HWIO
        "w1": scale * jax.random.normal(k1, (3, 3, 2 * in_channels, out_channels), jnp.float32),
        "b1": scale * jax.random.normal(k2, (out_channels,), jnp.float32),
        # conv2: Cout -> Cout, HWIO
        "w2": scale * jax.random.normal(k3, (3, 3, out_channels, out_channels), jnp.float32),
        "b2": scale * jax.random.normal(k4, (out_channels,), jnp.float32),
        # upconv: ConvTranspose2d(Cout, Cout, 2, 2) laid out as [di, dj, Cin, Cout]
        "wu": scale * jax.random.normal(k5, (2, 2, out_channels, out_channels), jnp.float32),
        "bu": scale * jax.random.normal(k6, (out_channels,), jnp.float32),
    }


# ------------------------------ pure-JAX reference --------------------------------
def _reference(from_down, from_left, params):
    x = jnp.concatenate([from_down, from_left], axis=1)
    x = jnp.transpose(x, (0, 2, 3, 1))                           # NHWC
    dn = ("NHWC", "HWIO", "NHWC")
    x = jax.nn.relu(jax.lax.conv_general_dilated(
        x, params["w1"], (1, 1), "SAME", dimension_numbers=dn) + params["b1"])
    x = jax.nn.relu(jax.lax.conv_general_dilated(
        x, params["w2"], (1, 1), "SAME", dimension_numbers=dn) + params["b2"])
    # transpose conv k=2, s=2: out[n, 2i+d, 2j+k, o] = sum_c x[n,i,j,c] * w[d,k,c,o] + b
    N, H, W, C = x.shape
    Cout = params["wu"].shape[-1]
    y = jnp.einsum("nhwc,dkco->nhdwko", x, params["wu"])
    y = y.reshape(N, 2 * H, 2 * W, Cout) + params["bu"]
    y = jax.nn.relu(y)
    return jnp.transpose(y, (0, 3, 1, 2))


if __name__ == "__main__":
    N, Cin, Cout, H, W = 2, 4, 8, 16, 16
    key = jax.random.PRNGKey(0)
    k_fd, k_fl, k_p = jax.random.split(key, 3)
    from_down = jax.random.normal(k_fd, (N, Cin, H, W), jnp.float32)
    from_left = jax.random.normal(k_fl, (N, Cin, H, W), jnp.float32)
    params = init_params(k_p, Cin, Cout)

    out = jax.jit(my_up_conv_forward)(from_down, from_left, params)
    out = jax.block_until_ready(out)

    assert out.shape == (N, Cout, 2 * H, 2 * W), out.shape
    ref = jax.block_until_ready(_reference(from_down, from_left, params))
    assert jnp.allclose(out, ref, atol=1e-4, rtol=1e-4), \
        float(jnp.max(jnp.abs(out - ref)))

    print("KERNEL_OK")
</pallas_src>

<mosaic_0001>
module attributes {stable_mosaic.version = 11 : i64} {
  func.func @_fused_upconv_kernel(%arg0: i32, %arg1: memref<1x16x16x4xf32, #tpu.memory_space<vmem>>, %arg2: memref<1x16x16x4xf32, #tpu.memory_space<vmem>>, %arg3: memref<9x4x8xf32, #tpu.memory_space<vmem>>, %arg4: memref<9x4x8xf32, #tpu.memory_space<vmem>>, %arg5: memref<1x8xf32, #tpu.memory_space<vmem>>, %arg6: memref<9x8x8xf32, #tpu.memory_space<vmem>>, %arg7: memref<1x8xf32, #tpu.memory_space<vmem>>, %arg8: memref<8x32xf32, #tpu.memory_space<vmem>>, %arg9: memref<1x32xf32, #tpu.memory_space<vmem>>, %arg10: memref<1x16x16x32xf32, #tpu.memory_space<vmem>>, %arg11: memref<18x25x4xf32, #tpu.memory_space<vmem>>, %arg12: memref<18x25x4xf32, #tpu.memory_space<vmem>>, %arg13: memref<18x25x8xf32, #tpu.memory_space<vmem>>, %arg14: memref<256x8xf32, #tpu.memory_space<vmem>>) attributes {dimension_semantics = [#tpu.dimension_semantics<parallel>], iteration_bounds = array<i64: 2>, scalar_prefetch = 0 : i64, scratch_operands = 4 : i64, tpu.core_type = #tpu.core_type<tc>, window_params = [{transform_indices = @transform_0, window_bounds = array<i64: 1, 16, 16, 4>}, {transform_indices = @transform_1, window_bounds = array<i64: 1, 16, 16, 4>}, {pipeline_mode = #tpu.pipeline_mode<synchronous>, transform_indices = @transform_2, window_bounds = array<i64: 9, 4, 8>}, {pipeline_mode = #tpu.pipeline_mode<synchronous>, transform_indices = @transform_3, window_bounds = array<i64: 9, 4, 8>}, {pipeline_mode = #tpu.pipeline_mode<synchronous>, transform_indices = @transform_4, window_bounds = array<i64: 1, 8>}, {pipeline_mode = #tpu.pipeline_mode<synchronous>, transform_indices = @transform_5, window_bounds = array<i64: 9, 8, 8>}, {pipeline_mode = #tpu.pipeline_mode<synchronous>, transform_indices = @transform_6, window_bounds = array<i64: 1, 8>}, {pipeline_mode = #tpu.pipeline_mode<synchronous>, transform_indices = @transform_7, window_bounds = array<i64: 8, 32>}, {pipeline_mode = #tpu.pipeline_mode<synchronous>, transform_indices = @transform_8, window_bounds = array<i64: 1, 32>}, {transform_indices = @transform_9, window_bounds = array<i64: 1, 16, 16, 32>}]} {
    %cst = arith.constant 0.000000e+00 : f32
    %0 = vector.broadcast %cst : f32 to vector<18x25x4xf32>
    %c0 = arith.constant 0 : index
    %c0_0 = arith.constant 0 : index
    %c0_1 = arith.constant 0 : index
    %1 = vector.load %arg11[%c0, %c0_0, %c0_1] : memref<18x25x4xf32, #tpu.memory_space<vmem>>, vector<18x25x4xf32>
    tpu.vector_store %arg11[%c0, %c0_0, %c0_1], %0 {strides = array<i32>} : memref<18x25x4xf32, #tpu.memory_space<vmem>>, vector<18x25x4xf32>,
    %cst_2 = arith.constant 0.000000e+00 : f32
    %2 = vector.broadcast %cst_2 : f32 to vector<18x25x4xf32>
    %c0_3 = arith.constant 0 : index
    %c0_4 = arith.constant 0 : index
    %c0_5 = arith.constant 0 : index
    %3 = vector.load %arg12[%c0_3, %c0_4, %c0_5] : memref<18x25x4xf32, #tpu.memory_space<vmem>>, vector<18x25x4xf32>
    tpu.vector_store %arg12[%c0_3, %c0_4, %c0_5], %2 {strides = array<i32>} : memref<18x25x4xf32, #tpu.memory_space<vmem>>, vector<18x25x4xf32>,
    %c0_6 = arith.constant 0 : index
    %c0_7 = arith.constant 0 : index
    %c0_8 = arith.constant 0 : index
    %c0_9 = arith.constant 0 : index
    %4 = vector.load %arg1[%c0_6, %c0_7, %c0_8, %c0_9] : memref<1x16x16x4xf32, #tpu.memory_space<vmem>>, vector<1x16x16x4xf32>
    %5 = vector.shape_cast %4 : vector<1x16x16x4xf32> to vector<16x16x4xf32>
    %c1 = arith.constant 1 : index
    %c8 = arith.constant 8 : index
    %c0_10 = arith.constant 0 : index
    %6 = vector.load %arg11[%c1, %c8, %c0_10] : memref<18x25x4xf32, #tpu.memory_space<vmem>>, vector<16x16x4xf32>
    tpu.vector_store %arg11[%c1, %c8, %c0_10], %5 {strides = array<i32>} : memref<18x25x4xf32, #tpu.memory_space<vmem>>, vector<16x16x4xf32>,
    %c0_11 = arith.constant 0 : index
    %c0_12 = arith.constant 0 : index
    %c0_13 = arith.constant 0 : index
    %c0_14 = arith.constant 0 : index
    %7 = vector.load %arg2[%c0_11, %c0_12, %c0_13, %c0_14] : memref<1x16x16x4xf32, #tpu.memory_space<vmem>>, vector<1x16x16x4xf32>
    %8 = vector.shape_cast %7 : vector<1x16x16x4xf32> to vector<16x16x4xf32>
    %c1_15 = arith.constant 1 : index
    %c8_16 = arith.constant 8 : index
    %c0_17 = arith.constant 0 : index
    %9 = vector.load %arg12[%c1_15, %c8_16, %c0_17] : memref<18x25x4xf32, #tpu.memory_space<vmem>>, vector<16x16x4xf32>
    tpu.vector_store %arg12[%c1_15, %c8_16, %c0_17], %8 {strides = array<i32>} : memref<18x25x4xf32, #tpu.memory_space<vmem>>, vector<16x16x4xf32>,
    %cst_18 = arith.constant 0.000000e+00 : f32
    %10 = vector.broadcast %cst_18 : f32 to vector<256x8xf32>
    %c0_19 = arith.constant 0 : index
    %c0_20 = arith.constant 0 : index
    %11 = vector.load %arg14[%c0_19, %c0_20] : memref<256x8xf32, #tpu.memory_space<vmem>>, vector<256x8xf32>
    tpu.vector_store %arg14[%c0_19, %c0_20], %10 {strides = array<i32>} : memref<256x8xf32, #tpu.memory_space<vmem>>, vector<256x8xf32>,
    %c0_21 = arith.constant 0 : index
    %c7 = arith.constant 7 : index
    %c0_22 = arith.constant 0 : index
    %12 = vector.load %arg11[%c0_21, %c7, %c0_22] : memref<18x25x4xf32, #tpu.memory_space<vmem>>, vector<16x16x4xf32>
    %13 = vector.shape_cast %12 : vector<16x16x4xf32> to vector<256x4xf32>
    %c0_23 = arith.constant 0 : index
    %c7_24 = arith.constant 7 : index
    %c0_25 = arith.constant 0 : index
    %14 = vector.load %arg12[%c0_23, %c7_24, %c0_25] : memref<18x25x4xf32, #tpu.memory_space<vmem>>, vector<16x16x4xf32>
    %15 = vector.shape_cast %14 : vector<16x16x4xf32> to vector<256x4xf32>
    %c0_26 = arith.constant 0 : index
    %c0_27 = arith.constant 0 : index
    %16 = vector.load %arg14[%c0_26, %c0_27] : memref<256x8xf32, #tpu.memory_space<vmem>>, vector<256x8xf32>
    %c0_28 = arith.constant 0 : index
    %c0_29 = arith.constant 0 : index
    %c0_30 = arith.constant 0 : index
    %17 = vector.load %arg3[%c0_28, %c0_29, %c0_30] : memref<9x4x8xf32, #tpu.memory_space<vmem>>, vector<1x4x8xf32>
    %18 = vector.shape_cast %17 : vector<1x4x8xf32> to vector<4x8xf32>
    %cst_31 = arith.constant dense<0.000000e+00> : vector<256x8xf32>
    %19 = tpu.matmul %13, %18, %cst_31 {dimension_numbers = #tpu.dot_dimension_numbers<[1], [0], [0], [1], [0, 0, 1, 1], [], []>} : vector<256x4xf32>, vector<4x8xf32>, vector<256x8xf32> -> vector<256x8xf32>
    %c0_32 = arith.constant 0 : index
    %c0_33 = arith.constant 0 : index
    %c0_34 = arith.constant 0 : index
    %20 = vector.load %arg4[%c0_32, %c0_33, %c0_34] : memref<9x4x8xf32, #tpu.memory_space<vmem>>, vector<1x4x8xf32>
    %21 = vector.shape_cast %20 : vector<1x4x8xf32> to vector<4x8xf32>
    %cst_35 = arith.constant dense<0.000000e+00> : vector<256x8xf32>
    %22 = tpu.matmul %15, %21, %cst_35 {dimension_numbers = #tpu.dot_dimension_numbers<[1], [0], [0], [1], [0, 0, 1, 1], [], []>} : vector<256x4xf32>, vector<4x8xf32>, vector<256x8xf32> -> vector<256x8xf32>
    %23 = arith.addf %19, %22 : vector<256x8xf32>
    %24 = arith.addf %16, %23 : vector<256x8xf32>
    %c0_36 = arith.constant 0 : index
    %c0_37 = arith.constant 0 : index
    %25 = vector.load %arg14[%c0_36, %c0_37] : memref<256x8xf32, #tpu.memory_space<vmem>>, vector<256x8xf32>
    tpu.vector_store %arg14[%c0_36, %c0_37], %24 {strides = array<i32>} : memref<256x8xf32, #tpu.memory_space<vmem>>, vector<256x8xf32>,
    %c0_38 = arith.constant 0 : index
    %c8_39 = arith.constant 8 : index
    %c0_40 = arith.constant 0 : index
    %26 = vector.load %arg11[%c0_38, %c8_39, %c0_40] : memref<18x25x4xf32, #tpu.memory_space<vmem>>, vector<16x16x4xf32>
    %27 = vector.shape_cast %26 : vector<16x16x4xf32> to vector<256x4xf32>
    %c0_41 = arith.constant 0 : index
    %c8_42 = arith.constant 8 : index
    %c0_43 = arith.constant 0 : index
    %28 = vector.load %arg12[%c0_41, %c8_42, %c0_43] : memref<18x25x4xf32, #tpu.memory_space<vmem>>, vector<16x16x4xf32>
    %29 = vector.shape_cast %28 : vector<16x16x4xf32> to vector<256x4xf32>
    %c0_44 = arith.constant 0 : index
    %c0_45 = arith.constant 0 : index
    %30 = vector.load %arg14[%c0_44, %c0_45] : memref<256x8xf32, #tpu.memory_space<vmem>>, vector<256x8xf32>
    %c1_46 = arith.constant 1 : index
    %c0_47 = arith.constant 0 : index
    %c0_48 = arith.constant 0 : index
    %31 = vector.load %arg3[%c1_46, %c0_47, %c0_48] : memref<9x4x8xf32, #tpu.memory_space<vmem>>, vector<1x4x8xf32>
    %32 = vector.shape_cast %31 : vector<1x4x8xf32> to vector<4x8xf32>
    %cst_49 = arith.constant dense<0.000000e+00> : vector<256x8xf32>
    %33 = tpu.matmul %27, %32, %cst_49 {dimension_numbers = #tpu.dot_dimension_numbers<[1], [0], [0], [1], [0, 0, 1, 1], [], []>} : vector<256x4xf32>, vector<4x8xf32>, vector<256x8xf32> -> vector<256x8xf32>
    %c1_50 = arith.constant 1 : index
    %c0_51 = arith.constant 0 : index
    %c0_52 = arith.constant 0 : index
    %34 = vector.load %arg4[%c1_50, %c0_51, %c0_52] : memref<9x4x8xf32, #tpu.memory_space<vmem>>, vector<1x4x8xf32>
    %35 = vector.shape_cast %34 : vector<1x4x8xf32> to vector<4x8xf32>
    %cst_53 = arith.constant dense<0.000000e+00> : vector<256x8xf32>
    %36 = tpu.matmul %29, %35, %cst_53 {dimension_numbers = #tpu.dot_dimension_numbers<[1], [0], [0], [1], [0, 0, 1, 1], [], []>} : vector<256x4xf32>, vector<4x8xf32>, vector<256x8xf32> -> vector<256x8xf32>
    %37 = arith.addf %33, %36 : vector<256x8xf32>
    %38 = arith.addf %30, %37 : vector<256x8xf32>
    %c0_54 = arith.constant 0 : index
    %c0_55 = arith.constant 0 : index
    %39 = vector.load %arg14[%c0_54, %c0_55] : memref<256x8xf32, #tpu.memory_space<vmem>>, vector<256x8xf32>
    tpu.vector_store %arg14[%c0_54, %c0_55], %38 {strides = array<i32>} : memref<256x8xf32, #tpu.memory_space<vmem>>, vector<256x8xf32>,
    %c0_56 = arith.constant 0 : index
    %c9 = arith.constant 9 : index
    %c0_57 = arith.constant 0 : index
    %40 = vector.load %arg11[%c0_56, %c9, %c0_57] : memref<18x25x4xf32, #tpu.memory_space<vmem>>, vector<16x16x4xf32>
    %41 = vector.shape_cast %40 : vector<16x16x4xf32> to vector<256x4xf32>
    %c0_58 = arith.constant 0 : index
    %c9_59 = arith.constant 9 : index
    %c0_60 = arith.constant 0 : index
    %42 = vector.load %arg12[%c0_58, %c9_59, %c0_60] : memref<18x25x4xf32, #tpu.memory_space<vmem>>, vector<16x16x4xf32>
    %43 = vector.shape_cast %42 : vector<16x16x4xf32> to vector<256x4xf32>
    %c0_61 = arith.constant 0 : index
    %c0_62 = arith.constant 0 : index
    %44 = vector.load %arg14[%c0_61, %c0_62] : memref<256x8xf32, #tpu.memory_space<vmem>>, vector<256x8xf32>
    %c2 = arith.constant 2 : index
    %c0_63 = arith.constant 0 : index
    %c0_64 = arith.constant 0 : index
    %45 = vector.load %arg3[%c2, %c0_63, %c0_64] : memref<9x4x8xf32, #tpu.memory_space<vmem>>, vector<1x4x8xf32>
    %46 = vector.shape_cast %45 : vector<1x4x8xf32> to vector<4x8xf32>
    %cst_65 = arith.constant dense<0.000000e+00> : vector<256x8xf32>
    %47 = tpu.matmul %41, %46, %cst_65 {dimension_numbers = #tpu.dot_dimension_numbers<[1], [0], [0], [1], [0, 0, 1, 1], [], []>} : vector<256x4xf32>, vector<4x8xf32>, vector<256x8xf32> -> vector<256x8xf32>
    %c2_66 = arith.constant 2 : index
    %c0_67 = arith.constant 0 : index
    %c0_68 = arith.constant 0 : index
    %48 = vector.load %arg4[%c2_66, %c0_67, %c0_68] : memref<9x4x8xf32, #tpu.memory_space<vmem>>, vector<1x4x8xf32>
    %49 = vector.shape_cast %48 : vector<1x4x8xf32> to vector<4x8xf32>
    %cst_69 = arith.constant dense<0.000000e+00> : vector<256x8xf32>
    %50 = tpu.matmul %43, %49, %cst_69 {dimension_numbers = #tpu.dot_dimension_numbers<[1], [0], [0], [1], [0, 0, 1, 1], [], []>} : vector<256x4xf32>, vector<4x8xf32>, vector<256x8xf32> -> vector<256x8xf32>
    %51 = arith.addf %47, %50 : vector<256x8xf32>
    %52 = arith.addf %44, %51 : vector<256x8xf32>
    %c0_70 = arith.constant 0 : index
    %c0_71 = arith.constant 0 : index
    %53 = vector.load %arg14[%c0_70, %c0_71] : memref<256x8xf32, #tpu.memory_space<vmem>>, vector<256x8xf32>
    tpu.vector_store %arg14[%c0_70, %c0_71], %52 {strides = array<i32>} : memref<256x8xf32, #tpu.memory_space<vmem>>, vector<256x8xf32>,
    %c1_72 = arith.constant 1 : index
    %c7_73 = arith.constant 7 : index
    %c0_74 = arith.constant 0 : index
    %54 = vector.load %arg11[%c1_72, %c7_73, %c0_74] : memref<18x25x4xf32, #tpu.memory_space<vmem>>, vector<16x16x4xf32>
    %55 = vector.shape_cast %54 : vector<16x16x4xf32> to vector<256x4xf32>
    %c1_75 = arith.constant 1 : index
    %c7_76 = arith.constant 7 : index
    %c0_77 = arith.constant 0 : index
    %56 = vector.load %arg12[%c1_75, %c7_76, %c0_77] : memref<18x25x4xf32, #tpu.memory_space<vmem>>, vector<16x16x4xf32>
    %57 = vector.shape_cast %56 : vector<16x16x4xf32> to vector<256x4xf32>
    %c0_78 = arith.constant 0 : index
    %c0_79 = arith.constant 0 : index
    %58 = vector.load %arg14[%c0_78, %c0_79] : memref<256x8xf32, #tpu.memory_space<vmem>>, vector<256x8xf32>
    %c3 = arith.constant 3 : index
    %c0_80 = arith.constant 0 : index
    %c0_81 = arith.constant 0 : index
    %59 = vector.load %arg3[%c3, %c0_80, %c0_81] : memref<9x4x8xf32, #tpu.memory_space<vmem>>, vector<1x4x8xf32>
    %60 = vector.shape_cast %59 : vector<1x4x8xf32> to vector<4x8xf32>
    %cst_82 = arith.constant dense<0.000000e+00> : vector<256x8xf32>
    %61 = tpu.matmul %55, %60, %cst_82 {dimension_numbers = #tpu.dot_dimension_numbers<[1], [0], [0], [1], [0, 0, 1, 1], [], []>} : vector<256x4xf32>, vector<4x8xf32>, vector<256x8xf32> -> vector<256x8xf32>
    %c3_83 = arith.constant 3 : index
    %c0_84 = arith.constant 0 : index
    %c0_85 = arith.constant 0 : index
    %62 = vector.load %arg4[%c3_83, %c0_84, %c0_85] : memref<9x4x8xf32, #tpu.memory_space<vmem>>, vector<1x4x8xf32>
    %63 = vector.shape_cast %62 : vector<1x4x8xf32> to vector<4x8xf32>
    %cst_86 = arith.constant dense<0.000000e+00> : vector<256x8xf32>
    %64 = tpu.matmul %57, %63, %cst_86 {dimension_numbers = #tpu.dot_dimension_numbers<[1], [0], [0], [1], [0, 0, 1, 1], [], []>} : vector<256x4xf32>, vector<4x8xf32>, vector<256x8xf32> -> vector<256x8xf32>
    %65 = arith.addf %61, %64 : vector<256x8xf32>
    %66 = arith.addf %58, %65 : vector<256x8xf32>
    %c0_87 = arith.constant 0 : index
    %c0_88 = arith.constant 0 : index
    %67 = vector.load %arg14[%c0_87, %c0_88] : memref<256x8xf32, #tpu.memory_space<vmem>>, vector<256x8xf32>
    tpu.vector_store %arg14[%c0_87, %c0_88], %66 {strides = array<i32>} : memref<256x8xf32, #tpu.memory_space<vmem>>, vector<256x8xf32>,
    %c1_89 = arith.constant 1 : index
    %c8_90 = arith.constant 8 : index
    %c0_91 = arith.constant 0 : index
    %68 = vector.load %arg11[%c1_89, %c8_90, %c0_91] : memref<18x25x4xf32, #tpu.memory_space<vmem>>, vector<16x16x4xf32>
    %69 = vector.shape_cast %68 : vector<16x16x4xf32> to vector<256x4xf32>
    %c1_92 = arith.constant 1 : index
    %c8_93 = arith.constant 8 : index
    %c0_94 = arith.constant 0 : index
    %70 = vector.load %arg12[%c1_92, %c8_93, %c0_94] : memref<18x25x4xf32, #tpu.memory_space<vmem>>, vector<16x16x4xf32>
    %71 = vector.shape_cast %70 : vector<16x16x4xf32> to vector<256x4xf32>
    %c0_95 = arith.constant 0 : index
    %c0_96 = arith.constant 0 : index
    %72 = vector.load %arg14[%c0_95, %c0_96] : memref<256x8xf32, #tpu.memory_space<vmem>>, vector<256x8xf32>
    %c4 = arith.constant 4 : index
    %c0_97 = arith.constant 0 : index
    %c0_98 = arith.constant 0 : index
    %73 = vector.load %arg3[%c4, %c0_97, %c0_98] : memref<9x4x8xf32, #tpu.memory_space<vmem>>, vector<1x4x8xf32>
    %74 = vector.shape_cast %73 : vector<1x4x8xf32> to vector<4x8xf32>
    %cst_99 = arith.constant dense<0.000000e+00> : vector<256x8xf32>
    %75 = tpu.matmul %69, %74, %cst_99 {dimension_numbers = #tpu.dot_dimension_numbers<[1], [0], [0], [1], [0, 0, 1, 1], [], []>} : vector<256x4xf32>, vector<4x8xf32>, vector<256x8xf32> -> vector<256x8xf32>
    %c4_100 = arith.constant 4 : index
    %c0_101 = arith.constant 0 : index
    %c0_102 = arith.constant 0 : index
    %76 = vector.load %arg4[%c4_100, %c0_101, %c0_102] : memref<9x4x8xf32, #tpu.memory_space<vmem>>, vector<1x4x8xf32>
    %77 = vector.shape_cast %76 : vector<1x4x8xf32> to vector<4x8xf32>
    %cst_103 = arith.constant dense<0.000000e+00> : vector<256x8xf32>
    %78 = tpu.matmul %71, %77, %cst_103 {dimension_numbers = #tpu.dot_dimension_numbers<[1], [0], [0], [1], [0, 0, 1, 1], [], []>} : vector<256x4xf32>, vector<4x8xf32>, vector<256x8xf32> -> vector<256x8xf32>
    %79 = arith.addf %75, %78 : vector<256x8xf32>
    %80 = arith.addf %72, %79 : vector<256x8xf32>
    %c0_104 = arith.constant 0 : index
    %c0_105 = arith.constant 0 : index
    %81 = vector.load %arg14[%c0_104, %c0_105] : memref<256x8xf32, #tpu.memory_space<vmem>>, vector<256x8xf32>
    tpu.vector_store %arg14[%c0_104, %c0_105], %80 {strides = array<i32>} : memref<256x8xf32, #tpu.memory_space<vmem>>, vector<256x8xf32>,
    %c1_106 = arith.constant 1 : index
    %c9_107 = arith.constant 9 : index
    %c0_108 = arith.constant 0 : index
    %82 = vector.load %arg11[%c1_106, %c9_107, %c0_108] : memref<18x25x4xf32, #tpu.memory_space<vmem>>, vector<16x16x4xf32>
    %83 = vector.shape_cast %82 : vector<16x16x4xf32> to vector<256x4xf32>
    %c1_109 = arith.constant 1 : index
    %c9_110 = arith.constant 9 : index
    %c0_111 = arith.constant 0 : index
    %84 = vector.load %arg12[%c1_109, %c9_110, %c0_111] : memref<18x25x4xf32, #tpu.memory_space<vmem>>, vector<16x16x4xf32>
    %85 = vector.shape_cast %84 : vector<16x16x4xf32> to vector<256x4xf32>
    %c0_112 = arith.constant 0 : index
    %c0_113 = arith.constant 0 : index
    %86 = vector.load %arg14[%c0_112, %c0_113] : memref<256x8xf32, #tpu.memory_space<vmem>>, vector<256x8xf32>
    %c5 = arith.constant 5 : index
    %c0_114 = arith.constant 0 : index
    %c0_115 = arith.constant 0 : index
    %87 = vector.load %arg3[%c5, %c0_114, %c0_115] : memref<9x4x8xf32, #tpu.memory_space<vmem>>, vector<1x4x8xf32>
    %88 = vector.shape_cast %87 : vector<1x4x8xf32> to vector<4x8xf32>
    %cst_116 = arith.constant dense<0.000000e+00> : vector<256x8xf32>
    %89 = tpu.matmul %83, %88, %cst_116 {dimension_numbers = #tpu.dot_dimension_numbers<[1], [0], [0], [1], [0, 0, 1, 1], [], []>} : vector<256x4xf32>, vector<4x8xf32>, vector<256x8xf32> -> vector<256x8xf32>
    %c5_117 = arith.constant 5 : index
    %c0_118 = arith.constant 0 : index
    %c0_119 = arith.constant 0 : index
    %90 = vector.load %arg4[%c5_117, %c0_118, %c0_119] : memref<9x4x8xf32, #tpu.memory_space<vmem>>, vector<1x4x8xf32>
    %91 = vector.shape_cast %90 : vector<1x4x8xf32> to vector<4x8xf32>
    %cst_120 = arith.constant dense<0.000000e+00> : vector<256x8xf32>
    %92 = tpu.matmul %85, %91, %cst_120 {dimension_numbers = #tpu.dot_dimension_numbers<[1], [0], [0], [1], [0, 0, 1, 1], [], []>} : vector<256x4xf32>, vector<4x8xf32>, vector<256x8xf32> -> vector<256x8xf32>
    %93 = arith.addf %89, %92 : vector<256x8xf32>
    %94 = arith.addf %86, %93 : vector<256x8xf32>
    %c0_121 = arith.constant 0 : index
    %c0_122 = arith.constant 0 : index
    %95 = vector.load %arg14[%c0_121, %c0_122] : memref<256x8xf32, #tpu.memory_space<vmem>>, vector<256x8xf32>
    tpu.vector_store %arg14[%c0_121, %c0_122], %94 {strides = array<i32>} : memref<256x8xf32, #tpu.memory_space<vmem>>, vector<256x8xf32>,
    %c2_123 = arith.constant 2 : index
    %c7_124 = arith.constant 7 : index
    %c0_125 = arith.constant 0 : index
    %96 = vector.load %arg11[%c2_123, %c7_124, %c0_125] : memref<18x25x4xf32, #tpu.memory_space<vmem>>, vector<16x16x4xf32>
    %97 = vector.shape_cast %96 : vector<16x16x4xf32> to vector<256x4xf32>
    %c2_126 = arith.constant 2 : index
    %c7_127 = arith.constant 7 : index
    %c0_128 = arith.constant 0 : index
    %98 = vector.load %arg12[%c2_126, %c7_127, %c0_128] : memref<18x25x4xf32, #tpu.memory_space<vmem>>, vector<16x16x4xf32>
    %99 = vector.shape_cast %98 : vector<16x16x4xf32> to vector<256x4xf32>
    %c0_129 = arith.constant 0 : index
    %c0_130 = arith.constant 0 : index
    %100 = vector.load %arg14[%c0_129, %c0_130] : memref<256x8xf32, #tpu.memory_space<vmem>>, vector<256x8xf32>
    %c6 = arith.constant 6 : index
    %c0_131 = arith.constant 0 : index
    %c0_132 = arith.constant 0 : index
    %101 = vector.load %arg3[%c6, %c0_131, %c0_132] : memref<9x4x8xf32, #tpu.memory_space<vmem>>, vector<1x4x8xf32>
    %102 = vector.shape_cast %101 : vector<1x4x8xf32> to vector<4x8xf32>
    %cst_133 = arith.constant dense<0.000000e+00> : vector<256x8xf32>
    %103 = tpu.matmul %97, %102, %cst_133 {dimension_numbers = #tpu.dot_dimension_numbers<[1], [0], [0], [1], [0, 0, 1, 1], [], []>} : vector<256x4xf32>, vector<4x8xf32>, vector<256x8xf32> -> vector<256x8xf32>
    %c6_134 = arith.constant 6 : index
    %c0_135 = arith.constant 0 : index
    %c0_136 = arith.constant 0 : index
    %104 = vector.load %arg4[%c6_134, %c0_135, %c0_136] : memref<9x4x8xf32, #tpu.memory_space<vmem>>, vector<1x4x8xf32>
    %105 = vector.shape_cast %104 : vector<1x4x8xf32> to vector<4x8xf32>
    %cst_137 = arith.constant dense<0.000000e+00> : vector<256x8xf32>
    %106 = tpu.matmul %99, %105, %cst_137 {dimension_numbers = #tpu.dot_dimension_numbers<[1], [0], [0], [1], [0, 0, 1, 1], [], []>} : vector<256x4xf32>, vector<4x8xf32>, vector<256x8xf32> -> vector<256x8xf32>
    %107 = arith.addf %103, %106 : vector<256x8xf32>
    %108 = arith.addf %100, %107 : vector<256x8xf32>
    %c0_138 = arith.constant 0 : index
    %c0_139 = arith.constant 0 : index
    %109 = vector.load %arg14[%c0_138, %c0_139] : memref<256x8xf32, #tpu.memory_space<vmem>>, vector<256x8xf32>
    tpu.vector_store %arg14[%c0_138, %c0_139], %108 {strides = array<i32>} : memref<256x8xf32, #tpu.memory_space<vmem>>, vector<256x8xf32>,
    %c2_140 = arith.constant 2 : index
    %c8_141 = arith.constant 8 : index
    %c0_142 = arith.constant 0 : index
    %110 = vector.load %arg11[%c2_140, %c8_141, %c0_142] : memref<18x25x4xf32, #tpu.memory_space<vmem>>, vector<16x16x4xf32>
    %111 = vector.shape_cast %110 : vector<16x16x4xf32> to vector<256x4xf32>
    %c2_143 = arith.constant 2 : index
    %c8_144 = arith.constant 8 : index
    %c0_145 = arith.constant 0 : index
    %112 = vector.load %arg12[%c2_143, %c8_144, %c0_145] : memref<18x25x4xf32, #tpu.memory_space<vmem>>, vector<16x16x4xf32>
    %113 = vector.shape_cast %112 : vector<16x16x4xf32> to vector<256x4xf32>
    %c0_146 = arith.constant 0 : index
    %c0_147 = arith.constant 0 : index
    %114 = vector.load %arg14[%c0_146, %c0_147] : memref<256x8xf32, #tpu.memory_space<vmem>>, vector<256x8xf32>
    %c7_148 = arith.constant 7 : index
    %c0_149 = arith.constant 0 : index
    %c0_150 = arith.constant 0 : index
    %115 = vector.load %arg3[%c7_148, %c0_149, %c0_150] : memref<9x4x8xf32, #tpu.memory_space<vmem>>, vector<1x4x8xf32>
    %116 = vector.shape_cast %115 : vector<1x4x8xf32> to vector<4x8xf32>
    %cst_151 = arith.constant dense<0.000000e+00> : vector<256x8xf32>
    %117 = tpu.matmul %111, %116, %cst_151 {dimension_numbers = #tpu.dot_dimension_numbers<[1], [0], [0], [1], [0, 0, 1, 1], [], []>} : vector<256x4xf32>, vector<4x8xf32>, vector<256x8xf32> -> vector<256x8xf32>
    %c7_152 = arith.constant 7 : index
    %c0_153 = arith.constant 0 : index
    %c0_154 = arith.constant 0 : index
    %118 = vector.load %arg4[%c7_152, %c0_153, %c0_154] : memref<9x4x8xf32, #tpu.memory_space<vmem>>, vector<1x4x8xf32>
    %119 = vector.shape_cast %118 : vector<1x4x8xf32> to vector<4x8xf32>
    %cst_155 = arith.constant dense<0.000000e+00> : vector<256x8xf32>
    %120 = tpu.matmul %113, %119, %cst_155 {dimension_numbers = #tpu.dot_dimension_numbers<[1], [0], [0], [1], [0, 0, 1, 1], [], []>} : vector<256x4xf32>, vector<4x8xf32>, vector<256x8xf32> -> vector<256x8xf32>
    %121 = arith.addf %117, %120 : vector<256x8xf32>
    %122 = arith.addf %114, %121 : vector<256x8xf32>
    %c0_156 = arith.constant 0 : index
    %c0_157 = arith.constant 0 : index
    %123 = vector.load %arg14[%c0_156, %c0_157] : memref<256x8xf32, #tpu.memory_space<vmem>>, vector<256x8xf32>
    tpu.vector_store %arg14[%c0_156, %c0_157], %122 {strides = array<i32>} : memref<256x8xf32, #tpu.memory_space<vmem>>, vector<256x8xf32>,
    %c2_158 = arith.constant 2 : index
    %c9_159 = arith.constant 9 : index
    %c0_160 = arith.constant 0 : index
    %124 = vector.load %arg11[%c2_158, %c9_159, %c0_160] : memref<18x25x4xf32, #tpu.memory_space<vmem>>, vector<16x16x4xf32>
    %125 = vector.shape_cast %124 : vector<16x16x4xf32> to vector<256x4xf32>
    %c2_161 = arith.constant 2 : index
    %c9_162 = arith.constant 9 : index
    %c0_163 = arith.constant 0 : index
    %126 = vector.load %arg12[%c2_161, %c9_162, %c0_163] : memref<18x25x4xf32, #tpu.memory_space<vmem>>, vector<16x16x4xf32>
    %127 = vector.shape_cast %126 : vector<16x16x4xf32> to vector<256x4xf32>
    %c0_164 = arith.constant 0 : index
    %c0_165 = arith.constant 0 : index
    %128 = vector.load %arg14[%c0_164, %c0_165] : memref<256x8xf32, #tpu.memory_space<vmem>>, vector<256x8xf32>
    %c8_166 = arith.constant 8 : index
    %c0_167 = arith.constant 0 : index
    %c0_168 = arith.constant 0 : index
    %129 = vector.load %arg3[%c8_166, %c0_167, %c0_168] : memref<9x4x8xf32, #tpu.memory_space<vmem>>, vector<1x4x8xf32>
    %130 = vector.shape_cast %129 : vector<1x4x8xf32> to vector<4x8xf32>
    %cst_169 = arith.constant dense<0.000000e+00> : vector<256x8xf32>
    %131 = tpu.matmul %125, %130, %cst_169 {dimension_numbers = #tpu.dot_dimension_numbers<[1], [0], [0], [1], [0, 0, 1, 1], [], []>} : vector<256x4xf32>, vector<4x8xf32>, vector<256x8xf32> -> vector<256x8xf32>
    %c8_170 = arith.constant 8 : index
    %c0_171 = arith.constant 0 : index
    %c0_172 = arith.constant 0 : index
    %132 = vector.load %arg4[%c8_170, %c0_171, %c0_172] : memref<9x4x8xf32, #tpu.memory_space<vmem>>, vector<1x4x8xf32>
    %133 = vector.shape_cast %132 : vector<1x4x8xf32> to vector<4x8xf32>
    %cst_173 = arith.constant dense<0.000000e+00> : vector<256x8xf32>
    %134 = tpu.matmul %127, %133, %cst_173 {dimension_numbers = #tpu.dot_dimension_numbers<[1], [0], [0], [1], [0, 0, 1, 1], [], []>} : vector<256x4xf32>, vector<4x8xf32>, vector<256x8xf32> -> vector<256x8xf32>
    %135 = arith.addf %131, %134 : vector<256x8xf32>
    %136 = arith.addf %128, %135 : vector<256x8xf32>
    %c0_174 = arith.constant 0 : index
    %c0_175 = arith.constant 0 : index
    %137 = vector.load %arg14[%c0_174, %c0_175] : memref<256x8xf32, #tpu.memory_space<vmem>>, vector<256x8xf32>
    tpu.vector_store %arg14[%c0_174, %c0_175], %136 {strides = array<i32>} : memref<256x8xf32, #tpu.memory_space<vmem>>, vector<256x8xf32>,
    %c0_176 = arith.constant 0 : index
    %c0_177 = arith.constant 0 : index
    %138 = vector.load %arg14[%c0_176, %c0_177] : memref<256x8xf32, #tpu.memory_space<vmem>>, vector<256x8xf32>
    %c0_178 = arith.constant 0 : index
    %c0_179 = arith.constant 0 : index
    %139 = vector.load %arg5[%c0_178, %c0_179] : memref<1x8xf32, #tpu.memory_space<vmem>>, vector<1x8xf32>
    %140 = vector.broadcast %139 : vector<1x8xf32> to vector<256x8xf32>
    %141 = arith.addf %138, %140 : vector<256x8xf32>
    %cst_180 = arith.constant 0.000000e+00 : f32
    %142 = vector.broadcast %cst_180 : f32 to vector<256x8xf32>
    %143 = arith.maximumf %141, %142 : vector<256x8xf32>
    %cst_181 = arith.constant 0.000000e+00 : f32
    %144 = vector.broadcast %cst_181 : f32 to vector<18x25x8xf32>
    %c0_182 = arith.constant 0 : index
    %c0_183 = arith.constant 0 : index
    %c0_184 = arith.constant 0 : index
    %145 = vector.load %arg13[%c0_182, %c0_183, %c0_184] : memref<18x25x8xf32, #tpu.memory_space<vmem>>, vector<18x25x8xf32>
    tpu.vector_store %arg13[%c0_182, %c0_183, %c0_184], %144 {strides = array<i32>} : memref<18x25x8xf32, #tpu.memory_space<vmem>>, vector<18x25x8xf32>,
    %146 = vector.shape_cast %143 : vector<256x8xf32> to vector<16x16x8xf32>
    %c1_185 = arith.constant 1 : index
    %c8_186 = arith.constant 8 : index
    %c0_187 = arith.constant 0 : index
    %147 = vector.load %arg13[%c1_185, %c8_186, %c0_187] : memref<18x25x8xf32, #tpu.memory_space<vmem>>, vector<16x16x8xf32>
    tpu.vector_store %arg13[%c1_185, %c8_186, %c0_187], %146 {strides = array<i32>} : memref<18x25x8xf32, #tpu.memory_space<vmem>>, vector<16x16x8xf32>,
    %cst_188 = arith.constant 0.000000e+00 : f32
    %148 = vector.broadcast %cst_188 : f32 to vector<256x8xf32>
    %c0_189 = arith.constant 0 : index
    %c0_190 = arith.constant 0 : index
    %149 = vector.load %arg14[%c0_189, %c0_190] : memref<256x8xf32, #tpu.memory_space<vmem>>, vector<256x8xf32>
    tpu.vector_store %arg14[%c0_189, %c0_190], %148 {strides = array<i32>} : memref<256x8xf32, #tpu.memory_space<vmem>>, vector<256x8xf32>,
    %c0_191 = arith.constant 0 : index
    %c7_192 = arith.constant 7 : index
    %c0_193 = arith.constant 0 : index
    %150 = vector.load %arg13[%c0_191, %c7_192, %c0_193] : memref<18x25x8xf32, #tpu.memory_space<vmem>>, vector<16x16x8xf32>
    %151 = vector.shape_cast %150 : vector<16x16x8xf32> to vector<256x8xf32>
    %c0_194 = arith.constant 0 : index
    %c0_195 = arith.constant 0 : index
    %152 = vector.load %arg14[%c0_194, %c0_195] : memref<256x8xf32, #tpu.memory_space<vmem>>, vector<256x8xf32>
    %c0_196 = arith.constant 0 : index
    %c0_197 = arith.constant 0 : index
    %c0_198 = arith.constant 0 : index
    %153 = vector.load %arg6[%c0_196, %c0_197, %c0_198] : memref<9x8x8xf32, #tpu.memory_space<vmem>>, vector<1x8x8xf32>
    %154 = vector.shape_cast %153 : vector<1x8x8xf32> to vector<8x8xf32>
    %cst_199 = arith.constant dense<0.000000e+00> : vector<256x8xf32>
    %155 = tpu.matmul %151, %154, %cst_199 {dimension_numbers = #tpu.dot_dimension_numbers<[1], [0], [0], [1], [0, 0, 1, 1], [], []>} : vector<256x8xf32>, vector<8x8xf32>, vector<256x8xf32> -> vector<256x8xf32>
    %156 = arith.addf %152, %155 : vector<256x8xf32>
    %c0_200 = arith.constant 0 : index
    %c0_201 = arith.constant 0 : index
    %157 = vector.load %arg14[%c0_200, %c0_201] : memref<256x8xf32, #tpu.memory_space<vmem>>, vector<256x8xf32>
    tpu.vector_store %arg14[%c0_200, %c0_201], %156 {strides = array<i32>} : memref<256x8xf32, #tpu.memory_space<vmem>>, vector<256x8xf32>,
    %c0_202 = arith.constant 0 : index
    %c8_203 = arith.constant 8 : index
    %c0_204 = arith.constant 0 : index
    %158 = vector.load %arg13[%c0_202, %c8_203, %c0_204] : memref<18x25x8xf32, #tpu.memory_space<vmem>>, vector<16x16x8xf32>
    %159 = vector.shape_cast %158 : vector<16x16x8xf32> to vector<256x8xf32>
    %c0_205 = arith.constant 0 : index
    %c0_206 = arith.constant 0 : index
    %160 = vector.load %arg14[%c0_205, %c0_206] : memref<256x8xf32, #tpu.memory_space<vmem>>, vector<256x8xf32>
    %c1_207 = arith.constant 1 : index
    %c0_208 = arith.constant 0 : index
    %c0_209 = arith.constant 0 : index
    %161 = vector.load %arg6[%c1_207, %c0_208, %c0_209] : memref<9x8x8xf32, #tpu.memory_space<vmem>>, vector<1x8x8xf32>
    %162 = vector.shape_cast %161 : vector<1x8x8xf32> to vector<8x8xf32>
    %cst_210 = arith.constant dense<0.000000e+00> : vector<256x8xf32>
    %163 = tpu.matmul %159, %162, %cst_210 {dimension_numbers = #tpu.dot_dimension_numbers<[1], [0], [0], [1], [0, 0, 1, 1], [], []>} : vector<256x8xf32>, vector<8x8xf32>, vector<256x8xf32> -> vector<256x8xf32>
    %164 = arith.addf %160, %163 : vector<256x8xf32>
    %c0_211 = arith.constant 0 : index
    %c0_212 = arith.constant 0 : index
    %165 = vector.load %arg14[%c0_211, %c0_212] : memref<256x8xf32, #tpu.memory_space<vmem>>, vector<256x8xf32>
    tpu.vector_store %arg14[%c0_211, %c0_212], %164 {strides = array<i32>} : memref<256x8xf32, #tpu.memory_space<vmem>>, vector<256x8xf32>,
    %c0_213 = arith.constant 0 : index
    %c9_214 = arith.constant 9 : index
    %c0_215 = arith.constant 0 : index
    %166 = vector.load %arg13[%c0_213, %c9_214, %c0_215] : memref<18x25x8xf32, #tpu.memory_space<vmem>>, vector<16x16x8xf32>
    %167 = vector.shape_cast %166 : vector<16x16x8xf32> to vector<256x8xf32>
    %c0_216 = arith.constant 0 : index
    %c0_217 = arith.constant 0 : index
    %168 = vector.load %arg14[%c0_216, %c0_217] : memref<256x8xf32, #tpu.memory_space<vmem>>, vector<256x8xf32>
    %c2_218 = arith.constant 2 : index
    %c0_219 = arith.constant 0 : index
    %c0_220 = arith.constant 0 : index
    %169 = vector.load %arg6[%c2_218, %c0_219, %c0_220] : memref<9x8x8xf32, #tpu.memory_space<vmem>>, vector<1x8x8xf32>
    %170 = vector.shape_cast %169 : vector<1x8x8xf32> to vector<8x8xf32>
    %cst_221 = arith.constant dense<0.000000e+00> : vector<256x8xf32>
    %171 = tpu.matmul %167, %170, %cst_221 {dimension_numbers = #tpu.dot_dimension_numbers<[1], [0], [0], [1], [0, 0, 1, 1], [], []>} : vector<256x8xf32>, vector<8x8xf32>, vector<256x8xf32> -> vector<256x8xf32>
    %172 = arith.addf %168, %171 : vector<256x8xf32>
    %c0_222 = arith.constant 0 : index
    %c0_223 = arith.constant 0 : index
    %173 = vector.load %arg14[%c0_222, %c0_223] : memref<256x8xf32, #tpu.memory_space<vmem>>, vector<256x8xf32>
    tpu.vector_store %arg14[%c0_222, %c0_223], %172 {strides = array<i32>} : memref<256x8xf32, #tpu.memory_space<vmem>>, vector<256x8xf32>,
    %c1_224 = arith.constant 1 : index
    %c7_225 = arith.constant 7 : index
    %c0_226 = arith.constant 0 : index
    %174 = vector.load %arg13[%c1_224, %c7_225, %c0_226] : memref<18x25x8xf32, #tpu.memory_space<vmem>>, vector<16x16x8xf32>
    %175 = vector.shape_cast %174 : vector<16x16x8xf32> to vector<256x8xf32>
    %c0_227 = arith.constant 0 : index
    %c0_228 = arith.constant 0 : index
    %176 = vector.load %arg14[%c0_227, %c0_228] : memref<256x8xf32, #tpu.memory_space<vmem>>, vector<256x8xf32>
    %c3_229 = arith.constant 3 : index
    %c0_230 = arith.constant 0 : index
    %c0_231 = arith.constant 0 : index
    %177 = vector.load %arg6[%c3_229, %c0_230, %c0_231] : memref<9x8x8xf32, #tpu.memory_space<vmem>>, vector<1x8x8xf32>
    %178 = vector.shape_cast %177 : vector<1x8x8xf32> to vector<8x8xf32>
    %cst_232 = arith.constant dense<0.000000e+00> : vector<256x8xf32>
    %179 = tpu.matmul %175, %178, %cst_232 {dimension_numbers = #tpu.dot_dimension_numbers<[1], [0], [0], [1], [0, 0, 1, 1], [], []>} : vector<256x8xf32>, vector<8x8xf32>, vector<256x8xf32> -> vector<256x8xf32>
    %180 = arith.addf %176, %179 : vector<256x8xf32>
    %c0_233 = arith.constant 0 : index
    %c0_234 = arith.constant 0 : index
    %181 = vector.load %arg14[%c0_233, %c0_234] : memref<256x8xf32, #tpu.memory_space<vmem>>, vector<256x8xf32>
    tpu.vector_store %arg14[%c0_233, %c0_234], %180 {strides = array<i32>} : memref<256x8xf32, #tpu.memory_space<vmem>>, vector<256x8xf32>,
    %c1_235 = arith.constant 1 : index
    %c8_236 = arith.constant 8 : index
    %c0_237 = arith.constant 0 : index
    %182 = vector.load %arg13[%c1_235, %c8_236, %c0_237] : memref<18x25x8xf32, #tpu.memory_space<vmem>>, vector<16x16x8xf32>
    %183 = vector.shape_cast %182 : vector<16x16x8xf32> to vector<256x8xf32>
    %c0_238 = arith.constant 0 : index
    %c0_239 = arith.constant 0 : index
    %184 = vector.load %arg14[%c0_238, %c0_239] : memref<256x8xf32, #tpu.memory_space<vmem>>, vector<256x8xf32>
    %c4_240 = arith.constant 4 : index
    %c0_241 = arith.constant 0 : index
    %c0_242 = arith.constant 0 : index
    %185 = vector.load %arg6[%c4_240, %c0_241, %c0_242] : memref<9x8x8xf32, #tpu.memory_space<vmem>>, vector<1x8x8xf32>
    %186 = vector.shape_cast %185 : vector<1x8x8xf32> to vector<8x8xf32>
    %cst_243 = arith.constant dense<0.000000e+00> : vector<256x8xf32>
    %187 = tpu.matmul %183, %186, %cst_243 {dimension_numbers = #tpu.dot_dimension_numbers<[1], [0], [0], [1], [0, 0, 1, 1], [], []>} : vector<256x8xf32>, vector<8x8xf32>, vector<256x8xf32> -> vector<256x8xf32>
    %188 = arith.addf %184, %187 : vector<256x8xf32>
    %c0_244 = arith.constant 0 : index
    %c0_245 = arith.constant 0 : index
    %189 = vector.load %arg14[%c0_244, %c0_245] : memref<256x8xf32, #tpu.memory_space<vmem>>, vector<256x8xf32>
    tpu.vector_store %arg14[%c0_244, %c0_245], %188 {strides = array<i32>} : memref<256x8xf32, #tpu.memory_space<vmem>>, vector<256x8xf32>,
    %c1_246 = arith.constant 1 : index
    %c9_247 = arith.constant 9 : index
    %c0_248 = arith.constant 0 : index
    %190 = vector.load %arg13[%c1_246, %c9_247, %c0_248] : memref<18x25x8xf32, #tpu.memory_space<vmem>>, vector<16x16x8xf32>
    %191 = vector.shape_cast %190 : vector<16x16x8xf32> to vector<256x8xf32>
    %c0_249 = arith.constant 0 : index
    %c0_250 = arith.constant 0 : index
    %192 = vector.load %arg14[%c0_249, %c0_250] : memref<256x8xf32, #tpu.memory_space<vmem>>, vector<256x8xf32>
    %c5_251 = arith.constant 5 : index
    %c0_252 = arith.constant 0 : index
    %c0_253 = arith.constant 0 : index
    %193 = vector.load %arg6[%c5_251, %c0_252, %c0_253] : memref<9x8x8xf32, #tpu.memory_space<vmem>>, vector<1x8x8xf32>
    %194 = vector.shape_cast %193 : vector<1x8x8xf32> to vector<8x8xf32>
    %cst_254 = arith.constant dense<0.000000e+00> : vector<256x8xf32>
    %195 = tpu.matmul %191, %194, %cst_254 {dimension_numbers = #tpu.dot_dimension_numbers<[1], [0], [0], [1], [0, 0, 1, 1], [], []>} : vector<256x8xf32>, vector<8x8xf32>, vector<256x8xf32> -> vector<256x8xf32>
    %196 = arith.addf %192, %195 : vector<256x8xf32>
    %c0_255 = arith.constant 0 : index
    %c0_256 = arith.constant 0 : index
    %197 = vector.load %arg14[%c0_255, %c0_256] : memref<256x8xf32, #tpu.memory_space<vmem>>, vector<256x8xf32>
    tpu.vector_store %arg14[%c0_255, %c0_256], %196 {strides = array<i32>} : memref<256x8xf32, #tpu.memory_space<vmem>>, vector<256x8xf32>,
    %c2_257 = arith.constant 2 : index
    %c7_258 = arith.constant 7 : index
    %c0_259 = arith.constant 0 : index
    %198 = vector.load %arg13[%c2_257, %c7_258, %c0_259] : memref<18x25x8xf32, #tpu.memory_space<vmem>>, vector<16x16x8xf32>
    %199 = vector.shape_cast %198 : vector<16x16x8xf32> to vector<256x8xf32>
    %c0_260 = arith.constant 0 : index
    %c0_261 = arith.constant 0 : index
    %200 = vector.load %arg14[%c0_260, %c0_261] : memref<256x8xf32, #tpu.memory_space<vmem>>, vector<256x8xf32>
    %c6_262 = arith.constant 6 : index
    %c0_263 = arith.constant 0 : index
    %c0_264 = arith.constant 0 : index
    %201 = vector.load %arg6[%c6_262, %c0_263, %c0_264] : memref<9x8x8xf32, #tpu.memory_space<vmem>>, vector<1x8x8xf32>
    %202 = vector.shape_cast %201 : vector<1x8x8xf32> to vector<8x8xf32>
    %cst_265 = arith.constant dense<0.000000e+00> : vector<256x8xf32>
    %203 = tpu.matmul %199, %202, %cst_265 {dimension_numbers = #tpu.dot_dimension_numbers<[1], [0], [0], [1], [0, 0, 1, 1], [], []>} : vector<256x8xf32>, vector<8x8xf32>, vector<256x8xf32> -> vector<256x8xf32>
    %204 = arith.addf %200, %203 : vector<256x8xf32>
    %c0_266 = arith.constant 0 : index
    %c0_267 = arith.constant 0 : index
    %205 = vector.load %arg14[%c0_266, %c0_267] : memref<256x8xf32, #tpu.memory_space<vmem>>, vector<256x8xf32>
    tpu.vector_store %arg14[%c0_266, %c0_267], %204 {strides = array<i32>} : memref<256x8xf32, #tpu.memory_space<vmem>>, vector<256x8xf32>,
    %c2_268 = arith.constant 2 : index
    %c8_269 = arith.constant 8 : index
    %c0_270 = arith.constant 0 : index
    %206 = vector.load %arg13[%c2_268, %c8_269, %c0_270] : memref<18x25x8xf32, #tpu.memory_space<vmem>>, vector<16x16x8xf32>
    %207 = vector.shape_cast %206 : vector<16x16x8xf32> to vector<256x8xf32>
    %c0_271 = arith.constant 0 : index
    %c0_272 = arith.constant 0 : index
    %208 = vector.load %arg14[%c0_271, %c0_272] : memref<256x8xf32, #tpu.memory_space<vmem>>, vector<256x8xf32>
    %c7_273 = arith.constant 7 : index
    %c0_274 = arith.constant 0 : index
    %c0_275 = arith.constant 0 : index
    %209 = vector.load %arg6[%c7_273, %c0_274, %c0_275] : memref<9x8x8xf32, #tpu.memory_space<vmem>>, vector<1x8x8xf32>
    %210 = vector.shape_cast %209 : vector<1x8x8xf32> to vector<8x8xf32>
    %cst_276 = arith.constant dense<0.000000e+00> : vector<256x8xf32>
    %211 = tpu.matmul %207, %210, %cst_276 {dimension_numbers = #tpu.dot_dimension_numbers<[1], [0], [0], [1], [0, 0, 1, 1], [], []>} : vector<256x8xf32>, vector<8x8xf32>, vector<256x8xf32> -> vector<256x8xf32>
    %212 = arith.addf %208, %211 : vector<256x8xf32>
    %c0_277 = arith.constant 0 : index
    %c0_278 = arith.constant 0 : index
    %213 = vector.load %arg14[%c0_277, %c0_278] : memref<256x8xf32, #tpu.memory_space<vmem>>, vector<256x8xf32>
    tpu.vector_store %arg14[%c0_277, %c0_278], %212 {strides = array<i32>} : memref<256x8xf32, #tpu.memory_space<vmem>>, vector<256x8xf32>,
    %c2_279 = arith.constant 2 : index
    %c9_280 = arith.constant 9 : index
    %c0_281 = arith.constant 0 : index
    %214 = vector.load %arg13[%c2_279, %c9_280, %c0_281] : memref<18x25x8xf32, #tpu.memory_space<vmem>>, vector<16x16x8xf32>
    %215 = vector.shape_cast %214 : vector<16x16x8xf32> to vector<256x8xf32>
    %c0_282 = arith.constant 0 : index
    %c0_283 = arith.constant 0 : index
    %216 = vector.load %arg14[%c0_282, %c0_283] : memref<256x8xf32, #tpu.memory_space<vmem>>, vector<256x8xf32>
    %c8_284 = arith.constant 8 : index
    %c0_285 = arith.constant 0 : index
    %c0_286 = arith.constant 0 : index
    %217 = vector.load %arg6[%c8_284, %c0_285, %c0_286] : memref<9x8x8xf32, #tpu.memory_space<vmem>>, vector<1x8x8xf32>
    %218 = vector.shape_cast %217 : vector<1x8x8xf32> to vector<8x8xf32>
    %cst_287 = arith.constant dense<0.000000e+00> : vector<256x8xf32>
    %219 = tpu.matmul %215, %218, %cst_287 {dimension_numbers = #tpu.dot_dimension_numbers<[1], [0], [0], [1], [0, 0, 1, 1], [], []>} : vector<256x8xf32>, vector<8x8xf32>, vector<256x8xf32> -> vector<256x8xf32>
    %220 = arith.addf %216, %219 : vector<256x8xf32>
    %c0_288 = arith.constant 0 : index
    %c0_289 = arith.constant 0 : index
    %221 = vector.load %arg14[%c0_288, %c0_289] : memref<256x8xf32, #tpu.memory_space<vmem>>, vector<256x8xf32>
    tpu.vector_store %arg14[%c0_288, %c0_289], %220 {strides = array<i32>} : memref<256x8xf32, #tpu.memory_space<vmem>>, vector<256x8xf32>,
    %c0_290 = arith.constant 0 : index
    %c0_291 = arith.constant 0 : index
    %222 = vector.load %arg14[%c0_290, %c0_291] : memref<256x8xf32, #tpu.memory_space<vmem>>, vector<256x8xf32>
    %c0_292 = arith.constant 0 : index
    %c0_293 = arith.constant 0 : index
    %223 = vector.load %arg7[%c0_292, %c0_293] : memref<1x8xf32, #tpu.memory_space<vmem>>, vector<1x8xf32>
    %224 = vector.broadcast %223 : vector<1x8xf32> to vector<256x8xf32>
    %225 = arith.addf %222, %224 : vector<256x8xf32>
    %cst_294 = arith.constant 0.000000e+00 : f32
    %226 = vector.broadcast %cst_294 : f32 to vector<256x8xf32>
    %227 = arith.maximumf %225, %226 : vector<256x8xf32>
    %c0_295 = arith.constant 0 : index
    %c0_296 = arith.constant 0 : index
    %228 = vector.load %arg8[%c0_295, %c0_296] : memref<8x32xf32, #tpu.memory_space<vmem>>, vector<8x32xf32>
    %cst_297 = arith.constant dense<0.000000e+00> : vector<256x32xf32>
    %229 = tpu.matmul %227, %228, %cst_297 {dimension_numbers = #tpu.dot_dimension_numbers<[1], [0], [0], [1], [0, 0, 1, 1], [], []>} : vector<256x8xf32>, vector<8x32xf32>, vector<256x32xf32> -> vector<256x32xf32>
    %c0_298 = arith.constant 0 : index
    %c0_299 = arith.constant 0 : index
    %230 = vector.load %arg9[%c0_298, %c0_299] : memref<1x32xf32, #tpu.memory_space<vmem>>, vector<1x32xf32>
    %231 = vector.broadcast %230 : vector<1x32xf32> to vector<256x32xf32>
    %232 = arith.addf %229, %231 : vector<256x32xf32>
    %cst_300 = arith.constant 0.000000e+00 : f32
    %233 = vector.broadcast %cst_300 : f32 to vector<256x32xf32>
    %234 = arith.maximumf %232, %233 : vector<256x32xf32>
    %235 = vector.shape_cast %234 : vector<256x32xf32> to vector<16x16x32xf32>
    %c0_301 = arith.constant 0 : index
    %c0_302 = arith.constant 0 : index
    %c0_303 = arith.constant 0 : index
    %c0_304 = arith.constant 0 : index
    %236 = vector.load %arg10[%c0_301, %c0_302, %c0_303, %c0_304] : memref<1x16x16x32xf32, #tpu.memory_space<vmem>>, vector<1x16x16x32xf32>
    %237 = vector.shape_cast %236 : vector<1x16x16x32xf32> to vector<16x16x32xf32>
    %238 = vector.shape_cast %235 : vector<16x16x32xf32> to vector<1x16x16x32xf32>
    tpu.vector_store %arg10[%c0_301, %c0_302, %c0_303, %c0_304], %238 {strides = array<i32>} : memref<1x16x16x32xf32, #tpu.memory_space<vmem>>, vector<1x16x16x32xf32>,
    return
  }
  func.func @transform_0(%arg0: i32) -> (i32, i32, i32, i32) {
    %c0_i32 = arith.constant 0 : i32
    %c0_i32_0 = arith.constant 0 : i32
    %c0_i32_1 = arith.constant 0 : i32
    %c0_i32_2 = arith.constant 0 : i32
    return %arg0, %c0_i32, %c0_i32_0, %c0_i32_1 : i32, i32, i32, i32
  }
  func.func @transform_1(%arg0: i32) -> (i32, i32, i32, i32) {
    %c0_i32 = arith.constant 0 : i32
    %c0_i32_0 = arith.constant 0 : i32
    %c0_i32_1 = arith.constant 0 : i32
    %c0_i32_2 = arith.constant 0 : i32
    return %arg0, %c0_i32, %c0_i32_0, %c0_i32_1 : i32, i32, i32, i32
  }
  func.func @transform_2(%arg0: i32) -> (i32, i32, i32) {
    %c0_i32 = arith.constant 0 : i32
    %c0_i32_0 = arith.constant 0 : i32
    %c0_i32_1 = arith.constant 0 : i32
    %c0_i32_2 = arith.constant 0 : i32
    return %c0_i32, %c0_i32_0, %c0_i32_1 : i32, i32, i32
  }
  func.func @transform_3(%arg0: i32) -> (i32, i32, i32) {
    %c0_i32 = arith.constant 0 : i32
    %c0_i32_0 = arith.constant 0 : i32
    %c0_i32_1 = arith.constant 0 : i32
    %c0_i32_2 = arith.constant 0 : i32
    return %c0_i32, %c0_i32_0, %c0_i32_1 : i32, i32, i32
  }
  func.func @transform_4(%arg0: i32) -> (i32, i32) {
    %c0_i32 = arith.constant 0 : i32
    %c0_i32_0 = arith.constant 0 : i32
    %c0_i32_1 = arith.constant 0 : i32
    return %c0_i32, %c0_i32_0 : i32, i32
  }
  func.func @transform_5(%arg0: i32) -> (i32, i32, i32) {
    %c0_i32 = arith.constant 0 : i32
    %c0_i32_0 = arith.constant 0 : i32
    %c0_i32_1 = arith.constant 0 : i32
    %c0_i32_2 = arith.constant 0 : i32
    return %c0_i32, %c0_i32_0, %c0_i32_1 : i32, i32, i32
  }
  func.func @transform_6(%arg0: i32) -> (i32, i32) {
    %c0_i32 = arith.constant 0 : i32
    %c0_i32_0 = arith.constant 0 : i32
    %c0_i32_1 = arith.constant 0 : i32
    return %c0_i32, %c0_i32_0 : i32, i32
  }
  func.func @transform_7(%arg0: i32) -> (i32, i32) {
    %c0_i32 = arith.constant 0 : i32
    %c0_i32_0 = arith.constant 0 : i32
    %c0_i32_1 = arith.constant 0 : i32
    return %c0_i32, %c0_i32_0 : i32, i32
  }
  func.func @transform_8(%arg0: i32) -> (i32, i32) {
    %c0_i32 = arith.constant 0 : i32
    %c0_i32_0 = arith.constant 0 : i32
    %c0_i32_1 = arith.constant 0 : i32
    return %c0_i32, %c0_i32_0 : i32, i32
  }
  func.func @transform_9(%arg0: i32) -> (i32, i32, i32, i32) {
    %c0_i32 = arith.constant 0 : i32
    %c0_i32_0 = arith.constant 0 : i32
    %c0_i32_1 = arith.constant 0 : i32
    %c0_i32_2 = arith.constant 0 : i32
    return %arg0, %c0_i32, %c0_i32_0, %c0_i32_1 : i32, i32, i32, i32
  }
}

</mosaic_0001>

<bundles_post_ra>
// kernel: tile.9
= control target key start
LH: loop header
LB: loop body
LE: loop exit
PB: predicated region body
PF: predicated region fallthrough
CT: control target
= control target key end

     0   :  { %vm8_vm0 = vcmask 64512   ;;  %s40_s8 = smov 8   ;;  %s41_s9 = smov 16   ;;  %vm14_vm1 = vcmask 261312   ;;  %vm20_vm2 = vcmask 195712   ;;  %vm26_vm3 = vcmask 130112   ;;  %s58_s0 = inlined_call_operand.vmem [shape: f32[4,8], index: 0, kind: input, shape index: {}]   ;;  %s59_s1 = inlined_call_operand.vmem [shape: f32[1,32], index: 1, kind: output, shape index: {}]  }
   0x1   :  { %v5_v0 = vld [vmem:[%s58_s0] sm:$0xf]  ;;  %s39_s0 = smov 24  }
   0x2   :  { %6 = vst [vmem:[#allocation1] sm:$0xf] %v5_v0 }
   0x9   :  { %v11_v1 = vld [vmem:[#allocation1 + $0x3] sm:$0x1]   ;;  %v23_v2 = vld [vmem:[#allocation1 + $0x1] sm:$0x1]   ;;  %v7_v3 = vld [vmem:[#allocation1] sm:$0x1]  }
   0xa   :  { %12 = vrot.lane.b32.xlu0 %v11_v1, %s39_s0  ;;  %24 = vrot.lane.b32.xlu1 %v23_v2, %s40_s8  ;;  %v17_v4 = vld [vmem:[#allocation1 + $0x2] sm:$0x1]   ;;  %9 = vst.msk [vmem:[#allocation0] sm:$0x1] %vm8_vm0, %v7_v3  }
   0xe   :  { %18 = vrot.lane.b32.xlu0 %v17_v4, %s41_s9 }
  0x7c   :  { %v13_v5 = vpop.permute.xlu0 %12   ;;  %v25_v6 = vpop.permute.xlu1 %24  }
  0x7d   :  { %15 = vst.msk [vmem:[#allocation0] sm:$0x1] %vm14_vm1, %v13_v5  }
  0x80   :  { %v19_v7 = vpop.permute.xlu0 %18  }
  0x81   :  { %21 = vst.msk [vmem:[#allocation0] sm:$0x1] %vm20_vm2, %v19_v7  }
  0x82   :  { %27 = vst.msk [vmem:[#allocation0] sm:$0x1] %vm26_vm3, %v25_v6  }
  0x89   :  { %v32_v8 = vld [vmem:[#allocation0] sm:$0x1] }
  0x8a   :  { %35 = vst [vmem:[%s59_s1] sm:$0x1] %v32_v8 }

// kernel: tile.8
= control target key start
LH: loop header
LB: loop body
LE: loop exit
PB: predicated region body
PF: predicated region fallthrough
CT: control target
= control target key end

     0   :  { %2 = vsyncpa [#allocation1], 0  ;;  %s42_s6 = smov [#allocation0]   ;;  %s59_s0 = inlined_call_operand.hbm [shape: f32[8], index: 0, kind: input, shape index: {}]   ;;  %s60_s1 = inlined_call_operand.vmem [shape: f32[4,8], index: 1, kind: output, shape index: {}]  }
   0x1   :  { %s9_s7 = sshll.u32 %s42_s6, 4  ;;  %s10_s7 = int_to_ptr.vmem [resolvable:$true] %s9_s7 }
   0x2   :  { %s28_s8 = scalar_lea.vmem %s10_s7, 16  ;;  %s32_s9 = scalar_lea.vmem %s10_s7, 32 }
   0x3   :  { %p29_p0 = scmp.ne.s32.totalorder %s10_s7, %s28_s8  ;;  %p33_p1 = scmp.lt.s32.totalorder %s10_s7, %s10_s7 }
   0x4   :  { %p34_p2 = scmp.lt.s32.totalorder %s32_s9, %s28_s8 }
   0x6   :  { %p35_p3 = por %p34_p2, %p33_p1 }
   0x8   :  { %p36_p4 = pnand %p35_p3, %p29_p0 }
   0xa   :  { %39 = shalt.err (!%p36_p4)
}
   0xb   :  { %12 = dma.hbm_to_vmem [thread:$0]  %s59_s0, 16, %s10_s7, [#allocation1]  }
   0xc   :  { %40 = dma.done.wait [#allocation1], 16  }
   0xd   :  { %41 = vsyncadd [#allocation1], 4294967280  ;;  %v16_v0 = vld [vmem:[#allocation0] ss:$0 sm:$0xff] }
   0xe   :  { %17 = vst [vmem:[%s60_s1] sm:$0xf] %v16_v0 }
   0xf   :  { %18 = vsyncpa [#allocation1], 1 }

// kernel: my_up_conv_forward.1
= control target key start
LH: loop header
LB: loop body
LE: loop exit
PB: predicated region body
PF: predicated region fallthrough
CT: control target
= control target key end

     0   :  { %s16185_s30 = smov 0   ;;  %s19236_s0 = inlined_call_operand.vmem [shape: f32[2,16,16,4], index: 0, kind: input, shape index: {}]   ;;  %s19237_s1 = inlined_call_operand.vmem [shape: f32[2,16,16,4], index: 1, kind: input, shape index: {}]   ;;  %s19238_s2 = inlined_call_operand.vmem [shape: f32[9,4,8], index: 2, kind: input, shape index: {}]   ;;  %s19239_s3 = inlined_call_operand.vmem [shape: f32[9,4,8], index: 3, kind: input, shape index: {}]   ;;  %s19240_s4 = inlined_call_operand.vmem [shape: f32[1,8], index: 4, kind: input, shape index: {}]   ;;  %s19241_s5 = inlined_call_operand.vmem [shape: f32[9,8,8], index: 5, kind: input, shape index: {}]   ;;  %s19242_s6 = inlined_call_operand.vmem [shape: f32[1,8], index: 6, kind: input, shape index: {}]   ;;  %s19243_s7 = inlined_call_operand.vmem [shape: f32[8,32], index: 7, kind: input, shape index: {}]   ;;  %s19244_s8 = inlined_call_operand.vmem [shape: f32[1,32], index: 8, kind: input, shape index: {}]   ;;  %s19245_s9 = inlined_call_operand.vmem [shape: f32[2,16,16,32], index: 9, kind: output, shape index: {}]  }
   0x1 LB: > { %s12835_s10 = sadd.s32 4294967295, %s16132_s30   ;;  %p12839_p0 = scmp.ge.s32.totalorder %s16132_s30, 1  ;;  %s16132_s30 = sphi %s16185_s30, %s19_s30  }
   0x2   : > { %p297_p1 = scmp.lt.s32.totalorder %s16132_s30, 3 }
   0x4   : > { %p298_p2 = pnand %p12839_p0, %p297_p1 }
   0x6   : > { %301 = sbr.rel (%p298_p2) target bundleno = 1546 (0x60a), region = 56 }
   0xb   : > { %v759_v0 = vld [vmem:[%s19239_s3] sm:$0xf]  ;;  %vm856_vm0 = vcmask 1043456   ;;  %vm353_vm1 = vcmask 31744   ;;  %v16207_v2 = vld [vmem:[%s19239_s3 + $0x4] sm:$0xf] }
   0xc   : > { %v16199_v1 = vld [vmem:[%s19238_s2] sm:$0xf]  ;;  %14716 = vmatprep.subr.msk.mxu0 %vm856_vm0, %v759_v0  ;;  %v16212_v3 = vld [vmem:[%s19238_s2 + $0x4] sm:$0xf]  ;;  %p16216_p3 = scmp.lt.s32.totalorder %s12835_s10, 1  ;;  %v16134_v4 = vmov 0.0  }
   0xd   : > { %14766 = vmatprep.subr.msk.mxu1 %vm856_vm0, %v16199_v1  ;;  %14717 = vmatpush3.msk.msra.mxu0 %vm856_vm0, %v759_v0  ;;  %427 = vst.msk [vmem:[#allocation3] sm:$0xff] %vm353_vm1, %v16134_v4  ;;  %428 = vst.msk [vmem:[#allocation3 + $0x8] sm:$0xff] %vm353_vm1, %v16134_v4  ;;  %vm357_vm2 = vcmask 24576   ;;  %v16545_v11 = vld [vmem:[%s19239_s3 + $0x8] sm:$0xf]  ;;  %vm629_vm3 = vcmask 64512  }
   0xe   : > { %354 = vst.msk [vmem:[#allocation2] sm:$0xff] %vm353_vm1, %v16134_v4  ;;  %355 = vst.msk [vmem:[#allocation2 + $0x8] sm:$0xff] %vm353_vm1, %v16134_v4  ;;  %14767 = vmatpush3.msk.msra.mxu1 %vm856_vm0, %v16199_v1  ;;  %14816 = vmatprep.subr.msk.mxu0 %vm856_vm0, %v16207_v2  ;;  %s19263_s10 = smov (!%p16216_p3, %s12835_s10), 1  ;;  %v16550_v12 = vld [vmem:[%s19238_s2 + $0x8] sm:$0xf]  ;;  %vm8077_vm4 = vcmask 57344  }
   0xf   : > { %356 = vst.msk [vmem:[#allocation2 + $0x10] sm:$0xff] %vm353_vm1, %v16134_v4  ;;  %359 = vst.msk [vmem:[#allocation2 + $0x20] sm:$0xff] %vm353_vm1, %v16134_v4  ;;  %14866 = vmatprep.subr.msk.mxu1 %vm856_vm0, %v16212_v3  ;;  %s16447_s20 = sshll.u32 %s19263_s10, 8  ;;  %vm12735_vm5 = vcmask 261120  }
  0x10   : > { %360 = vst.msk [vmem:[#allocation2 + $0x28] sm:$0xff] %vm353_vm1, %v16134_v4  ;;  %361 = vst.msk [vmem:[#allocation2 + $0x30] sm:$0xff] %vm353_vm1, %v16134_v4  ;;  %s16525_s23 = scalar_lea.vmem %s19237_s1, %s16447_s20  ;;  %s16531_s26 = scalar_lea.vmem %s19236_s0, %s16447_s20 }
  0x11   : > { %363 = vst.msk [vmem:[#allocation2 + $0x40] sm:$0xff] %vm353_vm1, %v16134_v4  ;;  %364 = vst.msk [vmem:[#allocation2 + $0x48] sm:$0xff] %vm353_vm1, %v16134_v4  ;;  %v564_v5 = vld [vmem:[%s16525_s23] sm:$0xff]  ;;  %v565_v7 = vld [vmem:[%s16525_s23 + $0x8] sm:$0xff]  ;;  %s19136_s28 = scalar_lea.vmem %s19245_s9, %s16447_s20 }
  0x12   : > { %365 = vst.msk [vmem:[#allocation2 + $0x50] sm:$0xff] %vm353_vm1, %v16134_v4  ;;  %367 = vst.msk [vmem:[#allocation2 + $0x60] sm:$0xff] %vm353_vm1, %v16134_v4  ;;  %v499_v6 = vld [vmem:[%s16531_s26] sm:$0xff]  ;;  %v500_v8 = vld [vmem:[%s16531_s26 + $0x8] sm:$0xff] }
  0x13   : > { %368 = vst.msk [vmem:[#allocation2 + $0x68] sm:$0xff] %vm353_vm1, %v16134_v4  ;;  %369 = vst.msk [vmem:[#allocation2 + $0x70] sm:$0xff] %vm353_vm1, %v16134_v4  ;;  %v566_v9 = vld [vmem:[%s16525_s23 + $0x10] sm:$0xff]  ;;  %v567_v17 = vld [vmem:[%s16525_s23 + $0x18] sm:$0xff] }
  0x14   : > { %371 = vst.msk [vmem:[#allocation2 + $0x80] sm:$0xff] %vm353_vm1, %v16134_v4  ;;  %372 = vst.msk [vmem:[#allocation2 + $0x88] sm:$0xff] %vm353_vm1, %v16134_v4  ;;  %v501_v10 = vld [vmem:[%s16531_s26 + $0x10] sm:$0xff]  ;;  %v694_v13 = vld [vmem:[#allocation3 + $0x7] sm:$0xff] }
  0x15   : > { %373 = vst.msk [vmem:[#allocation2 + $0x90] sm:$0xff] %vm353_vm1, %v16134_v4  ;;  %375 = vst.msk [vmem:[#allocation2 + $0xa0] sm:$0xff] %vm353_vm1, %v16134_v4  ;;  %v662_v14 = vld [vmem:[#allocation2 + $0x7] sm:$0xff]  ;;  %14718 = vmatprep.mubr.msk.f32.mxu0 %vm353_vm1, %v694_v13  ;;  %v502_v18 = vld [vmem:[%s16531_s26 + $0x18] sm:$0xff] }
  0x16   : > { %376 = vst.msk [vmem:[#allocation2 + $0xa8] sm:$0xff] %vm353_vm1, %v16134_v4  ;;  %377 = vst.msk [vmem:[#allocation2 + $0xb0] sm:$0xff] %vm353_vm1, %v16134_v4  ;;  %14768 = vmatprep.mubr.msk.f32.mxu1 %vm353_vm1, %v662_v14  ;;  %v663_v16 = vld [vmem:[#allocation2 + $0xf] sm:$0xff]  ;;  %v568_v19 = vld [vmem:[%s16525_s23 + $0x20] sm:$0xff] }
  0x17   : > { %379 = vst.msk [vmem:[#allocation2 + $0xc0] sm:$0xff] %vm353_vm1, %v16134_v4  ;;  %380 = vst.msk [vmem:[#allocation2 + $0xc8] sm:$0xff] %vm353_vm1, %v16134_v4  ;;  %14769 = vmatmul.mubr.msk.f32.vlgmr.msra.gmra.mxu1 %vm353_vm1, %v663_v16  ;;  %v503_v20 = vld [vmem:[%s16531_s26 + $0x20] sm:$0xff]  ;;  %v569_v21 = vld [vmem:[%s16525_s23 + $0x28] sm:$0xff] }
  0x18   : > { %381 = vst.msk [vmem:[#allocation2 + $0xd0] sm:$0xff] %vm353_vm1, %v16134_v4  ;;  %383 = vst.msk [vmem:[#allocation2 + $0xe0] sm:$0xff] %vm353_vm1, %v16134_v4  ;;  %14867 = vmatpush3.msk.msra.mxu1 %vm856_vm0, %v16212_v3  ;;  %v504_v22 = vld [vmem:[%s16531_s26 + $0x28] sm:$0xff]  ;;  %v570_v23 = vld [vmem:[%s16525_s23 + $0x30] sm:$0xff] }
  0x19   : > { %384 = vst.msk [vmem:[#allocation2 + $0xe8] sm:$0xff] %vm353_vm1, %v16134_v4  ;;  %385 = vst.msk [vmem:[#allocation2 + $0xf0] sm:$0xff] %vm353_vm1, %v16134_v4  ;;  %v505_v24 = vld [vmem:[%s16531_s26 + $0x30] sm:$0xff]  ;;  %v571_v25 = vld [vmem:[%s16525_s23 + $0x38] sm:$0xff]  ;;  %14966 = vmatprep.subr.msk.mxu1 %vm856_vm0, %v16550_v12 }
  0x1a   : > { %387 = vst.msk [vmem:[#allocation2 + $0x100] sm:$0xff] %vm353_vm1, %v16134_v4  ;;  %388 = vst.msk [vmem:[#allocation2 + $0x108] sm:$0xff] %vm353_vm1, %v16134_v4  ;;  %v506_v26 = vld [vmem:[%s16531_s26 + $0x38] sm:$0xff]  ;;  %v572_v27 = vld [vmem:[%s16525_s23 + $0x40] sm:$0xff] }
  0x1b   : > { %389 = vst.msk [vmem:[#allocation2 + $0x110] sm:$0xff] %vm353_vm1, %v16134_v4  ;;  %391 = vst.msk [vmem:[#allocation2 + $0x120] sm:$0xff] %vm353_vm1, %v16134_v4  ;;  %v507_v28 = vld [vmem:[%s16531_s26 + $0x40] sm:$0xff]  ;;  %v573_v29 = vld [vmem:[%s16525_s23 + $0x48] sm:$0xff] }
  0x1c   : > { %392 = vst.msk [vmem:[#allocation2 + $0x128] sm:$0xff] %vm353_vm1, %v16134_v4  ;;  %393 = vst.msk [vmem:[#allocation2 + $0x130] sm:$0xff] %vm353_vm1, %v16134_v4  ;;  %v508_v30 = vld [vmem:[%s16531_s26 + $0x48] sm:$0xff]  ;;  %v574_v37 = vld [vmem:[%s16525_s23 + $0x50] sm:$0xff] }
  0x1d   : > { %395 = vst.msk [vmem:[#allocation2 + $0x140] sm:$0xff] %vm353_vm1, %v16134_v4  ;;  %396 = vst.msk [vmem:[#allocation2 + $0x148] sm:$0xff] %vm353_vm1, %v16134_v4  ;;  %v509_v38 = vld [vmem:[%s16531_s26 + $0x50] sm:$0xff]  ;;  %v575_v39 = vld [vmem:[%s16525_s23 + $0x58] sm:$0xff] }
  0x1e   : > { %397 = vst.msk [vmem:[#allocation2 + $0x150] sm:$0xff] %vm353_vm1, %v16134_v4  ;;  %399 = vst.msk [vmem:[#allocation2 + $0x160] sm:$0xff] %vm353_vm1, %v16134_v4  ;;  %v510_v42 = vld [vmem:[%s16531_s26 + $0x58] sm:$0xff]  ;;  %v576_v49 = vld [vmem:[%s16525_s23 + $0x60] sm:$0xff] }
  0x1f   : > { %400 = vst.msk [vmem:[#allocation2 + $0x168] sm:$0xff] %vm353_vm1, %v16134_v4  ;;  %401 = vst.msk [vmem:[#allocation2 + $0x170] sm:$0xff] %vm353_vm1, %v16134_v4  ;;  %v511_v50 = vld [vmem:[%s16531_s26 + $0x60] sm:$0xff]  ;;  %v577_v51 = vld [vmem:[%s16525_s23 + $0x68] sm:$0xff] }
  0x20   : > { %403 = vst.msk [vmem:[#allocation2 + $0x180] sm:$0xff] %vm353_vm1, %v16134_v4  ;;  %404 = vst.msk [vmem:[#allocation2 + $0x188] sm:$0xff] %vm353_vm1, %v16134_v4  ;;  %v512_v52 = vld [vmem:[%s16531_s26 + $0x68] sm:$0xff]  ;;  %v578_v53 = vld [vmem:[%s16525_s23 + $0x70] sm:$0xff] }
  0x21   : > { %405 = vst.msk [vmem:[#allocation2 + $0x190] sm:$0xff] %vm353_vm1, %v16134_v4  ;;  %407 = vst.msk [vmem:[#allocation2 + $0x1a0] sm:$0xff] %vm353_vm1, %v16134_v4  ;;  %v513_v54 = vld [vmem:[%s16531_s26 + $0x70] sm:$0xff]  ;;  %v579_v59 = vld [vmem:[%s16525_s23 + $0x78] sm:$0xff] }
  0x22   : > { %408 = vst.msk [vmem:[#allocation2 + $0x1a8] sm:$0xff] %vm353_vm1, %v16134_v4  ;;  %409 = vst.msk [vmem:[#allocation2 + $0x1b0] sm:$0xff] %vm353_vm1, %v16134_v4  ;;  %v514_v60 = vld [vmem:[%s16531_s26 + $0x78] sm:$0xff]  ;;  %v580_v61 = vld [vmem:[%s16525_s23 + $0x80] sm:$0xff] }
  0x23   : > { %411 = vst.msk [vmem:[#allocation2 + $0x1c0] sm:$0xff] %vm353_vm1, %v16134_v4  ;;  %412 = vst.msk [vmem:[#allocation2 + $0x1c8] sm:$0xff] %vm353_vm1, %v16134_v4  ;;  %v515_v62 = vld [vmem:[%s16531_s26 + $0x80] sm:$0xff]  ;;  %v581_v63 = vld [vmem:[%s16525_s23 + $0x88] sm:$0xff] }
  0x24   : > { %413 = vst.msk [vmem:[#allocation2 + $0x1d0] sm:$0xff] %vm353_vm1, %v16134_v4  ;;  %415 = vst.msk [vmem:[#allocation2 + $0x1e0] sm:$0xff] %vm353_vm1, %v16134_v4  ;;  %v582_v3 = vld [vmem:[%s16525_s23 + $0x90] sm:$0xff]  ;;  %v520_v13 = vld [vmem:[%s16531_s26 + $0xa8] sm:$0xff] }
  0x25   : > { %416 = vst.msk [vmem:[#allocation2 + $0x1e8] sm:$0xff] %vm353_vm1, %v16134_v4  ;;  %417 = vst.msk [vmem:[#allocation2 + $0x1f0] sm:$0xff] %vm353_vm1, %v16134_v4  ;;  %v586_v16 = vld [vmem:[%s16525_s23 + $0xb0] sm:$0xff] }
  0x26   : > { %419 = vst.msk [vmem:[#allocation2 + $0x200] sm:$0xff] %vm353_vm1, %v16134_v4  ;;  %420 = vst.msk [vmem:[#allocation2 + $0x208] sm:$0xff] %vm353_vm1, %v16134_v4 }
  0x27   : > { %421 = vst.msk [vmem:[#allocation2 + $0x210] sm:$0xff] %vm353_vm1, %v16134_v4  ;;  %423 = vst.msk [vmem:[#allocation2 + $0x220] sm:$0xff] %vm353_vm1, %v16134_v4 }
  0x28   : > { %424 = vst.msk [vmem:[#allocation2 + $0x228] sm:$0xff] %vm353_vm1, %v16134_v4  ;;  %425 = vst.msk [vmem:[#allocation2 + $0x230] sm:$0xff] %vm353_vm1, %v16134_v4 }
  0x29   : > { %429 = vst.msk [vmem:[#allocation3 + $0x10] sm:$0xff] %vm353_vm1, %v16134_v4  ;;  %431 = vst.msk [vmem:[#allocation3 + $0x20] sm:$0xff] %vm353_vm1, %v16134_v4 }
  0x2a   : > { %432 = vst.msk [vmem:[#allocation3 + $0x28] sm:$0xff] %vm353_vm1, %v16134_v4  ;;  %433 = vst.msk [vmem:[#allocation3 + $0x30] sm:$0xff] %vm353_vm1, %v16134_v4 }
  0x2b   : > { %435 = vst.msk [vmem:[#allocation3 + $0x40] sm:$0xff] %vm353_vm1, %v16134_v4  ;;  %436 = vst.msk [vmem:[#allocation3 + $0x48] sm:$0xff] %vm353_vm1, %v16134_v4 }
  0x2c   : > { %437 = vst.msk [vmem:[#allocation3 + $0x50] sm:$0xff] %vm353_vm1, %v16134_v4  ;;  %439 = vst.msk [vmem:[#allocation3 + $0x60] sm:$0xff] %vm353_vm1, %v16134_v4 }
  0x2d   : > { %440 = vst.msk [vmem:[#allocation3 + $0x68] sm:$0xff] %vm353_vm1, %v16134_v4  ;;  %441 = vst.msk [vmem:[#allocation3 + $0x70] sm:$0xff] %vm353_vm1, %v16134_v4 }
  0x2e   : > { %443 = vst.msk [vmem:[#allocation3 + $0x80] sm:$0xff] %vm353_vm1, %v16134_v4  ;;  %444 = vst.msk [vmem:[#allocation3 + $0x88] sm:$0xff] %vm353_vm1, %v16134_v4 }
  0x2f   : > { %445 = vst.msk [vmem:[#allocation3 + $0x90] sm:$0xff] %vm353_vm1, %v16134_v4  ;;  %447 = vst.msk [vmem:[#allocation3 + $0xa0] sm:$0xff] %vm353_vm1, %v16134_v4 }
  0x30   : > { %448 = vst.msk [vmem:[#allocation3 + $0xa8] sm:$0xff] %vm353_vm1, %v16134_v4  ;;  %449 = vst.msk [vmem:[#allocation3 + $0xb0] sm:$0xff] %vm353_vm1, %v16134_v4  ;;  %v695_v15 = vld [vmem:[#allocation3 + $0xf] sm:$0xff] }
  0x31   : > { %451 = vst.msk [vmem:[#allocation3 + $0xc0] sm:$0xff] %vm353_vm1, %v16134_v4  ;;  %452 = vst.msk [vmem:[#allocation3 + $0xc8] sm:$0xff] %vm353_vm1, %v16134_v4  ;;  %14719 = vmatmul.mubr.msk.f32.vlgmr.msra.gmra.mxu0 %vm353_vm1, %v695_v15 }
  0x32   : > { %453 = vst.msk [vmem:[#allocation3 + $0xd0] sm:$0xff] %vm353_vm1, %v16134_v4  ;;  %455 = vst.msk [vmem:[#allocation3 + $0xe0] sm:$0xff] %vm353_vm1, %v16134_v4  ;;  %14817 = vmatpush3.msk.msra.mxu0 %vm856_vm0, %v16207_v2  ;;  %v516_v2 = vld [vmem:[%s16531_s26 + $0x88] sm:$0xff] }
  0x33   : > { %456 = vst.msk [vmem:[#allocation3 + $0xe8] sm:$0xff] %vm353_vm1, %v16134_v4  ;;  %457 = vst.msk [vmem:[#allocation3 + $0xf0] sm:$0xff] %vm353_vm1, %v16134_v4  ;;  %14916 = vmatprep.subr.msk.mxu0 %vm856_vm0, %v16545_v11 }
  0x34   : > { %459 = vst.msk [vmem:[#allocation3 + $0x100] sm:$0xff] %vm353_vm1, %v16134_v4  ;;  %460 = vst.msk [vmem:[#allocation3 + $0x108] sm:$0xff] %vm353_vm1, %v16134_v4 }
  0x35   : > { %461 = vst.msk [vmem:[#allocation3 + $0x110] sm:$0xff] %vm353_vm1, %v16134_v4  ;;  %463 = vst.msk [vmem:[#allocation3 + $0x120] sm:$0xff] %vm353_vm1, %v16134_v4 }
  0x36   : > { %464 = vst.msk [vmem:[#allocation3 + $0x128] sm:$0xff] %vm353_vm1, %v16134_v4  ;;  %465 = vst.msk [vmem:[#allocation3 + $0x130] sm:$0xff] %vm353_vm1, %v16134_v4 }
  0x37   : > { %467 = vst.msk [vmem:[#allocation3 + $0x140] sm:$0xff] %vm353_vm1, %v16134_v4  ;;  %468 = vst.msk [vmem:[#allocation3 + $0x148] sm:$0xff] %vm353_vm1, %v16134_v4 }
  0x38   : > { %469 = vst.msk [vmem:[#allocation3 + $0x150] sm:$0xff] %vm353_vm1, %v16134_v4  ;;  %471 = vst.msk [vmem:[#allocation3 + $0x160] sm:$0xff] %vm353_vm1, %v16134_v4 }
  0x39   : > { %472 = vst.msk [vmem:[#allocation3 + $0x168] sm:$0xff] %vm353_vm1, %v16134_v4  ;;  %473 = vst.msk [vmem:[#allocation3 + $0x170] sm:$0xff] %vm353_vm1, %v16134_v4 }
  0x3a   : > { %475 = vst.msk [vmem:[#allocation3 + $0x180] sm:$0xff] %vm353_vm1, %v16134_v4  ;;  %476 = vst.msk [vmem:[#allocation3 + $0x188] sm:$0xff] %vm353_vm1, %v16134_v4 }
  0x3b   : > { %477 = vst.msk [vmem:[#allocation3 + $0x190] sm:$0xff] %vm353_vm1, %v16134_v4  ;;  %479 = vst.msk [vmem:[#allocation3 + $0x1a0] sm:$0xff] %vm353_vm1, %v16134_v4 }
  0x3c   : > { %480 = vst.msk [vmem:[#allocation3 + $0x1a8] sm:$0xff] %vm353_vm1, %v16134_v4  ;;  %481 = vst.msk [vmem:[#allocation3 + $0x1b0] sm:$0xff] %vm353_vm1, %v16134_v4 }
  0x3d   : > { %483 = vst.msk [vmem:[#allocation3 + $0x1c0] sm:$0xff] %vm353_vm1, %v16134_v4  ;;  %484 = vst.msk [vmem:[#allocation3 + $0x1c8] sm:$0xff] %vm353_vm1, %v16134_v4 }
  0x3e   : > { %485 = vst.msk [vmem:[#allocation3 + $0x1d0] sm:$0xff] %vm353_vm1, %v16134_v4  ;;  %487 = vst.msk [vmem:[#allocation3 + $0x1e0] sm:$0xff] %vm353_vm1, %v16134_v4 }
  0x3f   : > { %488 = vst.msk [vmem:[#allocation3 + $0x1e8] sm:$0xff] %vm353_vm1, %v16134_v4  ;;  %489 = vst.msk [vmem:[#allocation3 + $0x1f0] sm:$0xff] %vm353_vm1, %v16134_v4 }
  0x40   : > { %491 = vst.msk [vmem:[#allocation3 + $0x200] sm:$0xff] %vm353_vm1, %v16134_v4  ;;  %492 = vst.msk [vmem:[#allocation3 + $0x208] sm:$0xff] %vm353_vm1, %v16134_v4 }
  0x41   : > { %493 = vst.msk [vmem:[#allocation3 + $0x210] sm:$0xff] %vm353_vm1, %v16134_v4  ;;  %495 = vst.msk [vmem:[#allocation3 + $0x220] sm:$0xff] %vm353_vm1, %v16134_v4 }
  0x42   : > { %496 = vst.msk [vmem:[#allocation3 + $0x228] sm:$0xff] %vm353_vm1, %v16134_v4  ;;  %497 = vst.msk [vmem:[#allocation3 + $0x230] sm:$0xff] %vm353_vm1, %v16134_v4 }
  0x43   : > { %430 = vst.msk [vmem:[#allocation3 + $0x18] sm:$0x1] %vm357_vm2, %v16134_v4  ;;  %358 = vst.msk [vmem:[#allocation2 + $0x18] sm:$0x1] %vm357_vm2, %v16134_v4 }
  0x44   : > { %362 = vst.msk [vmem:[#allocation2 + $0x38] sm:$0x1] %vm357_vm2, %v16134_v4  ;;  %366 = vst.msk [vmem:[#allocation2 + $0x58] sm:$0x1] %vm357_vm2, %v16134_v4 }
  0x45   : > { %370 = vst.msk [vmem:[#allocation2 + $0x78] sm:$0x1] %vm357_vm2, %v16134_v4  ;;  %374 = vst.msk [vmem:[#allocation2 + $0x98] sm:$0x1] %vm357_vm2, %v16134_v4 }
  0x46   : > { %378 = vst.msk [vmem:[#allocation2 + $0xb8] sm:$0x1] %vm357_vm2, %v16134_v4  ;;  %382 = vst.msk [vmem:[#allocation2 + $0xd8] sm:$0x1] %vm357_vm2, %v16134_v4 }
  0x47   : > { %386 = vst.msk [vmem:[#allocation2 + $0xf8] sm:$0x1] %vm357_vm2, %v16134_v4  ;;  %390 = vst.msk [vmem:[#allocation2 + $0x118] sm:$0x1] %vm357_vm2, %v16134_v4 }
  0x48   : > { %394 = vst.msk [vmem:[#allocation2 + $0x138] sm:$0x1] %vm357_vm2, %v16134_v4  ;;  %398 = vst.msk [vmem:[#allocation2 + $0x158] sm:$0x1] %vm357_vm2, %v16134_v4 }
  0x49   : > { %402 = vst.msk [vmem:[#allocation2 + $0x178] sm:$0x1] %vm357_vm2, %v16134_v4  ;;  %406 = vst.msk [vmem:[#allocation2 + $0x198] sm:$0x1] %vm357_vm2, %v16134_v4 }
  0x4a   : > { %410 = vst.msk [vmem:[#allocation2 + $0x1b8] sm:$0x1] %vm357_vm2, %v16134_v4  ;;  %414 = vst.msk [vmem:[#allocation2 + $0x1d8] sm:$0x1] %vm357_vm2, %v16134_v4 }
  0x4b   : > { %418 = vst.msk [vmem:[#allocation2 + $0x1f8] sm:$0x1] %vm357_vm2, %v16134_v4  ;;  %422 = vst.msk [vmem:[#allocation2 + $0x218] sm:$0x1] %vm357_vm2, %v16134_v4 }
  0x4c   : > { %426 = vst.msk [vmem:[#allocation2 + $0x238] sm:$0x1] %vm357_vm2, %v16134_v4  ;;  %434 = vst.msk [vmem:[#allocation3 + $0x38] sm:$0x1] %vm357_vm2, %v16134_v4 }
  0x4d   : > { %438 = vst.msk [vmem:[#allocation3 + $0x58] sm:$0x1] %vm357_vm2, %v16134_v4  ;;  %442 = vst.msk [vmem:[#allocation3 + $0x78] sm:$0x1] %vm357_vm2, %v16134_v4 }
  0x4e   : > { %446 = vst.msk [vmem:[#allocation3 + $0x98] sm:$0x1] %vm357_vm2, %v16134_v4  ;;  %450 = vst.msk [vmem:[#allocation3 + $0xb8] sm:$0x1] %vm357_vm2, %v16134_v4 }
  0x4f   : > { %454 = vst.msk [vmem:[#allocation3 + $0xd8] sm:$0x1] %vm357_vm2, %v16134_v4  ;;  %458 = vst.msk [vmem:[#allocation3 + $0xf8] sm:$0x1] %vm357_vm2, %v16134_v4 }
  0x50   : > { %462 = vst.msk [vmem:[#allocation3 + $0x118] sm:$0x1] %vm357_vm2, %v16134_v4  ;;  %466 = vst.msk [vmem:[#allocation3 + $0x138] sm:$0x1] %vm357_vm2, %v16134_v4 }
  0x51   : > { %470 = vst.msk [vmem:[#allocation3 + $0x158] sm:$0x1] %vm357_vm2, %v16134_v4  ;;  %474 = vst.msk [vmem:[#allocation3 + $0x178] sm:$0x1] %vm357_vm2, %v16134_v4 }
  0x52   : > { %478 = vst.msk [vmem:[#allocation3 + $0x198] sm:$0x1] %vm357_vm2, %v16134_v4  ;;  %482 = vst.msk [vmem:[#allocation3 + $0x1b8] sm:$0x1] %vm357_vm2, %v16134_v4 }
  0x53   : > { %486 = vst.msk [vmem:[#allocation3 + $0x1d8] sm:$0x1] %vm357_vm2, %v16134_v4  ;;  %490 = vst.msk [vmem:[#allocation3 + $0x1f8] sm:$0x1] %vm357_vm2, %v16134_v4 }
  0x54   : > { %494 = vst.msk [vmem:[#allocation3 + $0x218] sm:$0x1] %vm357_vm2, %v16134_v4  ;;  %498 = vst.msk [vmem:[#allocation3 + $0x238] sm:$0x1] %vm357_vm2, %v16134_v4 }
  0x55   : > { %597 = vst.msk [vmem:[#allocation3 + $0x28] sm:$0xff] %vm353_vm1, %v564_v5  ;;  %532 = vst.msk [vmem:[#allocation2 + $0x28] sm:$0xff] %vm353_vm1, %v499_v6  ;;  %v517_v5 = vld [vmem:[%s16531_s26 + $0x90] sm:$0xff]  ;;  %v583_v6 = vld [vmem:[%s16525_s23 + $0x98] sm:$0xff] }
  0x56   : > { %598 = vst.msk [vmem:[#allocation3 + $0x30] sm:$0xff] %vm353_vm1, %v565_v7  ;;  %533 = vst.msk [vmem:[#allocation2 + $0x30] sm:$0xff] %vm353_vm1, %v500_v8  ;;  %v518_v7 = vld [vmem:[%s16531_s26 + $0x98] sm:$0xff]  ;;  %v584_v8 = vld [vmem:[%s16525_s23 + $0xa0] sm:$0xff] }
  0x57   : > { %599 = vst.msk [vmem:[#allocation3 + $0x48] sm:$0xff] %vm353_vm1, %v566_v9  ;;  %534 = vst.msk [vmem:[#allocation2 + $0x48] sm:$0xff] %vm353_vm1, %v501_v10  ;;  %v519_v9 = vld [vmem:[%s16531_s26 + $0xa0] sm:$0xff]  ;;  %v585_v10 = vld [vmem:[%s16525_s23 + $0xa8] sm:$0xff] }
  0x58   : > { %600 = vst.msk [vmem:[#allocation3 + $0x50] sm:$0xff] %vm353_vm1, %v567_v17  ;;  %535 = vst.msk [vmem:[#allocation2 + $0x50] sm:$0xff] %vm353_vm1, %v502_v18  ;;  %v521_v17 = vld [vmem:[%s16531_s26 + $0xb0] sm:$0xff]  ;;  %v587_v18 = vld [vmem:[%s16525_s23 + $0xb8] sm:$0xff] }
  0x59   : > { %601 = vst.msk [vmem:[#allocation3 + $0x68] sm:$0xff] %vm353_vm1, %v568_v19  ;;  %536 = vst.msk [vmem:[#allocation2 + $0x68] sm:$0xff] %vm353_vm1, %v503_v20 }
  0x5a   : > { %602 = vst.msk [vmem:[#allocation3 + $0x70] sm:$0xff] %vm353_vm1, %v569_v21  ;;  %537 = vst.msk [vmem:[#allocation2 + $0x70] sm:$0xff] %vm353_vm1, %v504_v22  ;;  %v522_v21 = vld [vmem:[%s16531_s26 + $0xb8] sm:$0xff] }
  0x5b   : > { %603 = vst.msk [vmem:[#allocation3 + $0x88] sm:$0xff] %vm353_vm1, %v570_v23  ;;  %538 = vst.msk [vmem:[#allocation2 + $0x88] sm:$0xff] %vm353_vm1, %v505_v24 }
  0x5c   : > { %604 = vst.msk [vmem:[#allocation3 + $0x90] sm:$0xff] %vm353_vm1, %v571_v25  ;;  %539 = vst.msk [vmem:[#allocation2 + $0x90] sm:$0xff] %vm353_vm1, %v506_v26  ;;  %v696_v31 = vld [vmem:[#allocation3 + $0x27] sm:$0xff] }
  0x5d   : > { %605 = vst.msk [vmem:[#allocation3 + $0xa8] sm:$0xff] %vm353_vm1, %v572_v27  ;;  %v664_v32 = vld [vmem:[#allocation2 + $0x27] sm:$0xff]  ;;  %v697_v33 = vld [vmem:[#allocation3 + $0x2f] sm:$0xff]  ;;  %540 = vst.msk [vmem:[#allocation2 + $0xa8] sm:$0xff] %vm353_vm1, %v507_v28  ;;  %14721 = vmatprep.mubr.msk.f32.mxu0 %vm353_vm1, %v696_v31 }
  0x5e   : > { %606 = vst.msk [vmem:[#allocation3 + $0xb0] sm:$0xff] %vm353_vm1, %v573_v29  ;;  %541 = vst.msk [vmem:[#allocation2 + $0xb0] sm:$0xff] %vm353_vm1, %v508_v30  ;;  %14771 = vmatprep.mubr.msk.f32.mxu1 %vm353_vm1, %v664_v32  ;;  %v665_v34 = vld [vmem:[#allocation2 + $0x2f] sm:$0xff]  ;;  %v698_v35 = vld [vmem:[#allocation3 + $0x47] sm:$0xff]  ;;  %14722 = vmatmul.mubr.msk.f32.gmra.mxu0 %vm353_vm1, %v697_v33 }
  0x5f   : > { %v666_v36 = vld [vmem:[#allocation2 + $0x47] sm:$0xff]  ;;  %14772 = vmatmul.mubr.msk.f32.gmra.mxu1 %vm353_vm1, %v665_v34  ;;  %14724 = vmatprep.mubr.msk.f32.mxu0 %vm353_vm1, %v698_v35  ;;  %v699_v40 = vld [vmem:[#allocation3 + $0x4f] sm:$0xff]  ;;  %607 = vst.msk [vmem:[#allocation3 + $0xc8] sm:$0xff] %vm353_vm1, %v574_v37  ;;  %542 = vst.msk [vmem:[#allocation2 + $0xc8] sm:$0xff] %vm353_vm1, %v509_v38 }
  0x60   : > { %14774 = vmatprep.mubr.msk.f32.mxu1 %vm353_vm1, %v666_v36  ;;  %v667_v41 = vld [vmem:[#allocation2 + $0x4f] sm:$0xff]  ;;  %608 = vst.msk [vmem:[#allocation3 + $0xd0] sm:$0xff] %vm353_vm1, %v575_v39  ;;  %v700_v43 = vld [vmem:[#allocation3 + $0x67] sm:$0xff]  ;;  %543 = vst.msk [vmem:[#allocation2 + $0xd0] sm:$0xff] %vm353_vm1, %v510_v42 }
  0x61   : > { %v668_v44 = vld [vmem:[#allocation2 + $0x67] sm:$0xff]  ;;  %v701_v45 = vld [vmem:[#allocation3 + $0x6f] sm:$0xff]  ;;  %609 = vst.msk [vmem:[#allocation3 + $0xe8] sm:$0xff] %vm353_vm1, %v576_v49  ;;  %544 = vst.msk [vmem:[#allocation2 + $0xe8] sm:$0xff] %vm353_vm1, %v511_v50 }
  0x62   : > { %14725 = vmatmul.mubr.msk.f32.gmra.mxu0 %vm353_vm1, %v699_v40  ;;  %v669_v46 = vld [vmem:[#allocation2 + $0x6f] sm:$0xff]  ;;  %v702_v47 = vld [vmem:[#allocation3 + $0x87] sm:$0xff]  ;;  %610 = vst.msk [vmem:[#allocation3 + $0xf0] sm:$0xff] %vm353_vm1, %v577_v51  ;;  %545 = vst.msk [vmem:[#allocation2 + $0xf0] sm:$0xff] %vm353_vm1, %v512_v52 }
  0x63   : > { %14775 = vmatmul.mubr.msk.f32.gmra.mxu1 %vm353_vm1, %v667_v41  ;;  %14727 = vmatprep.mubr.msk.f32.mxu0 %vm353_vm1, %v700_v43  ;;  %v670_v48 = vld [vmem:[#allocation2 + $0x87] sm:$0xff]  ;;  %v703_v55 = vld [vmem:[#allocation3 + $0x8f] sm:$0xff]  ;;  %611 = vst.msk [vmem:[#allocation3 + $0x108] sm:$0xff] %vm353_vm1, %v578_v53  ;;  %546 = vst.msk [vmem:[#allocation2 + $0x108] sm:$0xff] %vm353_vm1, %v513_v54 }
  0x64   : > { %14777 = vmatprep.mubr.msk.f32.mxu1 %vm353_vm1, %v668_v44  ;;  %v671_v56 = vld [vmem:[#allocation2 + $0x8f] sm:$0xff]  ;;  %v704_v57 = vld [vmem:[#allocation3 + $0xa7] sm:$0xff]  ;;  %612 = vst.msk [vmem:[#allocation3 + $0x110] sm:$0xff] %vm353_vm1, %v579_v59  ;;  %547 = vst.msk [vmem:[#allocation2 + $0x110] sm:$0xff] %vm353_vm1, %v514_v60 }
  0x65   : > { %v672_v58 = vld [vmem:[#allocation2 + $0xa7] sm:$0xff]  ;;  %v705_v0 = vld [vmem:[#allocation3 + $0xaf] sm:$0xff]  ;;  %613 = vst.msk [vmem:[#allocation3 + $0x128] sm:$0xff] %vm353_vm1, %v580_v61  ;;  %548 = vst.msk [vmem:[#allocation2 + $0x128] sm:$0xff] %vm353_vm1, %v515_v62 }
  0x66   : > { %14728 = vmatmul.mubr.msk.f32.gmra.mxu0 %vm353_vm1, %v701_v45  ;;  %v673_v1 = vld [vmem:[#allocation2 + $0xaf] sm:$0xff]  ;;  %614 = vst.msk [vmem:[#allocation3 + $0x130] sm:$0xff] %vm353_vm1, %v581_v63  ;;  %549 = vst.msk [vmem:[#allocation2 + $0x130] sm:$0xff] %vm353_vm1, %v516_v2  ;;  %v706_v14 = vld [vmem:[#allocation3 + $0xc7] sm:$0xff] }
  0x67   : > { %14778 = vmatmul.mubr.msk.f32.gmra.mxu1 %vm353_vm1, %v669_v46  ;;  %14730 = vmatprep.mubr.msk.f32.mxu0 %vm353_vm1, %v702_v47  ;;  %615 = vst.msk [vmem:[#allocation3 + $0x148] sm:$0xff] %vm353_vm1, %v582_v3  ;;  %550 = vst.msk [vmem:[#allocation2 + $0x148] sm:$0xff] %vm353_vm1, %v517_v5  ;;  %v674_v15 = vld [vmem:[#allocation2 + $0xc7] sm:$0xff]  ;;  %v707_v19 = vld [vmem:[#allocation3 + $0xcf] sm:$0xff] }
  0x68   : > { %14780 = vmatprep.mubr.msk.f32.mxu1 %vm353_vm1, %v670_v48  ;;  %616 = vst.msk [vmem:[#allocation3 + $0x150] sm:$0xff] %vm353_vm1, %v583_v6  ;;  %551 = vst.msk [vmem:[#allocation2 + $0x150] sm:$0xff] %vm353_vm1, %v518_v7  ;;  %v675_v20 = vld [vmem:[#allocation2 + $0xcf] sm:$0xff]  ;;  %v708_v22 = vld [vmem:[#allocation3 + $0xe7] sm:$0xff] }
  0x69   : > { %617 = vst.msk [vmem:[#allocation3 + $0x168] sm:$0xff] %vm353_vm1, %v584_v8  ;;  %552 = vst.msk [vmem:[#allocation2 + $0x168] sm:$0xff] %vm353_vm1, %v519_v9  ;;  %v676_v23 = vld [vmem:[#allocation2 + $0xe7] sm:$0xff]  ;;  %v709_v24 = vld [vmem:[#allocation3 + $0xef] sm:$0xff] }
  0x6a   : > { %14731 = vmatmul.mubr.msk.f32.gmra.mxu0 %vm353_vm1, %v703_v55  ;;  %618 = vst.msk [vmem:[#allocation3 + $0x170] sm:$0xff] %vm353_vm1, %v585_v10  ;;  %553 = vst.msk [vmem:[#allocation2 + $0x170] sm:$0xff] %vm353_vm1, %v520_v13  ;;  %v677_v25 = vld [vmem:[#allocation2 + $0xef] sm:$0xff]  ;;  %v710_v26 = vld [vmem:[#allocation3 + $0x107] sm:$0xff] }
  0x6b   : > { %14781 = vmatmul.mubr.msk.f32.gmra.mxu1 %vm353_vm1, %v671_v56  ;;  %14733 = vmatprep.mubr.msk.f32.mxu0 %vm353_vm1, %v704_v57  ;;  %619 = vst.msk [vmem:[#allocation3 + $0x188] sm:$0xff] %vm353_vm1, %v586_v16  ;;  %554 = vst.msk [vmem:[#allocation2 + $0x188] sm:$0xff] %vm353_vm1, %v521_v17  ;;  %v678_v27 = vld [vmem:[#allocation2 + $0x107] sm:$0xff]  ;;  %v590_v32 = vld [vmem:[%s16525_s23 + $0xd0] sm:$0xff] }
  0x6c   : > { %14783 = vmatprep.mubr.msk.f32.mxu1 %vm353_vm1, %v672_v58  ;;  %620 = vst.msk [vmem:[#allocation3 + $0x190] sm:$0xff] %vm353_vm1, %v587_v18  ;;  %555 = vst.msk [vmem:[#allocation2 + $0x190] sm:$0xff] %vm353_vm1, %v522_v21  ;;  %v588_v28 = vld [vmem:[%s16525_s23 + $0xc0] sm:$0xff]  ;;  %v589_v30 = vld [vmem:[%s16525_s23 + $0xc8] sm:$0xff] }
  0x6d   : > { %v523_v29 = vld [vmem:[%s16531_s26 + $0xc0] sm:$0xff]  ;;  %621 = vst.msk [vmem:[#allocation3 + $0x1a8] sm:$0xff] %vm353_vm1, %v588_v28  ;;  %622 = vst.msk [vmem:[#allocation3 + $0x1b0] sm:$0xff] %vm353_vm1, %v589_v30  ;;  %v524_v31 = vld [vmem:[%s16531_s26 + $0xc8] sm:$0xff] }
  0x6e   : > { %14734 = vmatmul.mubr.msk.f32.gmra.mxu0 %vm353_vm1, %v705_v0  ;;  %556 = vst.msk [vmem:[#allocation2 + $0x1a8] sm:$0xff] %vm353_vm1, %v523_v29  ;;  %v525_v33 = vld [vmem:[%s16531_s26 + $0xd0] sm:$0xff]  ;;  %v712_v36 = vld [vmem:[#allocation3 + $0x127] sm:$0xff]  ;;  %557 = vst.msk [vmem:[#allocation2 + $0x1b0] sm:$0xff] %vm353_vm1, %v524_v31 }
  0x6f   : > { %14784 = vmatmul.mubr.msk.f32.gmra.mxu1 %vm353_vm1, %v673_v1  ;;  %14736 = vmatprep.mubr.msk.f32.mxu0 %vm353_vm1, %v706_v14  ;;  %v711_v34 = vld [vmem:[#allocation3 + $0x10f] sm:$0xff]  ;;  %623 = vst.msk [vmem:[#allocation3 + $0x1c8] sm:$0xff] %vm353_vm1, %v590_v32  ;;  %558 = vst.msk [vmem:[#allocation2 + $0x1c8] sm:$0xff] %vm353_vm1, %v525_v33  ;;  %v680_v37 = vld [vmem:[#allocation2 + $0x127] sm:$0xff] }
  0x70   : > { %14786 = vmatprep.mubr.msk.f32.mxu1 %vm353_vm1, %v674_v15  ;;  %v679_v35 = vld [vmem:[#allocation2 + $0x10f] sm:$0xff]  ;;  %v591_v38 = vld [vmem:[%s16525_s23 + $0xd8] sm:$0xff]  ;;  %v592_v40 = vld [vmem:[%s16525_s23 + $0xe0] sm:$0xff]  ;;  %631 = vst.msk [vmem:[#allocation5 + $0x8] sm:$0xff] %vm629_vm3, %v16134_v4 }
  0x71   : > { %v526_v39 = vld [vmem:[%s16531_s26 + $0xd8] sm:$0xff]  ;;  %624 = vst.msk [vmem:[#allocation3 + $0x1d0] sm:$0xff] %vm353_vm1, %v591_v38  ;;  %v527_v41 = vld [vmem:[%s16531_s26 + $0xe0] sm:$0xff]  ;;  %v593_v42 = vld [vmem:[%s16525_s23 + $0xe8] sm:$0xff] }
  0x72   : > { %14737 = vmatmul.mubr.msk.f32.gmra.mxu0 %vm353_vm1, %v707_v19  ;;  %559 = vst.msk [vmem:[#allocation2 + $0x1d0] sm:$0xff] %vm353_vm1, %v526_v39  ;;  %625 = vst.msk [vmem:[#allocation3 + $0x1e8] sm:$0xff] %vm353_vm1, %v592_v40  ;;  %v528_v43 = vld [vmem:[%s16531_s26 + $0xe8] sm:$0xff]  ;;  %v1506_v9 = vld [vmem:[#allocation3 + $0x10] sm:$0xff] }
  0x73   : > { %14787 = vmatmul.mubr.msk.f32.gmra.mxu1 %vm353_vm1, %v675_v20  ;;  %14739 = vmatprep.mubr.msk.f32.mxu0 %vm353_vm1, %v708_v22  ;;  %560 = vst.msk [vmem:[#allocation2 + $0x1e8] sm:$0xff] %vm353_vm1, %v527_v41  ;;  %626 = vst.msk [vmem:[#allocation3 + $0x1f0] sm:$0xff] %vm353_vm1, %v593_v42  ;;  %v713_v44 = vld [vmem:[#allocation3 + $0x12f] sm:$0xff]  ;;  %v714_v46 = vld [vmem:[#allocation3 + $0x147] sm:$0xff] }
  0x74   : > { %14789 = vmatprep.mubr.msk.f32.mxu1 %vm353_vm1, %v676_v23  ;;  %561 = vst.msk [vmem:[#allocation2 + $0x1f0] sm:$0xff] %vm353_vm1, %v528_v43  ;;  %v681_v45 = vld [vmem:[#allocation2 + $0x12f] sm:$0xff]  ;;  %v682_v47 = vld [vmem:[#allocation2 + $0x147] sm:$0xff] }
  0x75   : > { %v715_v48 = vld [vmem:[#allocation3 + $0x14f] sm:$0xff]  ;;  %v716_v50 = vld [vmem:[#allocation3 + $0x167] sm:$0xff]  ;;  %630 = vst.msk [vmem:[#allocation5] sm:$0xff] %vm629_vm3, %v16134_v4  ;;  %632 = vst.msk [vmem:[#allocation5 + $0x10] sm:$0xff] %vm629_vm3, %v16134_v4 }
  0x76   : > { %14740 = vmatmul.mubr.msk.f32.gmra.mxu0 %vm353_vm1, %v709_v24  ;;  %v683_v49 = vld [vmem:[#allocation2 + $0x14f] sm:$0xff]  ;;  %v684_v51 = vld [vmem:[#allocation2 + $0x167] sm:$0xff]  ;;  %633 = vst.msk [vmem:[#allocation5 + $0x18] sm:$0xff] %vm629_vm3, %v16134_v4  ;;  %634 = vst.msk [vmem:[#allocation5 + $0x20] sm:$0xff] %vm629_vm3, %v16134_v4 }
  0x77   : > { %14790 = vmatmul.mubr.msk.f32.gmra.mxu1 %vm353_vm1, %v677_v25  ;;  %14742 = vmatprep.mubr.msk.f32.mxu0 %vm353_vm1, %v710_v26  ;;  %v717_v52 = vld [vmem:[#allocation3 + $0x16f] sm:$0xff]  ;;  %v718_v54 = vld [vmem:[#allocation3 + $0x187] sm:$0xff]  ;;  %635 = vst.msk [vmem:[#allocation5 + $0x28] sm:$0xff] %vm629_vm3, %v16134_v4  ;;  %636 = vst.msk [vmem:[#allocation5 + $0x30] sm:$0xff] %vm629_vm3, %v16134_v4 }
  0x78   : > { %14792 = vmatprep.mubr.msk.f32.mxu1 %vm353_vm1, %v678_v27  ;;  %v685_v53 = vld [vmem:[#allocation2 + $0x16f] sm:$0xff]  ;;  %v686_v55 = vld [vmem:[#allocation2 + $0x187] sm:$0xff]  ;;  %637 = vst.msk [vmem:[#allocation5 + $0x38] sm:$0xff] %vm629_vm3, %v16134_v4  ;;  %638 = vst.msk [vmem:[#allocation5 + $0x40] sm:$0xff] %vm629_vm3, %v16134_v4 }
  0x79   : > { %v719_v56 = vld [vmem:[#allocation3 + $0x18f] sm:$0xff]  ;;  %v720_v58 = vld [vmem:[#allocation3 + $0x1a7] sm:$0xff]  ;;  %639 = vst.msk [vmem:[#allocation5 + $0x48] sm:$0xff] %vm629_vm3, %v16134_v4  ;;  %640 = vst.msk [vmem:[#allocation5 + $0x50] sm:$0xff] %vm629_vm3, %v16134_v4 }
  0x7a   : > { %14743 = vmatmul.mubr.msk.f32.gmra.mxu0 %vm353_vm1, %v711_v34  ;;  %v687_v57 = vld [vmem:[#allocation2 + $0x18f] sm:$0xff]  ;;  %v688_v59 = vld [vmem:[#allocation2 + $0x1a7] sm:$0xff]  ;;  %641 = vst.msk [vmem:[#allocation5 + $0x58] sm:$0xff] %vm629_vm3, %v16134_v4  ;;  %642 = vst.msk [vmem:[#allocation5 + $0x60] sm:$0xff] %vm629_vm3, %v16134_v4 }
  0x7b   : > { %14793 = vmatmul.mubr.msk.f32.gmra.mxu1 %vm353_vm1, %v679_v35  ;;  %14745 = vmatprep.mubr.msk.f32.mxu0 %vm353_vm1, %v712_v36  ;;  %v721_v60 = vld [vmem:[#allocation3 + $0x1af] sm:$0xff]  ;;  %v722_v62 = vld [vmem:[#allocation3 + $0x1c7] sm:$0xff]  ;;  %643 = vst.msk [vmem:[#allocation5 + $0x68] sm:$0xff] %vm629_vm3, %v16134_v4  ;;  %644 = vst.msk [vmem:[#allocation5 + $0x70] sm:$0xff] %vm629_vm3, %v16134_v4 }
  0x7c   : > { %14795 = vmatprep.mubr.msk.f32.mxu1 %vm353_vm1, %v680_v37  ;;  %v689_v61 = vld [vmem:[#allocation2 + $0x1af] sm:$0xff]  ;;  %v690_v63 = vld [vmem:[#allocation2 + $0x1c7] sm:$0xff]  ;;  %645 = vst.msk [vmem:[#allocation5 + $0x78] sm:$0xff] %vm629_vm3, %v16134_v4  ;;  %646 = vst.msk [vmem:[#allocation5 + $0x80] sm:$0xff] %vm629_vm3, %v16134_v4 }
  0x7d   : > { %v723_v0 = vld [vmem:[#allocation3 + $0x1cf] sm:$0xff]  ;;  %v724_v2 = vld [vmem:[#allocation3 + $0x1e7] sm:$0xff]  ;;  %647 = vst.msk [vmem:[#allocation5 + $0x88] sm:$0xff] %vm629_vm3, %v16134_v4  ;;  %648 = vst.msk [vmem:[#allocation5 + $0x90] sm:$0xff] %vm629_vm3, %v16134_v4 }
  0x7e   : > { %14746 = vmatmul.mubr.msk.f32.gmra.mxu0 %vm353_vm1, %v713_v44  ;;  %v691_v1 = vld [vmem:[#allocation2 + $0x1cf] sm:$0xff]  ;;  %v692_v3 = vld [vmem:[#allocation2 + $0x1e7] sm:$0xff]  ;;  %649 = vst.msk [vmem:[#allocation5 + $0x98] sm:$0xff] %vm629_vm3, %v16134_v4  ;;  %650 = vst.msk [vmem:[#allocation5 + $0xa0] sm:$0xff] %vm629_vm3, %v16134_v4 }
  0x7f   : > { %14796 = vmatmul.mubr.msk.f32.gmra.mxu1 %vm353_vm1, %v681_v45  ;;  %14748 = vmatprep.mubr.msk.f32.mxu0 %vm353_vm1, %v714_v46  ;;  %v16733_v5 = vld [vmem:[#allocation3 + $0x1ef] sm:$0xff]  ;;  %651 = vst.msk [vmem:[#allocation5 + $0xa8] sm:$0xff] %vm629_vm3, %v16134_v4  ;;  %652 = vst.msk [vmem:[#allocation5 + $0xb0] sm:$0xff] %vm629_vm3, %v16134_v4 }
  0x80   : > { %14798 = vmatprep.mubr.msk.f32.mxu1 %vm353_vm1, %v682_v47  ;;  %v16735_v6 = vld [vmem:[#allocation2 + $0x1ef] sm:$0xff]  ;;  %653 = vst.msk [vmem:[#allocation5 + $0xb8] sm:$0xff] %vm629_vm3, %v16134_v4  ;;  %654 = vst.msk [vmem:[#allocation5 + $0xc0] sm:$0xff] %vm629_vm3, %v16134_v4 }
  0x81   : > { %v16737_v7 = vld [vmem:[#allocation3 + $0x8] sm:$0xff]  ;;  %655 = vst.msk [vmem:[#allocation5 + $0xc8] sm:$0xff] %vm629_vm3, %v16134_v4  ;;  %656 = vst.msk [vmem:[#allocation5 + $0xd0] sm:$0xff] %vm629_vm3, %v16134_v4  ;;  %v1474_v10 = vld [vmem:[#allocation2 + $0x10] sm:$0xff] }
  0x82   : > { %14749 = vmatmul.mubr.msk.f32.gmra.mxu0 %vm353_vm1, %v715_v48  ;;  %v16739_v8 = vld [vmem:[#allocation2 + $0x8] sm:$0xff]  ;;  %657 = vst.msk [vmem:[#allocation5 + $0xd8] sm:$0xff] %vm629_vm3, %v16134_v4  ;;  %658 = vst.msk [vmem:[#allocation5 + $0xe0] sm:$0xff] %vm629_vm3, %v16134_v4  ;;  %v1508_v17 = vld [vmem:[#allocation3 + $0x30] sm:$0xff] }
  0x83   : > { %14799 = vmatmul.mubr.msk.f32.gmra.mxu1 %vm353_vm1, %v683_v49  ;;  %14751 = vmatprep.mubr.msk.f32.mxu0 %vm353_vm1, %v716_v50  ;;  %659 = vst.msk [vmem:[#allocation5 + $0xe8] sm:$0xff] %vm629_vm3, %v16134_v4  ;;  %660 = vst.msk [vmem:[#allocation5 + $0xf0] sm:$0xff] %vm629_vm3, %v16134_v4  ;;  %v1507_v13 = vld [vmem:[#allocation3 + $0x28] sm:$0xff]  ;;  %v1476_v18 = vld [vmem:[#allocation2 + $0x30] sm:$0xff] }
  0x84   : > { %14801 = vmatprep.mubr.msk.f32.mxu1 %vm353_vm1, %v684_v51  ;;  %661 = vst.msk [vmem:[#allocation5 + $0xf8] sm:$0xff] %vm629_vm3, %v16134_v4  ;;  %8074 = vst.msk [vmem:[#allocation4] sm:$0xff] %vm629_vm3, %v16134_v4  ;;  %v1475_v14 = vld [vmem:[#allocation2 + $0x28] sm:$0xff]  ;;  %v1512_v23 = vld [vmem:[#allocation3 + $0x70] sm:$0xff] }
  0x85   : > { %8075 = vst.msk [vmem:[#allocation4 + $0x8] sm:$0xff] %vm629_vm3, %v16134_v4  ;;  %8076 = vst.msk [vmem:[#allocation4 + $0x10] sm:$0xff] %vm629_vm3, %v16134_v4  ;;  %v16926_v15 = vld [vmem:[%s19239_s3 + $0xc] sm:$0xf]  ;;  %v1480_v24 = vld [vmem:[#allocation2 + $0x70] sm:$0xff] }
  0x86   : > { %14752 = vmatmul.mubr.msk.f32.gmra.mxu0 %vm353_vm1, %v717_v52  ;;  %8079 = vst.msk [vmem:[#allocation4 + $0x20] sm:$0xff] %vm629_vm3, %v16134_v4  ;;  %8080 = vst.msk [vmem:[#allocation4 + $0x28] sm:$0xff] %vm629_vm3, %v16134_v4  ;;  %v16931_v16 = vld [vmem:[%s19238_s2 + $0xc] sm:$0xf]  ;;  %v1514_v27 = vld [vmem:[#allocation3 + $0x90] sm:$0xff] }
  0x87   : > { %14802 = vmatmul.mubr.msk.f32.gmra.mxu1 %vm353_vm1, %v685_v53  ;;  %14754 = vmatprep.mubr.msk.f32.mxu0 %vm353_vm1, %v718_v54  ;;  %8081 = vst.msk [vmem:[#allocation4 + $0x30] sm:$0xff] %vm629_vm3, %v16134_v4  ;;  %8083 = vst.msk [vmem:[#allocation4 + $0x40] sm:$0xff] %vm629_vm3, %v16134_v4  ;;  %v1509_v19 = vld [vmem:[#allocation3 + $0x48] sm:$0xff]  ;;  %v1482_v28 = vld [vmem:[#allocation2 + $0x90] sm:$0xff] }
  0x88   : > { %14804 = vmatprep.mubr.msk.f32.mxu1 %vm353_vm1, %v686_v55  ;;  %8084 = vst.msk [vmem:[#allocation4 + $0x48] sm:$0xff] %vm629_vm3, %v16134_v4  ;;  %8085 = vst.msk [vmem:[#allocation4 + $0x50] sm:$0xff] %vm629_vm3, %v16134_v4  ;;  %v1477_v20 = vld [vmem:[#allocation2 + $0x48] sm:$0xff]  ;;  %v1516_v31 = vld [vmem:[#allocation3 + $0xb0] sm:$0xff] }
  0x89   : > { %8087 = vst.msk [vmem:[#allocation4 + $0x60] sm:$0xff] %vm629_vm3, %v16134_v4  ;;  %8088 = vst.msk [vmem:[#allocation4 + $0x68] sm:$0xff] %vm629_vm3, %v16134_v4  ;;  %v1511_v21 = vld [vmem:[#allocation3 + $0x68] sm:$0xff]  ;;  %v1484_v32 = vld [vmem:[#allocation2 + $0xb0] sm:$0xff] }
  0x8a   : > { %14755 = vmatmul.mubr.msk.f32.gmra.mxu0 %vm353_vm1, %v719_v56  ;;  %8089 = vst.msk [vmem:[#allocation4 + $0x70] sm:$0xff] %vm629_vm3, %v16134_v4  ;;  %8091 = vst.msk [vmem:[#allocation4 + $0x80] sm:$0xff] %vm629_vm3, %v16134_v4  ;;  %v1479_v22 = vld [vmem:[#allocation2 + $0x68] sm:$0xff]  ;;  %v1518_v35 = vld [vmem:[#allocation3 + $0xd0] sm:$0xff] }
  0x8b   : > { %14805 = vmatmul.mubr.msk.f32.gmra.mxu1 %vm353_vm1, %v687_v57  ;;  %14757 = vmatprep.mubr.msk.f32.mxu0 %vm353_vm1, %v720_v58  ;;  %8092 = vst.msk [vmem:[#allocation4 + $0x88] sm:$0xff] %vm629_vm3, %v16134_v4  ;;  %8093 = vst.msk [vmem:[#allocation4 + $0x90] sm:$0xff] %vm629_vm3, %v16134_v4  ;;  %v1513_v25 = vld [vmem:[#allocation3 + $0x88] sm:$0xff]  ;;  %v1486_v36 = vld [vmem:[#allocation2 + $0xd0] sm:$0xff] }
  0x8c   : > { %14807 = vmatprep.mubr.msk.f32.mxu1 %vm353_vm1, %v688_v59  ;;  %8095 = vst.msk [vmem:[#allocation4 + $0xa0] sm:$0xff] %vm629_vm3, %v16134_v4  ;;  %8096 = vst.msk [vmem:[#allocation4 + $0xa8] sm:$0xff] %vm629_vm3, %v16134_v4  ;;  %v1481_v26 = vld [vmem:[#allocation2 + $0x88] sm:$0xff]  ;;  %v1520_v39 = vld [vmem:[#allocation3 + $0xf0] sm:$0xff] }
  0x8d   : > { %8097 = vst.msk [vmem:[#allocation4 + $0xb0] sm:$0xff] %vm629_vm3, %v16134_v4  ;;  %8099 = vst.msk [vmem:[#allocation4 + $0xc0] sm:$0xff] %vm629_vm3, %v16134_v4  ;;  %v1515_v29 = vld [vmem:[#allocation3 + $0xa8] sm:$0xff]  ;;  %v1488_v40 = vld [vmem:[#allocation2 + $0xf0] sm:$0xff] }
  0x8e   : > { %14758 = vmatmul.mubr.msk.f32.gmra.mxu0 %vm353_vm1, %v721_v60  ;;  %8100 = vst.msk [vmem:[#allocation4 + $0xc8] sm:$0xff] %vm629_vm3, %v16134_v4  ;;  %8101 = vst.msk [vmem:[#allocation4 + $0xd0] sm:$0xff] %vm629_vm3, %v16134_v4  ;;  %v1483_v30 = vld [vmem:[#allocation2 + $0xa8] sm:$0xff]  ;;  %v1522_v43 = vld [vmem:[#allocation3 + $0x110] sm:$0xff] }
  0x8f   : > { %14808 = vmatmul.mubr.msk.f32.gmra.mxu1 %vm353_vm1, %v689_v61  ;;  %14760 = vmatprep.mubr.msk.f32.mxu0 %vm353_vm1, %v722_v62  ;;  %8103 = vst.msk [vmem:[#allocation4 + $0xe0] sm:$0xff] %vm629_vm3, %v16134_v4  ;;  %8104 = vst.msk [vmem:[#allocation4 + $0xe8] sm:$0xff] %vm629_vm3, %v16134_v4  ;;  %v1517_v33 = vld [vmem:[#allocation3 + $0xc8] sm:$0xff]  ;;  %v1490_v44 = vld [vmem:[#allocation2 + $0x110] sm:$0xff] }
  0x90   : > { %14810 = vmatprep.mubr.msk.f32.mxu1 %vm353_vm1, %v690_v63  ;;  %8105 = vst.msk [vmem:[#allocation4 + $0xf0] sm:$0xff] %vm629_vm3, %v16134_v4  ;;  %8107 = vst.msk [vmem:[#allocation4 + $0x100] sm:$0xff] %vm629_vm3, %v16134_v4  ;;  %v1485_v34 = vld [vmem:[#allocation2 + $0xc8] sm:$0xff]  ;;  %v1524_v47 = vld [vmem:[#allocation3 + $0x130] sm:$0xff] }
  0x91   : > { %8108 = vst.msk [vmem:[#allocation4 + $0x108] sm:$0xff] %vm629_vm3, %v16134_v4  ;;  %8109 = vst.msk [vmem:[#allocation4 + $0x110] sm:$0xff] %vm629_vm3, %v16134_v4  ;;  %v1519_v37 = vld [vmem:[#allocation3 + $0xe8] sm:$0xff]  ;;  %v1492_v48 = vld [vmem:[#allocation2 + $0x130] sm:$0xff] }
  0x92   : > { %14761 = vmatmul.mubr.msk.f32.gmra.mxu0 %vm353_vm1, %v723_v0  ;;  %8111 = vst.msk [vmem:[#allocation4 + $0x120] sm:$0xff] %vm629_vm3, %v16134_v4  ;;  %8112 = vst.msk [vmem:[#allocation4 + $0x128] sm:$0xff] %vm629_vm3, %v16134_v4  ;;  %v1487_v38 = vld [vmem:[#allocation2 + $0xe8] sm:$0xff]  ;;  %v1526_v51 = vld [vmem:[#allocation3 + $0x150] sm:$0xff] }
  0x93   : > { %14811 = vmatmul.mubr.msk.f32.gmra.mxu1 %vm353_vm1, %v691_v1  ;;  %14763 = vmatprep.mubr.msk.f32.mxu0 %vm353_vm1, %v724_v2  ;;  %8113 = vst.msk [vmem:[#allocation4 + $0x130] sm:$0xff] %vm629_vm3, %v16134_v4  ;;  %8115 = vst.msk [vmem:[#allocation4 + $0x140] sm:$0xff] %vm629_vm3, %v16134_v4  ;;  %v1521_v41 = vld [vmem:[#allocation3 + $0x108] sm:$0xff]  ;;  %v1494_v52 = vld [vmem:[#allocation2 + $0x150] sm:$0xff] }
  0x94   : > { %14813 = vmatprep.mubr.msk.f32.mxu1 %vm353_vm1, %v692_v3  ;;  %8116 = vst.msk [vmem:[#allocation4 + $0x148] sm:$0xff] %vm629_vm3, %v16134_v4  ;;  %8117 = vst.msk [vmem:[#allocation4 + $0x150] sm:$0xff] %vm629_vm3, %v16134_v4  ;;  %v1489_v42 = vld [vmem:[#allocation2 + $0x108] sm:$0xff]  ;;  %v1528_v55 = vld [vmem:[#allocation3 + $0x170] sm:$0xff] }
  0x95   : > { %8119 = vst.msk [vmem:[#allocation4 + $0x160] sm:$0xff] %vm629_vm3, %v16134_v4  ;;  %8120 = vst.msk [vmem:[#allocation4 + $0x168] sm:$0xff] %vm629_vm3, %v16134_v4  ;;  %v1523_v45 = vld [vmem:[#allocation3 + $0x128] sm:$0xff]  ;;  %v1496_v56 = vld [vmem:[#allocation2 + $0x170] sm:$0xff] }
  0x96   : > { %8121 = vst.msk [vmem:[#allocation4 + $0x170] sm:$0xff] %vm629_vm3, %v16134_v4  ;;  %8123 = vst.msk [vmem:[#allocation4 + $0x180] sm:$0xff] %vm629_vm3, %v16134_v4  ;;  %14764 = vmatmul.mubr.msk.f32.gmra.mxu0 %vm353_vm1, %v16733_v5  ;;  %v1491_v46 = vld [vmem:[#allocation2 + $0x128] sm:$0xff]  ;;  %v1530_v59 = vld [vmem:[#allocation3 + $0x190] sm:$0xff] }
  0x97   : > { %8124 = vst.msk [vmem:[#allocation4 + $0x188] sm:$0xff] %vm629_vm3, %v16134_v4  ;;  %8125 = vst.msk [vmem:[#allocation4 + $0x190] sm:$0xff] %vm629_vm3, %v16134_v4  ;;  %14814 = vmatmul.mubr.msk.f32.gmra.mxu1 %vm353_vm1, %v16735_v6  ;;  %14818 = vmatprep.mubr.msk.f32.mxu0 %vm353_vm1, %v16737_v7  ;;  %v1525_v49 = vld [vmem:[#allocation3 + $0x148] sm:$0xff]  ;;  %v1498_v60 = vld [vmem:[#allocation2 + $0x190] sm:$0xff] }
  0x98   : > { %8127 = vst.msk [vmem:[#allocation4 + $0x1a0] sm:$0xff] %vm629_vm3, %v16134_v4  ;;  %8128 = vst.msk [vmem:[#allocation4 + $0x1a8] sm:$0xff] %vm629_vm3, %v16134_v4  ;;  %14868 = vmatprep.mubr.msk.f32.mxu1 %vm353_vm1, %v16739_v8  ;;  %v1493_v50 = vld [vmem:[#allocation2 + $0x148] sm:$0xff]  ;;  %v1532_v63 = vld [vmem:[#allocation3 + $0x1b0] sm:$0xff] }
  0x99   : > { %8129 = vst.msk [vmem:[#allocation4 + $0x1b0] sm:$0xff] %vm629_vm3, %v16134_v4  ;;  %8131 = vst.msk [vmem:[#allocation4 + $0x1c0] sm:$0xff] %vm629_vm3, %v16134_v4  ;;  %v1527_v53 = vld [vmem:[#allocation3 + $0x168] sm:$0xff]  ;;  %v1500_v0 = vld [vmem:[#allocation2 + $0x1b0] sm:$0xff] }
  0x9a   : > { %8132 = vst.msk [vmem:[#allocation4 + $0x1c8] sm:$0xff] %vm629_vm3, %v16134_v4  ;;  %8133 = vst.msk [vmem:[#allocation4 + $0x1d0] sm:$0xff] %vm629_vm3, %v16134_v4  ;;  %14819 = vmatmul.mubr.msk.f32.vlgmr.msra.gmra.mxu0 %vm353_vm1, %v1506_v9  ;;  %v1495_v54 = vld [vmem:[#allocation2 + $0x168] sm:$0xff]  ;;  %v594_v3 = vld [vmem:[%s16525_s23 + $0xf0] sm:$0xff] }
  0x9b   : > { %8135 = vst.msk [vmem:[#allocation4 + $0x1e0] sm:$0xff] %vm629_vm3, %v16134_v4  ;;  %8136 = vst.msk [vmem:[#allocation4 + $0x1e8] sm:$0xff] %vm629_vm3, %v16134_v4  ;;  %14869 = vmatmul.mubr.msk.f32.vlgmr.msra.gmra.mxu1 %vm353_vm1, %v1474_v10  ;;  %14917 = vmatpush3.msk.msra.mxu0 %vm856_vm0, %v16545_v11  ;;  %v1510_v11 = vld [vmem:[#allocation3 + $0x50] sm:$0xff]  ;;  %v1529_v57 = vld [vmem:[#allocation3 + $0x188] sm:$0xff] }
  0x9c   : > { %8137 = vst.msk [vmem:[#allocation4 + $0x1f0] sm:$0xff] %vm629_vm3, %v16134_v4  ;;  %8139 = vst.msk [vmem:[#allocation4 + $0x200] sm:$0xff] %vm629_vm3, %v16134_v4  ;;  %14967 = vmatpush3.msk.msra.mxu1 %vm856_vm0, %v16550_v12  ;;  %14821 = vmatprep.mubr.msk.f32.mxu0 %vm353_vm1, %v1507_v13  ;;  %v1478_v12 = vld [vmem:[#allocation2 + $0x50] sm:$0xff]  ;;  %v1497_v58 = vld [vmem:[#allocation2 + $0x188] sm:$0xff] }
  0x9d   : > { %8140 = vst.msk [vmem:[#allocation4 + $0x208] sm:$0xff] %vm629_vm3, %v16134_v4  ;;  %8141 = vst.msk [vmem:[#allocation4 + $0x210] sm:$0xff] %vm629_vm3, %v16134_v4  ;;  %14871 = vmatprep.mubr.msk.f32.mxu1 %vm353_vm1, %v1475_v14  ;;  %15016 = vmatprep.subr.msk.mxu0 %vm856_vm0, %v16926_v15  ;;  %v1531_v61 = vld [vmem:[#allocation3 + $0x1a8] sm:$0xff]  ;;  %v529_v5 = vld [vmem:[%s16531_s26 + $0xf0] sm:$0xff] }
  0x9e   : > { %8143 = vst.msk [vmem:[#allocation4 + $0x220] sm:$0xff] %vm629_vm3, %v16134_v4  ;;  %8144 = vst.msk [vmem:[#allocation4 + $0x228] sm:$0xff] %vm629_vm3, %v16134_v4  ;;  %15066 = vmatprep.subr.msk.mxu1 %vm856_vm0, %v16931_v16  ;;  %14822 = vmatmul.mubr.msk.f32.gmra.mxu0 %vm353_vm1, %v1508_v17  ;;  %v1499_v62 = vld [vmem:[#allocation2 + $0x1a8] sm:$0xff]  ;;  %v595_v6 = vld [vmem:[%s16525_s23 + $0xf8] sm:$0xff] }
  0x9f   : > { %8145 = vst.msk [vmem:[#allocation4 + $0x230] sm:$0xff] %vm629_vm3, %v16134_v4  ;;  %14872 = vmatmul.mubr.msk.f32.gmra.mxu1 %vm353_vm1, %v1476_v18  ;;  %14824 = vmatprep.mubr.msk.f32.mxu0 %vm353_vm1, %v1509_v19  ;;  %v1533_v1 = vld [vmem:[#allocation3 + $0x1c8] sm:$0xff]  ;;  %v1534_v7 = vld [vmem:[#allocation3 + $0x1d0] sm:$0xff]  ;;  %v530_v9 = vld [vmem:[%s16531_s26 + $0xf8] sm:$0xff] }
  0xa0   : > { %14874 = vmatprep.mubr.msk.f32.mxu1 %vm353_vm1, %v1477_v20  ;;  %v1501_v2 = vld [vmem:[#allocation2 + $0x1c8] sm:$0xff]  ;;  %627 = vst.msk [vmem:[#allocation3 + $0x208] sm:$0xff] %vm353_vm1, %v594_v3  ;;  %v1502_v8 = vld [vmem:[#allocation2 + $0x1d0] sm:$0xff]  ;;  %562 = vst.msk [vmem:[#allocation2 + $0x208] sm:$0xff] %vm353_vm1, %v529_v5 }
  0xa1   : > { %628 = vst.msk [vmem:[#allocation3 + $0x210] sm:$0xff] %vm353_vm1, %v595_v6  ;;  %v1535_v10 = vld [vmem:[#allocation3 + $0x1e8] sm:$0xff]  ;;  %563 = vst.msk [vmem:[#allocation2 + $0x210] sm:$0xff] %vm353_vm1, %v530_v9  ;;  %v1536_v14 = vld [vmem:[#allocation3 + $0x1f0] sm:$0xff] }
  0xa2   : > { %14825 = vmatmul.mubr.msk.f32.gmra.mxu0 %vm353_vm1, %v1510_v11  ;;  %v1503_v13 = vld [vmem:[#allocation2 + $0x1e8] sm:$0xff]  ;;  %v1504_v17 = vld [vmem:[#allocation2 + $0x1f0] sm:$0xff]  ;;  %8078 = vst.msk [vmem:[#allocation4 + $0x18] sm:$0x1] %vm8077_vm4, %v16134_v4  ;;  %8082 = vst.msk [vmem:[#allocation4 + $0x38] sm:$0x1] %vm8077_vm4, %v16134_v4 }
  0xa3   : > { %14875 = vmatmul.mubr.msk.f32.gmra.mxu1 %vm353_vm1, %v1478_v12  ;;  %14827 = vmatprep.mubr.msk.f32.mxu0 %vm353_vm1, %v1511_v21  ;;  %v2317_v18 = vld [vmem:[#allocation3 + $0x9] sm:$0xff]  ;;  %v2318_v20 = vld [vmem:[#allocation3 + $0x11] sm:$0xff]  ;;  %8086 = vst.msk [vmem:[#allocation4 + $0x58] sm:$0x1] %vm8077_vm4, %v16134_v4  ;;  %8090 = vst.msk [vmem:[#allocation4 + $0x78] sm:$0x1] %vm8077_vm4, %v16134_v4 }
  0xa4   : > { %14877 = vmatprep.mubr.msk.f32.mxu1 %vm353_vm1, %v1479_v22  ;;  %v2285_v19 = vld [vmem:[#allocation2 + $0x9] sm:$0xff]  ;;  %v2286_v11 = vld [vmem:[#allocation2 + $0x11] sm:$0xff]  ;;  %8094 = vst.msk [vmem:[#allocation4 + $0x98] sm:$0x1] %vm8077_vm4, %v16134_v4  ;;  %8098 = vst.msk [vmem:[#allocation4 + $0xb8] sm:$0x1] %vm8077_vm4, %v16134_v4 }
  0xa5   : > { %v2319_v12 = vld [vmem:[#allocation3 + $0x29] sm:$0xff]  ;;  %v2310_v3 = vld [vmem:[#allocation2 + $0x191] sm:$0xff]  ;;  %8102 = vst.msk [vmem:[#allocation4 + $0xd8] sm:$0x1] %vm8077_vm4, %v16134_v4  ;;  %8106 = vst.msk [vmem:[#allocation4 + $0xf8] sm:$0x1] %vm8077_vm4, %v16134_v4 }
  0xa6   : > { %14828 = vmatmul.mubr.msk.f32.gmra.mxu0 %vm353_vm1, %v1512_v23  ;;  %v2287_v21 = vld [vmem:[#allocation2 + $0x29] sm:$0xff]  ;;  %8110 = vst.msk [vmem:[#allocation4 + $0x118] sm:$0x1] %vm8077_vm4, %v16134_v4  ;;  %8114 = vst.msk [vmem:[#allocation4 + $0x138] sm:$0x1] %vm8077_vm4, %v16134_v4 }
  0xa7   : > { %14878 = vmatmul.mubr.msk.f32.gmra.mxu1 %vm353_vm1, %v1480_v24  ;;  %14830 = vmatprep.mubr.msk.f32.mxu0 %vm353_vm1, %v1513_v25  ;;  %v17016_v22 = vld [vmem:[%s19239_s3 + $0x10] sm:$0xf]  ;;  %8118 = vst.msk [vmem:[#allocation4 + $0x158] sm:$0x1] %vm8077_vm4, %v16134_v4  ;;  %8122 = vst.msk [vmem:[#allocation4 + $0x178] sm:$0x1] %vm8077_vm4, %v16134_v4 }
  0xa8   : > { %14880 = vmatprep.mubr.msk.f32.mxu1 %vm353_vm1, %v1481_v26  ;;  %v17021_v23 = vld [vmem:[%s19238_s2 + $0x10] sm:$0xf]  ;;  %8126 = vst.msk [vmem:[#allocation4 + $0x198] sm:$0x1] %vm8077_vm4, %v16134_v4  ;;  %8130 = vst.msk [vmem:[#allocation4 + $0x1b8] sm:$0x1] %vm8077_vm4, %v16134_v4 }
  0xa9   : > { %v2320_v24 = vld [vmem:[#allocation3 + $0x31] sm:$0xff]  ;;  %v2321_v26 = vld [vmem:[#allocation3 + $0x49] sm:$0xff]  ;;  %8134 = vst.msk [vmem:[#allocation4 + $0x1d8] sm:$0x1] %vm8077_vm4, %v16134_v4  ;;  %8138 = vst.msk [vmem:[#allocation4 + $0x1f8] sm:$0x1] %vm8077_vm4, %v16134_v4 }
  0xaa   : > { %14831 = vmatmul.mubr.msk.f32.gmra.mxu0 %vm353_vm1, %v1514_v27  ;;  %v2288_v25 = vld [vmem:[#allocation2 + $0x31] sm:$0xff]  ;;  %v2289_v27 = vld [vmem:[#allocation2 + $0x49] sm:$0xff]  ;;  %8142 = vst.msk [vmem:[#allocation4 + $0x218] sm:$0x1] %vm8077_vm4, %v16134_v4  ;;  %8146 = vst.msk [vmem:[#allocation4 + $0x238] sm:$0x1] %vm8077_vm4, %v16134_v4 }
  0xab   : > { %14881 = vmatmul.mubr.msk.f32.gmra.mxu1 %vm353_vm1, %v1482_v28  ;;  %14833 = vmatprep.mubr.msk.f32.mxu0 %vm353_vm1, %v1515_v29  ;;  %v2323_v28 = vld [vmem:[#allocation3 + $0x69] sm:$0xff] }
  0xac   : > { %14883 = vmatprep.mubr.msk.f32.mxu1 %vm353_vm1, %v1483_v30  ;;  %v2291_v29 = vld [vmem:[#allocation2 + $0x69] sm:$0xff]  ;;  %v2324_v30 = vld [vmem:[#allocation3 + $0x71] sm:$0xff] }
  0xad   : > { %v2343_v5 = vld [vmem:[#allocation3 + $0x1a9] sm:$0xff] }
  0xae   : > { %14834 = vmatmul.mubr.msk.f32.gmra.mxu0 %vm353_vm1, %v1516_v31  ;;  %v2292_v31 = vld [vmem:[#allocation2 + $0x71] sm:$0xff]  ;;  %v2311_v6 = vld [vmem:[#allocation2 + $0x1a9] sm:$0xff] }
  0xaf   : > { %14884 = vmatmul.mubr.msk.f32.gmra.mxu1 %vm353_vm1, %v1484_v32  ;;  %14836 = vmatprep.mubr.msk.f32.mxu0 %vm353_vm1, %v1517_v33  ;;  %v2325_v32 = vld [vmem:[#allocation3 + $0x89] sm:$0xff] }
  0xb0   : > { %14886 = vmatprep.mubr.msk.f32.mxu1 %vm353_vm1, %v1485_v34  ;;  %v2293_v33 = vld [vmem:[#allocation2 + $0x89] sm:$0xff]  ;;  %v2326_v34 = vld [vmem:[#allocation3 + $0x91] sm:$0xff] }
  0xb1   : > { %v2345_v9 = vld [vmem:[#allocation3 + $0x1c9] sm:$0xff] }
  0xb2   : > { %14837 = vmatmul.mubr.msk.f32.gmra.mxu0 %vm353_vm1, %v1518_v35  ;;  %v2294_v35 = vld [vmem:[#allocation2 + $0x91] sm:$0xff] }
  0xb3   : > { %14887 = vmatmul.mubr.msk.f32.gmra.mxu1 %vm353_vm1, %v1486_v36  ;;  %14839 = vmatprep.mubr.msk.f32.mxu0 %vm353_vm1, %v1519_v37  ;;  %v2327_v36 = vld [vmem:[#allocation3 + $0xa9] sm:$0xff] }
  0xb4   : > { %14889 = vmatprep.mubr.msk.f32.mxu1 %vm353_vm1, %v1487_v38  ;;  %v2295_v37 = vld [vmem:[#allocation2 + $0xa9] sm:$0xff]  ;;  %v2328_v38 = vld [vmem:[#allocation3 + $0xb1] sm:$0xff] }
  0xb6   : > { %14840 = vmatmul.mubr.msk.f32.gmra.mxu0 %vm353_vm1, %v1520_v39  ;;  %v2296_v39 = vld [vmem:[#allocation2 + $0xb1] sm:$0xff] }
  0xb7   : > { %14890 = vmatmul.mubr.msk.f32.gmra.mxu1 %vm353_vm1, %v1488_v40  ;;  %14842 = vmatprep.mubr.msk.f32.mxu0 %vm353_vm1, %v1521_v41  ;;  %v2329_v40 = vld [vmem:[#allocation3 + $0xc9] sm:$0xff] }
  0xb8   : > { %14892 = vmatprep.mubr.msk.f32.mxu1 %vm353_vm1, %v1489_v42  ;;  %v2297_v41 = vld [vmem:[#allocation2 + $0xc9] sm:$0xff]  ;;  %v2330_v42 = vld [vmem:[#allocation3 + $0xd1] sm:$0xff] }
  0xba   : > { %14843 = vmatmul.mubr.msk.f32.gmra.mxu0 %vm353_vm1, %v1522_v43  ;;  %v2298_v43 = vld [vmem:[#allocation2 + $0xd1] sm:$0xff] }
  0xbb   : > { %14893 = vmatmul.mubr.msk.f32.gmra.mxu1 %vm353_vm1, %v1490_v44  ;;  %14845 = vmatprep.mubr.msk.f32.mxu0 %vm353_vm1, %v1523_v45  ;;  %v2331_v44 = vld [vmem:[#allocation3 + $0xe9] sm:$0xff] }
  0xbc   : > { %14895 = vmatprep.mubr.msk.f32.mxu1 %vm353_vm1, %v1491_v46  ;;  %v2299_v45 = vld [vmem:[#allocation2 + $0xe9] sm:$0xff]  ;;  %v2332_v46 = vld [vmem:[#allocation3 + $0xf1] sm:$0xff] }
  0xbe   : > { %14846 = vmatmul.mubr.msk.f32.gmra.mxu0 %vm353_vm1, %v1524_v47  ;;  %v2300_v47 = vld [vmem:[#allocation2 + $0xf1] sm:$0xff] }
  0xbf   : > { %14896 = vmatmul.mubr.msk.f32.gmra.mxu1 %vm353_vm1, %v1492_v48  ;;  %14848 = vmatprep.mubr.msk.f32.mxu0 %vm353_vm1, %v1525_v49  ;;  %v2333_v48 = vld [vmem:[#allocation3 + $0x109] sm:$0xff] }
  0xc0   : > { %14898 = vmatprep.mubr.msk.f32.mxu1 %vm353_vm1, %v1493_v50  ;;  %v2301_v49 = vld [vmem:[#allocation2 + $0x109] sm:$0xff]  ;;  %v2334_v50 = vld [vmem:[#allocation3 + $0x111] sm:$0xff] }
  0xc2   : > { %14849 = vmatmul.mubr.msk.f32.gmra.mxu0 %vm353_vm1, %v1526_v51  ;;  %v2302_v51 = vld [vmem:[#allocation2 + $0x111] sm:$0xff] }
  0xc3   : > { %14899 = vmatmul.mubr.msk.f32.gmra.mxu1 %vm353_vm1, %v1494_v52  ;;  %14851 = vmatprep.mubr.msk.f32.mxu0 %vm353_vm1, %v1527_v53  ;;  %v2335_v52 = vld [vmem:[#allocation3 + $0x129] sm:$0xff] }
  0xc4   : > { %14901 = vmatprep.mubr.msk.f32.mxu1 %vm353_vm1, %v1495_v54  ;;  %v2303_v53 = vld [vmem:[#allocation2 + $0x129] sm:$0xff]  ;;  %v2336_v54 = vld [vmem:[#allocation3 + $0x131] sm:$0xff] }
  0xc6   : > { %14852 = vmatmul.mubr.msk.f32.gmra.mxu0 %vm353_vm1, %v1528_v55  ;;  %v2304_v55 = vld [vmem:[#allocation2 + $0x131] sm:$0xff] }
  0xc7   : > { %14902 = vmatmul.mubr.msk.f32.gmra.mxu1 %vm353_vm1, %v1496_v56  ;;  %14854 = vmatprep.mubr.msk.f32.mxu0 %vm353_vm1, %v1529_v57  ;;  %v2337_v56 = vld [vmem:[#allocation3 + $0x149] sm:$0xff] }
  0xc8   : > { %14904 = vmatprep.mubr.msk.f32.mxu1 %vm353_vm1, %v1497_v58  ;;  %v2305_v57 = vld [vmem:[#allocation2 + $0x149] sm:$0xff]  ;;  %v2338_v58 = vld [vmem:[#allocation3 + $0x151] sm:$0xff] }
  0xca   : > { %14855 = vmatmul.mubr.msk.f32.gmra.mxu0 %vm353_vm1, %v1530_v59  ;;  %v2306_v59 = vld [vmem:[#allocation2 + $0x151] sm:$0xff] }
  0xcb   : > { %14905 = vmatmul.mubr.msk.f32.gmra.mxu1 %vm353_vm1, %v1498_v60  ;;  %14857 = vmatprep.mubr.msk.f32.mxu0 %vm353_vm1, %v1531_v61  ;;  %v2339_v60 = vld [vmem:[#allocation3 + $0x169] sm:$0xff] }
  0xcc   : > { %14907 = vmatprep.mubr.msk.f32.mxu1 %vm353_vm1, %v1499_v62  ;;  %v2307_v61 = vld [vmem:[#allocation2 + $0x169] sm:$0xff]  ;;  %v2340_v62 = vld [vmem:[#allocation3 + $0x171] sm:$0xff] }
  0xce   : > { %14858 = vmatmul.mubr.msk.f32.gmra.mxu0 %vm353_vm1, %v1532_v63  ;;  %v2308_v63 = vld [vmem:[#allocation2 + $0x171] sm:$0xff] }
  0xcf   : > { %14908 = vmatmul.mubr.msk.f32.gmra.mxu1 %vm353_vm1, %v1500_v0  ;;  %14860 = vmatprep.mubr.msk.f32.mxu0 %vm353_vm1, %v1533_v1  ;;  %v2341_v0 = vld [vmem:[#allocation3 + $0x189] sm:$0xff] }
  0xd0   : > { %14910 = vmatprep.mubr.msk.f32.mxu1 %vm353_vm1, %v1501_v2  ;;  %v2309_v1 = vld [vmem:[#allocation2 + $0x189] sm:$0xff]  ;;  %v2342_v2 = vld [vmem:[#allocation3 + $0x191] sm:$0xff] }
  0xd2   : > { %14861 = vmatmul.mubr.msk.f32.gmra.mxu0 %vm353_vm1, %v1534_v7  ;;  %v2344_v7 = vld [vmem:[#allocation3 + $0x1b1] sm:$0xff] }
  0xd3   : > { %14911 = vmatmul.mubr.msk.f32.gmra.mxu1 %vm353_vm1, %v1502_v8  ;;  %14863 = vmatprep.mubr.msk.f32.mxu0 %vm353_vm1, %v1535_v10  ;;  %v2312_v8 = vld [vmem:[#allocation2 + $0x1b1] sm:$0xff]  ;;  %v2313_v10 = vld [vmem:[#allocation2 + $0x1c9] sm:$0xff] }
  0xd4   : > { %14913 = vmatprep.mubr.msk.f32.mxu1 %vm353_vm1, %v1503_v13  ;;  %v2346_v13 = vld [vmem:[#allocation3 + $0x1d1] sm:$0xff] }
  0xd6   : > { %14864 = vmatmul.mubr.msk.f32.gmra.mxu0 %vm353_vm1, %v1536_v14  ;;  %v2314_v14 = vld [vmem:[#allocation2 + $0x1d1] sm:$0xff] }
  0xd7   : > { %14914 = vmatmul.mubr.msk.f32.gmra.mxu1 %vm353_vm1, %v1504_v17  ;;  %14918 = vmatprep.mubr.msk.f32.mxu0 %vm353_vm1, %v2317_v18  ;;  %v2347_v17 = vld [vmem:[#allocation3 + $0x1e9] sm:$0xff] }
  0xd8   : > { %14968 = vmatprep.mubr.msk.f32.mxu1 %vm353_vm1, %v2285_v19  ;;  %v2315_v18 = vld [vmem:[#allocation2 + $0x1e9] sm:$0xff]  ;;  %v2348_v19 = vld [vmem:[#allocation3 + $0x1f1] sm:$0xff] }
  0xda   : > { %14919 = vmatmul.mubr.msk.f32.vlgmr.msra.gmra.mxu0 %vm353_vm1, %v2318_v20  ;;  %v2316_v20 = vld [vmem:[#allocation2 + $0x1f1] sm:$0xff] }
  0xdb   : > { %14969 = vmatmul.mubr.msk.f32.vlgmr.msra.gmra.mxu1 %vm353_vm1, %v2286_v11  ;;  %15017 = vmatpush3.msk.msra.mxu0 %vm856_vm0, %v16926_v15  ;;  %v2322_v15 = vld [vmem:[#allocation3 + $0x51] sm:$0xff]  ;;  %v3129_v11 = vld [vmem:[#allocation3 + $0x27] sm:$0xff] }
  0xdc   : > { %15067 = vmatpush3.msk.msra.mxu1 %vm856_vm0, %v16931_v16  ;;  %14921 = vmatprep.mubr.msk.f32.mxu0 %vm353_vm1, %v2319_v12  ;;  %v2290_v16 = vld [vmem:[#allocation2 + $0x51] sm:$0xff]  ;;  %v3097_v12 = vld [vmem:[#allocation2 + $0x27] sm:$0xff] }
  0xdd   : > { %14971 = vmatprep.mubr.msk.f32.mxu1 %vm353_vm1, %v2287_v21  ;;  %15116 = vmatprep.subr.msk.mxu0 %vm856_vm0, %v17016_v22  ;;  %v3130_v21 = vld [vmem:[#allocation3 + $0x2f] sm:$0xff] }
  0xde   : > { %15166 = vmatprep.subr.msk.mxu1 %vm856_vm0, %v17021_v23  ;;  %14922 = vmatmul.mubr.msk.f32.gmra.mxu0 %vm353_vm1, %v2320_v24  ;;  %v3098_v24 = vld [vmem:[#allocation2 + $0x2f] sm:$0xff] }
  0xdf   : > { %14972 = vmatmul.mubr.msk.f32.gmra.mxu1 %vm353_vm1, %v2288_v25  ;;  %14924 = vmatprep.mubr.msk.f32.mxu0 %vm353_vm1, %v2321_v26  ;;  %v727_v26 = vld [vmem:[#allocation5 + $0x8] sm:$0xff] }
  0xe0   : > { %14974 = vmatprep.mubr.msk.f32.mxu1 %vm353_vm1, %v2289_v27  ;;  %v14770_v27 = vpop.f32.mrf.mxu1 }
  0xe2   : > { %14925 = vmatmul.mubr.msk.f32.gmra.mxu0 %vm353_vm1, %v2322_v15 }
  0xe3   : > { %14975 = vmatmul.mubr.msk.f32.gmra.mxu1 %vm353_vm1, %v2290_v16  ;;  %14927 = vmatprep.mubr.msk.f32.mxu0 %vm353_vm1, %v2323_v28  ;;  %v3131_v16 = vld [vmem:[#allocation3 + $0x47] sm:$0xff] }
  0xe4   : > { %14977 = vmatprep.mubr.msk.f32.mxu1 %vm353_vm1, %v2291_v29  ;;  %v3099_v28 = vld [vmem:[#allocation2 + $0x47] sm:$0xff] }
  0xe6   : > { %14928 = vmatmul.mubr.msk.f32.gmra.mxu0 %vm353_vm1, %v2324_v30  ;;  %v726_v30 = vld [vmem:[#allocation5] sm:$0xff] }
  0xe7   : > { %14978 = vmatmul.mubr.msk.f32.gmra.mxu1 %vm353_vm1, %v2292_v31  ;;  %14930 = vmatprep.mubr.msk.f32.mxu0 %vm353_vm1, %v2325_v32  ;;  %v1250_v31 = vpop.f32.mrf.mxu1  ;;  %v17098_v32 = vld [vmem:[%s19239_s3 + $0x14] sm:$0xf] }
  0xe8   : > { %14980 = vmatprep.mubr.msk.f32.mxu1 %vm353_vm1, %v2293_v33  ;;  %v17103_v33 = vld [vmem:[%s19238_s2 + $0x14] sm:$0xf] }
  0xea   : > { %14931 = vmatmul.mubr.msk.f32.gmra.mxu0 %vm353_vm1, %v2326_v34 }
  0xeb   : > { %14981 = vmatmul.mubr.msk.f32.gmra.mxu1 %vm353_vm1, %v2294_v35  ;;  %14933 = vmatprep.mubr.msk.f32.mxu0 %vm353_vm1, %v2327_v36  ;;  %v3132_v36 = vld [vmem:[#allocation3 + $0x4f] sm:$0xff] }
  0xec   : > { %14983 = vmatprep.mubr.msk.f32.mxu1 %vm353_vm1, %v2295_v37  ;;  %v3100_v37 = vld [vmem:[#allocation2 + $0x4f] sm:$0xff] }
  0xee   : > { %14934 = vmatmul.mubr.msk.f32.gmra.mxu0 %vm353_vm1, %v2328_v38  ;;  %v3133_v38 = vld [vmem:[#allocation3 + $0x67] sm:$0xff] }
  0xef   : > { %14984 = vmatmul.mubr.msk.f32.gmra.mxu1 %vm353_vm1, %v2296_v39  ;;  %14936 = vmatprep.mubr.msk.f32.mxu0 %vm353_vm1, %v2329_v40  ;;  %v3101_v39 = vld [vmem:[#allocation2 + $0x67] sm:$0xff] }
  0xf0   : > { %14986 = vmatprep.mubr.msk.f32.mxu1 %vm353_vm1, %v2297_v41  ;;  %v729_v41 = vld [vmem:[#allocation5 + $0x18] sm:$0xff] }
  0xf1   : > { %v14720_v25 = vpop.f32.mrf.mxu0 }
  0xf2   : > { %14937 = vmatmul.mubr.msk.f32.gmra.mxu0 %vm353_vm1, %v2330_v42  ;;  %v1256_v15 = vadd.f32 %v14770_v27, %v14720_v25  ;;  %v3108_v27 = vld [vmem:[#allocation2 + $0xcf] sm:$0xff] }
  0xf3   : > { %14987 = vmatmul.mubr.msk.f32.gmra.mxu1 %vm353_vm1, %v2298_v43  ;;  %14939 = vmatprep.mubr.msk.f32.mxu0 %vm353_vm1, %v2331_v44  ;;  %v926_v29 = vpop.f32.mrf.mxu0  ;;  %v3134_v43 = vld [vmem:[#allocation3 + $0x6f] sm:$0xff] }
  0xf4   : > { %14989 = vmatprep.mubr.msk.f32.mxu1 %vm353_vm1, %v2299_v45  ;;  %v1410_v34 = vadd.f32 %v1256_v15, %v727_v26  ;;  %v1251_v35 = vadd.f32 %v1250_v31, %v926_v29  ;;  %v3102_v44 = vld [vmem:[#allocation2 + $0x6f] sm:$0xff]  ;;  %v3141_v29 = vld [vmem:[#allocation3 + $0xe7] sm:$0xff] }
  0xf5   : > { %v3140_v26 = vld [vmem:[#allocation3 + $0xcf] sm:$0xff] }
  0xf6   : > { %14940 = vmatmul.mubr.msk.f32.gmra.mxu0 %vm353_vm1, %v2332_v46  ;;  %1442 = vst.msk [vmem:[#allocation5 + $0x8] sm:$0xff] %vm629_vm3, %v1410_v34  ;;  %v1409_v40 = vadd.f32 %v1251_v35, %v726_v30  ;;  %v728_v46 = vld [vmem:[#allocation5 + $0x10] sm:$0xff]  ;;  %v3109_v30 = vld [vmem:[#allocation2 + $0xe7] sm:$0xff] }
  0xf7   : > { %14990 = vmatmul.mubr.msk.f32.gmra.mxu1 %vm353_vm1, %v2300_v47  ;;  %14942 = vmatprep.mubr.msk.f32.mxu0 %vm353_vm1, %v2333_v48  ;;  %v3135_v48 = vld [vmem:[#allocation3 + $0x87] sm:$0xff] }
  0xf8   : > { %14992 = vmatprep.mubr.msk.f32.mxu1 %vm353_vm1, %v2301_v49  ;;  %1441 = vst.msk [vmem:[#allocation5] sm:$0xff] %vm629_vm3, %v1409_v40  ;;  %v3103_v49 = vld [vmem:[#allocation2 + $0x87] sm:$0xff]  ;;  %v3142_v40 = vld [vmem:[#allocation3 + $0xef] sm:$0xff] }
  0xfa   : > { %14943 = vmatmul.mubr.msk.f32.gmra.mxu0 %vm353_vm1, %v2334_v50 }
  0xfb   : > { %14993 = vmatmul.mubr.msk.f32.gmra.mxu1 %vm353_vm1, %v2302_v51  ;;  %14945 = vmatprep.mubr.msk.f32.mxu0 %vm353_vm1, %v2335_v52 }
  0xfc   : > { %14995 = vmatprep.mubr.msk.f32.mxu1 %vm353_vm1, %v2303_v53  ;;  %v731_v53 = vld [vmem:[#allocation5 + $0x28] sm:$0xff] }
  0xfe   : > { %14946 = vmatmul.mubr.msk.f32.gmra.mxu0 %vm353_vm1, %v2336_v54 }
  0xff   : > { %14996 = vmatmul.mubr.msk.f32.gmra.mxu1 %vm353_vm1, %v2304_v55  ;;  %14948 = vmatprep.mubr.msk.f32.mxu0 %vm353_vm1, %v2337_v56 }
 0x100   : > { %14998 = vmatprep.mubr.msk.f32.mxu1 %vm353_vm1, %v2305_v57  ;;  %v3136_v57 = vld [vmem:[#allocation3 + $0x8f] sm:$0xff] }
 0x102   : > { %14949 = vmatmul.mubr.msk.f32.gmra.mxu0 %vm353_vm1, %v2338_v58  ;;  %v3104_v58 = vld [vmem:[#allocation2 + $0x8f] sm:$0xff] }
 0x103   : > { %14999 = vmatmul.mubr.msk.f32.gmra.mxu1 %vm353_vm1, %v2306_v59  ;;  %14951 = vmatprep.mubr.msk.f32.mxu0 %vm353_vm1, %v2339_v60  ;;  %v730_v60 = vld [vmem:[#allocation5 + $0x20] sm:$0xff] }
 0x104   : > { %15001 = vmatprep.mubr.msk.f32.mxu1 %vm353_vm1, %v2307_v61 }
 0x106   : > { %14952 = vmatmul.mubr.msk.f32.gmra.mxu0 %vm353_vm1, %v2340_v62  ;;  %v3137_v62 = vld [vmem:[#allocation3 + $0xa7] sm:$0xff] }
 0x107   : > { %15002 = vmatmul.mubr.msk.f32.gmra.mxu1 %vm353_vm1, %v2308_v63  ;;  %14954 = vmatprep.mubr.msk.f32.mxu0 %vm353_vm1, %v2341_v0  ;;  %v3105_v63 = vld [vmem:[#allocation2 + $0xa7] sm:$0xff] }
 0x108   : > { %15004 = vmatprep.mubr.msk.f32.mxu1 %vm353_vm1, %v2309_v1 }
 0x10a   : > { %14955 = vmatmul.mubr.msk.f32.gmra.mxu0 %vm353_vm1, %v2342_v2 }
 0x10b   : > { %15005 = vmatmul.mubr.msk.f32.gmra.mxu1 %vm353_vm1, %v2310_v3  ;;  %14957 = vmatprep.mubr.msk.f32.mxu0 %vm353_vm1, %v2343_v5  ;;  %v733_v3 = vld [vmem:[#allocation5 + $0x38] sm:$0xff] }
 0x10c   : > { %15007 = vmatprep.mubr.msk.f32.mxu1 %vm353_vm1, %v2311_v6 }
 0x10e   : > { %14958 = vmatmul.mubr.msk.f32.gmra.mxu0 %vm353_vm1, %v2344_v7 }
 0x10f   : > { %15008 = vmatmul.mubr.msk.f32.gmra.mxu1 %vm353_vm1, %v2312_v8  ;;  %14960 = vmatprep.mubr.msk.f32.mxu0 %vm353_vm1, %v2345_v9  ;;  %v3138_v8 = vld [vmem:[#allocation3 + $0xaf] sm:$0xff] }
 0x110   : > { %15010 = vmatprep.mubr.msk.f32.mxu1 %vm353_vm1, %v2313_v10  ;;  %v3106_v9 = vld [vmem:[#allocation2 + $0xaf] sm:$0xff] }
 0x112   : > { %14961 = vmatmul.mubr.msk.f32.gmra.mxu0 %vm353_vm1, %v2346_v13  ;;  %v732_v13 = vld [vmem:[#allocation5 + $0x30] sm:$0xff] }
 0x113   : > { %15011 = vmatmul.mubr.msk.f32.gmra.mxu1 %vm353_vm1, %v2314_v14  ;;  %14963 = vmatprep.mubr.msk.f32.mxu0 %vm353_vm1, %v2347_v17  ;;  %v3139_v17 = vld [vmem:[#allocation3 + $0xc7] sm:$0xff] }
 0x114   : > { %15013 = vmatprep.mubr.msk.f32.mxu1 %vm353_vm1, %v2315_v18  ;;  %v3107_v18 = vld [vmem:[#allocation2 + $0xc7] sm:$0xff] }
 0x116   : > { %14964 = vmatmul.mubr.msk.f32.gmra.mxu0 %vm353_vm1, %v2348_v19 }
 0x117   : > { %15014 = vmatmul.mubr.msk.f32.gmra.mxu1 %vm353_vm1, %v2316_v20  ;;  %15018 = vmatprep.mubr.msk.f32.mxu0 %vm353_vm1, %v3129_v11 }
 0x118   : > { %15068 = vmatprep.mubr.msk.f32.mxu1 %vm353_vm1, %v3097_v12  ;;  %v735_v12 = vld [vmem:[#allocation5 + $0x48] sm:$0xff] }
 0x11a   : > { %15019 = vmatmul.mubr.msk.f32.vlgmr.msra.gmra.mxu0 %vm353_vm1, %v3130_v21 }
 0x11b   : > { %15069 = vmatmul.mubr.msk.f32.vlgmr.msra.gmra.mxu1 %vm353_vm1, %v3098_v24  ;;  %15117 = vmatpush3.msk.msra.mxu0 %vm856_vm0, %v17016_v22 }
 0x11c   : > { %15167 = vmatpush3.msk.msra.mxu1 %vm856_vm0, %v17021_v23  ;;  %15021 = vmatprep.mubr.msk.f32.mxu0 %vm353_vm1, %v3131_v16  ;;  %v734_v16 = vld [vmem:[#allocation5 + $0x40] sm:$0xff] }
 0x11d   : > { %15071 = vmatprep.mubr.msk.f32.mxu1 %vm353_vm1, %v3099_v28  ;;  %15216 = vmatprep.subr.msk.mxu0 %vm856_vm0, %v17098_v32 }
 0x11e   : > { %15266 = vmatprep.subr.msk.mxu1 %vm856_vm0, %v17103_v33  ;;  %v14723_v22 = vpop.f32.mrf.mxu0  ;;  %15022 = vmatmul.mubr.msk.f32.gmra.mxu0 %vm353_vm1, %v3132_v36  ;;  %v737_v36 = vld [vmem:[#allocation5 + $0x58] sm:$0xff] }
 0x11f   : > { %v14773_v23 = vpop.f32.mrf.mxu1  ;;  %15072 = vmatmul.mubr.msk.f32.gmra.mxu1 %vm353_vm1, %v3100_v37  ;;  %15024 = vmatprep.mubr.msk.f32.mxu0 %vm353_vm1, %v3133_v38 }
 0x120   : > { %v1266_v42 = vadd.f32 %v14773_v23, %v14723_v22  ;;  %15074 = vmatprep.mubr.msk.f32.mxu1 %vm353_vm1, %v3101_v39  ;;  %v936_v45 = vpop.f32.mrf.mxu0  ;;  %v3110_v22 = vld [vmem:[#allocation2 + $0xef] sm:$0xff] }
 0x121   : > { %v1260_v47 = vpop.f32.mrf.mxu1  ;;  %v736_v23 = vld [vmem:[#allocation5 + $0x50] sm:$0xff] }
 0x122   : > { %v1412_v50 = vadd.f32 %v1266_v42, %v729_v41  ;;  %v1261_v51 = vadd.f32 %v1260_v47, %v936_v45  ;;  %v14726_v52 = vpop.f32.mrf.mxu0  ;;  %15025 = vmatmul.mubr.msk.f32.gmra.mxu0 %vm353_vm1, %v3134_v43  ;;  %v3143_v43 = vld [vmem:[#allocation3 + $0x107] sm:$0xff] }
 0x123   : > { %v14776_v54 = vpop.f32.mrf.mxu1  ;;  %15075 = vmatmul.mubr.msk.f32.gmra.mxu1 %vm353_vm1, %v3102_v44  ;;  %15027 = vmatprep.mubr.msk.f32.mxu0 %vm353_vm1, %v3135_v48  ;;  %v3111_v44 = vld [vmem:[#allocation2 + $0x107] sm:$0xff] }
 0x124   : > { %1444 = vst.msk [vmem:[#allocation5 + $0x18] sm:$0xff] %vm629_vm3, %v1412_v50  ;;  %v1411_v55 = vadd.f32 %v1261_v51, %v728_v46  ;;  %v1276_v56 = vadd.f32 %v14776_v54, %v14726_v52  ;;  %15077 = vmatprep.mubr.msk.f32.mxu1 %vm353_vm1, %v3103_v49  ;;  %v946_v59 = vpop.f32.mrf.mxu0  ;;  %v739_v48 = vld [vmem:[#allocation5 + $0x68] sm:$0xff] }
 0x125   : > { %v1270_v61 = vpop.f32.mrf.mxu1  ;;  %v3144_v52 = vld [vmem:[#allocation3 + $0x10f] sm:$0xff] }
 0x126   : > { %1443 = vst.msk [vmem:[#allocation5 + $0x10] sm:$0xff] %vm629_vm3, %v1411_v55  ;;  %v1414_v0 = vadd.f32 %v1276_v56, %v731_v53  ;;  %v1271_v1 = vadd.f32 %v1270_v61, %v946_v59  ;;  %v14729_v2 = vpop.f32.mrf.mxu0  ;;  %15028 = vmatmul.mubr.msk.f32.gmra.mxu0 %vm353_vm1, %v3136_v57  ;;  %v3112_v53 = vld [vmem:[#allocation2 + $0x10f] sm:$0xff]  ;;  %v738_v55 = vld [vmem:[#allocation5 + $0x60] sm:$0xff] }
 0x127   : > { %v14779_v5 = vpop.f32.mrf.mxu1  ;;  %15078 = vmatmul.mubr.msk.f32.gmra.mxu1 %vm353_vm1, %v3104_v58  ;;  %15030 = vmatprep.mubr.msk.f32.mxu0 %vm353_vm1, %v3137_v62  ;;  %v3145_v57 = vld [vmem:[#allocation3 + $0x127] sm:$0xff]  ;;  %v741_v62 = vld [vmem:[#allocation5 + $0x78] sm:$0xff] }
 0x128   : > { %1446 = vst.msk [vmem:[#allocation5 + $0x28] sm:$0xff] %vm629_vm3, %v1414_v0  ;;  %v1413_v6 = vadd.f32 %v1271_v1, %v730_v60  ;;  %v1286_v7 = vadd.f32 %v14779_v5, %v14729_v2  ;;  %15080 = vmatprep.mubr.msk.f32.mxu1 %vm353_vm1, %v3105_v63  ;;  %v956_v10 = vpop.f32.mrf.mxu0  ;;  %v3113_v58 = vld [vmem:[#allocation2 + $0x127] sm:$0xff]  ;;  %v3146_v2 = vld [vmem:[#allocation3 + $0x12f] sm:$0xff] }
 0x129   : > { %v1280_v14 = vpop.f32.mrf.mxu1 }
 0x12a   : > { %1445 = vst.msk [vmem:[#allocation5 + $0x20] sm:$0xff] %vm629_vm3, %v1413_v6  ;;  %v1416_v19 = vadd.f32 %v1286_v7, %v733_v3  ;;  %v1281_v20 = vadd.f32 %v1280_v14, %v956_v10  ;;  %v14732_v11 = vpop.f32.mrf.mxu0  ;;  %15031 = vmatmul.mubr.msk.f32.gmra.mxu0 %vm353_vm1, %v3138_v8  ;;  %v3114_v3 = vld [vmem:[#allocation2 + $0x12f] sm:$0xff]  ;;  %v3147_v8 = vld [vmem:[#allocation3 + $0x147] sm:$0xff] }
 0x12b   : > { %v14782_v21 = vpop.f32.mrf.mxu1  ;;  %15081 = vmatmul.mubr.msk.f32.gmra.mxu1 %vm353_vm1, %v3106_v9  ;;  %15033 = vmatprep.mubr.msk.f32.mxu0 %vm353_vm1, %v3139_v17  ;;  %v740_v6 = vld [vmem:[#allocation5 + $0x70] sm:$0xff]  ;;  %v3115_v9 = vld [vmem:[#allocation2 + $0x147] sm:$0xff] }
 0x12c   : > { %1448 = vst.msk [vmem:[#allocation5 + $0x38] sm:$0xff] %vm629_vm3, %v1416_v19  ;;  %v1415_v24 = vadd.f32 %v1281_v20, %v732_v13  ;;  %v1296_v25 = vadd.f32 %v14782_v21, %v14732_v11  ;;  %15083 = vmatprep.mubr.msk.f32.mxu1 %vm353_vm1, %v3107_v18  ;;  %v966_v15 = vpop.f32.mrf.mxu0  ;;  %v743_v17 = vld [vmem:[#allocation5 + $0x88] sm:$0xff] }
 0x12d   : > { %v1290_v28 = vpop.f32.mrf.mxu1  ;;  %v3148_v11 = vld [vmem:[#allocation3 + $0x14f] sm:$0xff] }
 0x12e   : > { %1447 = vst.msk [vmem:[#allocation5 + $0x30] sm:$0xff] %vm629_vm3, %v1415_v24  ;;  %v1418_v31 = vadd.f32 %v1296_v25, %v735_v12  ;;  %v1291_v34 = vadd.f32 %v1290_v28, %v966_v15  ;;  %v14735_v35 = vpop.f32.mrf.mxu0  ;;  %15034 = vmatmul.mubr.msk.f32.gmra.mxu0 %vm353_vm1, %v3140_v26  ;;  %v3116_v12 = vld [vmem:[#allocation2 + $0x14f] sm:$0xff]  ;;  %v742_v24 = vld [vmem:[#allocation5 + $0x80] sm:$0xff] }
 0x12f   : > { %v14785_v37 = vpop.f32.mrf.mxu1  ;;  %15084 = vmatmul.mubr.msk.f32.gmra.mxu1 %vm353_vm1, %v3108_v27  ;;  %15036 = vmatprep.mubr.msk.f32.mxu0 %vm353_vm1, %v3141_v29  ;;  %v3149_v26 = vld [vmem:[#allocation3 + $0x167] sm:$0xff]  ;;  %v745_v29 = vld [vmem:[#allocation5 + $0x98] sm:$0xff] }
 0x130   : > { %1450 = vst.msk [vmem:[#allocation5 + $0x48] sm:$0xff] %vm629_vm3, %v1418_v31  ;;  %v1417_v38 = vadd.f32 %v1291_v34, %v734_v16  ;;  %v1306_v39 = vadd.f32 %v14785_v37, %v14735_v35  ;;  %15086 = vmatprep.mubr.msk.f32.mxu1 %vm353_vm1, %v3109_v30  ;;  %v976_v41 = vpop.f32.mrf.mxu0  ;;  %v3117_v27 = vld [vmem:[#allocation2 + $0x167] sm:$0xff]  ;;  %v3150_v35 = vld [vmem:[#allocation3 + $0x16f] sm:$0xff] }
 0x131   : > { %v1300_v42 = vpop.f32.mrf.mxu1 }
 0x132   : > { %1449 = vst.msk [vmem:[#allocation5 + $0x40] sm:$0xff] %vm629_vm3, %v1417_v38  ;;  %v1420_v45 = vadd.f32 %v1306_v39, %v737_v36  ;;  %v1301_v46 = vadd.f32 %v1300_v42, %v976_v41  ;;  %v14738_v47 = vpop.f32.mrf.mxu0  ;;  %15037 = vmatmul.mubr.msk.f32.gmra.mxu0 %vm353_vm1, %v3142_v40  ;;  %v3118_v36 = vld [vmem:[#allocation2 + $0x16f] sm:$0xff]  ;;  %v3151_v40 = vld [vmem:[#allocation3 + $0x187] sm:$0xff] }
 0x133   : > { %v14788_v49 = vpop.f32.mrf.mxu1  ;;  %15087 = vmatmul.mubr.msk.f32.gmra.mxu1 %vm353_vm1, %v3110_v22  ;;  %15039 = vmatprep.mubr.msk.f32.mxu0 %vm353_vm1, %v3143_v43  ;;  %v744_v38 = vld [vmem:[#allocation5 + $0x90] sm:$0xff]  ;;  %v3119_v22 = vld [vmem:[#allocation2 + $0x187] sm:$0xff] }
 0x134   : > { %1452 = vst.msk [vmem:[#allocation5 + $0x58] sm:$0xff] %vm629_vm3, %v1420_v45  ;;  %v1419_v50 = vadd.f32 %v1301_v46, %v736_v23  ;;  %v1316_v51 = vadd.f32 %v14788_v49, %v14738_v47  ;;  %15089 = vmatprep.mubr.msk.f32.mxu1 %vm353_vm1, %v3111_v44  ;;  %v986_v54 = vpop.f32.mrf.mxu0  ;;  %v747_v43 = vld [vmem:[#allocation5 + $0xa8] sm:$0xff] }
 0x135   : > { %v1310_v56 = vpop.f32.mrf.mxu1  ;;  %v3152_v47 = vld [vmem:[#allocation3 + $0x18f] sm:$0xff] }
 0x136   : > { %1451 = vst.msk [vmem:[#allocation5 + $0x50] sm:$0xff] %vm629_vm3, %v1419_v50  ;;  %v1422_v59 = vadd.f32 %v1316_v51, %v739_v48  ;;  %v1311_v60 = vadd.f32 %v1310_v56, %v986_v54  ;;  %v14741_v61 = vpop.f32.mrf.mxu0  ;;  %15040 = vmatmul.mubr.msk.f32.gmra.mxu0 %vm353_vm1, %v3144_v52  ;;  %v3120_v48 = vld [vmem:[#allocation2 + $0x18f] sm:$0xff]  ;;  %v746_v50 = vld [vmem:[#allocation5 + $0xa0] sm:$0xff] }
 0x137   : > { %v14791_v63 = vpop.f32.mrf.mxu1  ;;  %15090 = vmatmul.mubr.msk.f32.gmra.mxu1 %vm353_vm1, %v3112_v53  ;;  %15042 = vmatprep.mubr.msk.f32.mxu0 %vm353_vm1, %v3145_v57  ;;  %v3153_v52 = vld [vmem:[#allocation3 + $0x1a7] sm:$0xff]  ;;  %v749_v57 = vld [vmem:[#allocation5 + $0xb8] sm:$0xff] }
 0x138   : > { %1454 = vst.msk [vmem:[#allocation5 + $0x68] sm:$0xff] %vm629_vm3, %v1422_v59  ;;  %v1421_v0 = vadd.f32 %v1311_v60, %v738_v55  ;;  %v1326_v1 = vadd.f32 %v14791_v63, %v14741_v61  ;;  %15092 = vmatprep.mubr.msk.f32.mxu1 %vm353_vm1, %v3113_v58  ;;  %v996_v5 = vpop.f32.mrf.mxu0  ;;  %v3121_v53 = vld [vmem:[#allocation2 + $0x1a7] sm:$0xff]  ;;  %v3154_v61 = vld [vmem:[#allocation3 + $0x1af] sm:$0xff] }
 0x139   : > { %v1320_v7 = vpop.f32.mrf.mxu1 }
 0x13a   : > { %1453 = vst.msk [vmem:[#allocation5 + $0x60] sm:$0xff] %vm629_vm3, %v1421_v0  ;;  %v1424_v10 = vadd.f32 %v1326_v1, %v741_v62  ;;  %v1321_v13 = vadd.f32 %v1320_v7, %v996_v5  ;;  %v14744_v14 = vpop.f32.mrf.mxu0  ;;  %15043 = vmatmul.mubr.msk.f32.gmra.mxu0 %vm353_vm1, %v3146_v2  ;;  %v3122_v62 = vld [vmem:[#allocation2 + $0x1af] sm:$0xff]  ;;  %v3155_v2 = vld [vmem:[#allocation3 + $0x1c7] sm:$0xff] }
 0x13b   : > { %v14794_v18 = vpop.f32.mrf.mxu1  ;;  %15093 = vmatmul.mubr.msk.f32.gmra.mxu1 %vm353_vm1, %v3114_v3  ;;  %15045 = vmatprep.mubr.msk.f32.mxu0 %vm353_vm1, %v3147_v8  ;;  %v748_v0 = vld [vmem:[#allocation5 + $0xb0] sm:$0xff]  ;;  %v3123_v3 = vld [vmem:[#allocation2 + $0x1c7] sm:$0xff] }
 0x13c   : > { %1456 = vst.msk [vmem:[#allocation5 + $0x78] sm:$0xff] %vm629_vm3, %v1424_v10  ;;  %v1423_v19 = vadd.f32 %v1321_v13, %v740_v6  ;;  %v1336_v20 = vadd.f32 %v14794_v18, %v14744_v14  ;;  %15095 = vmatprep.mubr.msk.f32.mxu1 %vm353_vm1, %v3115_v9  ;;  %v1006_v21 = vpop.f32.mrf.mxu0  ;;  %v751_v8 = vld [vmem:[#allocation5 + $0xc8] sm:$0xff] }
 0x13d   : > { %v1330_v25 = vpop.f32.mrf.mxu1  ;;  %v3156_v14 = vld [vmem:[#allocation3 + $0x1cf] sm:$0xff] }
 0x13e   : > { %1455 = vst.msk [vmem:[#allocation5 + $0x70] sm:$0xff] %vm629_vm3, %v1423_v19  ;;  %v1426_v15 = vadd.f32 %v1336_v20, %v743_v17  ;;  %v1331_v16 = vadd.f32 %v1330_v25, %v1006_v21  ;;  %v14747_v28 = vpop.f32.mrf.mxu0  ;;  %15046 = vmatmul.mubr.msk.f32.gmra.mxu0 %vm353_vm1, %v3148_v11  ;;  %v3124_v17 = vld [vmem:[#allocation2 + $0x1cf] sm:$0xff]  ;;  %v750_v19 = vld [vmem:[#allocation5 + $0xc0] sm:$0xff] }
 0x13f   : > { %v14797_v30 = vpop.f32.mrf.mxu1  ;;  %15096 = vmatmul.mubr.msk.f32.gmra.mxu1 %vm353_vm1, %v3116_v12  ;;  %15048 = vmatprep.mubr.msk.f32.mxu0 %vm353_vm1, %v3149_v26  ;;  %v3157_v11 = vld [vmem:[#allocation3 + $0x1e7] sm:$0xff]  ;;  %v753_v26 = vld [vmem:[#allocation5 + $0xd8] sm:$0xff] }
 0x140   : > { %1458 = vst.msk [vmem:[#allocation5 + $0x88] sm:$0xff] %vm629_vm3, %v1426_v15  ;;  %v1425_v31 = vadd.f32 %v1331_v16, %v742_v24  ;;  %v1346_v34 = vadd.f32 %v14797_v30, %v14747_v28  ;;  %15098 = vmatprep.mubr.msk.f32.mxu1 %vm353_vm1, %v3117_v27  ;;  %v1016_v37 = vpop.f32.mrf.mxu0  ;;  %v3125_v12 = vld [vmem:[#allocation2 + $0x1e7] sm:$0xff]  ;;  %v3158_v28 = vld [vmem:[#allocation3 + $0x1ef] sm:$0xff] }
 0x141   : > { %v1340_v39 = vpop.f32.mrf.mxu1 }
 0x142   : > { %1457 = vst.msk [vmem:[#allocation5 + $0x80] sm:$0xff] %vm629_vm3, %v1425_v31  ;;  %v1428_v41 = vadd.f32 %v1346_v34, %v745_v29  ;;  %v1341_v23 = vadd.f32 %v1340_v39, %v1016_v37  ;;  %v14750_v42 = vpop.f32.mrf.mxu0  ;;  %15049 = vmatmul.mubr.msk.f32.gmra.mxu0 %vm353_vm1, %v3150_v35  ;;  %v3126_v29 = vld [vmem:[#allocation2 + $0x1ef] sm:$0xff]  ;;  %v3159_v35 = vld [vmem:[#allocation3 + $0x207] sm:$0xff] }
 0x143   : > { %v14800_v44 = vpop.f32.mrf.mxu1  ;;  %15099 = vmatmul.mubr.msk.f32.gmra.mxu1 %vm353_vm1, %v3118_v36  ;;  %15051 = vmatprep.mubr.msk.f32.mxu0 %vm353_vm1, %v3151_v40  ;;  %v752_v31 = vld [vmem:[#allocation5 + $0xd0] sm:$0xff]  ;;  %v3127_v36 = vld [vmem:[#allocation2 + $0x207] sm:$0xff] }
 0x144   : > { %1460 = vst.msk [vmem:[#allocation5 + $0x98] sm:$0xff] %vm629_vm3, %v1428_v41  ;;  %v1427_v45 = vadd.f32 %v1341_v23, %v744_v38  ;;  %v1356_v46 = vadd.f32 %v14800_v44, %v14750_v42  ;;  %15101 = vmatprep.mubr.msk.f32.mxu1 %vm353_vm1, %v3119_v22  ;;  %v1026_v49 = vpop.f32.mrf.mxu0  ;;  %v755_v40 = vld [vmem:[#allocation5 + $0xe8] sm:$0xff] }
 0x145   : > { %v1350_v51 = vpop.f32.mrf.mxu1  ;;  %v3160_v42 = vld [vmem:[#allocation3 + $0x20f] sm:$0xff] }
 0x146   : > { %1459 = vst.msk [vmem:[#allocation5 + $0x90] sm:$0xff] %vm629_vm3, %v1427_v45  ;;  %v1430_v54 = vadd.f32 %v1356_v46, %v747_v43  ;;  %v1351_v55 = vadd.f32 %v1350_v51, %v1026_v49  ;;  %v14753_v56 = vpop.f32.mrf.mxu0  ;;  %15052 = vmatmul.mubr.msk.f32.gmra.mxu0 %vm353_vm1, %v3152_v47  ;;  %v3128_v43 = vld [vmem:[#allocation2 + $0x20f] sm:$0xff]  ;;  %v754_v45 = vld [vmem:[#allocation5 + $0xe0] sm:$0xff] }
 0x147   : > { %v14803_v58 = vpop.f32.mrf.mxu1  ;;  %15102 = vmatmul.mubr.msk.f32.gmra.mxu1 %vm353_vm1, %v3120_v48  ;;  %15054 = vmatprep.mubr.msk.f32.mxu0 %vm353_vm1, %v3153_v52  ;;  %v3941_v47 = vld [vmem:[#allocation3 + $0x28] sm:$0xff]  ;;  %v757_v52 = vld [vmem:[#allocation5 + $0xf8] sm:$0xff] }
 0x148   : > { %1462 = vst.msk [vmem:[#allocation5 + $0xa8] sm:$0xff] %vm629_vm3, %v1430_v54  ;;  %v1429_v59 = vadd.f32 %v1351_v55, %v746_v50  ;;  %v1366_v60 = vadd.f32 %v14803_v58, %v14753_v56  ;;  %15104 = vmatprep.mubr.msk.f32.mxu1 %vm353_vm1, %v3121_v53  ;;  %v1036_v63 = vpop.f32.mrf.mxu0  ;;  %v3909_v48 = vld [vmem:[#allocation2 + $0x28] sm:$0xff]  ;;  %v3942_v56 = vld [vmem:[#allocation3 + $0x30] sm:$0xff] }
 0x149   : > { %v1360_v1 = vpop.f32.mrf.mxu1 }
 0x14a   : > { %1461 = vst.msk [vmem:[#allocation5 + $0xa0] sm:$0xff] %vm629_vm3, %v1429_v59  ;;  %v1432_v5 = vadd.f32 %v1366_v60, %v749_v57  ;;  %v1361_v6 = vadd.f32 %v1360_v1, %v1036_v63  ;;  %v14756_v7 = vpop.f32.mrf.mxu0  ;;  %15055 = vmatmul.mubr.msk.f32.gmra.mxu0 %vm353_vm1, %v3154_v61  ;;  %v3910_v57 = vld [vmem:[#allocation2 + $0x30] sm:$0xff]  ;;  %v3943_v63 = vld [vmem:[#allocation3 + $0x48] sm:$0xff] }
 0x14b   : > { %v14806_v9 = vpop.f32.mrf.mxu1  ;;  %15105 = vmatmul.mubr.msk.f32.gmra.mxu1 %vm353_vm1, %v3122_v62  ;;  %15057 = vmatprep.mubr.msk.f32.mxu0 %vm353_vm1, %v3155_v2  ;;  %v756_v59 = vld [vmem:[#allocation5 + $0xf0] sm:$0xff] }
 0x14c   : > { %1464 = vst.msk [vmem:[#allocation5 + $0xb8] sm:$0xff] %vm629_vm3, %v1432_v5  ;;  %v1431_v10 = vadd.f32 %v1361_v6, %v748_v0  ;;  %v1376_v13 = vadd.f32 %v14806_v9, %v14756_v7  ;;  %15107 = vmatprep.mubr.msk.f32.mxu1 %vm353_vm1, %v3123_v3  ;;  %v1046_v18 = vpop.f32.mrf.mxu0  ;;  %v3911_v0 = vld [vmem:[#allocation2 + $0x48] sm:$0xff]  ;;  %v17210_v3 = vld [vmem:[%s19239_s3 + $0x18] sm:$0xf]  ;;  %v3912_v9 = vld [vmem:[#allocation2 + $0x50] sm:$0xff] }
 0x14d   : > { %v1370_v20 = vpop.f32.mrf.mxu1  ;;  %v17215_v5 = vld [vmem:[%s19238_s2 + $0x18] sm:$0xf] }
 0x14e   : > { %1463 = vst.msk [vmem:[#allocation5 + $0xb0] sm:$0xff] %vm629_vm3, %v1431_v10  ;;  %v1434_v21 = vadd.f32 %v1376_v13, %v751_v8  ;;  %v1371_v24 = vadd.f32 %v1370_v20, %v1046_v18  ;;  %v14759_v25 = vpop.f32.mrf.mxu0  ;;  %15058 = vmatmul.mubr.msk.f32.gmra.mxu0 %vm353_vm1, %v3156_v14  ;;  %v3944_v8 = vld [vmem:[#allocation3 + $0x50] sm:$0xff]  ;;  %v1538_v10 = vld [vmem:[#allocation5 + $0x8] sm:$0xff] }
 0x14f   : > { %v14809_v27 = vpop.f32.mrf.mxu1  ;;  %15108 = vmatmul.mubr.msk.f32.gmra.mxu1 %vm353_vm1, %v3124_v17  ;;  %15060 = vmatprep.mubr.msk.f32.mxu0 %vm353_vm1, %v3157_v11  ;;  %v3945_v17 = vld [vmem:[#allocation3 + $0x68] sm:$0xff] }
 0x150   : > { %1466 = vst.msk [vmem:[#allocation5 + $0xc8] sm:$0xff] %vm629_vm3, %v1434_v21  ;;  %v1433_v15 = vadd.f32 %v1371_v24, %v750_v19  ;;  %v1386_v16 = vadd.f32 %v14809_v27, %v14759_v25  ;;  %15110 = vmatprep.mubr.msk.f32.mxu1 %vm353_vm1, %v3125_v12  ;;  %v1056_v30 = vpop.f32.mrf.mxu0  ;;  %v3913_v18 = vld [vmem:[#allocation2 + $0x68] sm:$0xff]  ;;  %v3946_v24 = vld [vmem:[#allocation3 + $0x70] sm:$0xff] }
 0x151   : > { %v1380_v34 = vpop.f32.mrf.mxu1  ;;  %v3914_v25 = vld [vmem:[#allocation2 + $0x70] sm:$0xff] }
 0x152   : > { %1465 = vst.msk [vmem:[#allocation5 + $0xc0] sm:$0xff] %vm629_vm3, %v1433_v15  ;;  %v1436_v37 = vadd.f32 %v1386_v16, %v753_v26  ;;  %v1381_v38 = vadd.f32 %v1380_v34, %v1056_v30  ;;  %v14762_v39 = vpop.f32.mrf.mxu0  ;;  %15061 = vmatmul.mubr.msk.f32.gmra.mxu0 %vm353_vm1, %v3158_v28  ;;  %v1540_v26 = vld [vmem:[#allocation5 + $0x18] sm:$0xff]  ;;  %v3947_v16 = vld [vmem:[#allocation3 + $0x88] sm:$0xff] }
 0x153   : > { %v14812_v22 = vpop.f32.mrf.mxu1  ;;  %15111 = vmatmul.mubr.msk.f32.gmra.mxu1 %vm353_vm1, %v3126_v29  ;;  %15063 = vmatprep.mubr.msk.f32.mxu0 %vm353_vm1, %v3159_v35  ;;  %v3915_v28 = vld [vmem:[#allocation2 + $0x88] sm:$0xff] }
 0x154   : > { %1468 = vst.msk [vmem:[#allocation5 + $0xd8] sm:$0xff] %vm629_vm3, %v1436_v37  ;;  %v1435_v41 = vadd.f32 %v1381_v38, %v752_v31  ;;  %v1396_v23 = vadd.f32 %v14812_v22, %v14762_v39  ;;  %15113 = vmatprep.mubr.msk.f32.mxu1 %vm353_vm1, %v3127_v36  ;;  %v1066_v44 = vpop.f32.mrf.mxu0  ;;  %v1539_v31 = vld [vmem:[#allocation5 + $0x10] sm:$0xff] }
 0x155   : > { %v1390_v46 = vpop.f32.mrf.mxu1  ;;  %v3948_v38 = vld [vmem:[#allocation3 + $0x90] sm:$0xff] }
 0x156   : > { %1467 = vst.msk [vmem:[#allocation5 + $0xd0] sm:$0xff] %vm629_vm3, %v1435_v41  ;;  %v1438_v49 = vadd.f32 %v1396_v23, %v755_v40  ;;  %v1391_v50 = vadd.f32 %v1390_v46, %v1066_v44  ;;  %v14765_v51 = vpop.f32.mrf.mxu0  ;;  %15064 = vmatmul.mubr.msk.f32.gmra.mxu0 %vm353_vm1, %v3160_v42  ;;  %v3916_v39 = vld [vmem:[#allocation2 + $0x90] sm:$0xff]  ;;  %v1542_v40 = vld [vmem:[#allocation5 + $0x28] sm:$0xff] }
 0x157   : > { %v14815_v53 = vpop.f32.mrf.mxu1  ;;  %15114 = vmatmul.mubr.msk.f32.gmra.mxu1 %vm353_vm1, %v3128_v43  ;;  %15118 = vmatprep.mubr.msk.f32.mxu0 %vm353_vm1, %v3941_v47  ;;  %v3949_v23 = vld [vmem:[#allocation3 + $0xa8] sm:$0xff] }
 0x158   : > { %1470 = vst.msk [vmem:[#allocation5 + $0xe8] sm:$0xff] %vm629_vm3, %v1438_v49  ;;  %v1437_v54 = vadd.f32 %v1391_v50, %v754_v45  ;;  %v1406_v55 = vadd.f32 %v14815_v53, %v14765_v51  ;;  %15168 = vmatprep.mubr.msk.f32.mxu1 %vm353_vm1, %v3909_v48  ;;  %v1076_v58 = vpop.f32.mrf.mxu0  ;;  %v3917_v42 = vld [vmem:[#allocation2 + $0xa8] sm:$0xff]  ;;  %v1541_v45 = vld [vmem:[#allocation5 + $0x20] sm:$0xff]  ;;  %v3950_v50 = vld [vmem:[#allocation3 + $0xb0] sm:$0xff] }
 0x159   : > { %v1400_v60 = vpop.f32.mrf.mxu1  ;;  %v3918_v51 = vld [vmem:[#allocation2 + $0xb0] sm:$0xff] }
 0x15a   : > { %1469 = vst.msk [vmem:[#allocation5 + $0xe0] sm:$0xff] %vm629_vm3, %v1437_v54  ;;  %v1440_v61 = vadd.f32 %v1406_v55, %v757_v52  ;;  %v1401_v62 = vadd.f32 %v1400_v60, %v1076_v58  ;;  %v14820_v1 = vpop.f32.mrf.mxu0  ;;  %15119 = vmatmul.mubr.msk.f32.vlgmr.msra.gmra.mxu0 %vm353_vm1, %v3942_v56  ;;  %v1544_v52 = vld [vmem:[#allocation5 + $0x38] sm:$0xff]  ;;  %v3951_v55 = vld [vmem:[#allocation3 + $0xc8] sm:$0xff] }
 0x15b   : > { %v14870_v2 = vpop.f32.mrf.mxu1  ;;  %15169 = vmatmul.mubr.msk.f32.vlgmr.msra.gmra.mxu1 %vm353_vm1, %v3910_v57  ;;  %15217 = vmatpush3.msk.msra.mxu0 %vm856_vm0, %v17098_v32  ;;  %v1537_v32 = vld [vmem:[#allocation5] sm:$0xff]  ;;  %v3919_v56 = vld [vmem:[#allocation2 + $0xc8] sm:$0xff] }
 0x15c   : > { %1472 = vst.msk [vmem:[#allocation5 + $0xf8] sm:$0xff] %vm629_vm3, %v1440_v61  ;;  %v1439_v6 = vadd.f32 %v1401_v62, %v756_v59  ;;  %v2068_v7 = vadd.f32 %v14870_v2, %v14820_v1  ;;  %15267 = vmatpush3.msk.msra.mxu1 %vm856_vm0, %v17103_v33  ;;  %v1738_v13 = vpop.f32.mrf.mxu0  ;;  %15121 = vmatprep.mubr.msk.f32.mxu0 %vm353_vm1, %v3943_v63  ;;  %v1543_v59 = vld [vmem:[#allocation5 + $0x30] sm:$0xff]  ;;  %v1546_v2 = vld [vmem:[#allocation5 + $0x48] sm:$0xff] }
 0x15d   : > { %v2062_v14 = vpop.f32.mrf.mxu1  ;;  %15171 = vmatprep.mubr.msk.f32.mxu1 %vm353_vm1, %v3911_v0  ;;  %15316 = vmatprep.subr.msk.mxu0 %vm856_vm0, %v17210_v3  ;;  %v3952_v0 = vld [vmem:[#allocation3 + $0xd0] sm:$0xff] }
 0x15e   : > { %1471 = vst.msk [vmem:[#allocation5 + $0xf0] sm:$0xff] %vm629_vm3, %v1439_v6  ;;  %v2222_v19 = vadd.f32 %v2068_v7, %v1538_v10  ;;  %v2063_v20 = vadd.f32 %v2062_v14, %v1738_v13  ;;  %15366 = vmatprep.subr.msk.mxu1 %vm856_vm0, %v17215_v5  ;;  %v14823_v33 = vpop.f32.mrf.mxu0  ;;  %15122 = vmatmul.mubr.msk.f32.gmra.mxu0 %vm353_vm1, %v3944_v8  ;;  %v3920_v1 = vld [vmem:[#allocation2 + $0xd0] sm:$0xff]  ;;  %v3953_v8 = vld [vmem:[#allocation3 + $0xe8] sm:$0xff]  ;;  %v1545_v14 = vld [vmem:[#allocation5 + $0x40] sm:$0xff] }
 0x15f   : > { %v14873_v11 = vpop.f32.mrf.mxu1  ;;  %15172 = vmatmul.mubr.msk.f32.gmra.mxu1 %vm353_vm1, %v3912_v9  ;;  %15124 = vmatprep.mubr.msk.f32.mxu0 %vm353_vm1, %v3945_v17  ;;  %v3921_v9 = vld [vmem:[#allocation2 + $0xe8] sm:$0xff] }
 0x160   : > { %2254 = vst.msk [vmem:[#allocation5 + $0x8] sm:$0xff] %vm629_vm3, %v2222_v19  ;;  %v2221_v12 = vadd.f32 %v2063_v20, %v1537_v32  ;;  %v2078_v21 = vadd.f32 %v14873_v11, %v14823_v33  ;;  %15174 = vmatprep.mubr.msk.f32.mxu1 %vm353_vm1, %v3913_v18  ;;  %v1748_v27 = vpop.f32.mrf.mxu0  ;;  %v3954_v32 = vld [vmem:[#allocation3 + $0xf0] sm:$0xff]  ;;  %v1548_v11 = vld [vmem:[#allocation5 + $0x58] sm:$0xff] }
 0x161   : > { %v2072_v15 = vpop.f32.mrf.mxu1  ;;  %v3922_v33 = vld [vmem:[#allocation2 + $0xf0] sm:$0xff] }
 0x162   : > { %2253 = vst.msk [vmem:[#allocation5] sm:$0xff] %vm629_vm3, %v2221_v12  ;;  %v2224_v29 = vadd.f32 %v2078_v21, %v1540_v26  ;;  %v2073_v30 = vadd.f32 %v2072_v15, %v1748_v27  ;;  %v14826_v34 = vpop.f32.mrf.mxu0  ;;  %15125 = vmatmul.mubr.msk.f32.gmra.mxu0 %vm353_vm1, %v3946_v24  ;;  %v3955_v24 = vld [vmem:[#allocation3 + $0x108] sm:$0xff]  ;;  %v1547_v15 = vld [vmem:[#allocation5 + $0x50] sm:$0xff] }
 0x163   : > { %v14876_v35 = vpop.f32.mrf.mxu1  ;;  %15175 = vmatmul.mubr.msk.f32.gmra.mxu1 %vm353_vm1, %v3914_v25  ;;  %15127 = vmatprep.mubr.msk.f32.mxu0 %vm353_vm1, %v3947_v16  ;;  %v3923_v25 = vld [vmem:[#allocation2 + $0x108] sm:$0xff] }
 0x164   : > { %2256 = vst.msk [vmem:[#allocation5 + $0x18] sm:$0xff] %vm629_vm3, %v2224_v29  ;;  %v2223_v36 = vadd.f32 %v2073_v30, %v1539_v31  ;;  %v2088_v37 = vadd.f32 %v14876_v35, %v14826_v34  ;;  %15177 = vmatprep.mubr.msk.f32.mxu1 %vm353_vm1, %v3915_v28  ;;  %v1758_v22 = vpop.f32.mrf.mxu0  ;;  %v3956_v31 = vld [vmem:[#allocation3 + $0x110] sm:$0xff]  ;;  %v1550_v35 = vld [vmem:[#allocation5 + $0x68] sm:$0xff] }
 0x165   : > { %v2082_v41 = vpop.f32.mrf.mxu1  ;;  %v3924_v34 = vld [vmem:[#allocation2 + $0x110] sm:$0xff] }
 0x166   : > { %2255 = vst.msk [vmem:[#allocation5 + $0x10] sm:$0xff] %vm629_vm3, %v2223_v36  ;;  %v2226_v43 = vadd.f32 %v2088_v37, %v1542_v40  ;;  %v2083_v44 = vadd.f32 %v2082_v41, %v1758_v22  ;;  %v14829_v46 = vpop.f32.mrf.mxu0  ;;  %15128 = vmatmul.mubr.msk.f32.gmra.mxu0 %vm353_vm1, %v3948_v38  ;;  %v3957_v38 = vld [vmem:[#allocation3 + $0x128] sm:$0xff]  ;;  %v1549_v41 = vld [vmem:[#allocation5 + $0x60] sm:$0xff] }
 0x167   : > { %v14879_v47 = vpop.f32.mrf.mxu1  ;;  %15178 = vmatmul.mubr.msk.f32.gmra.mxu1 %vm353_vm1, %v3916_v39  ;;  %15130 = vmatprep.mubr.msk.f32.mxu0 %vm353_vm1, %v3949_v23  ;;  %v3925_v39 = vld [vmem:[#allocation2 + $0x128] sm:$0xff] }
 0x168   : > { %2258 = vst.msk [vmem:[#allocation5 + $0x28] sm:$0xff] %vm629_vm3, %v2226_v43  ;;  %v2225_v48 = vadd.f32 %v2083_v44, %v1541_v45  ;;  %v2098_v49 = vadd.f32 %v14879_v47, %v14829_v46  ;;  %15180 = vmatprep.mubr.msk.f32.mxu1 %vm353_vm1, %v3917_v42  ;;  %v1768_v53 = vpop.f32.mrf.mxu0  ;;  %v3958_v45 = vld [vmem:[#allocation3 + $0x130] sm:$0xff]  ;;  %v1552_v47 = vld [vmem:[#allocation5 + $0x78] sm:$0xff] }
 0x169   : > { %v2092_v54 = vpop.f32.mrf.mxu1  ;;  %v3926_v46 = vld [vmem:[#allocation2 + $0x130] sm:$0xff] }
 0x16a   : > { %2257 = vst.msk [vmem:[#allocation5 + $0x20] sm:$0xff] %vm629_vm3, %v2225_v48  ;;  %v2228_v57 = vadd.f32 %v2098_v49, %v1544_v52  ;;  %v2093_v58 = vadd.f32 %v2092_v54, %v1768_v53  ;;  %v14832_v60 = vpop.f32.mrf.mxu0  ;;  %15131 = vmatmul.mubr.msk.f32.gmra.mxu0 %vm353_vm1, %v3950_v50  ;;  %v3959_v50 = vld [vmem:[#allocation3 + $0x148] sm:$0xff]  ;;  %v1551_v54 = vld [vmem:[#allocation5 + $0x70] sm:$0xff] }
 0x16b   : > { %v14882_v61 = vpop.f32.mrf.mxu1  ;;  %15181 = vmatmul.mubr.msk.f32.gmra.mxu1 %vm353_vm1, %v3918_v51  ;;  %15133 = vmatprep.mubr.msk.f32.mxu0 %vm353_vm1, %v3951_v55  ;;  %v3927_v51 = vld [vmem:[#allocation2 + $0x148] sm:$0xff] }
 0x16c   : > { %2260 = vst.msk [vmem:[#allocation5 + $0x38] sm:$0xff] %vm629_vm3, %v2228_v57  ;;  %v2227_v62 = vadd.f32 %v2093_v58, %v1543_v59  ;;  %v2108_v63 = vadd.f32 %v14882_v61, %v14832_v60  ;;  %15183 = vmatprep.mubr.msk.f32.mxu1 %vm353_vm1, %v3919_v56  ;;  %v1778_v6 = vpop.f32.mrf.mxu0  ;;  %v3960_v59 = vld [vmem:[#allocation3 + $0x150] sm:$0xff]  ;;  %v1554_v61 = vld [vmem:[#allocation5 + $0x88] sm:$0xff] }
 0x16d   : > { %v2102_v7 = vpop.f32.mrf.mxu1  ;;  %v3928_v60 = vld [vmem:[#allocation2 + $0x150] sm:$0xff] }
 0x16e   : > { %2259 = vst.msk [vmem:[#allocation5 + $0x30] sm:$0xff] %vm629_vm3, %v2227_v62  ;;  %v2230_v10 = vadd.f32 %v2108_v63, %v1546_v2  ;;  %v2103_v13 = vadd.f32 %v2102_v7, %v1778_v6  ;;  %v14835_v17 = vpop.f32.mrf.mxu0  ;;  %15134 = vmatmul.mubr.msk.f32.gmra.mxu0 %vm353_vm1, %v3952_v0  ;;  %v3961_v0 = vld [vmem:[#allocation3 + $0x168] sm:$0xff]  ;;  %v1553_v7 = vld [vmem:[#allocation5 + $0x80] sm:$0xff] }
 0x16f   : > { %v14885_v18 = vpop.f32.mrf.mxu1  ;;  %15184 = vmatmul.mubr.msk.f32.gmra.mxu1 %vm353_vm1, %v3920_v1  ;;  %15136 = vmatprep.mubr.msk.f32.mxu0 %vm353_vm1, %v3953_v8  ;;  %v3929_v1 = vld [vmem:[#allocation2 + $0x168] sm:$0xff] }
 0x170   : > { %2262 = vst.msk [vmem:[#allocation5 + $0x48] sm:$0xff] %vm629_vm3, %v2230_v10  ;;  %v2229_v19 = vadd.f32 %v2103_v13, %v1545_v14  ;;  %v2118_v20 = vadd.f32 %v14885_v18, %v14835_v17  ;;  %15186 = vmatprep.mubr.msk.f32.mxu1 %vm353_vm1, %v3921_v9  ;;  %v1788_v12 = vpop.f32.mrf.mxu0  ;;  %v3962_v14 = vld [vmem:[#allocation3 + $0x170] sm:$0xff]  ;;  %v1556_v18 = vld [vmem:[#allocation5 + $0x98] sm:$0xff] }
 0x171   : > { %v2112_v21 = vpop.f32.mrf.mxu1  ;;  %v3930_v17 = vld [vmem:[#allocation2 + $0x170] sm:$0xff] }
 0x172   : > { %2261 = vst.msk [vmem:[#allocation5 + $0x40] sm:$0xff] %vm629_vm3, %v2229_v19  ;;  %v2232_v26 = vadd.f32 %v2118_v20, %v1548_v11  ;;  %v2113_v27 = vadd.f32 %v2112_v21, %v1788_v12  ;;  %v14838_v16 = vpop.f32.mrf.mxu0  ;;  %15137 = vmatmul.mubr.msk.f32.gmra.mxu0 %vm353_vm1, %v3954_v32  ;;  %v3963_v32 = vld [vmem:[#allocation3 + $0x188] sm:$0xff]  ;;  %v1555_v21 = vld [vmem:[#allocation5 + $0x90] sm:$0xff] }
 0x173   : > { %v14888_v28 = vpop.f32.mrf.mxu1  ;;  %15187 = vmatmul.mubr.msk.f32.gmra.mxu1 %vm353_vm1, %v3922_v33  ;;  %15139 = vmatprep.mubr.msk.f32.mxu0 %vm353_vm1, %v3955_v24  ;;  %v3931_v33 = vld [vmem:[#allocation2 + $0x188] sm:$0xff] }
 0x174   : > { %2264 = vst.msk [vmem:[#allocation5 + $0x58] sm:$0xff] %vm629_vm3, %v2232_v26  ;;  %v2231_v29 = vadd.f32 %v2113_v27, %v1547_v15  ;;  %v2128_v30 = vadd.f32 %v14888_v28, %v14838_v16  ;;  %15189 = vmatprep.mubr.msk.f32.mxu1 %vm353_vm1, %v3923_v25  ;;  %v1798_v36 = vpop.f32.mrf.mxu0  ;;  %v3964_v15 = vld [vmem:[#allocation3 + $0x190] sm:$0xff]  ;;  %v1558_v28 = vld [vmem:[#allocation5 + $0xa8] sm:$0xff] }
 0x175   : > { %v2122_v37 = vpop.f32.mrf.mxu1  ;;  %v3932_v16 = vld [vmem:[#allocation2 + $0x190] sm:$0xff] }
 0x176   : > { %2263 = vst.msk [vmem:[#allocation5 + $0x50] sm:$0xff] %vm629_vm3, %v2231_v29  ;;  %v2234_v40 = vadd.f32 %v2128_v30, %v1550_v35  ;;  %v2123_v22 = vadd.f32 %v2122_v37, %v1798_v36  ;;  %v14841_v23 = vpop.f32.mrf.mxu0  ;;  %15140 = vmatmul.mubr.msk.f32.gmra.mxu0 %vm353_vm1, %v3956_v31  ;;  %v3965_v31 = vld [vmem:[#allocation3 + $0x1a8] sm:$0xff]  ;;  %v1557_v37 = vld [vmem:[#allocation5 + $0xa0] sm:$0xff] }
 0x177   : > { %v14891_v42 = vpop.f32.mrf.mxu1  ;;  %15190 = vmatmul.mubr.msk.f32.gmra.mxu1 %vm353_vm1, %v3924_v34  ;;  %15142 = vmatprep.mubr.msk.f32.mxu0 %vm353_vm1, %v3957_v38  ;;  %v3933_v34 = vld [vmem:[#allocation2 + $0x1a8] sm:$0xff] }
 0x178   : > { %2266 = vst.msk [vmem:[#allocation5 + $0x68] sm:$0xff] %vm629_vm3, %v2234_v40  ;;  %v2233_v43 = vadd.f32 %v2123_v22, %v1549_v41  ;;  %v2138_v44 = vadd.f32 %v14891_v42, %v14841_v23  ;;  %15192 = vmatprep.mubr.msk.f32.mxu1 %vm353_vm1, %v3925_v39  ;;  %v1808_v48 = vpop.f32.mrf.mxu0  ;;  %v3966_v41 = vld [vmem:[#allocation3 + $0x1b0] sm:$0xff]  ;;  %v1560_v42 = vld [vmem:[#allocation5 + $0xb8] sm:$0xff] }
 0x179   : > { %v2132_v49 = vpop.f32.mrf.mxu1  ;;  %v3934_v23 = vld [vmem:[#allocation2 + $0x1b0] sm:$0xff] }
 0x17a   : > { %2265 = vst.msk [vmem:[#allocation5 + $0x60] sm:$0xff] %vm629_vm3, %v2233_v43  ;;  %v2236_v52 = vadd.f32 %v2138_v44, %v1552_v47  ;;  %v2133_v53 = vadd.f32 %v2132_v49, %v1808_v48  ;;  %v14844_v55 = vpop.f32.mrf.mxu0  ;;  %15143 = vmatmul.mubr.msk.f32.gmra.mxu0 %vm353_vm1, %v3958_v45  ;;  %v3967_v45 = vld [vmem:[#allocation3 + $0x1c8] sm:$0xff]  ;;  %v1559_v49 = vld [vmem:[#allocation5 + $0xb0] sm:$0xff] }
 0x17b   : > { %v14894_v56 = vpop.f32.mrf.mxu1  ;;  %15193 = vmatmul.mubr.msk.f32.gmra.mxu1 %vm353_vm1, %v3926_v46  ;;  %15145 = vmatprep.mubr.msk.f32.mxu0 %vm353_vm1, %v3959_v50  ;;  %v3935_v46 = vld [vmem:[#allocation2 + $0x1c8] sm:$0xff] }
 0x17c   : > { %2268 = vst.msk [vmem:[#allocation5 + $0x78] sm:$0xff] %vm629_vm3, %v2236_v52  ;;  %v2235_v57 = vadd.f32 %v2133_v53, %v1551_v54  ;;  %v2148_v58 = vadd.f32 %v14894_v56, %v14844_v55  ;;  %15195 = vmatprep.mubr.msk.f32.mxu1 %vm353_vm1, %v3927_v51  ;;  %v1818_v62 = vpop.f32.mrf.mxu0  ;;  %v3968_v54 = vld [vmem:[#allocation3 + $0x1d0] sm:$0xff]  ;;  %v1562_v56 = vld [vmem:[#allocation5 + $0xc8] sm:$0xff] }
 0x17d   : > { %v2142_v63 = vpop.f32.mrf.mxu1  ;;  %v3936_v55 = vld [vmem:[#allocation2 + $0x1d0] sm:$0xff] }
 0x17e   : > { %2267 = vst.msk [vmem:[#allocation5 + $0x70] sm:$0xff] %vm629_vm3, %v2235_v57  ;;  %v2238_v2 = vadd.f32 %v2148_v58, %v1554_v61  ;;  %v2143_v6 = vadd.f32 %v2142_v63, %v1818_v62  ;;  %v14847_v8 = vpop.f32.mrf.mxu0  ;;  %15146 = vmatmul.mubr.msk.f32.gmra.mxu0 %vm353_vm1, %v3960_v59  ;;  %v3969_v59 = vld [vmem:[#allocation3 + $0x1e8] sm:$0xff]  ;;  %v1561_v63 = vld [vmem:[#allocation5 + $0xc0] sm:$0xff] }
 0x17f   : > { %v14897_v9 = vpop.f32.mrf.mxu1  ;;  %15196 = vmatmul.mubr.msk.f32.gmra.mxu1 %vm353_vm1, %v3928_v60  ;;  %15148 = vmatprep.mubr.msk.f32.mxu0 %vm353_vm1, %v3961_v0  ;;  %v3937_v60 = vld [vmem:[#allocation2 + $0x1e8] sm:$0xff] }
 0x180   : > { %2270 = vst.msk [vmem:[#allocation5 + $0x88] sm:$0xff] %vm629_vm3, %v2238_v2  ;;  %v2237_v10 = vadd.f32 %v2143_v6, %v1553_v7  ;;  %v2158_v13 = vadd.f32 %v14897_v9, %v14847_v8  ;;  %15198 = vmatprep.mubr.msk.f32.mxu1 %vm353_vm1, %v3929_v1  ;;  %v1828_v19 = vpop.f32.mrf.mxu0  ;;  %v3970_v7 = vld [vmem:[#allocation3 + $0x1f0] sm:$0xff]  ;;  %v1564_v9 = vld [vmem:[#allocation5 + $0xd8] sm:$0xff] }
 0x181   : > { %v2152_v20 = vpop.f32.mrf.mxu1  ;;  %v3938_v8 = vld [vmem:[#allocation2 + $0x1f0] sm:$0xff] }
 0x182   : > { %2269 = vst.msk [vmem:[#allocation5 + $0x80] sm:$0xff] %vm629_vm3, %v2237_v10  ;;  %v2240_v11 = vadd.f32 %v2158_v13, %v1556_v18  ;;  %v2153_v12 = vadd.f32 %v2152_v20, %v1828_v19  ;;  %v14850_v24 = vpop.f32.mrf.mxu0  ;;  %15149 = vmatmul.mubr.msk.f32.gmra.mxu0 %vm353_vm1, %v3962_v14  ;;  %v3971_v14 = vld [vmem:[#allocation3 + $0x208] sm:$0xff]  ;;  %v1563_v20 = vld [vmem:[#allocation5 + $0xd0] sm:$0xff] }
 0x183   : > { %v14900_v25 = vpop.f32.mrf.mxu1  ;;  %15199 = vmatmul.mubr.msk.f32.gmra.mxu1 %vm353_vm1, %v3930_v17  ;;  %15151 = vmatprep.mubr.msk.f32.mxu0 %vm353_vm1, %v3963_v32  ;;  %v3939_v17 = vld [vmem:[#allocation2 + $0x208] sm:$0xff] }
 0x184   : > { %2272 = vst.msk [vmem:[#allocation5 + $0x98] sm:$0xff] %vm629_vm3, %v2240_v11  ;;  %v2239_v26 = vadd.f32 %v2153_v12, %v1555_v21  ;;  %v2168_v27 = vadd.f32 %v14900_v25, %v14850_v24  ;;  %15201 = vmatprep.mubr.msk.f32.mxu1 %vm353_vm1, %v3931_v33  ;;  %v1838_v29 = vpop.f32.mrf.mxu0  ;;  %v3972_v21 = vld [vmem:[#allocation3 + $0x210] sm:$0xff]  ;;  %v1566_v25 = vld [vmem:[#allocation5 + $0xe8] sm:$0xff] }
 0x185   : > { %v2162_v30 = vpop.f32.mrf.mxu1  ;;  %v3940_v24 = vld [vmem:[#allocation2 + $0x210] sm:$0xff] }
 0x186   : > { %2271 = vst.msk [vmem:[#allocation5 + $0x90] sm:$0xff] %vm629_vm3, %v2239_v26  ;;  %v2242_v35 = vadd.f32 %v2168_v27, %v1558_v28  ;;  %v2163_v36 = vadd.f32 %v2162_v30, %v1838_v29  ;;  %v14853_v38 = vpop.f32.mrf.mxu0  ;;  %15152 = vmatmul.mubr.msk.f32.gmra.mxu0 %vm353_vm1, %v3964_v15  ;;  %v4753_v15 = vld [vmem:[#allocation3 + $0x29] sm:$0xff]  ;;  %v1565_v30 = vld [vmem:[#allocation5 + $0xe0] sm:$0xff] }
 0x187   : > { %v14903_v39 = vpop.f32.mrf.mxu1  ;;  %15202 = vmatmul.mubr.msk.f32.gmra.mxu1 %vm353_vm1, %v3932_v16  ;;  %15154 = vmatprep.mubr.msk.f32.mxu0 %vm353_vm1, %v3965_v31  ;;  %v4721_v16 = vld [vmem:[#allocation2 + $0x29] sm:$0xff] }
 0x188   : > { %2274 = vst.msk [vmem:[#allocation5 + $0xa8] sm:$0xff] %vm629_vm3, %v2242_v35  ;;  %v2241_v40 = vadd.f32 %v2163_v36, %v1557_v37  ;;  %v2178_v22 = vadd.f32 %v14903_v39, %v14853_v38  ;;  %15204 = vmatprep.mubr.msk.f32.mxu1 %vm353_vm1, %v3933_v34  ;;  %v1848_v43 = vpop.f32.mrf.mxu0  ;;  %v4754_v37 = vld [vmem:[#allocation3 + $0x31] sm:$0xff] }
 0x189   : > { %v2172_v44 = vpop.f32.mrf.mxu1  ;;  %v4722_v38 = vld [vmem:[#allocation2 + $0x31] sm:$0xff] }
 0x18a   : > { %2273 = vst.msk [vmem:[#allocation5 + $0xa0] sm:$0xff] %vm629_vm3, %v2241_v40  ;;  %v2244_v47 = vadd.f32 %v2178_v22, %v1560_v42  ;;  %v2173_v48 = vadd.f32 %v2172_v44, %v1848_v43  ;;  %v14856_v50 = vpop.f32.mrf.mxu0  ;;  %15155 = vmatmul.mubr.msk.f32.gmra.mxu0 %vm353_vm1, %v3966_v41  ;;  %v1568_v39 = vld [vmem:[#allocation5 + $0xf8] sm:$0xff]  ;;  %v4755_v42 = vld [vmem:[#allocation3 + $0x49] sm:$0xff] }
 0x18b   : > { %v14906_v51 = vpop.f32.mrf.mxu1  ;;  %15205 = vmatmul.mubr.msk.f32.gmra.mxu1 %vm353_vm1, %v3934_v23  ;;  %15157 = vmatprep.mubr.msk.f32.mxu0 %vm353_vm1, %v3967_v45  ;;  %v4723_v43 = vld [vmem:[#allocation2 + $0x49] sm:$0xff] }
 0x18c   : > { %2276 = vst.msk [vmem:[#allocation5 + $0xb8] sm:$0xff] %vm629_vm3, %v2244_v47  ;;  %v2243_v52 = vadd.f32 %v2173_v48, %v1559_v49  ;;  %v2188_v53 = vadd.f32 %v14906_v51, %v14856_v50  ;;  %15207 = vmatprep.mubr.msk.f32.mxu1 %vm353_vm1, %v3935_v46  ;;  %v1858_v57 = vpop.f32.mrf.mxu0  ;;  %v1567_v44 = vld [vmem:[#allocation5 + $0xf0] sm:$0xff]  ;;  %v17324_v47 = vld [vmem:[%s19239_s3 + $0x1c] sm:$0xf] }
 0x18d   : > { %v2182_v58 = vpop.f32.mrf.mxu1  ;;  %v17329_v48 = vld [vmem:[%s19238_s2 + $0x1c] sm:$0xf]  ;;  %v4756_v51 = vld [vmem:[#allocation3 + $0x51] sm:$0xff] }
 0x18e   : > { %2275 = vst.msk [vmem:[#allocation5 + $0xb0] sm:$0xff] %vm629_vm3, %v2243_v52  ;;  %v2246_v61 = vadd.f32 %v2188_v53, %v1562_v56  ;;  %v2183_v62 = vadd.f32 %v2182_v58, %v1858_v57  ;;  %v14859_v0 = vpop.f32.mrf.mxu0  ;;  %15158 = vmatmul.mubr.msk.f32.gmra.mxu0 %vm353_vm1, %v3968_v54  ;;  %v4724_v52 = vld [vmem:[#allocation2 + $0x51] sm:$0xff]  ;;  %v2350_v53 = vld [vmem:[#allocation5 + $0x8] sm:$0xff] }
 0x18f   : > { %v14909_v1 = vpop.f32.mrf.mxu1  ;;  %15208 = vmatmul.mubr.msk.f32.gmra.mxu1 %vm353_vm1, %v3936_v55  ;;  %15160 = vmatprep.mubr.msk.f32.mxu0 %vm353_vm1, %v3969_v59  ;;  %v4757_v56 = vld [vmem:[#allocation3 + $0x69] sm:$0xff] }
 0x190   : > { %2278 = vst.msk [vmem:[#allocation5 + $0xc8] sm:$0xff] %vm629_vm3, %v2246_v61  ;;  %v2245_v2 = vadd.f32 %v2183_v62, %v1561_v63  ;;  %v2198_v6 = vadd.f32 %v14909_v1, %v14859_v0  ;;  %15210 = vmatprep.mubr.msk.f32.mxu1 %vm353_vm1, %v3937_v60  ;;  %v1868_v10 = vpop.f32.mrf.mxu0  ;;  %v4725_v57 = vld [vmem:[#allocation2 + $0x69] sm:$0xff]  ;;  %v4758_v63 = vld [vmem:[#allocation3 + $0x71] sm:$0xff] }
 0x191   : > { %v2192_v13 = vpop.f32.mrf.mxu1  ;;  %v4726_v0 = vld [vmem:[#allocation2 + $0x71] sm:$0xff] }
 0x192   : > { %2277 = vst.msk [vmem:[#allocation5 + $0xc0] sm:$0xff] %vm629_vm3, %v2245_v2  ;;  %v2248_v18 = vadd.f32 %v2198_v6, %v1564_v9  ;;  %v2193_v19 = vadd.f32 %v2192_v13, %v1868_v10  ;;  %v14862_v32 = vpop.f32.mrf.mxu0  ;;  %15161 = vmatmul.mubr.msk.f32.gmra.mxu0 %vm353_vm1, %v3970_v7  ;;  %v2352_v1 = vld [vmem:[#allocation5 + $0x18] sm:$0xff]  ;;  %v4759_v7 = vld [vmem:[#allocation3 + $0x89] sm:$0xff] }
 0x193   : > { %v14912_v33 = vpop.f32.mrf.mxu1  ;;  %15211 = vmatmul.mubr.msk.f32.gmra.mxu1 %vm353_vm1, %v3938_v8  ;;  %15163 = vmatprep.mubr.msk.f32.mxu0 %vm353_vm1, %v3971_v14  ;;  %v4727_v8 = vld [vmem:[#allocation2 + $0x89] sm:$0xff] }
 0x194   : > { %2280 = vst.msk [vmem:[#allocation5 + $0xd8] sm:$0xff] %vm629_vm3, %v2248_v18  ;;  %v2247_v11 = vadd.f32 %v2193_v19, %v1563_v20  ;;  %v2208_v12 = vadd.f32 %v14912_v33, %v14862_v32  ;;  %15213 = vmatprep.mubr.msk.f32.mxu1 %vm353_vm1, %v3939_v17  ;;  %v1878_v26 = vpop.f32.mrf.mxu0  ;;  %v2351_v13 = vld [vmem:[#allocation5 + $0x10] sm:$0xff]  ;;  %v2354_v33 = vld [vmem:[#allocation5 + $0x28] sm:$0xff] }
 0x195   : > { %v2202_v27 = vpop.f32.mrf.mxu1  ;;  %v4760_v20 = vld [vmem:[#allocation3 + $0x91] sm:$0xff] }
 0x196   : > { %2279 = vst.msk [vmem:[#allocation5 + $0xd0] sm:$0xff] %vm629_vm3, %v2247_v11  ;;  %v2250_v28 = vadd.f32 %v2208_v12, %v1566_v25  ;;  %v2203_v29 = vadd.f32 %v2202_v27, %v1878_v26  ;;  %v14865_v31 = vpop.f32.mrf.mxu0  ;;  %15164 = vmatmul.mubr.msk.f32.gmra.mxu0 %vm353_vm1, %v3972_v21  ;;  %v4728_v32 = vld [vmem:[#allocation2 + $0x91] sm:$0xff]  ;;  %v4761_v21 = vld [vmem:[#allocation3 + $0xa9] sm:$0xff]  ;;  %v2353_v27 = vld [vmem:[#allocation5 + $0x20] sm:$0xff] }
 0x197   : > { %v14915_v34 = vpop.f32.mrf.mxu1  ;;  %15214 = vmatmul.mubr.msk.f32.gmra.mxu1 %vm353_vm1, %v3940_v24  ;;  %15218 = vmatprep.mubr.msk.f32.mxu0 %vm353_vm1, %v4753_v15  ;;  %v4729_v24 = vld [vmem:[#allocation2 + $0xa9] sm:$0xff] }
 0x198   : > { %2282 = vst.msk [vmem:[#allocation5 + $0xe8] sm:$0xff] %vm629_vm3, %v2250_v28  ;;  %v2249_v35 = vadd.f32 %v2203_v29, %v1565_v30  ;;  %v2218_v36 = vadd.f32 %v14915_v34, %v14865_v31  ;;  %15268 = vmatprep.mubr.msk.f32.mxu1 %vm353_vm1, %v4721_v16  ;;  %v1888_v40 = vpop.f32.mrf.mxu0  ;;  %v4762_v30 = vld [vmem:[#allocation3 + $0xb1] sm:$0xff] }
 0x199   : > { %v2212_v22 = vpop.f32.mrf.mxu1  ;;  %v4730_v31 = vld [vmem:[#allocation2 + $0xb1] sm:$0xff] }
 0x19a   : > { %2281 = vst.msk [vmem:[#allocation5 + $0xe0] sm:$0xff] %vm629_vm3, %v2249_v35  ;;  %v2252_v41 = vadd.f32 %v2218_v36, %v1568_v39  ;;  %v2213_v23 = vadd.f32 %v2212_v22, %v1888_v40  ;;  %v14920_v45 = vpop.f32.mrf.mxu0  ;;  %15219 = vmatmul.mubr.msk.f32.vlgmr.msra.gmra.mxu0 %vm353_vm1, %v4754_v37  ;;  %v2356_v34 = vld [vmem:[#allocation5 + $0x38] sm:$0xff]  ;;  %v4763_v37 = vld [vmem:[#allocation3 + $0xc9] sm:$0xff] }
 0x19b   : > { %v14970_v46 = vpop.f32.mrf.mxu1  ;;  %15269 = vmatmul.mubr.msk.f32.vlgmr.msra.gmra.mxu1 %vm353_vm1, %v4722_v38  ;;  %15317 = vmatpush3.msk.msra.mxu0 %vm856_vm0, %v17210_v3  ;;  %v2349_v3 = vld [vmem:[#allocation5] sm:$0xff]  ;;  %v4731_v38 = vld [vmem:[#allocation2 + $0xc9] sm:$0xff] }
 0x19c   : > { %2284 = vst.msk [vmem:[#allocation5 + $0xf8] sm:$0xff] %vm629_vm3, %v2252_v41  ;;  %v2251_v49 = vadd.f32 %v2213_v23, %v1567_v44  ;;  %v2880_v50 = vadd.f32 %v14970_v46, %v14920_v45  ;;  %15367 = vmatpush3.msk.msra.mxu1 %vm856_vm0, %v17215_v5  ;;  %v2550_v54 = vpop.f32.mrf.mxu0  ;;  %15221 = vmatprep.mubr.msk.f32.mxu0 %vm353_vm1, %v4755_v42  ;;  %v2355_v22 = vld [vmem:[#allocation5 + $0x30] sm:$0xff]  ;;  %v2358_v46 = vld [vmem:[#allocation5 + $0x48] sm:$0xff] }
 0x19d   : > { %v2874_v55 = vpop.f32.mrf.mxu1  ;;  %15271 = vmatprep.mubr.msk.f32.mxu1 %vm353_vm1, %v4723_v43  ;;  %15416 = vmatprep.subr.msk.mxu0 %vm856_vm0, %v17324_v47  ;;  %v4764_v44 = vld [vmem:[#allocation3 + $0xd1] sm:$0xff] }
 0x19e   : > { %2283 = vst.msk [vmem:[#allocation5 + $0xf0] sm:$0xff] %vm629_vm3, %v2251_v49  ;;  %v3034_v58 = vadd.f32 %v2880_v50, %v2350_v53  ;;  %v2875_v59 = vadd.f32 %v2874_v55, %v2550_v54  ;;  %15466 = vmatprep.subr.msk.mxu1 %vm856_vm0, %v17329_v48  ;;  %v14923_v5 = vpop.f32.mrf.mxu0  ;;  %15222 = vmatmul.mubr.msk.f32.gmra.mxu0 %vm353_vm1, %v4756_v51  ;;  %v4732_v45 = vld [vmem:[#allocation2 + $0xd1] sm:$0xff]  ;;  %v4765_v51 = vld [vmem:[#allocation3 + $0xe9] sm:$0xff]  ;;  %v2357_v55 = vld [vmem:[#allocation5 + $0x40] sm:$0xff] }
 0x19f   : > { %v14973_v60 = vpop.f32.mrf.mxu1  ;;  %15272 = vmatmul.mubr.msk.f32.gmra.mxu1 %vm353_vm1, %v4724_v52  ;;  %15224 = vmatprep.mubr.msk.f32.mxu0 %vm353_vm1, %v4757_v56  ;;  %v4733_v52 = vld [vmem:[#allocation2 + $0xe9] sm:$0xff] }
 0x1a0   : > { %3066 = vst.msk [vmem:[#allocation5 + $0x8] sm:$0xff] %vm629_vm3, %v3034_v58  ;;  %v3033_v61 = vadd.f32 %v2875_v59, %v2349_v3  ;;  %v2890_v62 = vadd.f32 %v14973_v60, %v14923_v5  ;;  %15274 = vmatprep.mubr.msk.f32.mxu1 %vm353_vm1, %v4725_v57  ;;  %v2560_v2 = vpop.f32.mrf.mxu0  ;;  %v4766_v3 = vld [vmem:[#allocation3 + $0xf1] sm:$0xff] }
 0x1a1   : > { %v2884_v6 = vpop.f32.mrf.mxu1  ;;  %v4734_v5 = vld [vmem:[#allocation2 + $0xf1] sm:$0xff] }
 0x1a2   : > { %3065 = vst.msk [vmem:[#allocation5] sm:$0xff] %vm629_vm3, %v3033_v61  ;;  %v3036_v9 = vadd.f32 %v2890_v62, %v2352_v1  ;;  %v2885_v10 = vadd.f32 %v2884_v6, %v2560_v2  ;;  %v14926_v14 = vpop.f32.mrf.mxu0  ;;  %15225 = vmatmul.mubr.msk.f32.gmra.mxu0 %vm353_vm1, %v4758_v63  ;;  %v2360_v60 = vld [vmem:[#allocation5 + $0x58] sm:$0xff]  ;;  %v4767_v63 = vld [vmem:[#allocation3 + $0x109] sm:$0xff] }
 0x1a3   : > { %v14976_v17 = vpop.f32.mrf.mxu1  ;;  %15275 = vmatmul.mubr.msk.f32.gmra.mxu1 %vm353_vm1, %v4726_v0  ;;  %15227 = vmatprep.mubr.msk.f32.mxu0 %vm353_vm1, %v4759_v7  ;;  %v4735_v0 = vld [vmem:[#allocation2 + $0x109] sm:$0xff] }
 0x1a4   : > { %3068 = vst.msk [vmem:[#allocation5 + $0x18] sm:$0xff] %vm629_vm3, %v3036_v9  ;;  %v3035_v18 = vadd.f32 %v2885_v10, %v2351_v13  ;;  %v2900_v19 = vadd.f32 %v14976_v17, %v14926_v14  ;;  %15277 = vmatprep.mubr.msk.f32.mxu1 %vm353_vm1, %v4727_v8  ;;  %v2570_v11 = vpop.f32.mrf.mxu0  ;;  %v2359_v6 = vld [vmem:[#allocation5 + $0x50] sm:$0xff]  ;;  %v2362_v17 = vld [vmem:[#allocation5 + $0x68] sm:$0xff] }
 0x1a5   : > { %v2894_v12 = vpop.f32.mrf.mxu1  ;;  %v4768_v13 = vld [vmem:[#allocation3 + $0x111] sm:$0xff] }
 0x1a6   : > { %3067 = vst.msk [vmem:[#allocation5 + $0x10] sm:$0xff] %vm629_vm3, %v3035_v18  ;;  %v3038_v25 = vadd.f32 %v2900_v19, %v2354_v33  ;;  %v2895_v26 = vadd.f32 %v2894_v12, %v2570_v11  ;;  %v14929_v15 = vpop.f32.mrf.mxu0  ;;  %15228 = vmatmul.mubr.msk.f32.gmra.mxu0 %vm353_vm1, %v4760_v20  ;;  %v4736_v14 = vld [vmem:[#allocation2 + $0x111] sm:$0xff]  ;;  %v4769_v20 = vld [vmem:[#allocation3 + $0x129] sm:$0xff]  ;;  %v2361_v12 = vld [vmem:[#allocation5 + $0x60] sm:$0xff] }
 0x1a7   : > { %v14979_v16 = vpop.f32.mrf.mxu1  ;;  %15278 = vmatmul.mubr.msk.f32.gmra.mxu1 %vm353_vm1, %v4728_v32  ;;  %15230 = vmatprep.mubr.msk.f32.mxu0 %vm353_vm1, %v4761_v21  ;;  %v4737_v32 = vld [vmem:[#allocation2 + $0x129] sm:$0xff] }
 0x1a8   : > { %3070 = vst.msk [vmem:[#allocation5 + $0x28] sm:$0xff] %vm629_vm3, %v3038_v25  ;;  %v3037_v28 = vadd.f32 %v2895_v26, %v2353_v27  ;;  %v2910_v29 = vadd.f32 %v14979_v16, %v14929_v15  ;;  %15280 = vmatprep.mubr.msk.f32.mxu1 %vm353_vm1, %v4729_v24  ;;  %v2580_v35 = vpop.f32.mrf.mxu0  ;;  %v4770_v27 = vld [vmem:[#allocation3 + $0x131] sm:$0xff] }
 0x1a9   : > { %v2904_v36 = vpop.f32.mrf.mxu1  ;;  %v4738_v15 = vld [vmem:[#allocation2 + $0x131] sm:$0xff] }
 0x1aa   : > { %3069 = vst.msk [vmem:[#allocation5 + $0x20] sm:$0xff] %vm629_vm3, %v3037_v28  ;;  %v3040_v39 = vadd.f32 %v2910_v29, %v2356_v34  ;;  %v2905_v40 = vadd.f32 %v2904_v36, %v2580_v35  ;;  %v14932_v41 = vpop.f32.mrf.mxu0  ;;  %15231 = vmatmul.mubr.msk.f32.gmra.mxu0 %vm353_vm1, %v4762_v30  ;;  %v2364_v16 = vld [vmem:[#allocation5 + $0x78] sm:$0xff]  ;;  %v4771_v30 = vld [vmem:[#allocation3 + $0x149] sm:$0xff] }
 0x1ab   : > { %v14982_v23 = vpop.f32.mrf.mxu1  ;;  %15281 = vmatmul.mubr.msk.f32.gmra.mxu1 %vm353_vm1, %v4730_v31  ;;  %15233 = vmatprep.mubr.msk.f32.mxu0 %vm353_vm1, %v4763_v37  ;;  %v4739_v31 = vld [vmem:[#allocation2 + $0x149] sm:$0xff] }
 0x1ac   : > { %3072 = vst.msk [vmem:[#allocation5 + $0x38] sm:$0xff] %vm629_vm3, %v3040_v39  ;;  %v3039_v42 = vadd.f32 %v2905_v40, %v2355_v22  ;;  %v2920_v43 = vadd.f32 %v14982_v23, %v14932_v41  ;;  %15283 = vmatprep.mubr.msk.f32.mxu1 %vm353_vm1, %v4731_v38  ;;  %v2590_v49 = vpop.f32.mrf.mxu0  ;;  %v2363_v36 = vld [vmem:[#allocation5 + $0x70] sm:$0xff]  ;;  %v2366_v23 = vld [vmem:[#allocation5 + $0x88] sm:$0xff] }
 0x1ad   : > { %v2914_v50 = vpop.f32.mrf.mxu1  ;;  %v4772_v22 = vld [vmem:[#allocation3 + $0x151] sm:$0xff] }
 0x1ae   : > { %3071 = vst.msk [vmem:[#allocation5 + $0x30] sm:$0xff] %vm629_vm3, %v3039_v42  ;;  %v3042_v53 = vadd.f32 %v2920_v43, %v2358_v46  ;;  %v2915_v54 = vadd.f32 %v2914_v50, %v2590_v49  ;;  %v14935_v56 = vpop.f32.mrf.mxu0  ;;  %15234 = vmatmul.mubr.msk.f32.gmra.mxu0 %vm353_vm1, %v4764_v44  ;;  %v4740_v41 = vld [vmem:[#allocation2 + $0x151] sm:$0xff]  ;;  %v4773_v44 = vld [vmem:[#allocation3 + $0x169] sm:$0xff]  ;;  %v2365_v50 = vld [vmem:[#allocation5 + $0x80] sm:$0xff] }
 0x1af   : > { %v14985_v57 = vpop.f32.mrf.mxu1  ;;  %15284 = vmatmul.mubr.msk.f32.gmra.mxu1 %vm353_vm1, %v4732_v45  ;;  %15236 = vmatprep.mubr.msk.f32.mxu0 %vm353_vm1, %v4765_v51  ;;  %v4741_v45 = vld [vmem:[#allocation2 + $0x169] sm:$0xff] }
 0x1b0   : > { %3074 = vst.msk [vmem:[#allocation5 + $0x48] sm:$0xff] %vm629_vm3, %v3042_v53  ;;  %v3041_v58 = vadd.f32 %v2915_v54, %v2357_v55  ;;  %v2930_v59 = vadd.f32 %v14985_v57, %v14935_v56  ;;  %15286 = vmatprep.mubr.msk.f32.mxu1 %vm353_vm1, %v4733_v52  ;;  %v2600_v61 = vpop.f32.mrf.mxu0  ;;  %v4774_v55 = vld [vmem:[#allocation3 + $0x171] sm:$0xff] }
 0x1b1   : > { %v2924_v62 = vpop.f32.mrf.mxu1  ;;  %v4742_v56 = vld [vmem:[#allocation2 + $0x171] sm:$0xff] }
 0x1b2   : > { %3073 = vst.msk [vmem:[#allocation5 + $0x40] sm:$0xff] %vm629_vm3, %v3041_v58  ;;  %v3044_v1 = vadd.f32 %v2930_v59, %v2360_v60  ;;  %v2925_v2 = vadd.f32 %v2924_v62, %v2600_v61  ;;  %v14938_v7 = vpop.f32.mrf.mxu0  ;;  %15237 = vmatmul.mubr.msk.f32.gmra.mxu0 %vm353_vm1, %v4766_v3  ;;  %v2368_v57 = vld [vmem:[#allocation5 + $0x98] sm:$0xff]  ;;  %v4775_v3 = vld [vmem:[#allocation3 + $0x189] sm:$0xff] }
 0x1b3   : > { %v14988_v8 = vpop.f32.mrf.mxu1  ;;  %15287 = vmatmul.mubr.msk.f32.gmra.mxu1 %vm353_vm1, %v4734_v5  ;;  %15239 = vmatprep.mubr.msk.f32.mxu0 %vm353_vm1, %v4767_v63  ;;  %v4743_v5 = vld [vmem:[#allocation2 + $0x189] sm:$0xff] }
 0x1b4   : > { %3076 = vst.msk [vmem:[#allocation5 + $0x58] sm:$0xff] %vm629_vm3, %v3044_v1  ;;  %v3043_v9 = vadd.f32 %v2925_v2, %v2359_v6  ;;  %v2940_v10 = vadd.f32 %v14988_v8, %v14938_v7  ;;  %15289 = vmatprep.mubr.msk.f32.mxu1 %vm353_vm1, %v4735_v0  ;;  %v2610_v18 = vpop.f32.mrf.mxu0  ;;  %v2367_v62 = vld [vmem:[#allocation5 + $0x90] sm:$0xff]  ;;  %v2370_v8 = vld [vmem:[#allocation5 + $0xa8] sm:$0xff] }
 0x1b5   : > { %v2934_v19 = vpop.f32.mrf.mxu1  ;;  %v4776_v6 = vld [vmem:[#allocation3 + $0x191] sm:$0xff] }
 0x1b6   : > { %3075 = vst.msk [vmem:[#allocation5 + $0x50] sm:$0xff] %vm629_vm3, %v3043_v9  ;;  %v3046_v33 = vadd.f32 %v2940_v10, %v2362_v17  ;;  %v2935_v11 = vadd.f32 %v2934_v19, %v2610_v18  ;;  %v14941_v21 = vpop.f32.mrf.mxu0  ;;  %15240 = vmatmul.mubr.msk.f32.gmra.mxu0 %vm353_vm1, %v4768_v13  ;;  %v4744_v7 = vld [vmem:[#allocation2 + $0x191] sm:$0xff]  ;;  %v4777_v13 = vld [vmem:[#allocation3 + $0x1a9] sm:$0xff]  ;;  %v2369_v19 = vld [vmem:[#allocation5 + $0xa0] sm:$0xff] }
 0x1b7   : > { %v14991_v24 = vpop.f32.mrf.mxu1  ;;  %15290 = vmatmul.mubr.msk.f32.gmra.mxu1 %vm353_vm1, %v4736_v14  ;;  %15242 = vmatprep.mubr.msk.f32.mxu0 %vm353_vm1, %v4769_v20  ;;  %v4745_v14 = vld [vmem:[#allocation2 + $0x1a9] sm:$0xff] }
 0x1b8   : > { %3078 = vst.msk [vmem:[#allocation5 + $0x68] sm:$0xff] %vm629_vm3, %v3046_v33  ;;  %v3045_v25 = vadd.f32 %v2935_v11, %v2361_v12  ;;  %v2950_v26 = vadd.f32 %v14991_v24, %v14941_v21  ;;  %15292 = vmatprep.mubr.msk.f32.mxu1 %vm353_vm1, %v4737_v32  ;;  %v2620_v28 = vpop.f32.mrf.mxu0  ;;  %v4778_v12 = vld [vmem:[#allocation3 + $0x1b1] sm:$0xff] }
 0x1b9   : > { %v2944_v29 = vpop.f32.mrf.mxu1  ;;  %v4746_v21 = vld [vmem:[#allocation2 + $0x1b1] sm:$0xff] }
 0x1ba   : > { %3077 = vst.msk [vmem:[#allocation5 + $0x60] sm:$0xff] %vm629_vm3, %v3045_v25  ;;  %v3048_v34 = vadd.f32 %v2950_v26, %v2364_v16  ;;  %v2945_v35 = vadd.f32 %v2944_v29, %v2620_v28  ;;  %v14944_v37 = vpop.f32.mrf.mxu0  ;;  %15243 = vmatmul.mubr.msk.f32.gmra.mxu0 %vm353_vm1, %v4770_v27  ;;  %v2372_v24 = vld [vmem:[#allocation5 + $0xb8] sm:$0xff]  ;;  %v4779_v27 = vld [vmem:[#allocation3 + $0x1c9] sm:$0xff] }
 0x1bb   : > { %v14994_v38 = vpop.f32.mrf.mxu1  ;;  %15293 = vmatmul.mubr.msk.f32.gmra.mxu1 %vm353_vm1, %v4738_v15  ;;  %15245 = vmatprep.mubr.msk.f32.mxu0 %vm353_vm1, %v4771_v30  ;;  %v4747_v15 = vld [vmem:[#allocation2 + $0x1c9] sm:$0xff] }
 0x1bc   : > { %3080 = vst.msk [vmem:[#allocation5 + $0x78] sm:$0xff] %vm629_vm3, %v3048_v34  ;;  %v3047_v39 = vadd.f32 %v2945_v35, %v2363_v36  ;;  %v2960_v40 = vadd.f32 %v14994_v38, %v14944_v37  ;;  %15295 = vmatprep.mubr.msk.f32.mxu1 %vm353_vm1, %v4739_v31  ;;  %v2630_v42 = vpop.f32.mrf.mxu0  ;;  %v2371_v29 = vld [vmem:[#allocation5 + $0xb0] sm:$0xff]  ;;  %v2374_v38 = vld [vmem:[#allocation5 + $0xc8] sm:$0xff] }
 0x1bd   : > { %v2954_v43 = vpop.f32.mrf.mxu1  ;;  %v4780_v36 = vld [vmem:[#allocation3 + $0x1d1] sm:$0xff] }
 0x1be   : > { %3079 = vst.msk [vmem:[#allocation5 + $0x70] sm:$0xff] %vm629_vm3, %v3047_v39  ;;  %v3050_v46 = vadd.f32 %v2960_v40, %v2366_v23  ;;  %v2955_v49 = vadd.f32 %v2954_v43, %v2630_v42  ;;  %v14947_v51 = vpop.f32.mrf.mxu0  ;;  %15246 = vmatmul.mubr.msk.f32.gmra.mxu0 %vm353_vm1, %v4772_v22  ;;  %v4748_v37 = vld [vmem:[#allocation2 + $0x1d1] sm:$0xff]  ;;  %v4781_v22 = vld [vmem:[#allocation3 + $0x1e9] sm:$0xff]  ;;  %v2373_v43 = vld [vmem:[#allocation5 + $0xc0] sm:$0xff] }
 0x1bf   : > { %v14997_v52 = vpop.f32.mrf.mxu1  ;;  %15296 = vmatmul.mubr.msk.f32.gmra.mxu1 %vm353_vm1, %v4740_v41  ;;  %15248 = vmatprep.mubr.msk.f32.mxu0 %vm353_vm1, %v4773_v44  ;;  %v4749_v41 = vld [vmem:[#allocation2 + $0x1e9] sm:$0xff] }
 0x1c0   : > { %3082 = vst.msk [vmem:[#allocation5 + $0x88] sm:$0xff] %vm629_vm3, %v3050_v46  ;;  %v3049_v53 = vadd.f32 %v2955_v49, %v2365_v50  ;;  %v2970_v54 = vadd.f32 %v14997_v52, %v14947_v51  ;;  %15298 = vmatprep.mubr.msk.f32.mxu1 %vm353_vm1, %v4741_v45  ;;  %v2640_v58 = vpop.f32.mrf.mxu0  ;;  %v4782_v50 = vld [vmem:[#allocation3 + $0x1f1] sm:$0xff] }
 0x1c1   : > { %v2964_v59 = vpop.f32.mrf.mxu1  ;;  %v4750_v51 = vld [vmem:[#allocation2 + $0x1f1] sm:$0xff] }
 0x1c2   : > { %3081 = vst.msk [vmem:[#allocation5 + $0x80] sm:$0xff] %vm629_vm3, %v3049_v53  ;;  %v3052_v60 = vadd.f32 %v2970_v54, %v2368_v57  ;;  %v2965_v61 = vadd.f32 %v2964_v59, %v2640_v58  ;;  %v14950_v63 = vpop.f32.mrf.mxu0  ;;  %15249 = vmatmul.mubr.msk.f32.gmra.mxu0 %vm353_vm1, %v4774_v55  ;;  %v2376_v52 = vld [vmem:[#allocation5 + $0xd8] sm:$0xff]  ;;  %v4783_v55 = vld [vmem:[#allocation3 + $0x209] sm:$0xff] }
 0x1c3   : > { %v15000_v0 = vpop.f32.mrf.mxu1  ;;  %15299 = vmatmul.mubr.msk.f32.gmra.mxu1 %vm353_vm1, %v4742_v56  ;;  %15251 = vmatprep.mubr.msk.f32.mxu0 %vm353_vm1, %v4775_v3  ;;  %v4751_v56 = vld [vmem:[#allocation2 + $0x209] sm:$0xff] }
 0x1c4   : > { %3084 = vst.msk [vmem:[#allocation5 + $0x98] sm:$0xff] %vm629_vm3, %v3052_v60  ;;  %v3051_v1 = vadd.f32 %v2965_v61, %v2367_v62  ;;  %v2980_v2 = vadd.f32 %v15000_v0, %v14950_v63  ;;  %15301 = vmatprep.mubr.msk.f32.mxu1 %vm353_vm1, %v4743_v5  ;;  %v2650_v9 = vpop.f32.mrf.mxu0  ;;  %v2375_v59 = vld [vmem:[#allocation5 + $0xd0] sm:$0xff]  ;;  %v2378_v0 = vld [vmem:[#allocation5 + $0xe8] sm:$0xff] }
 0x1c5   : > { %v2974_v10 = vpop.f32.mrf.mxu1  ;;  %v4784_v62 = vld [vmem:[#allocation3 + $0x211] sm:$0xff] }
 0x1c6   : > { %3083 = vst.msk [vmem:[#allocation5 + $0x90] sm:$0xff] %vm629_vm3, %v3051_v1  ;;  %v3054_v17 = vadd.f32 %v2980_v2, %v2370_v8  ;;  %v2975_v18 = vadd.f32 %v2974_v10, %v2650_v9  ;;  %v14953_v20 = vpop.f32.mrf.mxu0  ;;  %15252 = vmatmul.mubr.msk.f32.gmra.mxu0 %vm353_vm1, %v4776_v6  ;;  %v4752_v63 = vld [vmem:[#allocation2 + $0x211] sm:$0xff]  ;;  %v5567_v6 = vld [vmem:[#allocation3 + $0x47] sm:$0xff] }
 0x1c7   : > { %v15003_v32 = vpop.f32.mrf.mxu1  ;;  %15302 = vmatmul.mubr.msk.f32.gmra.mxu1 %vm353_vm1, %v4744_v7  ;;  %15254 = vmatprep.mubr.msk.f32.mxu0 %vm353_vm1, %v4777_v13  ;;  %v5534_v7 = vld [vmem:[#allocation2 + $0x47] sm:$0xff] }
 0x1c8   : > { %3086 = vst.msk [vmem:[#allocation5 + $0xa8] sm:$0xff] %vm629_vm3, %v3054_v17  ;;  %v3053_v33 = vadd.f32 %v2975_v18, %v2369_v19  ;;  %v2990_v11 = vadd.f32 %v15003_v32, %v14953_v20  ;;  %15304 = vmatprep.mubr.msk.f32.mxu1 %vm353_vm1, %v4745_v14  ;;  %v2660_v25 = vpop.f32.mrf.mxu0  ;;  %v2377_v10 = vld [vmem:[#allocation5 + $0xe0] sm:$0xff]  ;;  %v5568_v19 = vld [vmem:[#allocation3 + $0x4f] sm:$0xff]  ;;  %v2380_v32 = vld [vmem:[#allocation5 + $0xf8] sm:$0xff] }
 0x1c9   : > { %v2984_v26 = vpop.f32.mrf.mxu1  ;;  %v5535_v20 = vld [vmem:[#allocation2 + $0x4f] sm:$0xff] }
 0x1ca   : > { %3085 = vst.msk [vmem:[#allocation5 + $0xa0] sm:$0xff] %vm629_vm3, %v3053_v33  ;;  %v3056_v16 = vadd.f32 %v2990_v11, %v2372_v24  ;;  %v2985_v28 = vadd.f32 %v2984_v26, %v2660_v25  ;;  %v14956_v30 = vpop.f32.mrf.mxu0  ;;  %15255 = vmatmul.mubr.msk.f32.gmra.mxu0 %vm353_vm1, %v4778_v12  ;;  %v5569_v24 = vld [vmem:[#allocation3 + $0x67] sm:$0xff]  ;;  %v2379_v26 = vld [vmem:[#allocation5 + $0xf0] sm:$0xff] }
 0x1cb   : > { %v15006_v31 = vpop.f32.mrf.mxu1  ;;  %15305 = vmatmul.mubr.msk.f32.gmra.mxu1 %vm353_vm1, %v4746_v21  ;;  %15257 = vmatprep.mubr.msk.f32.mxu0 %vm353_vm1, %v4779_v27  ;;  %v5536_v25 = vld [vmem:[#allocation2 + $0x67] sm:$0xff] }
 0x1cc   : > { %3088 = vst.msk [vmem:[#allocation5 + $0xb8] sm:$0xff] %vm629_vm3, %v3056_v16  ;;  %v3055_v34 = vadd.f32 %v2985_v28, %v2371_v29  ;;  %v3000_v35 = vadd.f32 %v15006_v31, %v14956_v30  ;;  %15307 = vmatprep.mubr.msk.f32.mxu1 %vm353_vm1, %v4747_v15  ;;  %v2670_v39 = vpop.f32.mrf.mxu0  ;;  %v17438_v16 = vld [vmem:[%s19239_s3 + $0x20] sm:$0xf]  ;;  %v5570_v31 = vld [vmem:[#allocation3 + $0x6f] sm:$0xff] }
 0x1cd   : > { %v2994_v40 = vpop.f32.mrf.mxu1  ;;  %v17443_v28 = vld [vmem:[%s19238_s2 + $0x20] sm:$0xf] }
 0x1ce   : > { %3087 = vst.msk [vmem:[#allocation5 + $0xb0] sm:$0xff] %vm629_vm3, %v3055_v34  ;;  %v3058_v23 = vadd.f32 %v3000_v35, %v2374_v38  ;;  %v2995_v42 = vadd.f32 %v2994_v40, %v2670_v39  ;;  %v14959_v44 = vpop.f32.mrf.mxu0  ;;  %15258 = vmatmul.mubr.msk.f32.gmra.mxu0 %vm353_vm1, %v4780_v36  ;;  %v5537_v34 = vld [vmem:[#allocation2 + $0x6f] sm:$0xff]  ;;  %v5571_v38 = vld [vmem:[#allocation3 + $0x87] sm:$0xff] }
 0x1cf   : > { %v15009_v45 = vpop.f32.mrf.mxu1  ;;  %15308 = vmatmul.mubr.msk.f32.gmra.mxu1 %vm353_vm1, %v4748_v37  ;;  %15260 = vmatprep.mubr.msk.f32.mxu0 %vm353_vm1, %v4781_v22  ;;  %v3162_v35 = vld [vmem:[#allocation5 + $0x8] sm:$0xff] }
 0x1d0   : > { %3090 = vst.msk [vmem:[#allocation5 + $0xc8] sm:$0xff] %vm629_vm3, %v3058_v23  ;;  %v3057_v46 = vadd.f32 %v2995_v42, %v2373_v43  ;;  %v3010_v49 = vadd.f32 %v15009_v45, %v14959_v44  ;;  %15310 = vmatprep.mubr.msk.f32.mxu1 %vm353_vm1, %v4749_v41  ;;  %v2680_v53 = vpop.f32.mrf.mxu0  ;;  %v5538_v39 = vld [vmem:[#allocation2 + $0x87] sm:$0xff]  ;;  %v5572_v43 = vld [vmem:[#allocation3 + $0x8f] sm:$0xff]  ;;  %v3164_v45 = vld [vmem:[#allocation5 + $0x18] sm:$0xff] }
 0x1d1   : > { %v3004_v54 = vpop.f32.mrf.mxu1  ;;  %v5539_v44 = vld [vmem:[#allocation2 + $0x8f] sm:$0xff] }
 0x1d2   : > { %3089 = vst.msk [vmem:[#allocation5 + $0xc0] sm:$0xff] %vm629_vm3, %v3057_v46  ;;  %v3060_v57 = vadd.f32 %v3010_v49, %v2376_v52  ;;  %v3005_v58 = vadd.f32 %v3004_v54, %v2680_v53  ;;  %v14962_v3 = vpop.f32.mrf.mxu0  ;;  %15261 = vmatmul.mubr.msk.f32.gmra.mxu0 %vm353_vm1, %v4782_v50  ;;  %v5573_v50 = vld [vmem:[#allocation3 + $0xa7] sm:$0xff]  ;;  %v3163_v54 = vld [vmem:[#allocation5 + $0x10] sm:$0xff] }
 0x1d3   : > { %v15012_v5 = vpop.f32.mrf.mxu1  ;;  %15311 = vmatmul.mubr.msk.f32.gmra.mxu1 %vm353_vm1, %v4750_v51  ;;  %15263 = vmatprep.mubr.msk.f32.mxu0 %vm353_vm1, %v4783_v55  ;;  %v5540_v51 = vld [vmem:[#allocation2 + $0xa7] sm:$0xff] }
 0x1d4   : > { %3092 = vst.msk [vmem:[#allocation5 + $0xd8] sm:$0xff] %vm629_vm3, %v3060_v57  ;;  %v3059_v60 = vadd.f32 %v3005_v58, %v2375_v59  ;;  %v3020_v61 = vadd.f32 %v15012_v5, %v14962_v3  ;;  %15313 = vmatprep.mubr.msk.f32.mxu1 %vm353_vm1, %v4751_v56  ;;  %v2690_v1 = vpop.f32.mrf.mxu0  ;;  %v5574_v59 = vld [vmem:[#allocation3 + $0xaf] sm:$0xff] }
 0x1d5   : > { %v3014_v2 = vpop.f32.mrf.mxu1  ;;  %v5541_v3 = vld [vmem:[#allocation2 + $0xaf] sm:$0xff] }
 0x1d6   : > { %3091 = vst.msk [vmem:[#allocation5 + $0xd0] sm:$0xff] %vm629_vm3, %v3059_v60  ;;  %v3062_v8 = vadd.f32 %v3020_v61, %v2378_v0  ;;  %v3015_v9 = vadd.f32 %v3014_v2, %v2690_v1  ;;  %v14965_v13 = vpop.f32.mrf.mxu0  ;;  %15264 = vmatmul.mubr.msk.f32.gmra.mxu0 %vm353_vm1, %v4784_v62  ;;  %v3166_v5 = vld [vmem:[#allocation5 + $0x28] sm:$0xff]  ;;  %v3165_v2 = vld [vmem:[#allocation5 + $0x20] sm:$0xff] }
 0x1d7   : > { %v15015_v14 = vpop.f32.mrf.mxu1  ;;  %15314 = vmatmul.mubr.msk.f32.gmra.mxu1 %vm353_vm1, %v4752_v63  ;;  %15318 = vmatprep.mubr.msk.f32.mxu0 %vm353_vm1, %v5567_v6  ;;  %v5575_v62 = vld [vmem:[#allocation3 + $0xc7] sm:$0xff] }
 0x1d8   : > { %3094 = vst.msk [vmem:[#allocation5 + $0xe8] sm:$0xff] %vm629_vm3, %v3062_v8  ;;  %v3061_v17 = vadd.f32 %v3015_v9, %v2377_v10  ;;  %v3030_v18 = vadd.f32 %v15015_v14, %v14965_v13  ;;  %15368 = vmatprep.mubr.msk.f32.mxu1 %vm353_vm1, %v5534_v7  ;;  %v2700_v33 = vpop.f32.mrf.mxu0  ;;  %v5542_v63 = vld [vmem:[#allocation2 + $0xc7] sm:$0xff]  ;;  %v5576_v10 = vld [vmem:[#allocation3 + $0xcf] sm:$0xff]  ;;  %v3168_v14 = vld [vmem:[#allocation5 + $0x38] sm:$0xff] }
 0x1d9   : > { %v3024_v11 = vpop.f32.mrf.mxu1  ;;  %v5543_v13 = vld [vmem:[#allocation2 + $0xcf] sm:$0xff] }
 0x1da   : > { %3093 = vst.msk [vmem:[#allocation5 + $0xe0] sm:$0xff] %vm629_vm3, %v3061_v17  ;;  %v3064_v12 = vadd.f32 %v3030_v18, %v2380_v32  ;;  %v3025_v21 = vadd.f32 %v3024_v11, %v2700_v33  ;;  %v15020_v27 = vpop.f32.mrf.mxu0  ;;  %15319 = vmatmul.mubr.msk.f32.vlgmr.msra.gmra.mxu0 %vm353_vm1, %v5568_v19  ;;  %v5577_v19 = vld [vmem:[#allocation3 + $0xe7] sm:$0xff]  ;;  %v3167_v11 = vld [vmem:[#allocation5 + $0x30] sm:$0xff] }
 0x1db   : > { %v15070_v15 = vpop.f32.mrf.mxu1  ;;  %15369 = vmatmul.mubr.msk.f32.vlgmr.msra.gmra.mxu1 %vm353_vm1, %v5535_v20  ;;  %15417 = vmatpush3.msk.msra.mxu0 %vm856_vm0, %v17324_v47  ;;  %v3161_v47 = vld [vmem:[#allocation5] sm:$0xff] }
 0x1dc   : > { %3096 = vst.msk [vmem:[#allocation5 + $0xf8] sm:$0xff] %vm629_vm3, %v3064_v12  ;;  %v3063_v29 = vadd.f32 %v3025_v21, %v2379_v26  ;;  %v3692_v30 = vadd.f32 %v15070_v15, %v15020_v27  ;;  %15467 = vmatpush3.msk.msra.mxu1 %vm856_vm0, %v17329_v48  ;;  %v3362_v36 = vpop.f32.mrf.mxu0  ;;  %15321 = vmatprep.mubr.msk.f32.mxu0 %vm353_vm1, %v5569_v24  ;;  %v5544_v20 = vld [vmem:[#allocation2 + $0xe7] sm:$0xff]  ;;  %v5578_v26 = vld [vmem:[#allocation3 + $0xef] sm:$0xff] }
 0x1dd   : > { %v3686_v37 = vpop.f32.mrf.mxu1  ;;  %15371 = vmatprep.mubr.msk.f32.mxu1 %vm353_vm1, %v5536_v25  ;;  %15516 = vmatprep.subr.msk.mxu0 %vm856_vm0, %v17438_v16  ;;  %v5545_v27 = vld [vmem:[#allocation2 + $0xef] sm:$0xff] }
 0x1de   : > { %3095 = vst.msk [vmem:[#allocation5 + $0xf0] sm:$0xff] %vm629_vm3, %v3063_v29  ;;  %v3846_v40 = vadd.f32 %v3692_v30, %v3162_v35  ;;  %v3687_v22 = vadd.f32 %v3686_v37, %v3362_v36  ;;  %15566 = vmatprep.subr.msk.mxu1 %vm856_vm0, %v17443_v28  ;;  %v15023_v48 = vpop.f32.mrf.mxu0  ;;  %15322 = vmatmul.mubr.msk.f32.gmra.mxu0 %vm353_vm1, %v5570_v31  ;;  %v3170_v15 = vld [vmem:[#allocation5 + $0x48] sm:$0xff]  ;;  %v3169_v37 = vld [vmem:[#allocation5 + $0x40] sm:$0xff] }
 0x1df   : > { %v15073_v41 = vpop.f32.mrf.mxu1  ;;  %15372 = vmatmul.mubr.msk.f32.gmra.mxu1 %vm353_vm1, %v5537_v34  ;;  %15324 = vmatprep.mubr.msk.f32.mxu0 %vm353_vm1, %v5571_v38  ;;  %v5579_v31 = vld [vmem:[#allocation3 + $0x107] sm:$0xff] }
 0x1e0   : > { %3878 = vst.msk [vmem:[#allocation5 + $0x8] sm:$0xff] %vm629_vm3, %v3846_v40  ;;  %v3845_v23 = vadd.f32 %v3687_v22, %v3161_v47  ;;  %v3702_v42 = vadd.f32 %v15073_v41, %v15023_v48  ;;  %15374 = vmatprep.mubr.msk.f32.mxu1 %vm353_vm1, %v5538_v39  ;;  %v3372_v46 = vpop.f32.mrf.mxu0  ;;  %v5546_v34 = vld [vmem:[#allocation2 + $0x107] sm:$0xff]  ;;  %v5580_v47 = vld [vmem:[#allocation3 + $0x10f] sm:$0xff]  ;;  %v3172_v41 = vld [vmem:[#allocation5 + $0x58] sm:$0xff] }
 0x1e1   : > { %v3696_v49 = vpop.f32.mrf.mxu1  ;;  %v5547_v48 = vld [vmem:[#allocation2 + $0x10f] sm:$0xff] }
 0x1e2   : > { %3877 = vst.msk [vmem:[#allocation5] sm:$0xff] %vm629_vm3, %v3845_v23  ;;  %v3848_v52 = vadd.f32 %v3702_v42, %v3164_v45  ;;  %v3697_v53 = vadd.f32 %v3696_v49, %v3372_v46  ;;  %v15026_v55 = vpop.f32.mrf.mxu0  ;;  %15325 = vmatmul.mubr.msk.f32.gmra.mxu0 %vm353_vm1, %v5572_v43  ;;  %v5581_v43 = vld [vmem:[#allocation3 + $0x127] sm:$0xff]  ;;  %v3171_v49 = vld [vmem:[#allocation5 + $0x50] sm:$0xff] }
 0x1e3   : > { %v15076_v56 = vpop.f32.mrf.mxu1  ;;  %15375 = vmatmul.mubr.msk.f32.gmra.mxu1 %vm353_vm1, %v5539_v44  ;;  %15327 = vmatprep.mubr.msk.f32.mxu0 %vm353_vm1, %v5573_v50  ;;  %v5548_v44 = vld [vmem:[#allocation2 + $0x127] sm:$0xff] }
 0x1e4   : > { %3880 = vst.msk [vmem:[#allocation5 + $0x18] sm:$0xff] %vm629_vm3, %v3848_v52  ;;  %v3847_v57 = vadd.f32 %v3697_v53, %v3163_v54  ;;  %v3712_v58 = vadd.f32 %v15076_v56, %v15026_v55  ;;  %15377 = vmatprep.mubr.msk.f32.mxu1 %vm353_vm1, %v5540_v51  ;;  %v3382_v60 = vpop.f32.mrf.mxu0  ;;  %v5582_v54 = vld [vmem:[#allocation3 + $0x12f] sm:$0xff] }
 0x1e5   : > { %v3706_v61 = vpop.f32.mrf.mxu1  ;;  %v5549_v55 = vld [vmem:[#allocation2 + $0x12f] sm:$0xff] }
 0x1e6   : > { %3879 = vst.msk [vmem:[#allocation5 + $0x10] sm:$0xff] %vm629_vm3, %v3847_v57  ;;  %v3850_v0 = vadd.f32 %v3712_v58, %v3166_v5  ;;  %v3707_v1 = vadd.f32 %v3706_v61, %v3382_v60  ;;  %v15029_v6 = vpop.f32.mrf.mxu0  ;;  %15328 = vmatmul.mubr.msk.f32.gmra.mxu0 %vm353_vm1, %v5574_v59  ;;  %v3174_v56 = vld [vmem:[#allocation5 + $0x68] sm:$0xff]  ;;  %v3173_v61 = vld [vmem:[#allocation5 + $0x60] sm:$0xff] }
 0x1e7   : > { %v15079_v7 = vpop.f32.mrf.mxu1  ;;  %15378 = vmatmul.mubr.msk.f32.gmra.mxu1 %vm353_vm1, %v5541_v3  ;;  %15330 = vmatprep.mubr.msk.f32.mxu0 %vm353_vm1, %v5575_v62  ;;  %v5583_v59 = vld [vmem:[#allocation3 + $0x147] sm:$0xff] }
 0x1e8   : > { %3882 = vst.msk [vmem:[#allocation5 + $0x28] sm:$0xff] %vm629_vm3, %v3850_v0  ;;  %v3849_v8 = vadd.f32 %v3707_v1, %v3165_v2  ;;  %v3722_v9 = vadd.f32 %v15079_v7, %v15029_v6  ;;  %15380 = vmatprep.mubr.msk.f32.mxu1 %vm353_vm1, %v5542_v63  ;;  %v3392_v17 = vpop.f32.mrf.mxu0  ;;  %v5550_v3 = vld [vmem:[#allocation2 + $0x147] sm:$0xff]  ;;  %v5584_v2 = vld [vmem:[#allocation3 + $0x14f] sm:$0xff]  ;;  %v3176_v7 = vld [vmem:[#allocation5 + $0x78] sm:$0xff] }
 0x1e9   : > { %v3716_v18 = vpop.f32.mrf.mxu1  ;;  %v5551_v6 = vld [vmem:[#allocation2 + $0x14f] sm:$0xff] }
 0x1ea   : > { %3881 = vst.msk [vmem:[#allocation5 + $0x20] sm:$0xff] %vm629_vm3, %v3849_v8  ;;  %v3852_v32 = vadd.f32 %v3722_v9, %v3168_v14  ;;  %v3717_v33 = vadd.f32 %v3716_v18, %v3392_v17  ;;  %v15032_v12 = vpop.f32.mrf.mxu0  ;;  %15331 = vmatmul.mubr.msk.f32.gmra.mxu0 %vm353_vm1, %v5576_v10  ;;  %v5585_v10 = vld [vmem:[#allocation3 + $0x167] sm:$0xff]  ;;  %v3175_v18 = vld [vmem:[#allocation5 + $0x70] sm:$0xff] }
 0x1eb   : > { %v15082_v21 = vpop.f32.mrf.mxu1  ;;  %15381 = vmatmul.mubr.msk.f32.gmra.mxu1 %vm353_vm1, %v5543_v13  ;;  %15333 = vmatprep.mubr.msk.f32.mxu0 %vm353_vm1, %v5577_v19  ;;  %v5552_v13 = vld [vmem:[#allocation2 + $0x167] sm:$0xff] }
 0x1ec   : > { %3884 = vst.msk [vmem:[#allocation5 + $0x38] sm:$0xff] %vm629_vm3, %v3852_v32  ;;  %v3851_v24 = vadd.f32 %v3717_v33, %v3167_v11  ;;  %v3732_v25 = vadd.f32 %v15082_v21, %v15032_v12  ;;  %15383 = vmatprep.mubr.msk.f32.mxu1 %vm353_vm1, %v5544_v20  ;;  %v3402_v29 = vpop.f32.mrf.mxu0  ;;  %v5586_v11 = vld [vmem:[#allocation3 + $0x16f] sm:$0xff] }
 0x1ed   : > { %v3726_v30 = vpop.f32.mrf.mxu1  ;;  %v5553_v12 = vld [vmem:[#allocation2 + $0x16f] sm:$0xff] }
 0x1ee   : > { %3883 = vst.msk [vmem:[#allocation5 + $0x30] sm:$0xff] %vm629_vm3, %v3851_v24  ;;  %v3854_v35 = vadd.f32 %v3732_v25, %v3170_v15  ;;  %v3727_v36 = vadd.f32 %v3726_v30, %v3402_v29  ;;  %v15035_v38 = vpop.f32.mrf.mxu0  ;;  %15334 = vmatmul.mubr.msk.f32.gmra.mxu0 %vm353_vm1, %v5578_v26  ;;  %v3178_v21 = vld [vmem:[#allocation5 + $0x88] sm:$0xff]  ;;  %v3177_v30 = vld [vmem:[#allocation5 + $0x80] sm:$0xff] }
 0x1ef   : > { %v15085_v39 = vpop.f32.mrf.mxu1  ;;  %15384 = vmatmul.mubr.msk.f32.gmra.mxu1 %vm353_vm1, %v5545_v27  ;;  %15336 = vmatprep.mubr.msk.f32.mxu0 %vm353_vm1, %v5579_v31  ;;  %v5587_v26 = vld [vmem:[#allocation3 + $0x187] sm:$0xff] }
 0x1f0   : > { %3886 = vst.msk [vmem:[#allocation5 + $0x48] sm:$0xff] %vm629_vm3, %v3854_v35  ;;  %v3853_v40 = vadd.f32 %v3727_v36, %v3169_v37  ;;  %v3742_v22 = vadd.f32 %v15085_v39, %v15035_v38  ;;  %15386 = vmatprep.mubr.msk.f32.mxu1 %vm353_vm1, %v5546_v34  ;;  %v3412_v23 = vpop.f32.mrf.mxu0  ;;  %v5554_v27 = vld [vmem:[#allocation2 + $0x187] sm:$0xff]  ;;  %v5588_v37 = vld [vmem:[#allocation3 + $0x18f] sm:$0xff]  ;;  %v3180_v39 = vld [vmem:[#allocation5 + $0x98] sm:$0xff] }
 0x1f1   : > { %v3736_v42 = vpop.f32.mrf.mxu1  ;;  %v5555_v38 = vld [vmem:[#allocation2 + $0x18f] sm:$0xff] }
 0x1f2   : > { %3885 = vst.msk [vmem:[#allocation5 + $0x40] sm:$0xff] %vm629_vm3, %v3853_v40  ;;  %v3856_v45 = vadd.f32 %v3742_v22, %v3172_v41  ;;  %v3737_v46 = vadd.f32 %v3736_v42, %v3412_v23  ;;  %v15038_v50 = vpop.f32.mrf.mxu0  ;;  %15337 = vmatmul.mubr.msk.f32.gmra.mxu0 %vm353_vm1, %v5580_v47  ;;  %v5589_v47 = vld [vmem:[#allocation3 + $0x1a7] sm:$0xff]  ;;  %v3179_v42 = vld [vmem:[#allocation5 + $0x90] sm:$0xff] }
 0x1f3   : > { %v15088_v51 = vpop.f32.mrf.mxu1  ;;  %15387 = vmatmul.mubr.msk.f32.gmra.mxu1 %vm353_vm1, %v5547_v48  ;;  %15339 = vmatprep.mubr.msk.f32.mxu0 %vm353_vm1, %v5581_v43  ;;  %v5556_v48 = vld [vmem:[#allocation2 + $0x1a7] sm:$0xff] }
 0x1f4   : > { %3888 = vst.msk [vmem:[#allocation5 + $0x58] sm:$0xff] %vm629_vm3, %v3856_v45  ;;  %v3855_v52 = vadd.f32 %v3737_v46, %v3171_v49  ;;  %v3752_v53 = vadd.f32 %v15088_v51, %v15038_v50  ;;  %15389 = vmatprep.mubr.msk.f32.mxu1 %vm353_vm1, %v5548_v44  ;;  %v3422_v57 = vpop.f32.mrf.mxu0  ;;  %v5590_v49 = vld [vmem:[#allocation3 + $0x1af] sm:$0xff] }
 0x1f5   : > { %v3746_v58 = vpop.f32.mrf.mxu1  ;;  %v5557_v50 = vld [vmem:[#allocation2 + $0x1af] sm:$0xff] }
 0x1f6   : > { %3887 = vst.msk [vmem:[#allocation5 + $0x50] sm:$0xff] %vm629_vm3, %v3855_v52  ;;  %v3858_v5 = vadd.f32 %v3752_v53, %v3174_v56  ;;  %v3747_v60 = vadd.f32 %v3746_v58, %v3422_v57  ;;  %v15041_v62 = vpop.f32.mrf.mxu0  ;;  %15340 = vmatmul.mubr.msk.f32.gmra.mxu0 %vm353_vm1, %v5582_v54  ;;  %v3182_v51 = vld [vmem:[#allocation5 + $0xa8] sm:$0xff]  ;;  %v3181_v58 = vld [vmem:[#allocation5 + $0xa0] sm:$0xff] }
 0x1f7   : > { %v15091_v63 = vpop.f32.mrf.mxu1  ;;  %15390 = vmatmul.mubr.msk.f32.gmra.mxu1 %vm353_vm1, %v5549_v55  ;;  %15342 = vmatprep.mubr.msk.f32.mxu0 %vm353_vm1, %v5583_v59  ;;  %v5591_v54 = vld [vmem:[#allocation3 + $0x1c7] sm:$0xff] }
 0x1f8   : > { %3890 = vst.msk [vmem:[#allocation5 + $0x68] sm:$0xff] %vm629_vm3, %v3858_v5  ;;  %v3857_v0 = vadd.f32 %v3747_v60, %v3173_v61  ;;  %v3762_v1 = vadd.f32 %v15091_v63, %v15041_v62  ;;  %15392 = vmatprep.mubr.msk.f32.mxu1 %vm353_vm1, %v5550_v3  ;;  %v3432_v8 = vpop.f32.mrf.mxu0  ;;  %v5558_v55 = vld [vmem:[#allocation2 + $0x1c7] sm:$0xff]  ;;  %v5592_v61 = vld [vmem:[#allocation3 + $0x1cf] sm:$0xff]  ;;  %v3184_v63 = vld [vmem:[#allocation5 + $0xb8] sm:$0xff] }
 0x1f9   : > { %v3756_v9 = vpop.f32.mrf.mxu1  ;;  %v5559_v62 = vld [vmem:[#allocation2 + $0x1cf] sm:$0xff] }
 0x1fa   : > { %3889 = vst.msk [vmem:[#allocation5 + $0x60] sm:$0xff] %vm629_vm3, %v3857_v0  ;;  %v3860_v14 = vadd.f32 %v3762_v1, %v3176_v7  ;;  %v3757_v17 = vadd.f32 %v3756_v9, %v3432_v8  ;;  %v15044_v19 = vpop.f32.mrf.mxu0  ;;  %15343 = vmatmul.mubr.msk.f32.gmra.mxu0 %vm353_vm1, %v5584_v2  ;;  %v5593_v2 = vld [vmem:[#allocation3 + $0x1e7] sm:$0xff]  ;;  %v3183_v9 = vld [vmem:[#allocation5 + $0xb0] sm:$0xff] }
 0x1fb   : > { %v15094_v20 = vpop.f32.mrf.mxu1  ;;  %15393 = vmatmul.mubr.msk.f32.gmra.mxu1 %vm353_vm1, %v5551_v6  ;;  %15345 = vmatprep.mubr.msk.f32.mxu0 %vm353_vm1, %v5585_v10  ;;  %v5560_v6 = vld [vmem:[#allocation2 + $0x1e7] sm:$0xff] }
 0x1fc   : > { %3892 = vst.msk [vmem:[#allocation5 + $0x78] sm:$0xff] %vm629_vm3, %v3860_v14  ;;  %v3859_v32 = vadd.f32 %v3757_v17, %v3175_v18  ;;  %v3772_v33 = vadd.f32 %v15094_v20, %v15044_v19  ;;  %15395 = vmatprep.mubr.msk.f32.mxu1 %vm353_vm1, %v5552_v13  ;;  %v3442_v24 = vpop.f32.mrf.mxu0  ;;  %v5594_v18 = vld [vmem:[#allocation3 + $0x1ef] sm:$0xff] }
 0x1fd   : > { %v3766_v25 = vpop.f32.mrf.mxu1  ;;  %v5561_v19 = vld [vmem:[#allocation2 + $0x1ef] sm:$0xff] }
 0x1fe   : > { %3891 = vst.msk [vmem:[#allocation5 + $0x70] sm:$0xff] %vm629_vm3, %v3859_v32  ;;  %v3862_v15 = vadd.f32 %v3772_v33, %v3178_v21  ;;  %v3767_v29 = vadd.f32 %v3766_v25, %v3442_v24  ;;  %v15047_v31 = vpop.f32.mrf.mxu0  ;;  %15346 = vmatmul.mubr.msk.f32.gmra.mxu0 %vm353_vm1, %v5586_v11  ;;  %v3186_v20 = vld [vmem:[#allocation5 + $0xc8] sm:$0xff]  ;;  %v3185_v25 = vld [vmem:[#allocation5 + $0xc0] sm:$0xff] }
 0x1ff   : > { %v15097_v34 = vpop.f32.mrf.mxu1  ;;  %15396 = vmatmul.mubr.msk.f32.gmra.mxu1 %vm353_vm1, %v5553_v12  ;;  %15348 = vmatprep.mubr.msk.f32.mxu0 %vm353_vm1, %v5587_v26  ;;  %v5595_v11 = vld [vmem:[#allocation3 + $0x207] sm:$0xff] }
 0x200   : > { %3894 = vst.msk [vmem:[#allocation5 + $0x88] sm:$0xff] %vm629_vm3, %v3862_v15  ;;  %v3861_v35 = vadd.f32 %v3767_v29, %v3177_v30  ;;  %v3782_v36 = vadd.f32 %v15097_v34, %v15047_v31  ;;  %15398 = vmatprep.mubr.msk.f32.mxu1 %vm353_vm1, %v5554_v27  ;;  %v3452_v40 = vpop.f32.mrf.mxu0  ;;  %v5562_v12 = vld [vmem:[#allocation2 + $0x207] sm:$0xff]  ;;  %v5596_v30 = vld [vmem:[#allocation3 + $0x20f] sm:$0xff]  ;;  %v3188_v34 = vld [vmem:[#allocation5 + $0xd8] sm:$0xff] }
 0x201   : > { %v3776_v22 = vpop.f32.mrf.mxu1  ;;  %v5563_v31 = vld [vmem:[#allocation2 + $0x20f] sm:$0xff] }
 0x202   : > { %3893 = vst.msk [vmem:[#allocation5 + $0x80] sm:$0xff] %vm629_vm3, %v3861_v35  ;;  %v3864_v41 = vadd.f32 %v3782_v36, %v3180_v39  ;;  %v3777_v23 = vadd.f32 %v3776_v22, %v3452_v40  ;;  %v15050_v43 = vpop.f32.mrf.mxu0  ;;  %15349 = vmatmul.mubr.msk.f32.gmra.mxu0 %vm353_vm1, %v5588_v37  ;;  %v5597_v37 = vld [vmem:[#allocation3 + $0x227] sm:$0xff]  ;;  %v3187_v22 = vld [vmem:[#allocation5 + $0xd0] sm:$0xff] }
 0x203   : > { %v15100_v44 = vpop.f32.mrf.mxu1  ;;  %15399 = vmatmul.mubr.msk.f32.gmra.mxu1 %vm353_vm1, %v5555_v38  ;;  %15351 = vmatprep.mubr.msk.f32.mxu0 %vm353_vm1, %v5589_v47  ;;  %v5564_v38 = vld [vmem:[#allocation2 + $0x227] sm:$0xff] }
 0x204   : > { %3896 = vst.msk [vmem:[#allocation5 + $0x98] sm:$0xff] %vm629_vm3, %v3864_v41  ;;  %v3863_v45 = vadd.f32 %v3777_v23, %v3179_v42  ;;  %v3792_v46 = vadd.f32 %v15100_v44, %v15050_v43  ;;  %15401 = vmatprep.mubr.msk.f32.mxu1 %vm353_vm1, %v5556_v48  ;;  %v3462_v52 = vpop.f32.mrf.mxu0  ;;  %v5598_v42 = vld [vmem:[#allocation3 + $0x22f] sm:$0xff] }
 0x205   : > { %v3786_v53 = vpop.f32.mrf.mxu1  ;;  %v5565_v43 = vld [vmem:[#allocation2 + $0x22f] sm:$0xff] }
 0x206   : > { %3895 = vst.msk [vmem:[#allocation5 + $0x90] sm:$0xff] %vm629_vm3, %v3863_v45  ;;  %v3866_v56 = vadd.f32 %v3792_v46, %v3182_v51  ;;  %v3787_v57 = vadd.f32 %v3786_v53, %v3462_v52  ;;  %v15053_v59 = vpop.f32.mrf.mxu0  ;;  %15352 = vmatmul.mubr.msk.f32.gmra.mxu0 %vm353_vm1, %v5590_v49  ;;  %v3190_v44 = vld [vmem:[#allocation5 + $0xe8] sm:$0xff]  ;;  %v3189_v53 = vld [vmem:[#allocation5 + $0xe0] sm:$0xff] }
 0x207   : > { %v15103_v3 = vpop.f32.mrf.mxu1  ;;  %15402 = vmatmul.mubr.msk.f32.gmra.mxu1 %vm353_vm1, %v5557_v50  ;;  %15354 = vmatprep.mubr.msk.f32.mxu0 %vm353_vm1, %v5591_v54  ;;  %v6379_v49 = vld [vmem:[#allocation3 + $0x48] sm:$0xff] }
 0x208   : > { %3898 = vst.msk [vmem:[#allocation5 + $0xa8] sm:$0xff] %vm629_vm3, %v3866_v56  ;;  %v3865_v5 = vadd.f32 %v3787_v57, %v3181_v58  ;;  %v3802_v60 = vadd.f32 %v15103_v3, %v15053_v59  ;;  %15404 = vmatprep.mubr.msk.f32.mxu1 %vm353_vm1, %v5558_v55  ;;  %v3472_v0 = vpop.f32.mrf.mxu0  ;;  %v6347_v50 = vld [vmem:[#allocation2 + $0x48] sm:$0xff]  ;;  %v6380_v58 = vld [vmem:[#allocation3 + $0x50] sm:$0xff]  ;;  %v3192_v3 = vld [vmem:[#allocation5 + $0xf8] sm:$0xff] }
 0x209   : > { %v3796_v1 = vpop.f32.mrf.mxu1  ;;  %v6348_v59 = vld [vmem:[#allocation2 + $0x50] sm:$0xff] }
 0x20a   : > { %3897 = vst.msk [vmem:[#allocation5 + $0xa0] sm:$0xff] %vm629_vm3, %v3865_v5  ;;  %v3868_v7 = vadd.f32 %v3802_v60, %v3184_v63  ;;  %v3797_v8 = vadd.f32 %v3796_v1, %v3472_v0  ;;  %v15056_v10 = vpop.f32.mrf.mxu0  ;;  %15355 = vmatmul.mubr.msk.f32.gmra.mxu0 %vm353_vm1, %v5592_v61  ;;  %v6381_v63 = vld [vmem:[#allocation3 + $0x68] sm:$0xff]  ;;  %v3191_v1 = vld [vmem:[#allocation5 + $0xf0] sm:$0xff] }
 0x20b   : > { %v15106_v13 = vpop.f32.mrf.mxu1  ;;  %15405 = vmatmul.mubr.msk.f32.gmra.mxu1 %vm353_vm1, %v5559_v62  ;;  %15357 = vmatprep.mubr.msk.f32.mxu0 %vm353_vm1, %v5593_v2  ;;  %v6349_v0 = vld [vmem:[#allocation2 + $0x68] sm:$0xff] }
 0x20c   : > { %3900 = vst.msk [vmem:[#allocation5 + $0xb8] sm:$0xff] %vm629_vm3, %v3868_v7  ;;  %v3867_v14 = vadd.f32 %v3797_v8, %v3183_v9  ;;  %v3812_v17 = vadd.f32 %v15106_v13, %v15056_v10  ;;  %15407 = vmatprep.mubr.msk.f32.mxu1 %vm353_vm1, %v5560_v6  ;;  %v3482_v32 = vpop.f32.mrf.mxu0  ;;  %v6382_v9 = vld [vmem:[#allocation3 + $0x70] sm:$0xff]  ;;  %v3974_v13 = vld [vmem:[#allocation5 + $0x8] sm:$0xff] }
 0x20d   : > { %v3806_v33 = vpop.f32.mrf.mxu1  ;;  %v6350_v10 = vld [vmem:[#allocation2 + $0x70] sm:$0xff] }
 0x20e   : > { %3899 = vst.msk [vmem:[#allocation5 + $0xb0] sm:$0xff] %vm629_vm3, %v3867_v14  ;;  %v3870_v21 = vadd.f32 %v3812_v17, %v3186_v20  ;;  %v3807_v24 = vadd.f32 %v3806_v33, %v3482_v32  ;;  %v15059_v26 = vpop.f32.mrf.mxu0  ;;  %15358 = vmatmul.mubr.msk.f32.gmra.mxu0 %vm353_vm1, %v5594_v18  ;;  %v6383_v18 = vld [vmem:[#allocation3 + $0x88] sm:$0xff]  ;;  %v3973_v33 = vld [vmem:[#allocation5] sm:$0xff] }
 0x20f   : > { %v15109_v27 = vpop.f32.mrf.mxu1  ;;  %15408 = vmatmul.mubr.msk.f32.gmra.mxu1 %vm353_vm1, %v5561_v19  ;;  %15360 = vmatprep.mubr.msk.f32.mxu0 %vm353_vm1, %v5595_v11  ;;  %v6351_v19 = vld [vmem:[#allocation2 + $0x88] sm:$0xff] }
 0x210   : > { %3902 = vst.msk [vmem:[#allocation5 + $0xc8] sm:$0xff] %vm629_vm3, %v3870_v21  ;;  %v3869_v15 = vadd.f32 %v3807_v24, %v3185_v25  ;;  %v3822_v29 = vadd.f32 %v15109_v27, %v15059_v26  ;;  %15410 = vmatprep.mubr.msk.f32.mxu1 %vm353_vm1, %v5562_v12  ;;  %v3492_v35 = vpop.f32.mrf.mxu0  ;;  %v6384_v21 = vld [vmem:[#allocation3 + $0x90] sm:$0xff]  ;;  %v3976_v25 = vld [vmem:[#allocation5 + $0x18] sm:$0xff] }
 0x211   : > { %v3816_v36 = vpop.f32.mrf.mxu1  ;;  %v6352_v24 = vld [vmem:[#allocation2 + $0x90] sm:$0xff] }
 0x212   : > { %3901 = vst.msk [vmem:[#allocation5 + $0xc0] sm:$0xff] %vm629_vm3, %v3869_v15  ;;  %v3872_v39 = vadd.f32 %v3822_v29, %v3188_v34  ;;  %v3817_v40 = vadd.f32 %v3816_v36, %v3492_v35  ;;  %v15062_v47 = vpop.f32.mrf.mxu0  ;;  %15361 = vmatmul.mubr.msk.f32.gmra.mxu0 %vm353_vm1, %v5596_v30  ;;  %v6385_v15 = vld [vmem:[#allocation3 + $0xa8] sm:$0xff]  ;;  %v3975_v34 = vld [vmem:[#allocation5 + $0x10] sm:$0xff] }
 0x213   : > { %v15112_v48 = vpop.f32.mrf.mxu1  ;;  %15411 = vmatmul.mubr.msk.f32.gmra.mxu1 %vm353_vm1, %v5563_v31  ;;  %15363 = vmatprep.mubr.msk.f32.mxu0 %vm353_vm1, %v5597_v37  ;;  %v6353_v29 = vld [vmem:[#allocation2 + $0xa8] sm:$0xff] }
 0x214   : > { %3904 = vst.msk [vmem:[#allocation5 + $0xd8] sm:$0xff] %vm629_vm3, %v3872_v39  ;;  %v3871_v41 = vadd.f32 %v3817_v40, %v3187_v22  ;;  %v3832_v23 = vadd.f32 %v15112_v48, %v15062_v47  ;;  %15413 = vmatprep.mubr.msk.f32.mxu1 %vm353_vm1, %v5564_v38  ;;  %v3502_v45 = vpop.f32.mrf.mxu0  ;;  %v6386_v39 = vld [vmem:[#allocation3 + $0xb0] sm:$0xff]  ;;  %v3978_v22 = vld [vmem:[#allocation5 + $0x28] sm:$0xff] }
 0x215   : > { %v3826_v46 = vpop.f32.mrf.mxu1  ;;  %v6354_v40 = vld [vmem:[#allocation2 + $0xb0] sm:$0xff] }
 0x216   : > { %3903 = vst.msk [vmem:[#allocation5 + $0xd0] sm:$0xff] %vm629_vm3, %v3871_v41  ;;  %v3874_v51 = vadd.f32 %v3832_v23, %v3190_v44  ;;  %v3827_v52 = vadd.f32 %v3826_v46, %v3502_v45  ;;  %v15065_v54 = vpop.f32.mrf.mxu0  ;;  %15364 = vmatmul.mubr.msk.f32.gmra.mxu0 %vm353_vm1, %v5598_v42  ;;  %v6387_v41 = vld [vmem:[#allocation3 + $0xc8] sm:$0xff]  ;;  %v3977_v44 = vld [vmem:[#allocation5 + $0x20] sm:$0xff] }
 0x217   : > { %v15115_v55 = vpop.f32.mrf.mxu1  ;;  %15414 = vmatmul.mubr.msk.f32.gmra.mxu1 %vm353_vm1, %v5565_v43  ;;  %15418 = vmatprep.mubr.msk.f32.mxu0 %vm353_vm1, %v6379_v49  ;;  %v6355_v23 = vld [vmem:[#allocation2 + $0xc8] sm:$0xff] }
 0x218   : > { %3906 = vst.msk [vmem:[#allocation5 + $0xe8] sm:$0xff] %vm629_vm3, %v3874_v51  ;;  %v3873_v56 = vadd.f32 %v3827_v52, %v3189_v53  ;;  %v3842_v57 = vadd.f32 %v15115_v55, %v15065_v54  ;;  %15468 = vmatprep.mubr.msk.f32.mxu1 %vm353_vm1, %v6347_v50  ;;  %v3512_v5 = vpop.f32.mrf.mxu0  ;;  %v6388_v51 = vld [vmem:[#allocation3 + $0xd0] sm:$0xff]  ;;  %v3980_v53 = vld [vmem:[#allocation5 + $0x38] sm:$0xff] }
 0x219   : > { %v3836_v60 = vpop.f32.mrf.mxu1  ;;  %v6356_v52 = vld [vmem:[#allocation2 + $0xd0] sm:$0xff] }
 0x21a   : > { %3905 = vst.msk [vmem:[#allocation5 + $0xe0] sm:$0xff] %vm629_vm3, %v3873_v56  ;;  %v3876_v61 = vadd.f32 %v3842_v57, %v3192_v3  ;;  %v3837_v62 = vadd.f32 %v3836_v60, %v3512_v5  ;;  %v15120_v2 = vpop.f32.mrf.mxu0  ;;  %15419 = vmatmul.mubr.msk.f32.vlgmr.msra.gmra.mxu0 %vm353_vm1, %v6380_v58  ;;  %v6389_v56 = vld [vmem:[#allocation3 + $0xe8] sm:$0xff]  ;;  %v3979_v3 = vld [vmem:[#allocation5 + $0x30] sm:$0xff] }
 0x21b   : > { %v15170_v6 = vpop.f32.mrf.mxu1  ;;  %15469 = vmatmul.mubr.msk.f32.vlgmr.msra.gmra.mxu1 %vm353_vm1, %v6348_v59  ;;  %15517 = vmatpush3.msk.msra.mxu0 %vm856_vm0, %v17438_v16  ;;  %v6357_v57 = vld [vmem:[#allocation2 + $0xe8] sm:$0xff] }
 0x21c   : > { %3908 = vst.msk [vmem:[#allocation5 + $0xf8] sm:$0xff] %vm629_vm3, %v3876_v61  ;;  %v3875_v7 = vadd.f32 %v3837_v62, %v3191_v1  ;;  %v4504_v8 = vadd.f32 %v15170_v6, %v15120_v2  ;;  %15567 = vmatpush3.msk.msra.mxu1 %vm856_vm0, %v17443_v28  ;;  %v4174_v14 = vpop.f32.mrf.mxu0  ;;  %15421 = vmatprep.mubr.msk.f32.mxu0 %vm353_vm1, %v6381_v63  ;;  %v6390_v63 = vld [vmem:[#allocation3 + $0xf0] sm:$0xff]  ;;  %v3982_v1 = vld [vmem:[#allocation5 + $0x48] sm:$0xff] }
 0x21d   : > { %v4498_v17 = vpop.f32.mrf.mxu1  ;;  %15471 = vmatprep.mubr.msk.f32.mxu1 %vm353_vm1, %v6349_v0  ;;  %v6358_v0 = vld [vmem:[#allocation2 + $0xf0] sm:$0xff] }
 0x21e   : > { %3907 = vst.msk [vmem:[#allocation5 + $0xf0] sm:$0xff] %vm629_vm3, %v3875_v7  ;;  %v4658_v20 = vadd.f32 %v4504_v8, %v3974_v13  ;;  %v4499_v32 = vadd.f32 %v4498_v17, %v4174_v14  ;;  %v15123_v16 = vpop.f32.mrf.mxu0  ;;  %15422 = vmatmul.mubr.msk.f32.gmra.mxu0 %vm353_vm1, %v6382_v9  ;;  %v6391_v7 = vld [vmem:[#allocation3 + $0x108] sm:$0xff]  ;;  %v3981_v13 = vld [vmem:[#allocation5 + $0x40] sm:$0xff] }
 0x21f   : > { %v15173_v11 = vpop.f32.mrf.mxu1  ;;  %15472 = vmatmul.mubr.msk.f32.gmra.mxu1 %vm353_vm1, %v6350_v10  ;;  %15424 = vmatprep.mubr.msk.f32.mxu0 %vm353_vm1, %v6383_v18  ;;  %v6359_v8 = vld [vmem:[#allocation2 + $0x108] sm:$0xff] }
 0x220   : > { %4690 = vst.msk [vmem:[#allocation5 + $0x8] sm:$0xff] %vm629_vm3, %v4658_v20  ;;  %v4657_v28 = vadd.f32 %v4499_v32, %v3973_v33  ;;  %v4514_v12 = vadd.f32 %v15173_v11, %v15123_v16  ;;  %15474 = vmatprep.mubr.msk.f32.mxu1 %vm353_vm1, %v6351_v19  ;;  %v4184_v26 = vpop.f32.mrf.mxu0  ;;  %v6392_v20 = vld [vmem:[#allocation3 + $0x110] sm:$0xff]  ;;  %v3984_v33 = vld [vmem:[#allocation5 + $0x58] sm:$0xff] }
 0x221   : > { %v4508_v27 = vpop.f32.mrf.mxu1  ;;  %v6360_v32 = vld [vmem:[#allocation2 + $0x110] sm:$0xff] }
 0x222   : > { %4689 = vst.msk [vmem:[#allocation5] sm:$0xff] %vm629_vm3, %v4657_v28  ;;  %v4660_v30 = vadd.f32 %v4514_v12, %v3976_v25  ;;  %v4509_v31 = vadd.f32 %v4508_v27, %v4184_v26  ;;  %v15126_v35 = vpop.f32.mrf.mxu0  ;;  %15425 = vmatmul.mubr.msk.f32.gmra.mxu0 %vm353_vm1, %v6384_v21  ;;  %v6393_v28 = vld [vmem:[#allocation3 + $0x128] sm:$0xff]  ;;  %v3983_v25 = vld [vmem:[#allocation5 + $0x50] sm:$0xff] }
 0x223   : > { %v15176_v36 = vpop.f32.mrf.mxu1  ;;  %15475 = vmatmul.mubr.msk.f32.gmra.mxu1 %vm353_vm1, %v6352_v24  ;;  %15427 = vmatprep.mubr.msk.f32.mxu0 %vm353_vm1, %v6385_v15  ;;  %v6361_v12 = vld [vmem:[#allocation2 + $0x128] sm:$0xff] }
 0x224   : > { %4692 = vst.msk [vmem:[#allocation5 + $0x18] sm:$0xff] %vm629_vm3, %v4660_v30  ;;  %v4659_v37 = vadd.f32 %v4509_v31, %v3975_v34  ;;  %v4524_v38 = vadd.f32 %v15176_v36, %v15126_v35  ;;  %15477 = vmatprep.mubr.msk.f32.mxu1 %vm353_vm1, %v6353_v29  ;;  %v4194_v47 = vpop.f32.mrf.mxu0  ;;  %v6394_v30 = vld [vmem:[#allocation3 + $0x130] sm:$0xff]  ;;  %v3986_v34 = vld [vmem:[#allocation5 + $0x68] sm:$0xff] }
 0x225   : > { %v4518_v48 = vpop.f32.mrf.mxu1  ;;  %v6362_v31 = vld [vmem:[#allocation2 + $0x130] sm:$0xff] }
 0x226   : > { %4691 = vst.msk [vmem:[#allocation5 + $0x10] sm:$0xff] %vm629_vm3, %v4659_v37  ;;  %v4662_v42 = vadd.f32 %v4524_v38, %v3978_v22  ;;  %v4519_v43 = vadd.f32 %v4518_v48, %v4194_v47  ;;  %v15129_v45 = vpop.f32.mrf.mxu0  ;;  %15428 = vmatmul.mubr.msk.f32.gmra.mxu0 %vm353_vm1, %v6386_v39  ;;  %v6395_v37 = vld [vmem:[#allocation3 + $0x148] sm:$0xff]  ;;  %v3985_v22 = vld [vmem:[#allocation5 + $0x60] sm:$0xff] }
 0x227   : > { %v15179_v46 = vpop.f32.mrf.mxu1  ;;  %15478 = vmatmul.mubr.msk.f32.gmra.mxu1 %vm353_vm1, %v6354_v40  ;;  %15430 = vmatprep.mubr.msk.f32.mxu0 %vm353_vm1, %v6387_v41  ;;  %v6363_v38 = vld [vmem:[#allocation2 + $0x148] sm:$0xff] }
 0x228   : > { %4694 = vst.msk [vmem:[#allocation5 + $0x28] sm:$0xff] %vm629_vm3, %v4662_v42  ;;  %v4661_v49 = vadd.f32 %v4519_v43, %v3977_v44  ;;  %v4534_v50 = vadd.f32 %v15179_v46, %v15129_v45  ;;  %15480 = vmatprep.mubr.msk.f32.mxu1 %vm353_vm1, %v6355_v23  ;;  %v4204_v54 = vpop.f32.mrf.mxu0  ;;  %v6396_v42 = vld [vmem:[#allocation3 + $0x150] sm:$0xff]  ;;  %v3988_v44 = vld [vmem:[#allocation5 + $0x78] sm:$0xff] }
 0x229   : > { %v4528_v55 = vpop.f32.mrf.mxu1  ;;  %v6364_v43 = vld [vmem:[#allocation2 + $0x150] sm:$0xff] }
 0x22a   : > { %4693 = vst.msk [vmem:[#allocation5 + $0x20] sm:$0xff] %vm629_vm3, %v4661_v49  ;;  %v4664_v58 = vadd.f32 %v4534_v50, %v3980_v53  ;;  %v4529_v59 = vadd.f32 %v4528_v55, %v4204_v54  ;;  %v15132_v5 = vpop.f32.mrf.mxu0  ;;  %15431 = vmatmul.mubr.msk.f32.gmra.mxu0 %vm353_vm1, %v6388_v51  ;;  %v6397_v49 = vld [vmem:[#allocation3 + $0x168] sm:$0xff]  ;;  %v3987_v53 = vld [vmem:[#allocation5 + $0x70] sm:$0xff] }
 0x22b   : > { %v15182_v60 = vpop.f32.mrf.mxu1  ;;  %15481 = vmatmul.mubr.msk.f32.gmra.mxu1 %vm353_vm1, %v6356_v52  ;;  %15433 = vmatprep.mubr.msk.f32.mxu0 %vm353_vm1, %v6389_v56  ;;  %v6365_v50 = vld [vmem:[#allocation2 + $0x168] sm:$0xff] }
 0x22c   : > { %4696 = vst.msk [vmem:[#allocation5 + $0x38] sm:$0xff] %vm629_vm3, %v4664_v58  ;;  %v4663_v61 = vadd.f32 %v4529_v59, %v3979_v3  ;;  %v4544_v62 = vadd.f32 %v15182_v60, %v15132_v5  ;;  %15483 = vmatprep.mubr.msk.f32.mxu1 %vm353_vm1, %v6357_v57  ;;  %v4214_v2 = vpop.f32.mrf.mxu0  ;;  %v6398_v58 = vld [vmem:[#allocation3 + $0x170] sm:$0xff]  ;;  %v3990_v3 = vld [vmem:[#allocation5 + $0x88] sm:$0xff] }
 0x22d   : > { %v4538_v6 = vpop.f32.mrf.mxu1  ;;  %v6366_v59 = vld [vmem:[#allocation2 + $0x170] sm:$0xff] }
 0x22e   : > { %4695 = vst.msk [vmem:[#allocation5 + $0x30] sm:$0xff] %vm629_vm3, %v4663_v61  ;;  %v4666_v9 = vadd.f32 %v4544_v62, %v3982_v1  ;;  %v4539_v10 = vadd.f32 %v4538_v6, %v4214_v2  ;;  %v15135_v14 = vpop.f32.mrf.mxu0  ;;  %15434 = vmatmul.mubr.msk.f32.gmra.mxu0 %vm353_vm1, %v6390_v63  ;;  %v6399_v61 = vld [vmem:[#allocation3 + $0x188] sm:$0xff]  ;;  %v3989_v1 = vld [vmem:[#allocation5 + $0x80] sm:$0xff] }
 0x22f   : > { %v15185_v17 = vpop.f32.mrf.mxu1  ;;  %15484 = vmatmul.mubr.msk.f32.gmra.mxu1 %vm353_vm1, %v6358_v0  ;;  %15436 = vmatprep.mubr.msk.f32.mxu0 %vm353_vm1, %v6391_v7  ;;  %v6367_v62 = vld [vmem:[#allocation2 + $0x188] sm:$0xff] }
 0x230   : > { %4698 = vst.msk [vmem:[#allocation5 + $0x48] sm:$0xff] %vm629_vm3, %v4666_v9  ;;  %v4665_v18 = vadd.f32 %v4539_v10, %v3981_v13  ;;  %v4554_v19 = vadd.f32 %v15185_v17, %v15135_v14  ;;  %15486 = vmatprep.mubr.msk.f32.mxu1 %vm353_vm1, %v6359_v8  ;;  %v4224_v16 = vpop.f32.mrf.mxu0  ;;  %v6400_v9 = vld [vmem:[#allocation3 + $0x190] sm:$0xff]  ;;  %v3992_v13 = vld [vmem:[#allocation5 + $0x98] sm:$0xff] }
 0x231   : > { %v4548_v11 = vpop.f32.mrf.mxu1  ;;  %v6368_v10 = vld [vmem:[#allocation2 + $0x190] sm:$0xff] }
 0x232   : > { %4697 = vst.msk [vmem:[#allocation5 + $0x40] sm:$0xff] %vm629_vm3, %v4665_v18  ;;  %v4668_v21 = vadd.f32 %v4554_v19, %v3984_v33  ;;  %v4549_v24 = vadd.f32 %v4548_v11, %v4224_v16  ;;  %v15138_v26 = vpop.f32.mrf.mxu0  ;;  %15437 = vmatmul.mubr.msk.f32.gmra.mxu0 %vm353_vm1, %v6392_v20  ;;  %v6401_v18 = vld [vmem:[#allocation3 + $0x1a8] sm:$0xff]  ;;  %v3991_v33 = vld [vmem:[#allocation5 + $0x90] sm:$0xff] }
 0x233   : > { %v15188_v27 = vpop.f32.mrf.mxu1  ;;  %15487 = vmatmul.mubr.msk.f32.gmra.mxu1 %vm353_vm1, %v6360_v32  ;;  %15439 = vmatprep.mubr.msk.f32.mxu0 %vm353_vm1, %v6393_v28  ;;  %v6369_v19 = vld [vmem:[#allocation2 + $0x1a8] sm:$0xff] }
 0x234   : > { %4700 = vst.msk [vmem:[#allocation5 + $0x58] sm:$0xff] %vm629_vm3, %v4668_v21  ;;  %v4667_v15 = vadd.f32 %v4549_v24, %v3983_v25  ;;  %v4564_v29 = vadd.f32 %v15188_v27, %v15138_v26  ;;  %15489 = vmatprep.mubr.msk.f32.mxu1 %vm353_vm1, %v6361_v12  ;;  %v4234_v35 = vpop.f32.mrf.mxu0  ;;  %v6402_v21 = vld [vmem:[#allocation3 + $0x1b0] sm:$0xff]  ;;  %v3994_v25 = vld [vmem:[#allocation5 + $0xa8] sm:$0xff] }
 0x235   : > { %v4558_v36 = vpop.f32.mrf.mxu1  ;;  %v6370_v24 = vld [vmem:[#allocation2 + $0x1b0] sm:$0xff] }
 0x236   : > { %4699 = vst.msk [vmem:[#allocation5 + $0x50] sm:$0xff] %vm629_vm3, %v4667_v15  ;;  %v4670_v39 = vadd.f32 %v4564_v29, %v3986_v34  ;;  %v4559_v40 = vadd.f32 %v4558_v36, %v4234_v35  ;;  %v15141_v47 = vpop.f32.mrf.mxu0  ;;  %15440 = vmatmul.mubr.msk.f32.gmra.mxu0 %vm353_vm1, %v6394_v30  ;;  %v6403_v15 = vld [vmem:[#allocation3 + $0x1c8] sm:$0xff]  ;;  %v3993_v34 = vld [vmem:[#allocation5 + $0xa0] sm:$0xff] }
 0x237   : > { %v15191_v48 = vpop.f32.mrf.mxu1  ;;  %15490 = vmatmul.mubr.msk.f32.gmra.mxu1 %vm353_vm1, %v6362_v31  ;;  %15442 = vmatprep.mubr.msk.f32.mxu0 %vm353_vm1, %v6395_v37  ;;  %v6371_v29 = vld [vmem:[#allocation2 + $0x1c8] sm:$0xff] }
 0x238   : > { %4702 = vst.msk [vmem:[#allocation5 + $0x68] sm:$0xff] %vm629_vm3, %v4670_v39  ;;  %v4669_v41 = vadd.f32 %v4559_v40, %v3985_v22  ;;  %v4574_v23 = vadd.f32 %v15191_v48, %v15141_v47  ;;  %15492 = vmatprep.mubr.msk.f32.mxu1 %vm353_vm1, %v6363_v38  ;;  %v4244_v45 = vpop.f32.mrf.mxu0  ;;  %v6404_v39 = vld [vmem:[#allocation3 + $0x1d0] sm:$0xff]  ;;  %v3996_v22 = vld [vmem:[#allocation5 + $0xb8] sm:$0xff] }
 0x239   : > { %v4568_v46 = vpop.f32.mrf.mxu1  ;;  %v6372_v40 = vld [vmem:[#allocation2 + $0x1d0] sm:$0xff] }
 0x23a   : > { %4701 = vst.msk [vmem:[#allocation5 + $0x60] sm:$0xff] %vm629_vm3, %v4669_v41  ;;  %v4672_v51 = vadd.f32 %v4574_v23, %v3988_v44  ;;  %v4569_v52 = vadd.f32 %v4568_v46, %v4244_v45  ;;  %v15144_v54 = vpop.f32.mrf.mxu0  ;;  %15443 = vmatmul.mubr.msk.f32.gmra.mxu0 %vm353_vm1, %v6396_v42  ;;  %v6405_v41 = vld [vmem:[#allocation3 + $0x1e8] sm:$0xff]  ;;  %v3995_v44 = vld [vmem:[#allocation5 + $0xb0] sm:$0xff] }
 0x23b   : > { %v15194_v55 = vpop.f32.mrf.mxu1  ;;  %15493 = vmatmul.mubr.msk.f32.gmra.mxu1 %vm353_vm1, %v6364_v43  ;;  %15445 = vmatprep.mubr.msk.f32.mxu0 %vm353_vm1, %v6397_v49  ;;  %v6373_v23 = vld [vmem:[#allocation2 + $0x1e8] sm:$0xff] }
 0x23c   : > { %4704 = vst.msk [vmem:[#allocation5 + $0x78] sm:$0xff] %vm629_vm3, %v4672_v51  ;;  %v4671_v56 = vadd.f32 %v4569_v52, %v3987_v53  ;;  %v4584_v57 = vadd.f32 %v15194_v55, %v15144_v54  ;;  %15495 = vmatprep.mubr.msk.f32.mxu1 %vm353_vm1, %v6365_v50  ;;  %v4254_v5 = vpop.f32.mrf.mxu0  ;;  %v6406_v51 = vld [vmem:[#allocation3 + $0x1f0] sm:$0xff]  ;;  %v3998_v53 = vld [vmem:[#allocation5 + $0xc8] sm:$0xff] }
 0x23d   : > { %v4578_v60 = vpop.f32.mrf.mxu1  ;;  %v6374_v52 = vld [vmem:[#allocation2 + $0x1f0] sm:$0xff] }
 0x23e   : > { %4703 = vst.msk [vmem:[#allocation5 + $0x70] sm:$0xff] %vm629_vm3, %v4671_v56  ;;  %v4674_v63 = vadd.f32 %v4584_v57, %v3990_v3  ;;  %v4579_v0 = vadd.f32 %v4578_v60, %v4254_v5  ;;  %v15147_v2 = vpop.f32.mrf.mxu0  ;;  %15446 = vmatmul.mubr.msk.f32.gmra.mxu0 %vm353_vm1, %v6398_v58  ;;  %v6407_v56 = vld [vmem:[#allocation3 + $0x208] sm:$0xff]  ;;  %v3997_v3 = vld [vmem:[#allocation5 + $0xc0] sm:$0xff] }
 0x23f   : > { %v15197_v6 = vpop.f32.mrf.mxu1  ;;  %15496 = vmatmul.mubr.msk.f32.gmra.mxu1 %vm353_vm1, %v6366_v59  ;;  %15448 = vmatprep.mubr.msk.f32.mxu0 %vm353_vm1, %v6399_v61  ;;  %v6375_v57 = vld [vmem:[#allocation2 + $0x208] sm:$0xff] }
 0x240   : > { %4706 = vst.msk [vmem:[#allocation5 + $0x88] sm:$0xff] %vm629_vm3, %v4674_v63  ;;  %v4673_v7 = vadd.f32 %v4579_v0, %v3989_v1  ;;  %v4594_v8 = vadd.f32 %v15197_v6, %v15147_v2  ;;  %15498 = vmatprep.mubr.msk.f32.mxu1 %vm353_vm1, %v6367_v62  ;;  %v4264_v14 = vpop.f32.mrf.mxu0  ;;  %v6408_v63 = vld [vmem:[#allocation3 + $0x210] sm:$0xff]  ;;  %v4000_v1 = vld [vmem:[#allocation5 + $0xd8] sm:$0xff] }
 0x241   : > { %v4588_v17 = vpop.f32.mrf.mxu1  ;;  %v6376_v0 = vld [vmem:[#allocation2 + $0x210] sm:$0xff] }
 0x242   : > { %4705 = vst.msk [vmem:[#allocation5 + $0x80] sm:$0xff] %vm629_vm3, %v4673_v7  ;;  %v4676_v20 = vadd.f32 %v4594_v8, %v3992_v13  ;;  %v4589_v32 = vadd.f32 %v4588_v17, %v4264_v14  ;;  %v15150_v16 = vpop.f32.mrf.mxu0  ;;  %15449 = vmatmul.mubr.msk.f32.gmra.mxu0 %vm353_vm1, %v6400_v9  ;;  %v6409_v7 = vld [vmem:[#allocation3 + $0x228] sm:$0xff]  ;;  %v3999_v13 = vld [vmem:[#allocation5 + $0xd0] sm:$0xff] }
 0x243   : > { %v15200_v11 = vpop.f32.mrf.mxu1  ;;  %15499 = vmatmul.mubr.msk.f32.gmra.mxu1 %vm353_vm1, %v6368_v10  ;;  %15451 = vmatprep.mubr.msk.f32.mxu0 %vm353_vm1, %v6401_v18  ;;  %v6377_v8 = vld [vmem:[#allocation2 + $0x228] sm:$0xff] }
 0x244   : > { %4708 = vst.msk [vmem:[#allocation5 + $0x98] sm:$0xff] %vm629_vm3, %v4676_v20  ;;  %v4675_v28 = vadd.f32 %v4589_v32, %v3991_v33  ;;  %v4604_v12 = vadd.f32 %v15200_v11, %v15150_v16  ;;  %15501 = vmatprep.mubr.msk.f32.mxu1 %vm353_vm1, %v6369_v19  ;;  %v4274_v26 = vpop.f32.mrf.mxu0  ;;  %v6410_v20 = vld [vmem:[#allocation3 + $0x230] sm:$0xff]  ;;  %v4002_v33 = vld [vmem:[#allocation5 + $0xe8] sm:$0xff] }
 0x245   : > { %v4598_v27 = vpop.f32.mrf.mxu1  ;;  %v6378_v32 = vld [vmem:[#allocation2 + $0x230] sm:$0xff] }
 0x246   : > { %4707 = vst.msk [vmem:[#allocation5 + $0x90] sm:$0xff] %vm629_vm3, %v4675_v28  ;;  %v4678_v30 = vadd.f32 %v4604_v12, %v3994_v25  ;;  %v4599_v31 = vadd.f32 %v4598_v27, %v4274_v26  ;;  %v15153_v35 = vpop.f32.mrf.mxu0  ;;  %15452 = vmatmul.mubr.msk.f32.gmra.mxu0 %vm353_vm1, %v6402_v21  ;;  %v7191_v28 = vld [vmem:[#allocation3 + $0x49] sm:$0xff]  ;;  %v4001_v25 = vld [vmem:[#allocation5 + $0xe0] sm:$0xff] }
 0x247   : > { %v15203_v36 = vpop.f32.mrf.mxu1  ;;  %15502 = vmatmul.mubr.msk.f32.gmra.mxu1 %vm353_vm1, %v6370_v24  ;;  %15454 = vmatprep.mubr.msk.f32.mxu0 %vm353_vm1, %v6403_v15  ;;  %v7159_v12 = vld [vmem:[#allocation2 + $0x49] sm:$0xff] }
 0x248   : > { %4710 = vst.msk [vmem:[#allocation5 + $0xa8] sm:$0xff] %vm629_vm3, %v4678_v30  ;;  %v4677_v37 = vadd.f32 %v4599_v31, %v3993_v34  ;;  %v4614_v38 = vadd.f32 %v15203_v36, %v15153_v35  ;;  %15504 = vmatprep.mubr.msk.f32.mxu1 %vm353_vm1, %v6371_v29  ;;  %v4284_v47 = vpop.f32.mrf.mxu0  ;;  %v7192_v30 = vld [vmem:[#allocation3 + $0x51] sm:$0xff] }
 0x249   : > { %v4608_v48 = vpop.f32.mrf.mxu1  ;;  %v7160_v31 = vld [vmem:[#allocation2 + $0x51] sm:$0xff] }
 0x24a   : > { %4709 = vst.msk [vmem:[#allocation5 + $0xa0] sm:$0xff] %vm629_vm3, %v4677_v37  ;;  %v4680_v42 = vadd.f32 %v4614_v38, %v3996_v22  ;;  %v4609_v43 = vadd.f32 %v4608_v48, %v4284_v47  ;;  %v15156_v45 = vpop.f32.mrf.mxu0  ;;  %15455 = vmatmul.mubr.msk.f32.gmra.mxu0 %vm353_vm1, %v6404_v39  ;;  %v4004_v34 = vld [vmem:[#allocation5 + $0xf8] sm:$0xff]  ;;  %v7193_v37 = vld [vmem:[#allocation3 + $0x69] sm:$0xff] }
 0x24b   : > { %v15206_v46 = vpop.f32.mrf.mxu1  ;;  %15505 = vmatmul.mubr.msk.f32.gmra.mxu1 %vm353_vm1, %v6372_v40  ;;  %15457 = vmatprep.mubr.msk.f32.mxu0 %vm353_vm1, %v6405_v41  ;;  %v7161_v38 = vld [vmem:[#allocation2 + $0x69] sm:$0xff] }
 0x24c   : > { %4712 = vst.msk [vmem:[#allocation5 + $0xb8] sm:$0xff] %vm629_vm3, %v4680_v42  ;;  %v4679_v49 = vadd.f32 %v4609_v43, %v3995_v44  ;;  %v4624_v50 = vadd.f32 %v15206_v46, %v15156_v45  ;;  %15507 = vmatprep.mubr.msk.f32.mxu1 %vm353_vm1, %v6373_v23  ;;  %v4294_v54 = vpop.f32.mrf.mxu0  ;;  %v4003_v22 = vld [vmem:[#allocation5 + $0xf0] sm:$0xff]  ;;  %v4786_v44 = vld [vmem:[#allocation5 + $0x8] sm:$0xff] }
 0x24d   : > { %v4618_v55 = vpop.f32.mrf.mxu1  ;;  %v7194_v42 = vld [vmem:[#allocation3 + $0x71] sm:$0xff] }
 0x24e   : > { %4711 = vst.msk [vmem:[#allocation5 + $0xb0] sm:$0xff] %vm629_vm3, %v4679_v49  ;;  %v4682_v58 = vadd.f32 %v4624_v50, %v3998_v53  ;;  %v4619_v59 = vadd.f32 %v4618_v55, %v4294_v54  ;;  %v15159_v5 = vpop.f32.mrf.mxu0  ;;  %15458 = vmatmul.mubr.msk.f32.gmra.mxu0 %vm353_vm1, %v6406_v51  ;;  %v7162_v43 = vld [vmem:[#allocation2 + $0x71] sm:$0xff]  ;;  %v7195_v49 = vld [vmem:[#allocation3 + $0x89] sm:$0xff]  ;;  %v4785_v53 = vld [vmem:[#allocation5] sm:$0xff] }
 0x24f   : > { %v15209_v60 = vpop.f32.mrf.mxu1  ;;  %15508 = vmatmul.mubr.msk.f32.gmra.mxu1 %vm353_vm1, %v6374_v52  ;;  %15460 = vmatprep.mubr.msk.f32.mxu0 %vm353_vm1, %v6407_v56  ;;  %v7163_v50 = vld [vmem:[#allocation2 + $0x89] sm:$0xff] }
 0x250   : > { %4714 = vst.msk [vmem:[#allocation5 + $0xc8] sm:$0xff] %vm629_vm3, %v4682_v58  ;;  %v4681_v61 = vadd.f32 %v4619_v59, %v3997_v3  ;;  %v4634_v62 = vadd.f32 %v15209_v60, %v15159_v5  ;;  %15510 = vmatprep.mubr.msk.f32.mxu1 %vm353_vm1, %v6375_v57  ;;  %v4304_v2 = vpop.f32.mrf.mxu0  ;;  %v7196_v58 = vld [vmem:[#allocation3 + $0x91] sm:$0xff] }
 0x251   : > { %v4628_v6 = vpop.f32.mrf.mxu1  ;;  %v7164_v59 = vld [vmem:[#allocation2 + $0x91] sm:$0xff] }
 0x252   : > { %4713 = vst.msk [vmem:[#allocation5 + $0xc0] sm:$0xff] %vm629_vm3, %v4681_v61  ;;  %v4684_v9 = vadd.f32 %v4634_v62, %v4000_v1  ;;  %v4629_v10 = vadd.f32 %v4628_v6, %v4304_v2  ;;  %v15162_v14 = vpop.f32.mrf.mxu0  ;;  %15461 = vmatmul.mubr.msk.f32.gmra.mxu0 %vm353_vm1, %v6408_v63  ;;  %v4788_v3 = vld [vmem:[#allocation5 + $0x18] sm:$0xff]  ;;  %v7197_v61 = vld [vmem:[#allocation3 + $0xa9] sm:$0xff] }
 0x253   : > { %v15212_v17 = vpop.f32.mrf.mxu1  ;;  %15511 = vmatmul.mubr.msk.f32.gmra.mxu1 %vm353_vm1, %v6376_v0  ;;  %15463 = vmatprep.mubr.msk.f32.mxu0 %vm353_vm1, %v6409_v7  ;;  %v7165_v62 = vld [vmem:[#allocation2 + $0xa9] sm:$0xff] }
 0x254   : > { %4716 = vst.msk [vmem:[#allocation5 + $0xd8] sm:$0xff] %vm629_vm3, %v4684_v9  ;;  %v4683_v18 = vadd.f32 %v4629_v10, %v3999_v13  ;;  %v4644_v19 = vadd.f32 %v15212_v17, %v15162_v14  ;;  %15513 = vmatprep.mubr.msk.f32.mxu1 %vm353_vm1, %v6377_v8  ;;  %v4314_v16 = vpop.f32.mrf.mxu0  ;;  %v4787_v1 = vld [vmem:[#allocation5 + $0x10] sm:$0xff]  ;;  %v4790_v13 = vld [vmem:[#allocation5 + $0x28] sm:$0xff] }
 0x255   : > { %v4638_v11 = vpop.f32.mrf.mxu1  ;;  %v7198_v9 = vld [vmem:[#allocation3 + $0xb1] sm:$0xff] }
 0x256   : > { %4715 = vst.msk [vmem:[#allocation5 + $0xd0] sm:$0xff] %vm629_vm3, %v4683_v18  ;;  %v4686_v21 = vadd.f32 %v4644_v19, %v4002_v33  ;;  %v4639_v24 = vadd.f32 %v4638_v11, %v4314_v16  ;;  %v15165_v26 = vpop.f32.mrf.mxu0  ;;  %15464 = vmatmul.mubr.msk.f32.gmra.mxu0 %vm353_vm1, %v6410_v20  ;;  %v7166_v10 = vld [vmem:[#allocation2 + $0xb1] sm:$0xff]  ;;  %v7199_v18 = vld [vmem:[#allocation3 + $0xc9] sm:$0xff]  ;;  %v4789_v33 = vld [vmem:[#allocation5 + $0x20] sm:$0xff] }
 0x257   : > { %v15215_v27 = vpop.f32.mrf.mxu1  ;;  %15514 = vmatmul.mubr.msk.f32.gmra.mxu1 %vm353_vm1, %v6378_v32  ;;  %15518 = vmatprep.mubr.msk.f32.mxu0 %vm353_vm1, %v7191_v28  ;;  %v7167_v19 = vld [vmem:[#allocation2 + $0xc9] sm:$0xff] }
 0x258   : > { %4718 = vst.msk [vmem:[#allocation5 + $0xe8] sm:$0xff] %vm629_vm3, %v4686_v21  ;;  %v4685_v15 = vadd.f32 %v4639_v24, %v4001_v25  ;;  %v4654_v29 = vadd.f32 %v15215_v27, %v15165_v26  ;;  %15568 = vmatprep.mubr.msk.f32.mxu1 %vm353_vm1, %v7159_v12  ;;  %v4324_v35 = vpop.f32.mrf.mxu0  ;;  %v7200_v21 = vld [vmem:[#allocation3 + $0xd1] sm:$0xff] }
 0x259   : > { %v4648_v36 = vpop.f32.mrf.mxu1  ;;  %v7168_v24 = vld [vmem:[#allocation2 + $0xd1] sm:$0xff] }
 0x25a   : > { %4717 = vst.msk [vmem:[#allocation5 + $0xe0] sm:$0xff] %vm629_vm3, %v4685_v15  ;;  %v4688_v39 = vadd.f32 %v4654_v29, %v4004_v34  ;;  %v4649_v40 = vadd.f32 %v4648_v36, %v4324_v35  ;;  %v15220_v47 = vpop.f32.mrf.mxu0  ;;  %15519 = vmatmul.mubr.msk.f32.vlgmr.msra.gmra.mxu0 %vm353_vm1, %v7192_v30  ;;  %v4792_v25 = vld [vmem:[#allocation5 + $0x38] sm:$0xff]  ;;  %v7201_v15 = vld [vmem:[#allocation3 + $0xe9] sm:$0xff] }
 0x25b   : > { %v15270_v48 = vpop.f32.mrf.mxu1  ;;  %15569 = vmatmul.mubr.msk.f32.vlgmr.msra.gmra.mxu1 %vm353_vm1, %v7160_v31  ;;  %15521 = vmatprep.mubr.msk.f32.mxu0 %vm353_vm1, %v7193_v37  ;;  %v7169_v29 = vld [vmem:[#allocation2 + $0xe9] sm:$0xff] }
 0x25c   : > { %4720 = vst.msk [vmem:[#allocation5 + $0xf8] sm:$0xff] %vm629_vm3, %v4688_v39  ;;  %v4687_v41 = vadd.f32 %v4649_v40, %v4003_v22  ;;  %v5316_v23 = vadd.f32 %v15270_v48, %v15220_v47  ;;  %15571 = vmatprep.mubr.msk.f32.mxu1 %vm353_vm1, %v7161_v38  ;;  %v4986_v45 = vpop.f32.mrf.mxu0  ;;  %v4791_v34 = vld [vmem:[#allocation5 + $0x30] sm:$0xff]  ;;  %v4794_v22 = vld [vmem:[#allocation5 + $0x48] sm:$0xff] }
 0x25d   : > { %v5310_v46 = vpop.f32.mrf.mxu1  ;;  %v7202_v39 = vld [vmem:[#allocation3 + $0xf1] sm:$0xff] }
 0x25e   : > { %4719 = vst.msk [vmem:[#allocation5 + $0xf0] sm:$0xff] %vm629_vm3, %v4687_v41  ;;  %v5470_v51 = vadd.f32 %v5316_v23, %v4786_v44  ;;  %v5311_v52 = vadd.f32 %v5310_v46, %v4986_v45  ;;  %v15223_v54 = vpop.f32.mrf.mxu0  ;;  %15522 = vmatmul.mubr.msk.f32.gmra.mxu0 %vm353_vm1, %v7194_v42  ;;  %v7170_v40 = vld [vmem:[#allocation2 + $0xf1] sm:$0xff]  ;;  %v7203_v41 = vld [vmem:[#allocation3 + $0x109] sm:$0xff]  ;;  %v4793_v44 = vld [vmem:[#allocation5 + $0x40] sm:$0xff] }
 0x25f   : > { %v15273_v55 = vpop.f32.mrf.mxu1  ;;  %15572 = vmatmul.mubr.msk.f32.gmra.mxu1 %vm353_vm1, %v7162_v43  ;;  %15524 = vmatprep.mubr.msk.f32.mxu0 %vm353_vm1, %v7195_v49  ;;  %v7171_v23 = vld [vmem:[#allocation2 + $0x109] sm:$0xff] }
 0x260   : > { %5502 = vst.msk [vmem:[#allocation5 + $0x8] sm:$0xff] %vm629_vm3, %v5470_v51  ;;  %v5469_v56 = vadd.f32 %v5311_v52, %v4785_v53  ;;  %v5326_v57 = vadd.f32 %v15273_v55, %v15223_v54  ;;  %15574 = vmatprep.mubr.msk.f32.mxu1 %vm353_vm1, %v7163_v50  ;;  %v4996_v5 = vpop.f32.mrf.mxu0  ;;  %v7204_v51 = vld [vmem:[#allocation3 + $0x111] sm:$0xff] }
 0x261   : > { %v5320_v60 = vpop.f32.mrf.mxu1  ;;  %v7172_v52 = vld [vmem:[#allocation2 + $0x111] sm:$0xff] }
 0x262   : > { %5501 = vst.msk [vmem:[#allocation5] sm:$0xff] %vm629_vm3, %v5469_v56  ;;  %v5472_v63 = vadd.f32 %v5326_v57, %v4788_v3  ;;  %v5321_v0 = vadd.f32 %v5320_v60, %v4996_v5  ;;  %v15226_v2 = vpop.f32.mrf.mxu0  ;;  %15525 = vmatmul.mubr.msk.f32.gmra.mxu0 %vm353_vm1, %v7196_v58  ;;  %v4796_v53 = vld [vmem:[#allocation5 + $0x58] sm:$0xff]  ;;  %v7205_v56 = vld [vmem:[#allocation3 + $0x129] sm:$0xff] }
 0x263   : > { %v15276_v6 = vpop.f32.mrf.mxu1  ;;  %15575 = vmatmul.mubr.msk.f32.gmra.mxu1 %vm353_vm1, %v7164_v59  ;;  %15527 = vmatprep.mubr.msk.f32.mxu0 %vm353_vm1, %v7197_v61  ;;  %v7173_v57 = vld [vmem:[#allocation2 + $0x129] sm:$0xff] }
 0x264   : > { %5504 = vst.msk [vmem:[#allocation5 + $0x18] sm:$0xff] %vm629_vm3, %v5472_v63  ;;  %v5471_v7 = vadd.f32 %v5321_v0, %v4787_v1  ;;  %v5336_v8 = vadd.f32 %v15276_v6, %v15226_v2  ;;  %15577 = vmatprep.mubr.msk.f32.mxu1 %vm353_vm1, %v7165_v62  ;;  %v5006_v14 = vpop.f32.mrf.mxu0  ;;  %v4795_v3 = vld [vmem:[#allocation5 + $0x50] sm:$0xff]  ;;  %v4798_v1 = vld [vmem:[#allocation5 + $0x68] sm:$0xff] }
 0x265   : > { %v5330_v17 = vpop.f32.mrf.mxu1  ;;  %v7206_v63 = vld [vmem:[#allocation3 + $0x131] sm:$0xff] }
 0x266   : > { %5503 = vst.msk [vmem:[#allocation5 + $0x10] sm:$0xff] %vm629_vm3, %v5471_v7  ;;  %v5474_v20 = vadd.f32 %v5336_v8, %v4790_v13  ;;  %v5331_v32 = vadd.f32 %v5330_v17, %v5006_v14  ;;  %v15229_v16 = vpop.f32.mrf.mxu0  ;;  %15528 = vmatmul.mubr.msk.f32.gmra.mxu0 %vm353_vm1, %v7198_v9  ;;  %v7174_v0 = vld [vmem:[#allocation2 + $0x131] sm:$0xff]  ;;  %v7207_v7 = vld [vmem:[#allocation3 + $0x149] sm:$0xff]  ;;  %v8276_v13 = vld [vmem:[%s19241_s5] sm:$0xff] }
 0x267   : > { %v15279_v11 = vpop.f32.mrf.mxu1  ;;  %15578 = vmatmul.mubr.msk.f32.gmra.mxu1 %vm353_vm1, %v7166_v10  ;;  %15530 = vmatprep.mubr.msk.f32.mxu0 %vm353_vm1, %v7199_v18  ;;  %v7175_v8 = vld [vmem:[#allocation2 + $0x149] sm:$0xff]  ;;  %v4797_v14 = vld [vmem:[#allocation5 + $0x60] sm:$0xff] }
 0x268   : > { %5506 = vst.msk [vmem:[#allocation5 + $0x28] sm:$0xff] %vm629_vm3, %v5474_v20  ;;  %v5473_v28 = vadd.f32 %v5331_v32, %v4789_v33  ;;  %v5346_v12 = vadd.f32 %v15279_v11, %v15229_v16  ;;  %15580 = vmatprep.mubr.msk.f32.mxu1 %vm353_vm1, %v7167_v19  ;;  %v5016_v26 = vpop.f32.mrf.mxu0  ;;  %v7208_v32 = vld [vmem:[#allocation3 + $0x151] sm:$0xff]  ;;  %15616 = vmatprep.subr.mxu0 %v8276_v13 }
 0x269   : > { %v5340_v27 = vpop.f32.mrf.mxu1  ;;  %v7176_v33 = vld [vmem:[#allocation2 + $0x151] sm:$0xff]  ;;  %15617 = vmatpush3.msra.mxu0 %v8276_v13 }
 0x26a   : > { %5505 = vst.msk [vmem:[#allocation5 + $0x20] sm:$0xff] %vm629_vm3, %v5473_v28  ;;  %v5476_v30 = vadd.f32 %v5346_v12, %v4792_v25  ;;  %v5341_v31 = vadd.f32 %v5340_v27, %v5016_v26  ;;  %v15232_v35 = vpop.f32.mrf.mxu0  ;;  %15531 = vmatmul.mubr.msk.f32.gmra.mxu0 %vm353_vm1, %v7200_v21  ;;  %v4800_v16 = vld [vmem:[#allocation5 + $0x78] sm:$0xff]  ;;  %v7209_v12 = vld [vmem:[#allocation3 + $0x169] sm:$0xff] }
 0x26b   : > { %v15282_v36 = vpop.f32.mrf.mxu1  ;;  %15581 = vmatmul.mubr.msk.f32.gmra.mxu1 %vm353_vm1, %v7168_v24  ;;  %15533 = vmatprep.mubr.msk.f32.mxu0 %vm353_vm1, %v7201_v15  ;;  %v7177_v21 = vld [vmem:[#allocation2 + $0x169] sm:$0xff]  ;;  %v7184_v13 = vld [vmem:[#allocation2 + $0x1d1] sm:$0xff] }
 0x26c   : > { %5508 = vst.msk [vmem:[#allocation5 + $0x38] sm:$0xff] %vm629_vm3, %v5476_v30  ;;  %v5475_v37 = vadd.f32 %v5341_v31, %v4791_v34  ;;  %v5356_v38 = vadd.f32 %v15282_v36, %v15232_v35  ;;  %15583 = vmatprep.mubr.msk.f32.mxu1 %vm353_vm1, %v7169_v29  ;;  %v5026_v47 = vpop.f32.mrf.mxu0  ;;  %v4799_v26 = vld [vmem:[#allocation5 + $0x70] sm:$0xff]  ;;  %v4802_v35 = vld [vmem:[#allocation5 + $0x88] sm:$0xff] }
 0x26d   : > { %v5350_v48 = vpop.f32.mrf.mxu1  ;;  %v7210_v31 = vld [vmem:[#allocation3 + $0x171] sm:$0xff] }
 0x26e   : > { %5507 = vst.msk [vmem:[#allocation5 + $0x30] sm:$0xff] %vm629_vm3, %v5475_v37  ;;  %v5478_v42 = vadd.f32 %v5356_v38, %v4794_v22  ;;  %v5351_v43 = vadd.f32 %v5350_v48, %v5026_v47  ;;  %v15235_v45 = vpop.f32.mrf.mxu0  ;;  %15534 = vmatmul.mubr.msk.f32.gmra.mxu0 %vm353_vm1, %v7202_v39  ;;  %v7178_v34 = vld [vmem:[#allocation2 + $0x171] sm:$0xff]  ;;  %v7211_v38 = vld [vmem:[#allocation3 + $0x189] sm:$0xff]  ;;  %v4801_v47 = vld [vmem:[#allocation5 + $0x80] sm:$0xff] }
 0x26f   : > { %v15285_v46 = vpop.f32.mrf.mxu1  ;;  %15584 = vmatmul.mubr.msk.f32.gmra.mxu1 %vm353_vm1, %v7170_v40  ;;  %15536 = vmatprep.mubr.msk.f32.mxu0 %vm353_vm1, %v7203_v41  ;;  %v7179_v39 = vld [vmem:[#allocation2 + $0x189] sm:$0xff] }
 0x270   : > { %5510 = vst.msk [vmem:[#allocation5 + $0x48] sm:$0xff] %vm629_vm3, %v5478_v42  ;;  %v5477_v49 = vadd.f32 %v5351_v43, %v4793_v44  ;;  %v5366_v50 = vadd.f32 %v15285_v46, %v15235_v45  ;;  %15586 = vmatprep.mubr.msk.f32.mxu1 %vm353_vm1, %v7171_v23  ;;  %v5036_v54 = vpop.f32.mrf.mxu0  ;;  %v7212_v43 = vld [vmem:[#allocation3 + $0x191] sm:$0xff] }
 0x271   : > { %v5360_v55 = vpop.f32.mrf.mxu1  ;;  %v7180_v44 = vld [vmem:[#allocation2 + $0x191] sm:$0xff] }
 0x272   : > { %5509 = vst.msk [vmem:[#allocation5 + $0x40] sm:$0xff] %vm629_vm3, %v5477_v49  ;;  %v5480_v58 = vadd.f32 %v5366_v50, %v4796_v53  ;;  %v5361_v59 = vadd.f32 %v5360_v55, %v5036_v54  ;;  %v15238_v5 = vpop.f32.mrf.mxu0  ;;  %15537 = vmatmul.mubr.msk.f32.gmra.mxu0 %vm353_vm1, %v7204_v51  ;;  %v4804_v45 = vld [vmem:[#allocation5 + $0x98] sm:$0xff]  ;;  %v7213_v50 = vld [vmem:[#allocation3 + $0x1a9] sm:$0xff] }
 0x273   : > { %v15288_v60 = vpop.f32.mrf.mxu1  ;;  %15587 = vmatmul.mubr.msk.f32.gmra.mxu1 %vm353_vm1, %v7172_v52  ;;  %15539 = vmatprep.mubr.msk.f32.mxu0 %vm353_vm1, %v7205_v56  ;;  %v7181_v51 = vld [vmem:[#allocation2 + $0x1a9] sm:$0xff] }
 0x274   : > { %5512 = vst.msk [vmem:[#allocation5 + $0x58] sm:$0xff] %vm629_vm3, %v5480_v58  ;;  %v5479_v61 = vadd.f32 %v5361_v59, %v4795_v3  ;;  %v5376_v62 = vadd.f32 %v15288_v60, %v15238_v5  ;;  %15589 = vmatprep.mubr.msk.f32.mxu1 %vm353_vm1, %v7173_v57  ;;  %v5046_v2 = vpop.f32.mrf.mxu0  ;;  %v4803_v54 = vld [vmem:[#allocation5 + $0x90] sm:$0xff]  ;;  %v4806_v5 = vld [vmem:[#allocation5 + $0xa8] sm:$0xff] }
 0x275   : > { %v5370_v6 = vpop.f32.mrf.mxu1  ;;  %v7214_v59 = vld [vmem:[#allocation3 + $0x1b1] sm:$0xff] }
 0x276   : > { %5511 = vst.msk [vmem:[#allocation5 + $0x50] sm:$0xff] %vm629_vm3, %v5479_v61  ;;  %v5482_v9 = vadd.f32 %v5376_v62, %v4798_v1  ;;  %v5371_v10 = vadd.f32 %v5370_v6, %v5046_v2  ;;  %v15241_v17 = vpop.f32.mrf.mxu0  ;;  %15540 = vmatmul.mubr.msk.f32.gmra.mxu0 %vm353_vm1, %v7206_v63  ;;  %v7182_v3 = vld [vmem:[#allocation2 + $0x1b1] sm:$0xff]  ;;  %v7215_v62 = vld [vmem:[#allocation3 + $0x1c9] sm:$0xff]  ;;  %v4805_v2 = vld [vmem:[#allocation5 + $0xa0] sm:$0xff] }
 0x277   : > { %v15291_v18 = vpop.f32.mrf.mxu1  ;;  %15590 = vmatmul.mubr.msk.f32.gmra.mxu1 %vm353_vm1, %v7174_v0  ;;  %15542 = vmatprep.mubr.msk.f32.mxu0 %vm353_vm1, %v7207_v7  ;;  %v7183_v63 = vld [vmem:[#allocation2 + $0x1c9] sm:$0xff] }
 0x278   : > { %5514 = vst.msk [vmem:[#allocation5 + $0x68] sm:$0xff] %vm629_vm3, %v5482_v9  ;;  %v5481_v19 = vadd.f32 %v5371_v10, %v4797_v14  ;;  %v5386_v20 = vadd.f32 %v15291_v18, %v15241_v17  ;;  %15592 = vmatprep.mubr.msk.f32.mxu1 %vm353_vm1, %v7175_v8  ;;  %v5056_v11 = vpop.f32.mrf.mxu0  ;;  %v7216_v10 = vld [vmem:[#allocation3 + $0x1d1] sm:$0xff] }
 0x279   : > { %v5380_v28 = vpop.f32.mrf.mxu1  ;;  %v4808_v14 = vld [vmem:[#allocation5 + $0xb8] sm:$0xff] }
 0x27a   : > { %5513 = vst.msk [vmem:[#allocation5 + $0x60] sm:$0xff] %vm629_vm3, %v5481_v19  ;;  %v5484_v24 = vadd.f32 %v5386_v20, %v4800_v16  ;;  %v5381_v25 = vadd.f32 %v5380_v28, %v5056_v11  ;;  %v15244_v27 = vpop.f32.mrf.mxu0  ;;  %15543 = vmatmul.mubr.msk.f32.gmra.mxu0 %vm353_vm1, %v7208_v32  ;;  %v7217_v19 = vld [vmem:[#allocation3 + $0x1e9] sm:$0xff] }
 0x27b   : > { %v15294_v15 = vpop.f32.mrf.mxu1  ;;  %15593 = vmatmul.mubr.msk.f32.gmra.mxu1 %vm353_vm1, %v7176_v33  ;;  %15545 = vmatprep.mubr.msk.f32.mxu0 %vm353_vm1, %v7209_v12  ;;  %v7185_v20 = vld [vmem:[#allocation2 + $0x1e9] sm:$0xff] }
 0x27c   : > { %5516 = vst.msk [vmem:[#allocation5 + $0x78] sm:$0xff] %vm629_vm3, %v5484_v24  ;;  %v5483_v29 = vadd.f32 %v5381_v25, %v4799_v26  ;;  %v5396_v30 = vadd.f32 %v15294_v15, %v15244_v27  ;;  %15595 = vmatprep.mubr.msk.f32.mxu1 %vm353_vm1, %v7177_v21  ;;  %v5066_v36 = vpop.f32.mrf.mxu0  ;;  %v4807_v16 = vld [vmem:[#allocation5 + $0xb0] sm:$0xff]  ;;  %v4810_v26 = vld [vmem:[#allocation5 + $0xc8] sm:$0xff] }
 0x27d   : > { %v5390_v37 = vpop.f32.mrf.mxu1  ;;  %v7218_v24 = vld [vmem:[#allocation3 + $0x1f1] sm:$0xff] }
 0x27e   : > { %5515 = vst.msk [vmem:[#allocation5 + $0x70] sm:$0xff] %vm629_vm3, %v5483_v29  ;;  %v5486_v40 = vadd.f32 %v5396_v30, %v4802_v35  ;;  %v5391_v22 = vadd.f32 %v5390_v37, %v5066_v36  ;;  %v15247_v48 = vpop.f32.mrf.mxu0  ;;  %15546 = vmatmul.mubr.msk.f32.gmra.mxu0 %vm353_vm1, %v7210_v31  ;;  %v7186_v25 = vld [vmem:[#allocation2 + $0x1f1] sm:$0xff]  ;;  %v7219_v29 = vld [vmem:[#allocation3 + $0x209] sm:$0xff]  ;;  %v4809_v35 = vld [vmem:[#allocation5 + $0xc0] sm:$0xff] }
 0x27f   : > { %v15297_v41 = vpop.f32.mrf.mxu1  ;;  %15596 = vmatmul.mubr.msk.f32.gmra.mxu1 %vm353_vm1, %v7178_v34  ;;  %15548 = vmatprep.mubr.msk.f32.mxu0 %vm353_vm1, %v7211_v38  ;;  %v7187_v30 = vld [vmem:[#allocation2 + $0x209] sm:$0xff] }
 0x280   : > { %5518 = vst.msk [vmem:[#allocation5 + $0x88] sm:$0xff] %vm629_vm3, %v5486_v40  ;;  %v5485_v23 = vadd.f32 %v5391_v22, %v4801_v47  ;;  %v5406_v42 = vadd.f32 %v15297_v41, %v15247_v48  ;;  %15598 = vmatprep.mubr.msk.f32.mxu1 %vm353_vm1, %v7179_v39  ;;  %v5076_v46 = vpop.f32.mrf.mxu0  ;;  %v7220_v40 = vld [vmem:[#allocation3 + $0x211] sm:$0xff] }
 0x281   : > { %v5400_v49 = vpop.f32.mrf.mxu1  ;;  %v7188_v22 = vld [vmem:[#allocation2 + $0x211] sm:$0xff] }
 0x282   : > { %5517 = vst.msk [vmem:[#allocation5 + $0x80] sm:$0xff] %vm629_vm3, %v5485_v23  ;;  %v5488_v52 = vadd.f32 %v5406_v42, %v4804_v45  ;;  %v5401_v53 = vadd.f32 %v5400_v49, %v5076_v46  ;;  %v15250_v55 = vpop.f32.mrf.mxu0  ;;  %15549 = vmatmul.mubr.msk.f32.gmra.mxu0 %vm353_vm1, %v7212_v43  ;;  %v4812_v47 = vld [vmem:[#allocation5 + $0xd8] sm:$0xff]  ;;  %v7221_v23 = vld [vmem:[#allocation3 + $0x229] sm:$0xff] }
 0x283   : > { %v15300_v56 = vpop.f32.mrf.mxu1  ;;  %15599 = vmatmul.mubr.msk.f32.gmra.mxu1 %vm353_vm1, %v7180_v44  ;;  %15551 = vmatprep.mubr.msk.f32.mxu0 %vm353_vm1, %v7213_v50  ;;  %v7189_v42 = vld [vmem:[#allocation2 + $0x229] sm:$0xff] }
 0x284   : > { %5520 = vst.msk [vmem:[#allocation5 + $0x98] sm:$0xff] %vm629_vm3, %v5488_v52  ;;  %v5487_v57 = vadd.f32 %v5401_v53, %v4803_v54  ;;  %v5416_v58 = vadd.f32 %v15300_v56, %v15250_v55  ;;  %15601 = vmatprep.mubr.msk.f32.mxu1 %vm353_vm1, %v7181_v51  ;;  %v5086_v60 = vpop.f32.mrf.mxu0  ;;  %v4811_v45 = vld [vmem:[#allocation5 + $0xd0] sm:$0xff]  ;;  %v4814_v54 = vld [vmem:[#allocation5 + $0xe8] sm:$0xff] }
 0x285   : > { %v5410_v61 = vpop.f32.mrf.mxu1  ;;  %v7222_v52 = vld [vmem:[#allocation3 + $0x231] sm:$0xff] }
 0x286   : > { %5519 = vst.msk [vmem:[#allocation5 + $0x90] sm:$0xff] %vm629_vm3, %v5487_v57  ;;  %v5490_v0 = vadd.f32 %v5416_v58, %v4806_v5  ;;  %v5411_v1 = vadd.f32 %v5410_v61, %v5086_v60  ;;  %v15253_v6 = vpop.f32.mrf.mxu0  ;;  %15552 = vmatmul.mubr.msk.f32.gmra.mxu0 %vm353_vm1, %v7214_v59  ;;  %v7190_v53 = vld [vmem:[#allocation2 + $0x231] sm:$0xff]  ;;  %v4813_v59 = vld [vmem:[#allocation5 + $0xe0] sm:$0xff] }
 0x287   : > { %v15303_v7 = vpop.f32.mrf.mxu1  ;;  %15602 = vmatmul.mubr.msk.f32.gmra.mxu1 %vm353_vm1, %v7182_v3  ;;  %15554 = vmatprep.mubr.msk.f32.mxu0 %vm353_vm1, %v7215_v62  ;;  %v4816_v62 = vld [vmem:[#allocation5 + $0xf8] sm:$0xff] }
 0x288   : > { %5522 = vst.msk [vmem:[#allocation5 + $0xa8] sm:$0xff] %vm629_vm3, %v5490_v0  ;;  %v5489_v8 = vadd.f32 %v5411_v1, %v4805_v2  ;;  %v5426_v9 = vadd.f32 %v15303_v7, %v15253_v6  ;;  %15604 = vmatprep.mubr.msk.f32.mxu1 %vm353_vm1, %v7183_v63  ;;  %v5096_v17 = vpop.f32.mrf.mxu0  ;;  %v4815_v6 = vld [vmem:[#allocation5 + $0xf0] sm:$0xff] }
 0x289   : > { %v5420_v18 = vpop.f32.mrf.mxu1 }
 0x28a   : > { %5521 = vst.msk [vmem:[#allocation5 + $0xa0] sm:$0xff] %vm629_vm3, %v5489_v8  ;;  %v5492_v32 = vadd.f32 %v5426_v9, %v4808_v14  ;;  %v5421_v33 = vadd.f32 %v5420_v18, %v5096_v17  ;;  %v15256_v11 = vpop.f32.mrf.mxu0  ;;  %15555 = vmatmul.mubr.msk.f32.gmra.mxu0 %vm353_vm1, %v7216_v10 }
 0x28b   : > { %v15306_v28 = vpop.f32.mrf.mxu1  ;;  %15605 = vmatmul.mubr.msk.f32.gmra.mxu1 %vm353_vm1, %v7184_v13  ;;  %15557 = vmatprep.mubr.msk.f32.mxu0 %vm353_vm1, %v7217_v19  ;;  %v5600_v13 = vld [vmem:[#allocation5 + $0x8] sm:$0xff] }
 0x28c   : > { %5524 = vst.msk [vmem:[#allocation5 + $0xb8] sm:$0xff] %vm629_vm3, %v5492_v32  ;;  %v5491_v12 = vadd.f32 %v5421_v33, %v4807_v16  ;;  %v5436_v21 = vadd.f32 %v15306_v28, %v15256_v11  ;;  %15607 = vmatprep.mubr.msk.f32.mxu1 %vm353_vm1, %v7185_v20  ;;  %v5106_v27 = vpop.f32.mrf.mxu0  ;;  %v5599_v20 = vld [vmem:[#allocation5] sm:$0xff]  ;;  %v5602_v28 = vld [vmem:[#allocation5 + $0x18] sm:$0xff] }
 0x28d   : > { %v5430_v15 = vpop.f32.mrf.mxu1 }
 0x28e   : > { %5523 = vst.msk [vmem:[#allocation5 + $0xb0] sm:$0xff] %vm629_vm3, %v5491_v12  ;;  %v5494_v31 = vadd.f32 %v5436_v21, %v4810_v26  ;;  %v5431_v34 = vadd.f32 %v5430_v15, %v5106_v27  ;;  %v15259_v36 = vpop.f32.mrf.mxu0  ;;  %15558 = vmatmul.mubr.msk.f32.gmra.mxu0 %vm353_vm1, %v7218_v24  ;;  %v5601_v26 = vld [vmem:[#allocation5 + $0x10] sm:$0xff] }
 0x28f   : > { %v15309_v37 = vpop.f32.mrf.mxu1  ;;  %15608 = vmatmul.mubr.msk.f32.gmra.mxu1 %vm353_vm1, %v7186_v25  ;;  %15560 = vmatprep.mubr.msk.f32.mxu0 %vm353_vm1, %v7219_v29 }
 0x290   : > { %5526 = vst.msk [vmem:[#allocation5 + $0xc8] sm:$0xff] %vm629_vm3, %v5494_v31  ;;  %v5493_v38 = vadd.f32 %v5431_v34, %v4809_v35  ;;  %v5446_v39 = vadd.f32 %v15309_v37, %v15259_v36  ;;  %15610 = vmatprep.mubr.msk.f32.mxu1 %vm353_vm1, %v7187_v30  ;;  %v5116_v48 = vpop.f32.mrf.mxu0  ;;  %v5604_v31 = vld [vmem:[#allocation5 + $0x28] sm:$0xff] }
 0x291   : > { %v5440_v41 = vpop.f32.mrf.mxu1 }
 0x292   : > { %5525 = vst.msk [vmem:[#allocation5 + $0xc0] sm:$0xff] %vm629_vm3, %v5493_v38  ;;  %v5496_v43 = vadd.f32 %v5446_v39, %v4812_v47  ;;  %v5441_v44 = vadd.f32 %v5440_v41, %v5116_v48  ;;  %v15262_v46 = vpop.f32.mrf.mxu0  ;;  %15561 = vmatmul.mubr.msk.f32.gmra.mxu0 %vm353_vm1, %v7220_v40  ;;  %v5603_v38 = vld [vmem:[#allocation5 + $0x20] sm:$0xff]  ;;  %v5606_v48 = vld [vmem:[#allocation5 + $0x38] sm:$0xff] }
 0x293   : > { %v15312_v49 = vpop.f32.mrf.mxu1  ;;  %15611 = vmatmul.mubr.msk.f32.gmra.mxu1 %vm353_vm1, %v7188_v22  ;;  %15563 = vmatprep.mubr.msk.f32.mxu0 %vm353_vm1, %v7221_v23 }
 0x294   : > { %5528 = vst.msk [vmem:[#allocation5 + $0xd8] sm:$0xff] %vm629_vm3, %v5496_v43  ;;  %v5495_v50 = vadd.f32 %v5441_v44, %v4811_v45  ;;  %v5456_v51 = vadd.f32 %v15312_v49, %v15262_v46  ;;  %15613 = vmatprep.mubr.msk.f32.mxu1 %vm353_vm1, %v7189_v42  ;;  %v5126_v55 = vpop.f32.mrf.mxu0  ;;  %v5605_v44 = vld [vmem:[#allocation5 + $0x30] sm:$0xff] }
 0x295   : > { %v5450_v56 = vpop.f32.mrf.mxu1 }
 0x296   : > { %5527 = vst.msk [vmem:[#allocation5 + $0xd0] sm:$0xff] %vm629_vm3, %v5495_v50  ;;  %v5498_v57 = vadd.f32 %v5456_v51, %v4814_v54  ;;  %v5451_v58 = vadd.f32 %v5450_v56, %v5126_v55  ;;  %v15265_v3 = vpop.f32.mrf.mxu0  ;;  %15564 = vmatmul.mubr.msk.f32.gmra.mxu0 %vm353_vm1, %v7222_v52  ;;  %v5608_v51 = vld [vmem:[#allocation5 + $0x48] sm:$0xff]  ;;  %v5607_v56 = vld [vmem:[#allocation5 + $0x40] sm:$0xff] }
 0x297   : > { %v15315_v5 = vpop.f32.mrf.mxu1  ;;  %15614 = vmatmul.mubr.msk.f32.gmra.mxu1 %vm353_vm1, %v7190_v53 }
 0x298   : > { %5530 = vst.msk [vmem:[#allocation5 + $0xe8] sm:$0xff] %vm629_vm3, %v5498_v57  ;;  %v5497_v60 = vadd.f32 %v5451_v58, %v4813_v59  ;;  %v5466_v61 = vadd.f32 %v15315_v5, %v15265_v3  ;;  %v5136_v63 = vpop.f32.mrf.mxu0  ;;  %v8212_v59 = vld [vmem:[#allocation4 + $0x7] sm:$0xff] }
 0x299   : > { %v5460_v0 = vpop.f32.mrf.mxu1  ;;  %15618 = vmatprep.mubr.msk.f32.mxu0 %vm629_vm3, %v8212_v59  ;;  %v5619_v59 = vld [vmem:[#allocation5 + $0xa0] sm:$0xff] }
 0x29a   : > { %5529 = vst.msk [vmem:[#allocation5 + $0xe0] sm:$0xff] %vm629_vm3, %v5497_v60  ;;  %v5500_v1 = vadd.f32 %v5466_v61, %v4816_v62  ;;  %v5461_v2 = vadd.f32 %v5460_v0, %v5136_v63  ;;  %v15320_v7 = vpop.f32.mrf.mxu0  ;;  %v13489_v60 = vld [vmem:[%s19241_s5 + $0x8] sm:$0xff]  ;;  %v5610_v62 = vld [vmem:[#allocation5 + $0x58] sm:$0xff] }
 0x29b   : > { %v15370_v8 = vpop.f32.mrf.mxu1  ;;  %v8213_v61 = vld [vmem:[#allocation4 + $0xf] sm:$0xff]  ;;  %15666 = vmatprep.subr.mxu1 %v13489_v60 }
 0x29c   : > { %5532 = vst.msk [vmem:[#allocation5 + $0xf8] sm:$0xff] %vm629_vm3, %v5500_v1  ;;  %v5499_v9 = vadd.f32 %v5461_v2, %v4815_v6  ;;  %v6130_v10 = vadd.f32 %v15370_v8, %v15320_v7  ;;  %v5800_v14 = vpop.f32.mrf.mxu0  ;;  %15619 = vmatmul.mubr.msk.f32.vlgmr.msra.gmra.mxu0 %vm629_vm3, %v8213_v61  ;;  %v8662_v1 = vld [vmem:[#allocation4 + $0x8] sm:$0xff]  ;;  %15667 = vmatpush3.msra.mxu1 %v13489_v60  ;;  %v8663_v7 = vld [vmem:[#allocation4 + $0x10] sm:$0xff] }
 0x29d   : > { %v6124_v17 = vpop.f32.mrf.mxu1  ;;  %15668 = vmatprep.mubr.msk.f32.mxu1 %vm629_vm3, %v8662_v1  ;;  %v5609_v8 = vld [vmem:[#allocation5 + $0x50] sm:$0xff] }
 0x29e   : > { %5531 = vst.msk [vmem:[#allocation5 + $0xf0] sm:$0xff] %vm629_vm3, %v5499_v9  ;;  %v6284_v18 = vadd.f32 %v6130_v10, %v5600_v13  ;;  %v6125_v19 = vadd.f32 %v6124_v17, %v5800_v14  ;;  %v15323_v32 = vpop.f32.mrf.mxu0  ;;  %15669 = vmatmul.mubr.msk.f32.vlgmr.msra.gmra.mxu1 %vm629_vm3, %v8663_v7  ;;  %v5612_v17 = vld [vmem:[#allocation5 + $0x68] sm:$0xff] }
 0x29f   : > { %v15373_v33 = vpop.f32.mrf.mxu1 }
 0x2a0   : > { %6316 = vst.msk [vmem:[#allocation5 + $0x8] sm:$0xff] %vm629_vm3, %v6284_v18  ;;  %v6283_v16 = vadd.f32 %v6125_v19, %v5599_v20  ;;  %v6140_v11 = vadd.f32 %v15373_v33, %v15323_v32  ;;  %v5810_v12 = vpop.f32.mrf.mxu0  ;;  %v5611_v33 = vld [vmem:[#allocation5 + $0x60] sm:$0xff] }
 0x2a1   : > { %v6134_v21 = vpop.f32.mrf.mxu1 }
 0x2a2   : > { %6315 = vst.msk [vmem:[#allocation5] sm:$0xff] %vm629_vm3, %v6283_v16  ;;  %v6286_v24 = vadd.f32 %v6140_v11, %v5602_v28  ;;  %v6135_v25 = vadd.f32 %v6134_v21, %v5810_v12  ;;  %v15326_v27 = vpop.f32.mrf.mxu0  ;;  %v5614_v21 = vld [vmem:[#allocation5 + $0x78] sm:$0xff] }
 0x2a3   : > { %v15376_v15 = vpop.f32.mrf.mxu1 }
 0x2a4   : > { %6318 = vst.msk [vmem:[#allocation5 + $0x18] sm:$0xff] %vm629_vm3, %v6286_v24  ;;  %v6285_v29 = vadd.f32 %v6135_v25, %v5601_v26  ;;  %v6150_v30 = vadd.f32 %v15376_v15, %v15326_v27  ;;  %v5820_v34 = vpop.f32.mrf.mxu0  ;;  %v5613_v15 = vld [vmem:[#allocation5 + $0x70] sm:$0xff] }
 0x2a5   : > { %v6144_v35 = vpop.f32.mrf.mxu1 }
 0x2a6   : > { %6317 = vst.msk [vmem:[#allocation5 + $0x10] sm:$0xff] %vm629_vm3, %v6285_v29  ;;  %v6288_v36 = vadd.f32 %v6150_v30, %v5604_v31  ;;  %v6145_v37 = vadd.f32 %v6144_v35, %v5820_v34  ;;  %v15329_v39 = vpop.f32.mrf.mxu0  ;;  %v5616_v35 = vld [vmem:[#allocation5 + $0x88] sm:$0xff] }
 0x2a7   : > { %v15379_v40 = vpop.f32.mrf.mxu1 }
 0x2a8   : > { %6320 = vst.msk [vmem:[#allocation5 + $0x28] sm:$0xff] %vm629_vm3, %v6288_v36  ;;  %v6287_v22 = vadd.f32 %v6145_v37, %v5603_v38  ;;  %v6160_v47 = vadd.f32 %v15379_v40, %v15329_v39  ;;  %v5830_v41 = vpop.f32.mrf.mxu0  ;;  %v5615_v40 = vld [vmem:[#allocation5 + $0x80] sm:$0xff] }
 0x2a9   : > { %v6154_v23 = vpop.f32.mrf.mxu1 }
 0x2aa   : > { %6319 = vst.msk [vmem:[#allocation5 + $0x20] sm:$0xff] %vm629_vm3, %v6287_v22  ;;  %v6290_v42 = vadd.f32 %v6160_v47, %v5606_v48  ;;  %v6155_v43 = vadd.f32 %v6154_v23, %v5830_v41  ;;  %v15332_v45 = vpop.f32.mrf.mxu0  ;;  %v13522_v23 = vld [vmem:[%s19241_s5 + $0x10] sm:$0xff] }
 0x2ab   : > { %v15382_v46 = vpop.f32.mrf.mxu1  ;;  %15716 = vmatprep.subr.mxu0 %v13522_v23 }
 0x2ac   : > { %6322 = vst.msk [vmem:[#allocation5 + $0x38] sm:$0xff] %vm629_vm3, %v6290_v42  ;;  %v6289_v49 = vadd.f32 %v6155_v43, %v5605_v44  ;;  %v6170_v50 = vadd.f32 %v15382_v46, %v15332_v45  ;;  %v5840_v52 = vpop.f32.mrf.mxu0  ;;  %v5618_v42 = vld [vmem:[#allocation5 + $0x98] sm:$0xff]  ;;  %15717 = vmatpush3.msra.mxu0 %v13522_v23 }
 0x2ad   : > { %v6164_v53 = vpop.f32.mrf.mxu1 }
 0x2ae   : > { %6321 = vst.msk [vmem:[#allocation5 + $0x30] sm:$0xff] %vm629_vm3, %v6289_v49  ;;  %v6292_v54 = vadd.f32 %v6170_v50, %v5608_v51  ;;  %v6165_v55 = vadd.f32 %v6164_v53, %v5840_v52  ;;  %v15335_v57 = vpop.f32.mrf.mxu0  ;;  %v5617_v49 = vld [vmem:[#allocation5 + $0x90] sm:$0xff] }
 0x2af   : > { %v15385_v58 = vpop.f32.mrf.mxu1 }
 0x2b0   : > { %6324 = vst.msk [vmem:[#allocation5 + $0x48] sm:$0xff] %vm629_vm3, %v6292_v54  ;;  %v6291_v3 = vadd.f32 %v6165_v55, %v5607_v56  ;;  %v6180_v5 = vadd.f32 %v15385_v58, %v15335_v57  ;;  %v5850_v63 = vpop.f32.mrf.mxu0  ;;  %v5620_v54 = vld [vmem:[#allocation5 + $0xa8] sm:$0xff] }
 0x2b1   : > { %v6174_v0 = vpop.f32.mrf.mxu1 }
 0x2b2   : > { %6323 = vst.msk [vmem:[#allocation5 + $0x40] sm:$0xff] %vm629_vm3, %v6291_v3  ;;  %v6294_v2 = vadd.f32 %v6180_v5, %v5610_v62  ;;  %v6175_v6 = vadd.f32 %v6174_v0, %v5850_v63  ;;  %v15338_v9 = vpop.f32.mrf.mxu0  ;;  %v5622_v62 = vld [vmem:[#allocation5 + $0xb8] sm:$0xff] }
 0x2b3   : > { %v15388_v10 = vpop.f32.mrf.mxu1 }
 0x2b4   : > { %6326 = vst.msk [vmem:[#allocation5 + $0x58] sm:$0xff] %vm629_vm3, %v6294_v2  ;;  %v6293_v13 = vadd.f32 %v6175_v6, %v5609_v8  ;;  %v6190_v14 = vadd.f32 %v15388_v10, %v15338_v9  ;;  %v5860_v18 = vpop.f32.mrf.mxu0  ;;  %v5621_v6 = vld [vmem:[#allocation5 + $0xb0] sm:$0xff] }
 0x2b5   : > { %v6184_v19 = vpop.f32.mrf.mxu1 }
 0x2b6   : > { %6325 = vst.msk [vmem:[#allocation5 + $0x50] sm:$0xff] %vm629_vm3, %v6293_v13  ;;  %v6296_v20 = vadd.f32 %v6190_v14, %v5612_v17  ;;  %v6185_v32 = vadd.f32 %v6184_v19, %v5860_v18  ;;  %v15341_v16 = vpop.f32.mrf.mxu0  ;;  %v5624_v13 = vld [vmem:[#allocation5 + $0xc8] sm:$0xff] }
 0x2b7   : > { %v15391_v11 = vpop.f32.mrf.mxu1 }
 0x2b8   : > { %6328 = vst.msk [vmem:[#allocation5 + $0x68] sm:$0xff] %vm629_vm3, %v6296_v20  ;;  %v6295_v28 = vadd.f32 %v6185_v32, %v5611_v33  ;;  %v6200_v12 = vadd.f32 %v15391_v11, %v15341_v16  ;;  %v5870_v24 = vpop.f32.mrf.mxu0  ;;  %v5623_v20 = vld [vmem:[#allocation5 + $0xc0] sm:$0xff] }
 0x2b9   : > { %v6194_v25 = vpop.f32.mrf.mxu1 }
 0x2ba   : > { %6327 = vst.msk [vmem:[#allocation5 + $0x60] sm:$0xff] %vm629_vm3, %v6295_v28  ;;  %v6298_v26 = vadd.f32 %v6200_v12, %v5614_v21  ;;  %v6195_v27 = vadd.f32 %v6194_v25, %v5870_v24  ;;  %v15344_v29 = vpop.f32.mrf.mxu0  ;;  %v5626_v28 = vld [vmem:[#allocation5 + $0xd8] sm:$0xff] }
 0x2bb   : > { %v15394_v30 = vpop.f32.mrf.mxu1 }
 0x2bc   : > { %6330 = vst.msk [vmem:[#allocation5 + $0x78] sm:$0xff] %vm629_vm3, %v6298_v26  ;;  %v6297_v31 = vadd.f32 %v6195_v27, %v5613_v15  ;;  %v6210_v34 = vadd.f32 %v15394_v30, %v15344_v29  ;;  %v5880_v36 = vpop.f32.mrf.mxu0  ;;  %v5625_v26 = vld [vmem:[#allocation5 + $0xd0] sm:$0xff] }
 0x2bd   : > { %v6204_v37 = vpop.f32.mrf.mxu1 }
 0x2be   : > { %6329 = vst.msk [vmem:[#allocation5 + $0x70] sm:$0xff] %vm629_vm3, %v6297_v31  ;;  %v6300_v38 = vadd.f32 %v6210_v34, %v5616_v35  ;;  %v6205_v39 = vadd.f32 %v6204_v37, %v5880_v36  ;;  %v15347_v22 = vpop.f32.mrf.mxu0  ;;  %v5628_v31 = vld [vmem:[#allocation5 + $0xe8] sm:$0xff] }
 0x2bf   : > { %v15397_v47 = vpop.f32.mrf.mxu1 }
 0x2c0   : > { %6332 = vst.msk [vmem:[#allocation5 + $0x88] sm:$0xff] %vm629_vm3, %v6300_v38  ;;  %v6299_v48 = vadd.f32 %v6205_v39, %v5615_v40  ;;  %v6220_v41 = vadd.f32 %v15397_v47, %v15347_v22  ;;  %v5890_v43 = vpop.f32.mrf.mxu0  ;;  %v5627_v38 = vld [vmem:[#allocation5 + $0xe0] sm:$0xff] }
 0x2c1   : > { %v6214_v44 = vpop.f32.mrf.mxu1 }
 0x2c2   : > { %6331 = vst.msk [vmem:[#allocation5 + $0x80] sm:$0xff] %vm629_vm3, %v6299_v48  ;;  %v6302_v45 = vadd.f32 %v6220_v41, %v5618_v42  ;;  %v6215_v46 = vadd.f32 %v6214_v44, %v5890_v43  ;;  %v15350_v50 = vpop.f32.mrf.mxu0  ;;  %v5630_v48 = vld [vmem:[#allocation5 + $0xf8] sm:$0xff]  ;;  %v5629_v44 = vld [vmem:[#allocation5 + $0xf0] sm:$0xff] }
 0x2c3   : > { %v15400_v51 = vpop.f32.mrf.mxu1 }
 0x2c4   : > { %6334 = vst.msk [vmem:[#allocation5 + $0x98] sm:$0xff] %vm629_vm3, %v6302_v45  ;;  %v6301_v52 = vadd.f32 %v6215_v46, %v5617_v49  ;;  %v6230_v53 = vadd.f32 %v15400_v51, %v15350_v50  ;;  %v5900_v55 = vpop.f32.mrf.mxu0  ;;  %v6412_v51 = vld [vmem:[#allocation5 + $0x8] sm:$0xff] }
 0x2c5   : > { %v6224_v56 = vpop.f32.mrf.mxu1 }
 0x2c6   : > { %6333 = vst.msk [vmem:[#allocation5 + $0x90] sm:$0xff] %vm629_vm3, %v6301_v52  ;;  %v6304_v57 = vadd.f32 %v6230_v53, %v5620_v54  ;;  %v6225_v58 = vadd.f32 %v6224_v56, %v5900_v55  ;;  %v15353_v3 = vpop.f32.mrf.mxu0  ;;  %v6411_v56 = vld [vmem:[#allocation5] sm:$0xff] }
 0x2c7   : > { %v15403_v5 = vpop.f32.mrf.mxu1 }
 0x2c8   : > { %6336 = vst.msk [vmem:[#allocation5 + $0xa8] sm:$0xff] %vm629_vm3, %v6304_v57  ;;  %v6303_v60 = vadd.f32 %v6225_v58, %v5619_v59  ;;  %v6240_v61 = vadd.f32 %v15403_v5, %v15353_v3  ;;  %v5910_v63 = vpop.f32.mrf.mxu0  ;;  %v6414_v5 = vld [vmem:[#allocation5 + $0x18] sm:$0xff] }
 0x2c9   : > { %v6234_v0 = vpop.f32.mrf.mxu1 }
 0x2ca   : > { %6335 = vst.msk [vmem:[#allocation5 + $0xa0] sm:$0xff] %vm629_vm3, %v6303_v60  ;;  %v6306_v1 = vadd.f32 %v6240_v61, %v5622_v62  ;;  %v6235_v2 = vadd.f32 %v6234_v0, %v5910_v63  ;;  %v15356_v7 = vpop.f32.mrf.mxu0  ;;  %v6413_v0 = vld [vmem:[#allocation5 + $0x10] sm:$0xff] }
 0x2cb   : > { %v15406_v8 = vpop.f32.mrf.mxu1 }
 0x2cc   : > { %6338 = vst.msk [vmem:[#allocation5 + $0xb8] sm:$0xff] %vm629_vm3, %v6306_v1  ;;  %v6305_v9 = vadd.f32 %v6235_v2, %v5621_v6  ;;  %v6250_v10 = vadd.f32 %v15406_v8, %v15356_v7  ;;  %v5920_v14 = vpop.f32.mrf.mxu0  ;;  %v6416_v8 = vld [vmem:[#allocation5 + $0x28] sm:$0xff] }
 0x2cd   : > { %v6244_v17 = vpop.f32.mrf.mxu1 }
 0x2ce   : > { %6337 = vst.msk [vmem:[#allocation5 + $0xb0] sm:$0xff] %vm629_vm3, %v6305_v9  ;;  %v6308_v18 = vadd.f32 %v6250_v10, %v5624_v13  ;;  %v6245_v19 = vadd.f32 %v6244_v17, %v5920_v14  ;;  %v15359_v32 = vpop.f32.mrf.mxu0  ;;  %v6415_v17 = vld [vmem:[#allocation5 + $0x20] sm:$0xff] }
 0x2cf   : > { %v15409_v33 = vpop.f32.mrf.mxu1 }
 0x2d0   : > { %6340 = vst.msk [vmem:[#allocation5 + $0xc8] sm:$0xff] %vm629_vm3, %v6308_v18  ;;  %v6307_v16 = vadd.f32 %v6245_v19, %v5623_v20  ;;  %v6260_v11 = vadd.f32 %v15409_v33, %v15359_v32  ;;  %v5930_v12 = vpop.f32.mrf.mxu0  ;;  %v13555_v33 = vld [vmem:[%s19241_s5 + $0x18] sm:$0xff] }
 0x2d1   : > { %v6254_v21 = vpop.f32.mrf.mxu1  ;;  %15766 = vmatprep.subr.mxu1 %v13555_v33 }
 0x2d2   : > { %6339 = vst.msk [vmem:[#allocation5 + $0xc0] sm:$0xff] %vm629_vm3, %v6307_v16  ;;  %v6310_v24 = vadd.f32 %v6260_v11, %v5626_v28  ;;  %v6255_v25 = vadd.f32 %v6254_v21, %v5930_v12  ;;  %v15362_v27 = vpop.f32.mrf.mxu0  ;;  %v6418_v16 = vld [vmem:[#allocation5 + $0x38] sm:$0xff]  ;;  %15767 = vmatpush3.msra.mxu1 %v13555_v33 }
 0x2d3   : > { %v15412_v15 = vpop.f32.mrf.mxu1 }
 0x2d4   : > { %6342 = vst.msk [vmem:[#allocation5 + $0xd8] sm:$0xff] %vm629_vm3, %v6310_v24  ;;  %v6309_v29 = vadd.f32 %v6255_v25, %v5625_v26  ;;  %v6270_v30 = vadd.f32 %v15412_v15, %v15362_v27  ;;  %v5940_v34 = vpop.f32.mrf.mxu0  ;;  %v6417_v24 = vld [vmem:[#allocation5 + $0x30] sm:$0xff] }
 0x2d5   : > { %v6264_v35 = vpop.f32.mrf.mxu1 }
 0x2d6   : > { %6341 = vst.msk [vmem:[#allocation5 + $0xd0] sm:$0xff] %vm629_vm3, %v6309_v29  ;;  %v6312_v36 = vadd.f32 %v6270_v30, %v5628_v31  ;;  %v6265_v37 = vadd.f32 %v6264_v35, %v5940_v34  ;;  %v15365_v39 = vpop.f32.mrf.mxu0  ;;  %v6420_v29 = vld [vmem:[#allocation5 + $0x48] sm:$0xff] }
 0x2d7   : > { %v15415_v40 = vpop.f32.mrf.mxu1 }
 0x2d8   : > { %6344 = vst.msk [vmem:[#allocation5 + $0xe8] sm:$0xff] %vm629_vm3, %v6312_v36  ;;  %v6311_v22 = vadd.f32 %v6265_v37, %v5627_v38  ;;  %v6280_v47 = vadd.f32 %v15415_v40, %v15365_v39  ;;  %v5950_v41 = vpop.f32.mrf.mxu0  ;;  %v6419_v36 = vld [vmem:[#allocation5 + $0x40] sm:$0xff] }
 0x2d9   : > { %v6274_v23 = vpop.f32.mrf.mxu1 }
 0x2da   : > { %6343 = vst.msk [vmem:[#allocation5 + $0xe0] sm:$0xff] %vm629_vm3, %v6311_v22  ;;  %v6314_v42 = vadd.f32 %v6280_v47, %v5630_v48  ;;  %v6275_v43 = vadd.f32 %v6274_v23, %v5950_v41  ;;  %v15420_v45 = vpop.f32.mrf.mxu0  ;;  %v13588_v22 = vld [vmem:[%s19241_s5 + $0x20] sm:$0xff]  ;;  %v6422_v47 = vld [vmem:[#allocation5 + $0x58] sm:$0xff] }
 0x2db   : > { %v15470_v46 = vpop.f32.mrf.mxu1  ;;  %15816 = vmatprep.subr.mxu0 %v13588_v22 }
 0x2dc   : > { %6346 = vst.msk [vmem:[#allocation5 + $0xf8] sm:$0xff] %vm629_vm3, %v6314_v42  ;;  %v6313_v49 = vadd.f32 %v6275_v43, %v5629_v44  ;;  %v6942_v50 = vadd.f32 %v15470_v46, %v15420_v45  ;;  %v6612_v52 = vpop.f32.mrf.mxu0  ;;  %v6421_v43 = vld [vmem:[#allocation5 + $0x50] sm:$0xff] }
 0x2dd   : > { %v6936_v53 = vpop.f32.mrf.mxu1 }
 0x2de   : > { %6345 = vst.msk [vmem:[#allocation5 + $0xf0] sm:$0xff] %vm629_vm3, %v6313_v49  ;;  %v7096_v54 = vadd.f32 %v6942_v50, %v6412_v51  ;;  %v6937_v55 = vadd.f32 %v6936_v53, %v6612_v52  ;;  %v15423_v57 = vpop.f32.mrf.mxu0  ;;  %v6424_v50 = vld [vmem:[#allocation5 + $0x68] sm:$0xff] }
 0x2df   : > { %v15473_v58 = vpop.f32.mrf.mxu1 }
 0x2e0   : > { %7128 = vst.msk [vmem:[#allocation5 + $0x8] sm:$0xff] %vm629_vm3, %v7096_v54  ;;  %v7095_v59 = vadd.f32 %v6937_v55, %v6411_v56  ;;  %v6952_v3 = vadd.f32 %v15473_v58, %v15423_v57  ;;  %v6622_v60 = vpop.f32.mrf.mxu0  ;;  %v6423_v55 = vld [vmem:[#allocation5 + $0x60] sm:$0xff] }
 0x2e1   : > { %v6946_v61 = vpop.f32.mrf.mxu1 }
 0x2e2   : > { %7127 = vst.msk [vmem:[#allocation5] sm:$0xff] %vm629_vm3, %v7095_v59  ;;  %v7098_v62 = vadd.f32 %v6952_v3, %v6414_v5  ;;  %v6947_v63 = vadd.f32 %v6946_v61, %v6622_v60  ;;  %v15426_v1 = vpop.f32.mrf.mxu0  ;;  %v6426_v3 = vld [vmem:[#allocation5 + $0x78] sm:$0xff] }
 0x2e3   : > { %v15476_v2 = vpop.f32.mrf.mxu1 }
 0x2e4   : > { %7130 = vst.msk [vmem:[#allocation5 + $0x18] sm:$0xff] %vm629_vm3, %v7098_v62  ;;  %v7097_v6 = vadd.f32 %v6947_v63, %v6413_v0  ;;  %v6962_v7 = vadd.f32 %v15476_v2, %v15426_v1  ;;  %v6632_v9 = vpop.f32.mrf.mxu0  ;;  %v6425_v63 = vld [vmem:[#allocation5 + $0x70] sm:$0xff] }
 0x2e5   : > { %v6956_v10 = vpop.f32.mrf.mxu1 }
 0x2e6   : > { %7129 = vst.msk [vmem:[#allocation5 + $0x10] sm:$0xff] %vm629_vm3, %v7097_v6  ;;  %v7100_v13 = vadd.f32 %v6962_v7, %v6416_v8  ;;  %v6957_v14 = vadd.f32 %v6956_v10, %v6632_v9  ;;  %v15429_v18 = vpop.f32.mrf.mxu0  ;;  %v6428_v7 = vld [vmem:[#allocation5 + $0x88] sm:$0xff] }
 0x2e7   : > { %v15479_v19 = vpop.f32.mrf.mxu1 }
 0x2e8   : > { %7132 = vst.msk [vmem:[#allocation5 + $0x28] sm:$0xff] %vm629_vm3, %v7100_v13  ;;  %v7099_v20 = vadd.f32 %v6957_v14, %v6415_v17  ;;  %v6972_v32 = vadd.f32 %v15479_v19, %v15429_v18  ;;  %v6642_v11 = vpop.f32.mrf.mxu0  ;;  %v6427_v14 = vld [vmem:[#allocation5 + $0x80] sm:$0xff] }
 0x2e9   : > { %v6966_v28 = vpop.f32.mrf.mxu1 }
 0x2ea   : > { %7131 = vst.msk [vmem:[#allocation5 + $0x20] sm:$0xff] %vm629_vm3, %v7099_v20  ;;  %v7102_v12 = vadd.f32 %v6972_v32, %v6418_v16  ;;  %v6967_v21 = vadd.f32 %v6966_v28, %v6642_v11  ;;  %v15432_v25 = vpop.f32.mrf.mxu0  ;;  %v6430_v32 = vld [vmem:[#allocation5 + $0x98] sm:$0xff] }
 0x2eb   : > { %v15482_v26 = vpop.f32.mrf.mxu1 }
 0x2ec   : > { %7134 = vst.msk [vmem:[#allocation5 + $0x38] sm:$0xff] %vm629_vm3, %v7102_v12  ;;  %v7101_v27 = vadd.f32 %v6967_v21, %v6417_v24  ;;  %v6982_v15 = vadd.f32 %v15482_v26, %v15432_v25  ;;  %v6652_v30 = vpop.f32.mrf.mxu0  ;;  %v6429_v12 = vld [vmem:[#allocation5 + $0x90] sm:$0xff] }
 0x2ed   : > { %v6976_v31 = vpop.f32.mrf.mxu1 }
 0x2ee   : > { %7133 = vst.msk [vmem:[#allocation5 + $0x30] sm:$0xff] %vm629_vm3, %v7101_v27  ;;  %v7104_v34 = vadd.f32 %v6982_v15, %v6420_v29  ;;  %v6977_v35 = vadd.f32 %v6976_v31, %v6652_v30  ;;  %v15435_v37 = vpop.f32.mrf.mxu0  ;;  %v6432_v27 = vld [vmem:[#allocation5 + $0xa8] sm:$0xff] }
 0x2ef   : > { %v15485_v38 = vpop.f32.mrf.mxu1 }
 0x2f0   : > { %7136 = vst.msk [vmem:[#allocation5 + $0x48] sm:$0xff] %vm629_vm3, %v7104_v34  ;;  %v7103_v39 = vadd.f32 %v6977_v35, %v6419_v36  ;;  %v6992_v40 = vadd.f32 %v15485_v38, %v15435_v37  ;;  %v6662_v48 = vpop.f32.mrf.mxu0  ;;  %v6431_v34 = vld [vmem:[#allocation5 + $0xa0] sm:$0xff] }
 0x2f1   : > { %v6986_v41 = vpop.f32.mrf.mxu1 }
 0x2f2   : > { %7135 = vst.msk [vmem:[#allocation5 + $0x40] sm:$0xff] %vm629_vm3, %v7103_v39  ;;  %v7106_v23 = vadd.f32 %v6992_v40, %v6422_v47  ;;  %v6987_v42 = vadd.f32 %v6986_v41, %v6662_v48  ;;  %v15438_v44 = vpop.f32.mrf.mxu0  ;;  %v6434_v39 = vld [vmem:[#allocation5 + $0xb8] sm:$0xff]  ;;  %v6433_v41 = vld [vmem:[#allocation5 + $0xb0] sm:$0xff] }
 0x2f3   : > { %v15488_v45 = vpop.f32.mrf.mxu1 }
 0x2f4   : > { %7138 = vst.msk [vmem:[#allocation5 + $0x58] sm:$0xff] %vm629_vm3, %v7106_v23  ;;  %v7105_v46 = vadd.f32 %v6987_v42, %v6421_v43  ;;  %v7002_v49 = vadd.f32 %v15488_v45, %v15438_v44  ;;  %v6672_v51 = vpop.f32.mrf.mxu0  ;;  %v6436_v45 = vld [vmem:[#allocation5 + $0xc8] sm:$0xff] }
 0x2f5   : > { %v6996_v52 = vpop.f32.mrf.mxu1 }
 0x2f6   : > { %7137 = vst.msk [vmem:[#allocation5 + $0x50] sm:$0xff] %vm629_vm3, %v7105_v46  ;;  %v7108_v53 = vadd.f32 %v7002_v49, %v6424_v50  ;;  %v6997_v54 = vadd.f32 %v6996_v52, %v6672_v51  ;;  %v15441_v56 = vpop.f32.mrf.mxu0  ;;  %v6435_v52 = vld [vmem:[#allocation5 + $0xc0] sm:$0xff] }
 0x2f7   : > { %v15491_v57 = vpop.f32.mrf.mxu1 }
 0x2f8   : > { %7140 = vst.msk [vmem:[#allocation5 + $0x68] sm:$0xff] %vm629_vm3, %v7108_v53  ;;  %v7107_v58 = vadd.f32 %v6997_v54, %v6423_v55  ;;  %v7012_v59 = vadd.f32 %v15491_v57, %v15441_v56  ;;  %v6682_v5 = vpop.f32.mrf.mxu0  ;;  %v6438_v57 = vld [vmem:[#allocation5 + $0xd8] sm:$0xff] }
 0x2f9   : > { %v7006_v60 = vpop.f32.mrf.mxu1 }
 0x2fa   : > { %7139 = vst.msk [vmem:[#allocation5 + $0x60] sm:$0xff] %vm629_vm3, %v7107_v58  ;;  %v7110_v61 = vadd.f32 %v7012_v59, %v6426_v3  ;;  %v7007_v62 = vadd.f32 %v7006_v60, %v6682_v5  ;;  %v15444_v0 = vpop.f32.mrf.mxu0  ;;  %v6437_v60 = vld [vmem:[#allocation5 + $0xd0] sm:$0xff] }
 0x2fb   : > { %v15494_v1 = vpop.f32.mrf.mxu1 }
 0x2fc   : > { %7142 = vst.msk [vmem:[#allocation5 + $0x78] sm:$0xff] %vm629_vm3, %v7110_v61  ;;  %v7109_v2 = vadd.f32 %v7007_v62, %v6425_v63  ;;  %v7022_v6 = vadd.f32 %v15494_v1, %v15444_v0  ;;  %v6692_v8 = vpop.f32.mrf.mxu0  ;;  %v6440_v1 = vld [vmem:[#allocation5 + $0xe8] sm:$0xff] }
 0x2fd   : > { %v7016_v9 = vpop.f32.mrf.mxu1 }
 0x2fe   : > { %7141 = vst.msk [vmem:[#allocation5 + $0x70] sm:$0xff] %vm629_vm3, %v7109_v2  ;;  %v7112_v10 = vadd.f32 %v7022_v6, %v6428_v7  ;;  %v7017_v13 = vadd.f32 %v7016_v9, %v6692_v8  ;;  %v15447_v17 = vpop.f32.mrf.mxu0  ;;  %v6439_v9 = vld [vmem:[#allocation5 + $0xe0] sm:$0xff] }
 0x2ff   : > { %v15497_v18 = vpop.f32.mrf.mxu1 }
 0x300   : > { %7144 = vst.msk [vmem:[#allocation5 + $0x88] sm:$0xff] %vm629_vm3, %v7112_v10  ;;  %v7111_v19 = vadd.f32 %v7017_v13, %v6427_v14  ;;  %v7032_v20 = vadd.f32 %v15497_v18, %v15447_v17  ;;  %v6702_v33 = vpop.f32.mrf.mxu0  ;;  %v6442_v18 = vld [vmem:[#allocation5 + $0xf8] sm:$0xff] }
 0x301   : > { %v7026_v16 = vpop.f32.mrf.mxu1 }
 0x302   : > { %7143 = vst.msk [vmem:[#allocation5 + $0x80] sm:$0xff] %vm629_vm3, %v7111_v19  ;;  %v7114_v11 = vadd.f32 %v7032_v20, %v6430_v32  ;;  %v7027_v28 = vadd.f32 %v7026_v16, %v6702_v33  ;;  %v15450_v21 = vpop.f32.mrf.mxu0  ;;  %v6441_v16 = vld [vmem:[#allocation5 + $0xf0] sm:$0xff] }
 0x303   : > { %v15500_v24 = vpop.f32.mrf.mxu1 }
 0x304   : > { %7146 = vst.msk [vmem:[#allocation5 + $0x98] sm:$0xff] %vm629_vm3, %v7114_v11  ;;  %v7113_v25 = vadd.f32 %v7027_v28, %v6429_v12  ;;  %v7042_v26 = vadd.f32 %v15500_v24, %v15450_v21  ;;  %v6712_v15 = vpop.f32.mrf.mxu0  ;;  %v7224_v24 = vld [vmem:[#allocation5 + $0x8] sm:$0xff] }
 0x305   : > { %v7036_v29 = vpop.f32.mrf.mxu1 }
 0x306   : > { %7145 = vst.msk [vmem:[#allocation5 + $0x90] sm:$0xff] %vm629_vm3, %v7113_v25  ;;  %v7116_v30 = vadd.f32 %v7042_v26, %v6432_v27  ;;  %v7037_v31 = vadd.f32 %v7036_v29, %v6712_v15  ;;  %v15453_v35 = vpop.f32.mrf.mxu0  ;;  %v7223_v29 = vld [vmem:[#allocation5] sm:$0xff] }
 0x307   : > { %v15503_v36 = vpop.f32.mrf.mxu1 }
 0x308   : > { %7148 = vst.msk [vmem:[#allocation5 + $0xa8] sm:$0xff] %vm629_vm3, %v7116_v30  ;;  %v7115_v37 = vadd.f32 %v7037_v31, %v6431_v34  ;;  %v7052_v38 = vadd.f32 %v15503_v36, %v15453_v35  ;;  %v6722_v40 = vpop.f32.mrf.mxu0  ;;  %v7226_v36 = vld [vmem:[#allocation5 + $0x18] sm:$0xff] }
 0x309   : > { %v7046_v22 = vpop.f32.mrf.mxu1 }
 0x30a   : > { %7147 = vst.msk [vmem:[#allocation5 + $0xa0] sm:$0xff] %vm629_vm3, %v7115_v37  ;;  %v7118_v47 = vadd.f32 %v7052_v38, %v6434_v39  ;;  %v7047_v48 = vadd.f32 %v7046_v22, %v6722_v40  ;;  %v15456_v23 = vpop.f32.mrf.mxu0  ;;  %v7225_v22 = vld [vmem:[#allocation5 + $0x10] sm:$0xff] }
 0x30b   : > { %v15506_v42 = vpop.f32.mrf.mxu1 }
 0x30c   : > { %7150 = vst.msk [vmem:[#allocation5 + $0xb8] sm:$0xff] %vm629_vm3, %v7118_v47  ;;  %v7117_v43 = vadd.f32 %v7047_v48, %v6433_v41  ;;  %v7062_v44 = vadd.f32 %v15506_v42, %v15456_v23  ;;  %v6732_v46 = vpop.f32.mrf.mxu0  ;;  %v17868_v42 = vld [vmem:[%s19240_s4] ss:$0 sm:$0xff] }
 0x30d   : > { %v7056_v49 = vpop.f32.mrf.mxu1 }
 0x30e   : > { %7149 = vst.msk [vmem:[#allocation5 + $0xb0] sm:$0xff] %vm629_vm3, %v7117_v43  ;;  %v7120_v50 = vadd.f32 %v7062_v44, %v6436_v45  ;;  %v7057_v51 = vadd.f32 %v7056_v49, %v6732_v46  ;;  %v15459_v53 = vpop.f32.mrf.mxu0  ;;  %v7228_v43 = vld [vmem:[#allocation5 + $0x28] sm:$0xff] }
 0x30f   : > { %v15509_v54 = vpop.f32.mrf.mxu1 }
 0x310   : > { %7152 = vst.msk [vmem:[#allocation5 + $0xc8] sm:$0xff] %vm629_vm3, %v7120_v50  ;;  %v7119_v55 = vadd.f32 %v7057_v51, %v6435_v52  ;;  %v7072_v56 = vadd.f32 %v15509_v54, %v15459_v53  ;;  %v6742_v58 = vpop.f32.mrf.mxu0  ;;  %v7227_v51 = vld [vmem:[#allocation5 + $0x20] sm:$0xff] }
 0x311   : > { %v7066_v59 = vpop.f32.mrf.mxu1 }
 0x312   : > { %7151 = vst.msk [vmem:[#allocation5 + $0xc0] sm:$0xff] %vm629_vm3, %v7119_v55  ;;  %v7122_v3 = vadd.f32 %v7072_v56, %v6438_v57  ;;  %v7067_v5 = vadd.f32 %v7066_v59, %v6742_v58  ;;  %v15462_v61 = vpop.f32.mrf.mxu0  ;;  %v17878_v57 = vld [vmem:[%s19241_s5 + $0x28] sm:$0xff]  ;;  %v7230_v59 = vld [vmem:[#allocation5 + $0x38] sm:$0xff] }
 0x313   : > { %v15512_v62 = vpop.f32.mrf.mxu1  ;;  %15866 = vmatprep.subr.mxu1 %v17878_v57 }
 0x314   : > { %7154 = vst.msk [vmem:[#allocation5 + $0xd8] sm:$0xff] %vm629_vm3, %v7122_v3  ;;  %v7121_v63 = vadd.f32 %v7067_v5, %v6437_v60  ;;  %v7082_v0 = vadd.f32 %v15512_v62, %v15462_v61  ;;  %v6752_v2 = vpop.f32.mrf.mxu0 }
 0x315   : > { %v7076_v6 = vpop.f32.mrf.mxu1 }
 0x316   : > { %7153 = vst.msk [vmem:[#allocation5 + $0xd0] sm:$0xff] %vm629_vm3, %v7121_v63  ;;  %v7124_v7 = vadd.f32 %v7082_v0, %v6440_v1  ;;  %v7077_v8 = vadd.f32 %v7076_v6, %v6752_v2  ;;  %v15465_v10 = vpop.f32.mrf.mxu0  ;;  %v7229_v1 = vld [vmem:[#allocation5 + $0x30] sm:$0xff] }
 0x317   : > { %v15515_v13 = vpop.f32.mrf.mxu1 }
 0x318   : > { %7156 = vst.msk [vmem:[#allocation5 + $0xe8] sm:$0xff] %vm629_vm3, %v7124_v7  ;;  %v7123_v14 = vadd.f32 %v7077_v8, %v6439_v9  ;;  %v7092_v17 = vadd.f32 %v15515_v13, %v15465_v10  ;;  %v6762_v19 = vpop.f32.mrf.mxu0 }
 0x319   : > { %v7086_v20 = vpop.f32.mrf.mxu1 }
 0x31a   : > { %7155 = vst.msk [vmem:[#allocation5 + $0xe0] sm:$0xff] %vm629_vm3, %v7123_v14  ;;  %v7126_v32 = vadd.f32 %v7092_v17, %v6442_v18  ;;  %v7087_v33 = vadd.f32 %v7086_v20, %v6762_v19  ;;  %v15520_v11 = vpop.f32.mrf.mxu0  ;;  %v7232_v14 = vld [vmem:[#allocation5 + $0x48] sm:$0xff] }
 0x31b   : > { %v15570_v28 = vpop.f32.mrf.mxu1 }
 0x31c   : > { %7158 = vst.msk [vmem:[#allocation5 + $0xf8] sm:$0xff] %vm629_vm3, %v7126_v32  ;;  %v7125_v12 = vadd.f32 %v7087_v33, %v6441_v16  ;;  %v7754_v21 = vadd.f32 %v15570_v28, %v15520_v11  ;;  %v7424_v25 = vpop.f32.mrf.mxu0  ;;  %v7231_v11 = vld [vmem:[#allocation5 + $0x40] sm:$0xff] }
 0x31d   : > { %v7748_v26 = vpop.f32.mrf.mxu1 }
 0x31e   : > { %7157 = vst.msk [vmem:[#allocation5 + $0xf0] sm:$0xff] %vm629_vm3, %v7125_v12  ;;  %v7908_v27 = vadd.f32 %v7754_v21, %v7224_v24  ;;  %v7749_v15 = vadd.f32 %v7748_v26, %v7424_v25  ;;  %v15523_v30 = vpop.f32.mrf.mxu0 }
 0x31f   : > { %v15573_v31 = vpop.f32.mrf.mxu1 }
 0x320   : > { %7940 = vst.msk [vmem:[#allocation5 + $0x8] sm:$0xff] %vm629_vm3, %v7908_v27  ;;  %v7907_v34 = vadd.f32 %v7749_v15, %v7223_v29  ;;  %v7764_v35 = vadd.f32 %v15573_v31, %v15523_v30  ;;  %v7434_v37 = vpop.f32.mrf.mxu0  ;;  %v7234_v15 = vld [vmem:[#allocation5 + $0x58] sm:$0xff] }
 0x321   : > { %v7758_v38 = vpop.f32.mrf.mxu1 }
 0x322   : > { %7939 = vst.msk [vmem:[#allocation5] sm:$0xff] %vm629_vm3, %v7907_v34  ;;  %v7910_v39 = vadd.f32 %v7764_v35, %v7226_v36  ;;  %v7759_v40 = vadd.f32 %v7758_v38, %v7434_v37  ;;  %v15526_v47 = vpop.f32.mrf.mxu0  ;;  %v7233_v38 = vld [vmem:[#allocation5 + $0x50] sm:$0xff] }
 0x323   : > { %v15576_v48 = vpop.f32.mrf.mxu1 }
 0x324   : > { %7942 = vst.msk [vmem:[#allocation5 + $0x18] sm:$0xff] %vm629_vm3, %v7910_v39  ;;  %v7909_v41 = vadd.f32 %v7759_v40, %v7225_v22  ;;  %v7774_v23 = vadd.f32 %v15576_v48, %v15526_v47  ;;  %v7444_v44 = vpop.f32.mrf.mxu0  ;;  %v7236_v48 = vld [vmem:[#allocation5 + $0x68] sm:$0xff] }
 0x325   : > { %v7768_v45 = vpop.f32.mrf.mxu1 }
 0x326   : > { %7941 = vst.msk [vmem:[#allocation5 + $0x10] sm:$0xff] %vm629_vm3, %v7909_v41  ;;  %v7912_v46 = vadd.f32 %v7774_v23, %v7228_v43  ;;  %v7769_v49 = vadd.f32 %v7768_v45, %v7444_v44  ;;  %v15529_v52 = vpop.f32.mrf.mxu0 }
 0x327   : > { %v7972_v50 = vld [vmem:[#allocation5 + $0x8] sm:$0xff]  ;;  %v15579_v53 = vpop.f32.mrf.mxu1 }
 0x328   : > { %v8011_v54 = vadd.f32 %v17868_v42, %v7972_v50  ;;  %8181 = vst.msk [vmem:[#allocation5 + $0x8] sm:$0xff] %vm629_vm3, %v16134_v4  ;;  %7944 = vst.msk [vmem:[#allocation5 + $0x28] sm:$0xff] %vm629_vm3, %v7912_v46  ;;  %v7911_v55 = vadd.f32 %v7769_v49, %v7227_v51  ;;  %v7784_v56 = vadd.f32 %v15579_v53, %v15529_v52  ;;  %v7454_v3 = vpop.f32.mrf.mxu0 }
 0x329   : > { %v7971_v58 = vld [vmem:[#allocation5] sm:$0xff]  ;;  %v7778_v5 = vpop.f32.mrf.mxu1 }
 0x32a   : > { %v8043_v60 = vmax.f32 %v8011_v54, 0.0  ;;  %8180 = vst.msk [vmem:[#allocation5] sm:$0xff] %vm629_vm3, %v16134_v4  ;;  %7943 = vst.msk [vmem:[#allocation5 + $0x20] sm:$0xff] %vm629_vm3, %v7911_v55  ;;  %v7914_v61 = vadd.f32 %v7784_v56, %v7230_v59  ;;  %v7779_v62 = vadd.f32 %v7778_v5, %v7454_v3  ;;  %v8010_v63 = vadd.f32 %v17868_v42, %v7971_v58  ;;  %v15532_v2 = vpop.f32.mrf.mxu0  ;;  %v7235_v58 = vld [vmem:[#allocation5 + $0x60] sm:$0xff] }
 0x32b   : > { %v7974_v0 = vld [vmem:[#allocation5 + $0x18] sm:$0xff]  ;;  %v15582_v6 = vpop.f32.mrf.mxu1 }
 0x32c   : > { %8149 = vst.msk [vmem:[#allocation4 + $0x30] sm:$0xff] %vm629_vm3, %v8043_v60  ;;  %v8013_v7 = vadd.f32 %v17868_v42, %v7974_v0  ;;  %8183 = vst.msk [vmem:[#allocation5 + $0x18] sm:$0xff] %vm629_vm3, %v16134_v4  ;;  %v7913_v8 = vadd.f32 %v7779_v62, %v7229_v1  ;;  %v7794_v9 = vadd.f32 %v15582_v6, %v15532_v2  ;;  %v8042_v10 = vmax.f32 %v8010_v63, 0.0  ;;  %v7464_v17 = vpop.f32.mrf.mxu0 }
 0x32d   : > { %7946 = vst.msk [vmem:[#allocation5 + $0x38] sm:$0xff] %vm629_vm3, %v7914_v61  ;;  %v7973_v13 = vld [vmem:[#allocation5 + $0x10] sm:$0xff]  ;;  %v7788_v18 = vpop.f32.mrf.mxu1  ;;  %v7238_v61 = vld [vmem:[#allocation5 + $0x78] sm:$0xff] }
 0x32e   : > { %v8045_v19 = vmax.f32 %v8013_v7, 0.0  ;;  %8182 = vst.msk [vmem:[#allocation5 + $0x10] sm:$0xff] %vm629_vm3, %v16134_v4  ;;  %7945 = vst.msk [vmem:[#allocation5 + $0x30] sm:$0xff] %vm629_vm3, %v7913_v8  ;;  %v7916_v20 = vadd.f32 %v7794_v9, %v7232_v14  ;;  %v7789_v32 = vadd.f32 %v7788_v18, %v7464_v17  ;;  %v8012_v33 = vadd.f32 %v17868_v42, %v7973_v13  ;;  %v15535_v28 = vpop.f32.mrf.mxu0 }
 0x32f   : > { %8148 = vst.msk [vmem:[#allocation4 + $0x28] sm:$0xff] %vm629_vm3, %v8042_v10  ;;  %v7976_v16 = vld [vmem:[#allocation5 + $0x28] sm:$0xff]  ;;  %v15585_v12 = vpop.f32.mrf.mxu1 }
 0x330   : > { %8151 = vst.msk [vmem:[#allocation4 + $0x50] sm:$0xff] %vm629_vm3, %v8045_v19  ;;  %v8015_v21 = vadd.f32 %v17868_v42, %v7976_v16  ;;  %8185 = vst.msk [vmem:[#allocation5 + $0x28] sm:$0xff] %vm629_vm3, %v16134_v4  ;;  %v7915_v24 = vadd.f32 %v7789_v32, %v7231_v11  ;;  %v7804_v25 = vadd.f32 %v15585_v12, %v15535_v28  ;;  %v8044_v26 = vmax.f32 %v8012_v33, 0.0  ;;  %v7474_v29 = vpop.f32.mrf.mxu0  ;;  %v7237_v19 = vld [vmem:[#allocation5 + $0x70] sm:$0xff]  ;;  %v7240_v11 = vld [vmem:[#allocation5 + $0x88] sm:$0xff] }
 0x331   : > { %7948 = vst.msk [vmem:[#allocation5 + $0x48] sm:$0xff] %vm629_vm3, %v7916_v20  ;;  %v7975_v27 = vld [vmem:[#allocation5 + $0x20] sm:$0xff]  ;;  %v7798_v30 = vpop.f32.mrf.mxu1 }
 0x332   : > { %v8047_v31 = vmax.f32 %v8015_v21, 0.0  ;;  %8184 = vst.msk [vmem:[#allocation5 + $0x20] sm:$0xff] %vm629_vm3, %v16134_v4  ;;  %7947 = vst.msk [vmem:[#allocation5 + $0x40] sm:$0xff] %vm629_vm3, %v7915_v24  ;;  %v7918_v34 = vadd.f32 %v7804_v25, %v7234_v15  ;;  %v7799_v35 = vadd.f32 %v7798_v30, %v7474_v29  ;;  %v8014_v36 = vadd.f32 %v17868_v42, %v7975_v27  ;;  %v15538_v39 = vpop.f32.mrf.mxu0 }
 0x333   : > { %8150 = vst.msk [vmem:[#allocation4 + $0x48] sm:$0xff] %vm629_vm3, %v8044_v26  ;;  %v15588_v40 = vpop.f32.mrf.mxu1  ;;  %v17923_v54 = vld [vmem:[#allocation4 + $0x30] sm:$0xff] }
 0x334   : > { %v7978_v37 = vld [vmem:[#allocation5 + $0x38] sm:$0xff]  ;;  %8153 = vst.msk [vmem:[#allocation4 + $0x70] sm:$0xff] %vm629_vm3, %v8047_v31  ;;  %7950 = vst.msk [vmem:[#allocation5 + $0x58] sm:$0xff] %vm629_vm3, %v7918_v34  ;;  %v7917_v47 = vadd.f32 %v7799_v35, %v7233_v38  ;;  %v7814_v41 = vadd.f32 %v15588_v40, %v15538_v39  ;;  %v8046_v23 = vmax.f32 %v8014_v36, 0.0  ;;  %v7484_v44 = vpop.f32.mrf.mxu0 }
 0x335   : > { %v8017_v22 = vadd.f32 %v17868_v42, %v7978_v37  ;;  %8187 = vst.msk [vmem:[#allocation5 + $0x38] sm:$0xff] %vm629_vm3, %v16134_v4  ;;  %v7977_v43 = vld [vmem:[#allocation5 + $0x30] sm:$0xff]  ;;  %v7808_v45 = vpop.f32.mrf.mxu1  ;;  %v7239_v37 = vld [vmem:[#allocation5 + $0x80] sm:$0xff] }
 0x336   : > { %v17910_v46 = vld [vmem:[#allocation4 + $0x27] sm:$0xff]  ;;  %8186 = vst.msk [vmem:[#allocation5 + $0x30] sm:$0xff] %vm629_vm3, %v16134_v4  ;;  %7949 = vst.msk [vmem:[#allocation5 + $0x50] sm:$0xff] %vm629_vm3, %v7917_v47  ;;  %v7920_v51 = vadd.f32 %v7814_v41, %v7236_v48  ;;  %v7809_v52 = vadd.f32 %v7808_v45, %v7484_v44  ;;  %v17921_v53 = vld [vmem:[#allocation4 + $0x2f] sm:$0xff]  ;;  %v8016_v55 = vadd.f32 %v17868_v42, %v7977_v43  ;;  %v15541_v59 = vpop.f32.mrf.mxu0 }
 0x337   : > { %v17912_v49 = vld [vmem:[#allocation4 + $0x28] sm:$0xff]  ;;  %v8049_v50 = vmax.f32 %v8017_v22, 0.0  ;;  %15621 = vmatprep.mubr.msk.f32.mxu0 %vm629_vm3, %v17910_v46  ;;  %8152 = vst.msk [vmem:[#allocation4 + $0x68] sm:$0xff] %vm629_vm3, %v8046_v23  ;;  %v15591_v3 = vpop.f32.mrf.mxu1  ;;  %v17949_v14 = vld [vmem:[#allocation4 + $0x50] sm:$0xff]  ;;  %v7242_v47 = vld [vmem:[#allocation5 + $0x98] sm:$0xff] }
 0x338   : > { %15671 = vmatprep.mubr.msk.f32.mxu1 %vm629_vm3, %v17912_v49  ;;  %v7980_v56 = vld [vmem:[#allocation5 + $0x48] sm:$0xff]  ;;  %15622 = vmatmul.mubr.msk.f32.gmra.mxu0 %vm629_vm3, %v17921_v53  ;;  %7952 = vst.msk [vmem:[#allocation5 + $0x68] sm:$0xff] %vm629_vm3, %v7920_v51  ;;  %v7919_v60 = vadd.f32 %v7809_v52, %v7235_v58  ;;  %v7824_v62 = vadd.f32 %v15591_v3, %v15541_v59  ;;  %v8048_v63 = vmax.f32 %v8016_v55, 0.0  ;;  %v7494_v1 = vpop.f32.mrf.mxu0 }
 0x339   : > { %15672 = vmatmul.mubr.msk.f32.gmra.mxu1 %vm629_vm3, %v17923_v54  ;;  %8155 = vst.msk [vmem:[#allocation4 + $0x90] sm:$0xff] %vm629_vm3, %v8049_v50  ;;  %v8019_v5 = vadd.f32 %v17868_v42, %v7980_v56  ;;  %8189 = vst.msk [vmem:[#allocation5 + $0x48] sm:$0xff] %vm629_vm3, %v16134_v4  ;;  %v7979_v0 = vld [vmem:[#allocation5 + $0x40] sm:$0xff]  ;;  %v7818_v2 = vpop.f32.mrf.mxu1 }
 0x33a   : > { %v17936_v6 = vld [vmem:[#allocation4 + $0x47] sm:$0xff]  ;;  %8188 = vst.msk [vmem:[#allocation5 + $0x40] sm:$0xff] %vm629_vm3, %v16134_v4  ;;  %7951 = vst.msk [vmem:[#allocation5 + $0x60] sm:$0xff] %vm629_vm3, %v7919_v60  ;;  %v7922_v9 = vadd.f32 %v7824_v62, %v7238_v61  ;;  %v7819_v10 = vadd.f32 %v7818_v2, %v7494_v1  ;;  %v17947_v13 = vld [vmem:[#allocation4 + $0x4f] sm:$0xff]  ;;  %v8018_v17 = vadd.f32 %v17868_v42, %v7979_v0  ;;  %v15544_v20 = vpop.f32.mrf.mxu0 }
 0x33b   : > { %v17938_v7 = vld [vmem:[#allocation4 + $0x48] sm:$0xff]  ;;  %v8051_v8 = vmax.f32 %v8019_v5, 0.0  ;;  %15624 = vmatprep.mubr.msk.f32.mxu0 %vm629_vm3, %v17936_v6  ;;  %8154 = vst.msk [vmem:[#allocation4 + $0x88] sm:$0xff] %vm629_vm3, %v8048_v63  ;;  %v7982_v18 = vld [vmem:[#allocation5 + $0x58] sm:$0xff]  ;;  %v15594_v32 = vpop.f32.mrf.mxu1  ;;  %v17975_v34 = vld [vmem:[#allocation4 + $0x70] sm:$0xff] }
 0x33c   : > { %15674 = vmatprep.mubr.msk.f32.mxu1 %vm629_vm3, %v17938_v7  ;;  %15625 = vmatmul.mubr.msk.f32.gmra.mxu0 %vm629_vm3, %v17947_v13  ;;  %v8021_v33 = vadd.f32 %v17868_v42, %v7982_v18  ;;  %8191 = vst.msk [vmem:[#allocation5 + $0x58] sm:$0xff] %vm629_vm3, %v16134_v4  ;;  %7954 = vst.msk [vmem:[#allocation5 + $0x78] sm:$0xff] %vm629_vm3, %v7922_v9  ;;  %v7921_v16 = vadd.f32 %v7819_v10, %v7237_v19  ;;  %v8050_v12 = vmax.f32 %v8018_v17, 0.0  ;;  %v7504_v24 = vpop.f32.mrf.mxu0  ;;  %v7241_v5 = vld [vmem:[#allocation5 + $0x90] sm:$0xff]  ;;  %v7244_v0 = vld [vmem:[#allocation5 + $0xa8] sm:$0xff] }
 0x33d   : > { %15675 = vmatmul.mubr.msk.f32.gmra.mxu1 %vm629_vm3, %v17949_v14  ;;  %8157 = vst.msk [vmem:[#allocation4 + $0xb0] sm:$0xff] %vm629_vm3, %v8051_v8  ;;  %v7834_v28 = vadd.f32 %v15594_v32, %v15544_v20  ;;  %v7981_v21 = vld [vmem:[#allocation5 + $0x50] sm:$0xff]  ;;  %v7828_v25 = vpop.f32.mrf.mxu1 }
 0x33e   : > { %v17962_v26 = vld [vmem:[#allocation4 + $0x67] sm:$0xff]  ;;  %v8053_v15 = vmax.f32 %v8021_v33, 0.0  ;;  %8190 = vst.msk [vmem:[#allocation5 + $0x50] sm:$0xff] %vm629_vm3, %v16134_v4  ;;  %7953 = vst.msk [vmem:[#allocation5 + $0x70] sm:$0xff] %vm629_vm3, %v7921_v16  ;;  %v7829_v30 = vadd.f32 %v7828_v25, %v7504_v24  ;;  %v17973_v31 = vld [vmem:[#allocation4 + $0x6f] sm:$0xff]  ;;  %v8020_v35 = vadd.f32 %v17868_v42, %v7981_v21  ;;  %v15547_v38 = vpop.f32.mrf.mxu0 }
 0x33f   : > { %v17964_v27 = vld [vmem:[#allocation4 + $0x68] sm:$0xff]  ;;  %v7924_v29 = vadd.f32 %v7834_v28, %v7240_v11  ;;  %15627 = vmatprep.mubr.msk.f32.mxu0 %vm629_vm3, %v17962_v26  ;;  %8156 = vst.msk [vmem:[#allocation4 + $0xa8] sm:$0xff] %vm629_vm3, %v8050_v12  ;;  %v15597_v39 = vpop.f32.mrf.mxu1  ;;  %v7243_v12 = vld [vmem:[#allocation5 + $0xa0] sm:$0xff] }
 0x340   : > { %15677 = vmatprep.mubr.msk.f32.mxu1 %vm629_vm3, %v17964_v27  ;;  %v7984_v36 = vld [vmem:[#allocation5 + $0x68] sm:$0xff]  ;;  %15628 = vmatmul.mubr.msk.f32.gmra.mxu0 %vm629_vm3, %v17973_v31  ;;  %8159 = vst.msk [vmem:[#allocation4 + $0xd0] sm:$0xff] %vm629_vm3, %v8053_v15  ;;  %v7923_v22 = vadd.f32 %v7829_v30, %v7239_v37  ;;  %v7844_v48 = vadd.f32 %v15597_v39, %v15547_v38  ;;  %v8052_v41 = vmax.f32 %v8020_v35, 0.0  ;;  %v7514_v43 = vpop.f32.mrf.mxu0  ;;  %v18001_v58 = vld [vmem:[#allocation4 + $0x90] sm:$0xff] }
 0x341   : > { %15678 = vmatmul.mubr.msk.f32.gmra.mxu1 %vm629_vm3, %v17975_v34  ;;  %v8023_v40 = vadd.f32 %v17868_v42, %v7984_v36  ;;  %8193 = vst.msk [vmem:[#allocation5 + $0x68] sm:$0xff] %vm629_vm3, %v16134_v4  ;;  %7956 = vst.msk [vmem:[#allocation5 + $0x88] sm:$0xff] %vm629_vm3, %v7924_v29  ;;  %v7983_v23 = vld [vmem:[#allocation5 + $0x60] sm:$0xff]  ;;  %v7838_v44 = vpop.f32.mrf.mxu1  ;;  %v7246_v29 = vld [vmem:[#allocation5 + $0xb8] sm:$0xff] }
 0x342   : > { %v17988_v45 = vld [vmem:[#allocation4 + $0x87] sm:$0xff]  ;;  %8192 = vst.msk [vmem:[#allocation5 + $0x60] sm:$0xff] %vm629_vm3, %v16134_v4  ;;  %7955 = vst.msk [vmem:[#allocation5 + $0x80] sm:$0xff] %vm629_vm3, %v7923_v22  ;;  %v7926_v52 = vadd.f32 %v7844_v48, %v7242_v47  ;;  %v7839_v55 = vadd.f32 %v7838_v44, %v7514_v43  ;;  %v17999_v56 = vld [vmem:[#allocation4 + $0x8f] sm:$0xff]  ;;  %v8022_v59 = vadd.f32 %v17868_v42, %v7983_v23  ;;  %v15550_v60 = vpop.f32.mrf.mxu0 }
 0x343   : > { %v17990_v50 = vld [vmem:[#allocation4 + $0x88] sm:$0xff]  ;;  %v8055_v51 = vmax.f32 %v8023_v40, 0.0  ;;  %15630 = vmatprep.mubr.msk.f32.mxu0 %vm629_vm3, %v17988_v45  ;;  %8158 = vst.msk [vmem:[#allocation4 + $0xc8] sm:$0xff] %vm629_vm3, %v8052_v41  ;;  %v7986_v3 = vld [vmem:[#allocation5 + $0x78] sm:$0xff]  ;;  %v15600_v61 = vpop.f32.mrf.mxu1 }
 0x344   : > { %15680 = vmatprep.mubr.msk.f32.mxu1 %vm629_vm3, %v17990_v50  ;;  %15631 = vmatmul.mubr.msk.f32.gmra.mxu0 %vm629_vm3, %v17999_v56  ;;  %v8025_v62 = vadd.f32 %v17868_v42, %v7986_v3  ;;  %8195 = vst.msk [vmem:[#allocation5 + $0x78] sm:$0xff] %vm629_vm3, %v16134_v4  ;;  %7958 = vst.msk [vmem:[#allocation5 + $0x98] sm:$0xff] %vm629_vm3, %v7926_v52  ;;  %v7925_v63 = vadd.f32 %v7839_v55, %v7241_v5  ;;  %v8054_v2 = vmax.f32 %v8022_v59, 0.0  ;;  %v7524_v9 = vpop.f32.mrf.mxu0  ;;  %v18027_v16 = vld [vmem:[#allocation4 + $0xb0] sm:$0xff]  ;;  %v7248_v5 = vld [vmem:[#allocation5 + $0xc8] sm:$0xff] }
 0x345   : > { %15681 = vmatmul.mubr.msk.f32.gmra.mxu1 %vm629_vm3, %v18001_v58  ;;  %8161 = vst.msk [vmem:[#allocation4 + $0xf0] sm:$0xff] %vm629_vm3, %v8055_v51  ;;  %v7854_v1 = vadd.f32 %v15600_v61, %v15550_v60  ;;  %v7985_v8 = vld [vmem:[#allocation5 + $0x70] sm:$0xff]  ;;  %v7848_v10 = vpop.f32.mrf.mxu1 }
 0x346   : > { %v18014_v17 = vld [vmem:[#allocation4 + $0xa7] sm:$0xff]  ;;  %v8057_v19 = vmax.f32 %v8025_v62, 0.0  ;;  %8194 = vst.msk [vmem:[#allocation5 + $0x70] sm:$0xff] %vm629_vm3, %v16134_v4  ;;  %7957 = vst.msk [vmem:[#allocation5 + $0x90] sm:$0xff] %vm629_vm3, %v7925_v63  ;;  %v7849_v32 = vadd.f32 %v7848_v10, %v7524_v9  ;;  %v18025_v33 = vld [vmem:[#allocation4 + $0xaf] sm:$0xff]  ;;  %v8024_v11 = vadd.f32 %v17868_v42, %v7985_v8  ;;  %v15553_v21 = vpop.f32.mrf.mxu0 }
 0x347   : > { %v18016_v18 = vld [vmem:[#allocation4 + $0xa8] sm:$0xff]  ;;  %v7928_v20 = vadd.f32 %v7854_v1, %v7244_v0  ;;  %15633 = vmatprep.mubr.msk.f32.mxu0 %vm629_vm3, %v18014_v17  ;;  %8160 = vst.msk [vmem:[#allocation4 + $0xe8] sm:$0xff] %vm629_vm3, %v8054_v2  ;;  %v15603_v24 = vpop.f32.mrf.mxu1  ;;  %v18053_v23 = vld [vmem:[#allocation4 + $0xd0] sm:$0xff] }
 0x348   : > { %15683 = vmatprep.mubr.msk.f32.mxu1 %vm629_vm3, %v18016_v18  ;;  %v7988_v28 = vld [vmem:[#allocation5 + $0x88] sm:$0xff]  ;;  %15634 = vmatmul.mubr.msk.f32.gmra.mxu0 %vm629_vm3, %v18025_v33  ;;  %8163 = vst.msk [vmem:[#allocation4 + $0x110] sm:$0xff] %vm629_vm3, %v8057_v19  ;;  %v7927_v15 = vadd.f32 %v7849_v32, %v7243_v12  ;;  %v7864_v30 = vadd.f32 %v15603_v24, %v15553_v21  ;;  %v8056_v35 = vmax.f32 %v8024_v11, 0.0  ;;  %v7534_v37 = vpop.f32.mrf.mxu0  ;;  %v7245_v51 = vld [vmem:[#allocation5 + $0xb0] sm:$0xff] }
 0x349   : > { %15684 = vmatmul.mubr.msk.f32.gmra.mxu1 %vm629_vm3, %v18027_v16  ;;  %v8027_v25 = vadd.f32 %v17868_v42, %v7988_v28  ;;  %8197 = vst.msk [vmem:[#allocation5 + $0x88] sm:$0xff] %vm629_vm3, %v16134_v4  ;;  %7960 = vst.msk [vmem:[#allocation5 + $0xa8] sm:$0xff] %vm629_vm3, %v7928_v20  ;;  %v7987_v36 = vld [vmem:[#allocation5 + $0x80] sm:$0xff]  ;;  %v7858_v38 = vpop.f32.mrf.mxu1 }
 0x34a   : > { %v18040_v39 = vld [vmem:[#allocation4 + $0xc7] sm:$0xff]  ;;  %8196 = vst.msk [vmem:[#allocation5 + $0x80] sm:$0xff] %vm629_vm3, %v16134_v4  ;;  %7959 = vst.msk [vmem:[#allocation5 + $0xa0] sm:$0xff] %vm629_vm3, %v7927_v15  ;;  %v7930_v47 = vadd.f32 %v7864_v30, %v7246_v29  ;;  %v7859_v48 = vadd.f32 %v7858_v38, %v7534_v37  ;;  %v18051_v41 = vld [vmem:[#allocation4 + $0xcf] sm:$0xff]  ;;  %v8026_v43 = vadd.f32 %v17868_v42, %v7987_v36  ;;  %v15556_v52 = vpop.f32.mrf.mxu0 }
 0x34b   : > { %v18042_v40 = vld [vmem:[#allocation4 + $0xc8] sm:$0xff]  ;;  %v8059_v22 = vmax.f32 %v8027_v25, 0.0  ;;  %15636 = vmatprep.mubr.msk.f32.mxu0 %vm629_vm3, %v18040_v39  ;;  %8162 = vst.msk [vmem:[#allocation4 + $0x108] sm:$0xff] %vm629_vm3, %v8056_v35  ;;  %v7990_v44 = vld [vmem:[#allocation5 + $0x98] sm:$0xff]  ;;  %v15606_v55 = vpop.f32.mrf.mxu1  ;;  %v7247_v28 = vld [vmem:[#allocation5 + $0xc0] sm:$0xff] }
 0x34c   : > { %15686 = vmatprep.mubr.msk.f32.mxu1 %vm629_vm3, %v18042_v40  ;;  %15637 = vmatmul.mubr.msk.f32.gmra.mxu0 %vm629_vm3, %v18051_v41  ;;  %v8029_v59 = vadd.f32 %v17868_v42, %v7990_v44  ;;  %8199 = vst.msk [vmem:[#allocation5 + $0x98] sm:$0xff] %vm629_vm3, %v16134_v4  ;;  %7962 = vst.msk [vmem:[#allocation5 + $0xb8] sm:$0xff] %vm629_vm3, %v7930_v47  ;;  %v7929_v3 = vadd.f32 %v7859_v48, %v7245_v51  ;;  %v8058_v61 = vmax.f32 %v8026_v43, 0.0  ;;  %v7544_v63 = vpop.f32.mrf.mxu0  ;;  %v18079_v20 = vld [vmem:[#allocation4 + $0xf0] sm:$0xff]  ;;  %v7250_v15 = vld [vmem:[#allocation5 + $0xd8] sm:$0xff] }
 0x34d   : > { %15687 = vmatmul.mubr.msk.f32.gmra.mxu1 %vm629_vm3, %v18053_v23  ;;  %8165 = vst.msk [vmem:[#allocation4 + $0x130] sm:$0xff] %vm629_vm3, %v8059_v22  ;;  %v7874_v60 = vadd.f32 %v15606_v55, %v15556_v52  ;;  %v7989_v62 = vld [vmem:[#allocation5 + $0x90] sm:$0xff]  ;;  %v7868_v0 = vpop.f32.mrf.mxu1 }
 0x34e   : > { %v18066_v1 = vld [vmem:[#allocation4 + $0xe7] sm:$0xff]  ;;  %v8061_v8 = vmax.f32 %v8029_v59, 0.0  ;;  %8198 = vst.msk [vmem:[#allocation5 + $0x90] sm:$0xff] %vm629_vm3, %v16134_v4  ;;  %7961 = vst.msk [vmem:[#allocation5 + $0xb0] sm:$0xff] %vm629_vm3, %v7929_v3  ;;  %v7869_v10 = vadd.f32 %v7868_v0, %v7544_v63  ;;  %v18077_v19 = vld [vmem:[#allocation4 + $0xef] sm:$0xff]  ;;  %v8028_v32 = vadd.f32 %v17868_v42, %v7989_v62  ;;  %v15559_v12 = vpop.f32.mrf.mxu0 }
 0x34f   : > { %v18068_v2 = vld [vmem:[#allocation4 + $0xe8] sm:$0xff]  ;;  %v7932_v9 = vadd.f32 %v7874_v60, %v7248_v5  ;;  %15639 = vmatprep.mubr.msk.f32.mxu0 %vm629_vm3, %v18066_v1  ;;  %8164 = vst.msk [vmem:[#allocation4 + $0x128] sm:$0xff] %vm629_vm3, %v8058_v61  ;;  %v15609_v21 = vpop.f32.mrf.mxu1  ;;  %v18105_v51 = vld [vmem:[#allocation4 + $0x110] sm:$0xff] }
 0x350   : > { %15689 = vmatprep.mubr.msk.f32.mxu1 %vm629_vm3, %v18068_v2  ;;  %v7992_v11 = vld [vmem:[#allocation5 + $0xa8] sm:$0xff]  ;;  %15640 = vmatmul.mubr.msk.f32.gmra.mxu0 %vm629_vm3, %v18077_v19  ;;  %8167 = vst.msk [vmem:[#allocation4 + $0x150] sm:$0xff] %vm629_vm3, %v8061_v8  ;;  %v7931_v25 = vadd.f32 %v7869_v10, %v7247_v28  ;;  %v7884_v29 = vadd.f32 %v15609_v21, %v15559_v12  ;;  %v8060_v30 = vmax.f32 %v8028_v32, 0.0  ;;  %v7554_v36 = vpop.f32.mrf.mxu0  ;;  %v7249_v59 = vld [vmem:[#allocation5 + $0xd0] sm:$0xff] }
 0x351   : > { %15690 = vmatmul.mubr.msk.f32.gmra.mxu1 %vm629_vm3, %v18079_v20  ;;  %v8031_v24 = vadd.f32 %v17868_v42, %v7992_v11  ;;  %8201 = vst.msk [vmem:[#allocation5 + $0xa8] sm:$0xff] %vm629_vm3, %v16134_v4  ;;  %7964 = vst.msk [vmem:[#allocation5 + $0xc8] sm:$0xff] %vm629_vm3, %v7932_v9  ;;  %v7991_v35 = vld [vmem:[#allocation5 + $0xa0] sm:$0xff]  ;;  %v7878_v37 = vpop.f32.mrf.mxu1  ;;  %v7252_v62 = vld [vmem:[#allocation5 + $0xe8] sm:$0xff] }
 0x352   : > { %v18092_v38 = vld [vmem:[#allocation4 + $0x107] sm:$0xff]  ;;  %8200 = vst.msk [vmem:[#allocation5 + $0xa0] sm:$0xff] %vm629_vm3, %v16134_v4  ;;  %7963 = vst.msk [vmem:[#allocation5 + $0xc0] sm:$0xff] %vm629_vm3, %v7931_v25  ;;  %v7934_v48 = vadd.f32 %v7884_v29, %v7250_v15  ;;  %v7879_v43 = vadd.f32 %v7878_v37, %v7554_v36  ;;  %v18103_v44 = vld [vmem:[#allocation4 + $0x10f] sm:$0xff]  ;;  %v8030_v52 = vadd.f32 %v17868_v42, %v7991_v35  ;;  %v15562_v3 = vpop.f32.mrf.mxu0 }
 0x353   : > { %v18094_v22 = vld [vmem:[#allocation4 + $0x108] sm:$0xff]  ;;  %v8063_v47 = vmax.f32 %v8031_v24, 0.0  ;;  %15642 = vmatprep.mubr.msk.f32.mxu0 %vm629_vm3, %v18092_v38  ;;  %8166 = vst.msk [vmem:[#allocation4 + $0x148] sm:$0xff] %vm629_vm3, %v8060_v30  ;;  %v7994_v55 = vld [vmem:[#allocation5 + $0xb8] sm:$0xff]  ;;  %v15612_v5 = vpop.f32.mrf.mxu1  ;;  %v7251_v30 = vld [vmem:[#allocation5 + $0xe0] sm:$0xff] }
 0x354   : > { %15692 = vmatprep.mubr.msk.f32.mxu1 %vm629_vm3, %v18094_v22  ;;  %15643 = vmatmul.mubr.msk.f32.gmra.mxu0 %vm629_vm3, %v18103_v44  ;;  %v8033_v60 = vadd.f32 %v17868_v42, %v7994_v55  ;;  %8203 = vst.msk [vmem:[#allocation5 + $0xb8] sm:$0xff] %vm629_vm3, %v16134_v4  ;;  %7966 = vst.msk [vmem:[#allocation5 + $0xd8] sm:$0xff] %vm629_vm3, %v7934_v48  ;;  %v7933_v61 = vadd.f32 %v7879_v43, %v7249_v59  ;;  %v8062_v0 = vmax.f32 %v8030_v52, 0.0  ;;  %v7564_v9 = vpop.f32.mrf.mxu0  ;;  %v18131_v25 = vld [vmem:[#allocation4 + $0x130] sm:$0xff]  ;;  %v7254_v48 = vld [vmem:[#allocation5 + $0xf8] sm:$0xff] }
 0x355   : > { %15693 = vmatmul.mubr.msk.f32.gmra.mxu1 %vm629_vm3, %v18105_v51  ;;  %8169 = vst.msk [vmem:[#allocation4 + $0x170] sm:$0xff] %vm629_vm3, %v8063_v47  ;;  %v7894_v63 = vadd.f32 %v15612_v5, %v15562_v3  ;;  %v7993_v8 = vld [vmem:[#allocation5 + $0xb0] sm:$0xff]  ;;  %v7888_v10 = vpop.f32.mrf.mxu1 }
 0x356   : > { %v18118_v32 = vld [vmem:[#allocation4 + $0x127] sm:$0xff]  ;;  %v8065_v28 = vmax.f32 %v8033_v60, 0.0  ;;  %8202 = vst.msk [vmem:[#allocation5 + $0xb0] sm:$0xff] %vm629_vm3, %v16134_v4  ;;  %7965 = vst.msk [vmem:[#allocation5 + $0xd0] sm:$0xff] %vm629_vm3, %v7933_v61  ;;  %v7889_v21 = vadd.f32 %v7888_v10, %v7564_v9  ;;  %v18129_v24 = vld [vmem:[#allocation4 + $0x12f] sm:$0xff]  ;;  %v8032_v15 = vadd.f32 %v17868_v42, %v7993_v8  ;;  %v15565_v35 = vpop.f32.mrf.mxu0 }
 0x357   : > { %v18120_v11 = vld [vmem:[#allocation4 + $0x128] sm:$0xff]  ;;  %v7936_v12 = vadd.f32 %v7894_v63, %v7252_v62  ;;  %15645 = vmatprep.mubr.msk.f32.mxu0 %vm629_vm3, %v18118_v32  ;;  %8168 = vst.msk [vmem:[#allocation4 + $0x168] sm:$0xff] %vm629_vm3, %v8062_v0  ;;  %v15615_v36 = vpop.f32.mrf.mxu1  ;;  %v18157_v8 = vld [vmem:[#allocation4 + $0x150] sm:$0xff] }
 0x358   : > { %15695 = vmatprep.mubr.msk.f32.mxu1 %vm629_vm3, %v18120_v11  ;;  %v7996_v29 = vld [vmem:[#allocation5 + $0xc8] sm:$0xff]  ;;  %15646 = vmatmul.mubr.msk.f32.gmra.mxu0 %vm629_vm3, %v18129_v24  ;;  %8171 = vst.msk [vmem:[#allocation4 + $0x190] sm:$0xff] %vm629_vm3, %v8065_v28  ;;  %v7935_v47 = vadd.f32 %v7889_v21, %v7251_v30  ;;  %v7904_v43 = vadd.f32 %v15615_v36, %v15565_v35  ;;  %v8064_v52 = vmax.f32 %v8032_v15, 0.0  ;;  %v7574_v59 = vpop.f32.mrf.mxu0  ;;  %v7253_v28 = vld [vmem:[#allocation5 + $0xf0] sm:$0xff] }
 0x359   : > { %15696 = vmatmul.mubr.msk.f32.gmra.mxu1 %vm629_vm3, %v18131_v25  ;;  %v8035_v37 = vadd.f32 %v17868_v42, %v7996_v29  ;;  %8205 = vst.msk [vmem:[#allocation5 + $0xc8] sm:$0xff] %vm629_vm3, %v16134_v4  ;;  %7968 = vst.msk [vmem:[#allocation5 + $0xe8] sm:$0xff] %vm629_vm3, %v7936_v12  ;;  %v7995_v55 = vld [vmem:[#allocation5 + $0xc0] sm:$0xff]  ;;  %v7898_v3 = vpop.f32.mrf.mxu1 }
 0x35a   : > { %v18144_v5 = vld [vmem:[#allocation4 + $0x147] sm:$0xff]  ;;  %8204 = vst.msk [vmem:[#allocation5 + $0xc0] sm:$0xff] %vm629_vm3, %v16134_v4  ;;  %7967 = vst.msk [vmem:[#allocation5 + $0xe0] sm:$0xff] %vm629_vm3, %v7935_v47  ;;  %v7938_v62 = vadd.f32 %v7904_v43, %v7254_v48  ;;  %v7899_v63 = vadd.f32 %v7898_v3, %v7574_v59  ;;  %v18155_v0 = vld [vmem:[#allocation4 + $0x14f] sm:$0xff]  ;;  %v8034_v9 = vadd.f32 %v17868_v42, %v7995_v55 }
 0x35b   : > { %v18146_v60 = vld [vmem:[#allocation4 + $0x148] sm:$0xff]  ;;  %v8067_v61 = vmax.f32 %v8035_v37, 0.0  ;;  %15648 = vmatprep.mubr.msk.f32.mxu0 %vm629_vm3, %v18144_v5  ;;  %8170 = vst.msk [vmem:[#allocation4 + $0x188] sm:$0xff] %vm629_vm3, %v8064_v52  ;;  %v7998_v10 = vld [vmem:[#allocation5 + $0xd8] sm:$0xff] }
 0x35c   : > { %15698 = vmatprep.mubr.msk.f32.mxu1 %vm629_vm3, %v18146_v60  ;;  %15649 = vmatmul.mubr.msk.f32.gmra.mxu0 %vm629_vm3, %v18155_v0  ;;  %v8037_v12 = vadd.f32 %v17868_v42, %v7998_v10  ;;  %8207 = vst.msk [vmem:[#allocation5 + $0xd8] sm:$0xff] %vm629_vm3, %v16134_v4  ;;  %7970 = vst.msk [vmem:[#allocation5 + $0xf8] sm:$0xff] %vm629_vm3, %v7938_v62  ;;  %v7937_v21 = vadd.f32 %v7899_v63, %v7253_v28  ;;  %v8066_v15 = vmax.f32 %v8034_v9, 0.0  ;;  %v18183_v47 = vld [vmem:[#allocation4 + $0x170] sm:$0xff] }
 0x35d   : > { %15699 = vmatmul.mubr.msk.f32.gmra.mxu1 %vm629_vm3, %v18157_v8  ;;  %8173 = vst.msk [vmem:[#allocation4 + $0x1b0] sm:$0xff] %vm629_vm3, %v8067_v61  ;;  %v7997_v29 = vld [vmem:[#allocation5 + $0xd0] sm:$0xff] }
 0x35e   : > { %v18170_v30 = vld [vmem:[#allocation4 + $0x167] sm:$0xff]  ;;  %v8069_v36 = vmax.f32 %v8037_v12, 0.0  ;;  %8206 = vst.msk [vmem:[#allocation5 + $0xd0] sm:$0xff] %vm629_vm3, %v16134_v4  ;;  %7969 = vst.msk [vmem:[#allocation5 + $0xf0] sm:$0xff] %vm629_vm3, %v7937_v21  ;;  %v18181_v37 = vld [vmem:[#allocation4 + $0x16f] sm:$0xff]  ;;  %v8036_v48 = vadd.f32 %v17868_v42, %v7997_v29 }
 0x35f   : > { %v18172_v35 = vld [vmem:[#allocation4 + $0x168] sm:$0xff]  ;;  %15651 = vmatprep.mubr.msk.f32.mxu0 %vm629_vm3, %v18170_v30  ;;  %8172 = vst.msk [vmem:[#allocation4 + $0x1a8] sm:$0xff] %vm629_vm3, %v8066_v15  ;;  %v18207_v9 = vld [vmem:[#allocation4 + $0x190] sm:$0xff] }
 0x360   : > { %15701 = vmatprep.mubr.msk.f32.mxu1 %vm629_vm3, %v18172_v35  ;;  %v8000_v43 = vld [vmem:[#allocation5 + $0xe8] sm:$0xff]  ;;  %15652 = vmatmul.mubr.msk.f32.gmra.mxu0 %vm629_vm3, %v18181_v37  ;;  %8175 = vst.msk [vmem:[#allocation4 + $0x1d0] sm:$0xff] %vm629_vm3, %v8069_v36  ;;  %v8068_v55 = vmax.f32 %v8036_v48, 0.0 }
 0x361   : > { %15702 = vmatmul.mubr.msk.f32.gmra.mxu1 %vm629_vm3, %v18183_v47  ;;  %v8039_v52 = vadd.f32 %v17868_v42, %v8000_v43  ;;  %8209 = vst.msk [vmem:[#allocation5 + $0xe8] sm:$0xff] %vm629_vm3, %v16134_v4  ;;  %v7999_v59 = vld [vmem:[#allocation5 + $0xe0] sm:$0xff] }
 0x362   : > { %v18195_v3 = vld [vmem:[#allocation4 + $0x187] sm:$0xff]  ;;  %8208 = vst.msk [vmem:[#allocation5 + $0xe0] sm:$0xff] %vm629_vm3, %v16134_v4  ;;  %v18205_v63 = vld [vmem:[#allocation4 + $0x18f] sm:$0xff]  ;;  %8174 = vst.msk [vmem:[#allocation4 + $0x1c8] sm:$0xff] %vm629_vm3, %v8068_v55  ;;  %v8038_v10 = vadd.f32 %v17868_v42, %v7999_v59 }
 0x363   : > { %v18197_v61 = vld [vmem:[#allocation4 + $0x188] sm:$0xff]  ;;  %v8071_v62 = vmax.f32 %v8039_v52, 0.0  ;;  %15654 = vmatprep.mubr.msk.f32.mxu0 %vm629_vm3, %v18195_v3  ;;  %v8002_v28 = vld [vmem:[#allocation5 + $0xf8] sm:$0xff] }
 0x364   : > { %15704 = vmatprep.mubr.msk.f32.mxu1 %vm629_vm3, %v18197_v61  ;;  %15655 = vmatmul.mubr.msk.f32.gmra.mxu0 %vm629_vm3, %v18205_v63  ;;  %v8041_v12 = vadd.f32 %v17868_v42, %v8002_v28  ;;  %8211 = vst.msk [vmem:[#allocation5 + $0xf8] sm:$0xff] %vm629_vm3, %v16134_v4  ;;  %v8070_v21 = vmax.f32 %v8038_v10, 0.0  ;;  %v18231_v52 = vld [vmem:[#allocation4 + $0x1b0] sm:$0xff] }
 0x365   : > { %15705 = vmatmul.mubr.msk.f32.gmra.mxu1 %vm629_vm3, %v18207_v9  ;;  %8177 = vst.msk [vmem:[#allocation4 + $0x1f0] sm:$0xff] %vm629_vm3, %v8071_v62  ;;  %v8001_v15 = vld [vmem:[#allocation5 + $0xf0] sm:$0xff]  ;;  %19252 = vst [vmem:[#allocation6_spill] sm:$0xff] %v18231_v52 }
 0x366   : > { %v18219_v29 = vld [vmem:[#allocation4 + $0x1a7] sm:$0xff]  ;;  %v8073_v48 = vmax.f32 %v8041_v12, 0.0  ;;  %8210 = vst.msk [vmem:[#allocation5 + $0xf0] sm:$0xff] %vm629_vm3, %v16134_v4  ;;  %v18229_v43 = vld [vmem:[#allocation4 + $0x1af] sm:$0xff]  ;;  %8176 = vst.msk [vmem:[#allocation4 + $0x1e8] sm:$0xff] %vm629_vm3, %v8070_v21  ;;  %v8040_v55 = vadd.f32 %v17868_v42, %v8001_v15 }
 0x367   : > { %v18221_v36 = vld [vmem:[#allocation4 + $0x1a8] sm:$0xff]  ;;  %15657 = vmatprep.mubr.msk.f32.mxu0 %vm629_vm3, %v18219_v29  ;;  %v18250_v42 = vld [vmem:[#allocation4 + $0x1d0] sm:$0xff] }
 0x368   : > { %15707 = vmatprep.mubr.msk.f32.mxu1 %vm629_vm3, %v18221_v36  ;;  %15658 = vmatmul.mubr.msk.f32.gmra.mxu0 %vm629_vm3, %v18229_v43  ;;  %8179 = vst.msk [vmem:[#allocation4 + $0x210] sm:$0xff] %vm629_vm3, %v8073_v48  ;;  %v8072_v4 = vmax.f32 %v8040_v55, 0.0  ;;  %19254 = vst [vmem:[#allocation8_spill] sm:$0xff] %v18250_v42  ;;  %v9113_v28 = vld [vmem:[#allocation4 + $0x9] sm:$0xff]  ;;  %v9114_v55 = vld [vmem:[#allocation4 + $0x11] sm:$0xff] }
 0x369   : > { %15708 = vmatmul.mubr.msk.f32.gmra.mxu1 %vm629_vm3, %v18231_v52  ;;  %v18240_v59 = vld [vmem:[#allocation4 + $0x1c7] sm:$0xff]  ;;  %v18244_v10 = vld [vmem:[#allocation4 + $0x1cf] sm:$0xff] }
 0x36a   : > { %v18242_v62 = vld [vmem:[#allocation4 + $0x1c8] sm:$0xff]  ;;  %15660 = vmatprep.mubr.msk.f32.mxu0 %vm629_vm3, %v18240_v59  ;;  %8178 = vst.msk [vmem:[#allocation4 + $0x208] sm:$0xff] %vm629_vm3, %v8072_v4 }
 0x36b   : > { %19253 = vst [vmem:[#allocation7_spill] sm:$0xff] %v18242_v62  ;;  %15710 = vmatprep.mubr.msk.f32.mxu1 %vm629_vm3, %v18242_v62  ;;  %v8245_v4 = vld [vmem:[#allocation5 + $0x8] sm:$0xff]  ;;  %v8244_v62 = vld [vmem:[#allocation5] sm:$0xff] }
 0x36c   : > { %15661 = vmatmul.mubr.msk.f32.gmra.mxu0 %vm629_vm3, %v18244_v10  ;;  %v18267_v48 = vld [vmem:[#allocation4 + $0x1f0] sm:$0xff] }
 0x36d   : > { %15711 = vmatmul.mubr.msk.f32.gmra.mxu1 %vm629_vm3, %v18250_v42  ;;  %v18257_v12 = vld [vmem:[#allocation4 + $0x1e7] sm:$0xff]  ;;  %v18261_v15 = vld [vmem:[#allocation4 + $0x1ef] sm:$0xff]  ;;  %19256 = vst [vmem:[#allocation10_spill] sm:$0xff] %v18267_v48  ;;  %v15620_v42 = vpop.f32.mrf.mxu0 }
 0x36e   : > { %v18259_v21 = vld [vmem:[#allocation4 + $0x1e8] sm:$0xff]  ;;  %15663 = vmatprep.mubr.msk.f32.mxu0 %vm629_vm3, %v18257_v12  ;;  %v8599_v52 = vadd.f32 %v15620_v42, %v8245_v4  ;;  %v16125_v42 = vld [vmem:[%s19241_s5 + $0x20] sm:$0xff] }
 0x36f   : > { %19255 = vst [vmem:[#allocation9_spill] sm:$0xff] %v18259_v21  ;;  %15713 = vmatprep.mubr.msk.f32.mxu1 %vm629_vm3, %v18259_v21  ;;  %v18279_v21 = vld [vmem:[#allocation4 + $0x29] sm:$0xff] }
 0x370   : > { %15664 = vmatmul.mubr.msk.f32.gmra.mxu0 %vm629_vm3, %v18261_v15  ;;  %8631 = vst.msk [vmem:[#allocation5 + $0x8] sm:$0xff] %vm629_vm3, %v8599_v52  ;;  %v18309_v52 = vld [vmem:[#allocation4 + $0x49] sm:$0xff] }
 0x371   : > { %15714 = vmatmul.mubr.msk.f32.gmra.mxu1 %vm629_vm3, %v18267_v48  ;;  %15718 = vmatprep.mubr.msk.f32.mxu0 %vm629_vm3, %v9113_v28  ;;  %v18284_v48 = vld [vmem:[%s19241_s5 + $0x30] sm:$0xff]  ;;  %v8439_v28 = vpop.f32.mrf.mxu0 }
 0x372   : > { %15768 = vmatprep.mubr.msk.f32.mxu1 %vm629_vm3, %v17910_v46  ;;  %v18289_v46 = vld [vmem:[%s19241_s5 + $0x38] sm:$0xff] }
 0x374   : > { %15719 = vmatmul.mubr.msk.f32.vlgmr.msra.gmra.mxu0 %vm629_vm3, %v9114_v55  ;;  %v18300_v55 = vld [vmem:[#allocation4 + $0x31] sm:$0xff] }
 0x375   : > { %15769 = vmatmul.mubr.msk.f32.vlgmr.msra.gmra.mxu1 %vm629_vm3, %v17921_v53  ;;  %15817 = vmatpush3.msra.mxu0 %v16125_v42  ;;  %v8598_v53 = vadd.f32 %v8439_v28, %v8244_v62  ;;  %v18321_v62 = vld [vmem:[#allocation4 + $0x69] sm:$0xff]  ;;  %v18327_v42 = vld [vmem:[#allocation4 + $0x71] sm:$0xff] }
 0x376   : > { %15721 = vmatprep.mubr.msk.f32.mxu0 %vm629_vm3, %v18279_v21  ;;  %15771 = vmatprep.mubr.msk.f32.mxu1 %vm629_vm3, %v17936_v6  ;;  %v18315_v6 = vld [vmem:[#allocation4 + $0x51] sm:$0xff] }
 0x377   : > { %15867 = vmatpush3.msra.mxu1 %v17878_v57  ;;  %15916 = vmatprep.subr.mxu0 %v18284_v48  ;;  %8630 = vst.msk [vmem:[#allocation5] sm:$0xff] %vm629_vm3, %v8598_v53  ;;  %v15670_v57 = vpop.f32.mrf.mxu1 }
 0x378   : > { %15966 = vmatprep.subr.mxu1 %v18289_v46  ;;  %15722 = vmatmul.mubr.msk.f32.gmra.mxu0 %vm629_vm3, %v18300_v55 }
 0x379   : > { %15772 = vmatmul.mubr.msk.f32.gmra.mxu1 %vm629_vm3, %v17947_v13  ;;  %15724 = vmatprep.mubr.msk.f32.mxu0 %vm629_vm3, %v18309_v52  ;;  %v8695_v13 = vld [vmem:[#allocation5 + $0x8] sm:$0xff]  ;;  %v8890_v28 = vpop.f32.mrf.mxu1 }
 0x37a   : > { %15774 = vmatprep.mubr.msk.f32.mxu1 %vm629_vm3, %v17962_v26  ;;  %v9050_v4 = vadd.f32 %v15670_v57, %v8695_v13  ;;  %v18347_v57 = vld [vmem:[#allocation4 + $0xa9] sm:$0xff] }
 0x37b   : > { %v18469_v13 = vld [vmem:[#allocation4 + $0x207] sm:$0xff] }
 0x37c   : > { %15725 = vmatmul.mubr.msk.f32.gmra.mxu0 %vm629_vm3, %v18315_v6  ;;  %9082 = vst.msk [vmem:[#allocation5 + $0x8] sm:$0xff] %vm629_vm3, %v9050_v4  ;;  %v10924_v4 = vld [vmem:[#allocation4 + $0xa7] sm:$0xff] }
 0x37d   : > { %15775 = vmatmul.mubr.msk.f32.gmra.mxu1 %vm629_vm3, %v17973_v31  ;;  %15727 = vmatprep.mubr.msk.f32.mxu0 %vm629_vm3, %v18321_v62  ;;  %v18334_v31 = vld [vmem:[#allocation4 + $0x89] sm:$0xff] }
 0x37e   : > { %15777 = vmatprep.mubr.msk.f32.mxu1 %vm629_vm3, %v17988_v45  ;;  %v8694_v26 = vld [vmem:[#allocation5] sm:$0xff]  ;;  %v18341_v45 = vld [vmem:[#allocation4 + $0x91] sm:$0xff] }
 0x37f   : > { %v9049_v53 = vadd.f32 %v8890_v28, %v8694_v26  ;;  %v11375_v26 = vld [vmem:[#allocation4 + $0xa8] sm:$0xff]  ;;  %v8248_v28 = vld [vmem:[#allocation5 + $0x20] sm:$0xff] }
 0x380   : > { %15728 = vmatmul.mubr.msk.f32.gmra.mxu0 %vm629_vm3, %v18327_v42 }
 0x381   : > { %15778 = vmatmul.mubr.msk.f32.gmra.mxu1 %vm629_vm3, %v17999_v56  ;;  %15730 = vmatprep.mubr.msk.f32.mxu0 %vm629_vm3, %v18334_v31  ;;  %9081 = vst.msk [vmem:[#allocation5] sm:$0xff] %vm629_vm3, %v9049_v53  ;;  %v18353_v56 = vld [vmem:[#allocation4 + $0xb1] sm:$0xff] }
 0x382   : > { %15780 = vmatprep.mubr.msk.f32.mxu1 %vm629_vm3, %v18014_v17  ;;  %v18359_v17 = vld [vmem:[#allocation4 + $0xc9] sm:$0xff] }
 0x384   : > { %15731 = vmatmul.mubr.msk.f32.gmra.mxu0 %vm629_vm3, %v18341_v45 }
 0x385   : > { %15781 = vmatmul.mubr.msk.f32.gmra.mxu1 %vm629_vm3, %v18025_v33  ;;  %15733 = vmatprep.mubr.msk.f32.mxu0 %vm629_vm3, %v18347_v57  ;;  %v18365_v33 = vld [vmem:[#allocation4 + $0xd1] sm:$0xff] }
 0x386   : > { %15783 = vmatprep.mubr.msk.f32.mxu1 %vm629_vm3, %v18040_v39  ;;  %v18371_v39 = vld [vmem:[#allocation4 + $0xe9] sm:$0xff] }
 0x388   : > { %15734 = vmatmul.mubr.msk.f32.gmra.mxu0 %vm629_vm3, %v18353_v56 }
 0x389   : > { %15784 = vmatmul.mubr.msk.f32.gmra.mxu1 %vm629_vm3, %v18051_v41  ;;  %15736 = vmatprep.mubr.msk.f32.mxu0 %vm629_vm3, %v18359_v17  ;;  %v18377_v41 = vld [vmem:[#allocation4 + $0xf1] sm:$0xff] }
 0x38a   : > { %15786 = vmatprep.mubr.msk.f32.mxu1 %vm629_vm3, %v18066_v1  ;;  %v18383_v1 = vld [vmem:[#allocation4 + $0x109] sm:$0xff] }
 0x38c   : > { %15737 = vmatmul.mubr.msk.f32.gmra.mxu0 %vm629_vm3, %v18365_v33 }
 0x38d   : > { %15787 = vmatmul.mubr.msk.f32.gmra.mxu1 %vm629_vm3, %v18077_v19  ;;  %15739 = vmatprep.mubr.msk.f32.mxu0 %vm629_vm3, %v18371_v39  ;;  %v18389_v19 = vld [vmem:[#allocation4 + $0x111] sm:$0xff] }
 0x38e   : > { %15789 = vmatprep.mubr.msk.f32.mxu1 %vm629_vm3, %v18092_v38  ;;  %v18395_v38 = vld [vmem:[#allocation4 + $0x129] sm:$0xff] }
 0x390   : > { %15740 = vmatmul.mubr.msk.f32.gmra.mxu0 %vm629_vm3, %v18377_v41 }
 0x391   : > { %15790 = vmatmul.mubr.msk.f32.gmra.mxu1 %vm629_vm3, %v18103_v44  ;;  %15742 = vmatprep.mubr.msk.f32.mxu0 %vm629_vm3, %v18383_v1  ;;  %v18401_v44 = vld [vmem:[#allocation4 + $0x131] sm:$0xff] }
 0x392   : > { %15792 = vmatprep.mubr.msk.f32.mxu1 %vm629_vm3, %v18118_v32  ;;  %v18407_v32 = vld [vmem:[#allocation4 + $0x149] sm:$0xff] }
 0x394   : > { %15743 = vmatmul.mubr.msk.f32.gmra.mxu0 %vm629_vm3, %v18389_v19 }
 0x395   : > { %15793 = vmatmul.mubr.msk.f32.gmra.mxu1 %vm629_vm3, %v18129_v24  ;;  %15745 = vmatprep.mubr.msk.f32.mxu0 %vm629_vm3, %v18395_v38  ;;  %v18413_v24 = vld [vmem:[#allocation4 + $0x151] sm:$0xff] }
 0x396   : > { %15795 = vmatprep.mubr.msk.f32.mxu1 %vm629_vm3, %v18144_v5  ;;  %v18419_v5 = vld [vmem:[#allocation4 + $0x169] sm:$0xff] }
 0x398   : > { %15746 = vmatmul.mubr.msk.f32.gmra.mxu0 %vm629_vm3, %v18401_v44 }
 0x399   : > { %15796 = vmatmul.mubr.msk.f32.gmra.mxu1 %vm629_vm3, %v18155_v0  ;;  %15748 = vmatprep.mubr.msk.f32.mxu0 %vm629_vm3, %v18407_v32  ;;  %v18425_v0 = vld [vmem:[#allocation4 + $0x171] sm:$0xff] }
 0x39a   : > { %15798 = vmatprep.mubr.msk.f32.mxu1 %vm629_vm3, %v18170_v30  ;;  %v18431_v30 = vld [vmem:[#allocation4 + $0x189] sm:$0xff] }
 0x39c   : > { %15749 = vmatmul.mubr.msk.f32.gmra.mxu0 %vm629_vm3, %v18413_v24 }
 0x39d   : > { %15799 = vmatmul.mubr.msk.f32.gmra.mxu1 %vm629_vm3, %v18181_v37  ;;  %15751 = vmatprep.mubr.msk.f32.mxu0 %vm629_vm3, %v18419_v5  ;;  %v18437_v37 = vld [vmem:[#allocation4 + $0x191] sm:$0xff] }
 0x39e   : > { %15801 = vmatprep.mubr.msk.f32.mxu1 %vm629_vm3, %v18195_v3  ;;  %v18443_v3 = vld [vmem:[#allocation4 + $0x1a9] sm:$0xff] }
 0x3a0   : > { %15752 = vmatmul.mubr.msk.f32.gmra.mxu0 %vm629_vm3, %v18425_v0 }
 0x3a1   : > { %15802 = vmatmul.mubr.msk.f32.gmra.mxu1 %vm629_vm3, %v18205_v63  ;;  %15754 = vmatprep.mubr.msk.f32.mxu0 %vm629_vm3, %v18431_v30  ;;  %v18449_v63 = vld [vmem:[#allocation4 + $0x1b1] sm:$0xff] }
 0x3a2   : > { %15804 = vmatprep.mubr.msk.f32.mxu1 %vm629_vm3, %v18219_v29  ;;  %v18455_v29 = vld [vmem:[#allocation4 + $0x1c9] sm:$0xff] }
 0x3a4   : > { %15755 = vmatmul.mubr.msk.f32.gmra.mxu0 %vm629_vm3, %v18437_v37 }
 0x3a5   : > { %15805 = vmatmul.mubr.msk.f32.gmra.mxu1 %vm629_vm3, %v18229_v43  ;;  %15757 = vmatprep.mubr.msk.f32.mxu0 %vm629_vm3, %v18443_v3  ;;  %v18461_v43 = vld [vmem:[#allocation4 + $0x1d1] sm:$0xff] }
 0x3a6   : > { %15807 = vmatprep.mubr.msk.f32.mxu1 %vm629_vm3, %v18240_v59  ;;  %v18467_v59 = vld [vmem:[#allocation4 + $0x1e9] sm:$0xff] }
 0x3a8   : > { %15758 = vmatmul.mubr.msk.f32.gmra.mxu0 %vm629_vm3, %v18449_v63 }
 0x3a9   : > { %15808 = vmatmul.mubr.msk.f32.gmra.mxu1 %vm629_vm3, %v18244_v10  ;;  %15760 = vmatprep.mubr.msk.f32.mxu0 %vm629_vm3, %v18455_v29  ;;  %v18475_v10 = vld [vmem:[#allocation4 + $0x1f1] sm:$0xff] }
 0x3aa   : > { %15810 = vmatprep.mubr.msk.f32.mxu1 %vm629_vm3, %v18257_v12  ;;  %v18477_v12 = vld [vmem:[#allocation4 + $0x20f] sm:$0xff] }
 0x3ac   : > { %15761 = vmatmul.mubr.msk.f32.gmra.mxu0 %vm629_vm3, %v18461_v43 }
 0x3ad   : > { %15811 = vmatmul.mubr.msk.f32.gmra.mxu1 %vm629_vm3, %v18261_v15  ;;  %15763 = vmatprep.mubr.msk.f32.mxu0 %vm629_vm3, %v18467_v59  ;;  %v18494_v15 = vld [vmem:[%s19241_s5 + $0x40] sm:$0xff] }
 0x3ae   : > { %15813 = vmatprep.mubr.msk.f32.mxu1 %vm629_vm3, %v18469_v13 }
 0x3b0   : > { %15764 = vmatmul.mubr.msk.f32.gmra.mxu0 %vm629_vm3, %v18475_v10 }
 0x3b1   : > { %15814 = vmatmul.mubr.msk.f32.gmra.mxu1 %vm629_vm3, %v18477_v12  ;;  %15818 = vmatprep.mubr.msk.f32.mxu0 %vm629_vm3, %v17912_v49  ;;  %v19257_v49 = vld [vmem:[#allocation6_spill] sm:$0xff] }
 0x3b2   : > { %15868 = vmatprep.mubr.msk.f32.mxu1 %vm629_vm3, %v18279_v21 }
 0x3b4   : > { %15819 = vmatmul.mubr.msk.f32.vlgmr.msra.gmra.mxu0 %vm629_vm3, %v17923_v54  ;;  %v19258_v54 = vld [vmem:[#allocation7_spill] sm:$0xff] }
 0x3b5   : > { %15869 = vmatmul.mubr.msk.f32.vlgmr.msra.gmra.mxu1 %vm629_vm3, %v18300_v55  ;;  %15917 = vmatpush3.msra.mxu0 %v18284_v48  ;;  %v8249_v48 = vld [vmem:[#allocation5 + $0x28] sm:$0xff] }
 0x3b6   : > { %15821 = vmatprep.mubr.msk.f32.mxu0 %vm629_vm3, %v17938_v7  ;;  %15871 = vmatprep.mubr.msk.f32.mxu1 %vm629_vm3, %v18309_v52  ;;  %v19259_v7 = vld [vmem:[#allocation8_spill] sm:$0xff] }
 0x3b7   : > { %15967 = vmatpush3.msra.mxu1 %v18289_v46  ;;  %16016 = vmatprep.subr.mxu0 %v18494_v15  ;;  %v10923_v55 = vld [vmem:[#allocation4 + $0x8f] sm:$0xff] }
 0x3b8   : > { %15822 = vmatmul.mubr.msk.f32.gmra.mxu0 %vm629_vm3, %v17949_v14  ;;  %v19260_v14 = vld [vmem:[#allocation9_spill] sm:$0xff]  ;;  %v11374_v52 = vld [vmem:[#allocation4 + $0x90] sm:$0xff] }
 0x3b9   : > { %15872 = vmatmul.mubr.msk.f32.gmra.mxu1 %vm629_vm3, %v18315_v6  ;;  %15824 = vmatprep.mubr.msk.f32.mxu0 %vm629_vm3, %v17964_v27  ;;  %v19261_v27 = vld [vmem:[#allocation10_spill] sm:$0xff] }
 0x3ba   : > { %15874 = vmatprep.mubr.msk.f32.mxu1 %vm629_vm3, %v18321_v62 }
 0x3bc   : > { %15825 = vmatmul.mubr.msk.f32.gmra.mxu0 %vm629_vm3, %v17975_v34  ;;  %v18611_v34 = vld [vmem:[#allocation4 + $0x208] sm:$0xff] }
 0x3bd   : > { %15875 = vmatmul.mubr.msk.f32.gmra.mxu1 %vm629_vm3, %v18327_v42  ;;  %15827 = vmatprep.mubr.msk.f32.mxu0 %vm629_vm3, %v17990_v50  ;;  %v10496_v50 = vld [vmem:[#allocation4 + $0x209] sm:$0xff] }
 0x3be   : > { %15877 = vmatprep.mubr.msk.f32.mxu1 %vm629_vm3, %v18334_v31 }
 0x3c0   : > { %15828 = vmatmul.mubr.msk.f32.gmra.mxu0 %vm629_vm3, %v18001_v58  ;;  %v18616_v58 = vld [vmem:[#allocation4 + $0x210] sm:$0xff] }
 0x3c1   : > { %15878 = vmatmul.mubr.msk.f32.gmra.mxu1 %vm629_vm3, %v18341_v45  ;;  %15830 = vmatprep.mubr.msk.f32.mxu0 %vm629_vm3, %v18016_v18  ;;  %v10497_v18 = vld [vmem:[#allocation4 + $0x211] sm:$0xff] }
 0x3c2   : > { %15880 = vmatprep.mubr.msk.f32.mxu1 %vm629_vm3, %v18347_v57  ;;  %v8251_v45 = vld [vmem:[#allocation5 + $0x38] sm:$0xff] }
 0x3c4   : > { %15831 = vmatmul.mubr.msk.f32.gmra.mxu0 %vm629_vm3, %v18027_v16  ;;  %v10918_v16 = vld [vmem:[#allocation4 + $0x47] sm:$0xff] }
 0x3c5   : > { %15881 = vmatmul.mubr.msk.f32.gmra.mxu1 %vm629_vm3, %v18353_v56  ;;  %15833 = vmatprep.mubr.msk.f32.mxu0 %vm629_vm3, %v18042_v40  ;;  %v11369_v40 = vld [vmem:[#allocation4 + $0x48] sm:$0xff] }
 0x3c6   : > { %15883 = vmatprep.mubr.msk.f32.mxu1 %vm629_vm3, %v18359_v17  ;;  %v10925_v56 = vld [vmem:[#allocation4 + $0xaf] sm:$0xff] }
 0x3c7   : > { %v11376_v17 = vld [vmem:[#allocation4 + $0xb0] sm:$0xff] }
 0x3c8   : > { %15834 = vmatmul.mubr.msk.f32.gmra.mxu0 %vm629_vm3, %v18053_v23  ;;  %v10919_v23 = vld [vmem:[#allocation4 + $0x4f] sm:$0xff] }
 0x3c9   : > { %15884 = vmatmul.mubr.msk.f32.gmra.mxu1 %vm629_vm3, %v18365_v33  ;;  %15836 = vmatprep.mubr.msk.f32.mxu0 %vm629_vm3, %v18068_v2  ;;  %v11370_v2 = vld [vmem:[#allocation4 + $0x50] sm:$0xff] }
 0x3ca   : > { %15886 = vmatprep.mubr.msk.f32.mxu1 %vm629_vm3, %v18371_v39 }
 0x3cc   : > { %15837 = vmatmul.mubr.msk.f32.gmra.mxu0 %vm629_vm3, %v18079_v20  ;;  %v10920_v20 = vld [vmem:[#allocation4 + $0x67] sm:$0xff] }
 0x3cd   : > { %15887 = vmatmul.mubr.msk.f32.gmra.mxu1 %vm629_vm3, %v18377_v41  ;;  %15839 = vmatprep.mubr.msk.f32.mxu0 %vm629_vm3, %v18094_v22  ;;  %v11371_v22 = vld [vmem:[#allocation4 + $0x68] sm:$0xff] }
 0x3ce   : > { %15889 = vmatprep.mubr.msk.f32.mxu1 %vm629_vm3, %v18383_v1  ;;  %v10926_v41 = vld [vmem:[#allocation4 + $0xc7] sm:$0xff] }
 0x3cf   : > { %v11377_v1 = vld [vmem:[#allocation4 + $0xc8] sm:$0xff] }
 0x3d0   : > { %15840 = vmatmul.mubr.msk.f32.gmra.mxu0 %vm629_vm3, %v18105_v51  ;;  %v8247_v51 = vld [vmem:[#allocation5 + $0x18] sm:$0xff] }
 0x3d1   : > { %15890 = vmatmul.mubr.msk.f32.gmra.mxu1 %vm629_vm3, %v18389_v19  ;;  %15842 = vmatprep.mubr.msk.f32.mxu0 %vm629_vm3, %v18120_v11  ;;  %v10921_v11 = vld [vmem:[#allocation4 + $0x6f] sm:$0xff] }
 0x3d2   : > { %15892 = vmatprep.mubr.msk.f32.mxu1 %vm629_vm3, %v18395_v38  ;;  %v8250_v19 = vld [vmem:[#allocation5 + $0x30] sm:$0xff] }
 0x3d4   : > { %15843 = vmatmul.mubr.msk.f32.gmra.mxu0 %vm629_vm3, %v18131_v25  ;;  %v11372_v25 = vld [vmem:[#allocation4 + $0x70] sm:$0xff] }
 0x3d5   : > { %15893 = vmatmul.mubr.msk.f32.gmra.mxu1 %vm629_vm3, %v18401_v44  ;;  %15845 = vmatprep.mubr.msk.f32.mxu0 %vm629_vm3, %v18146_v60 }
 0x3d6   : > { %15895 = vmatprep.mubr.msk.f32.mxu1 %vm629_vm3, %v18407_v32 }
 0x3d8   : > { %15846 = vmatmul.mubr.msk.f32.gmra.mxu0 %vm629_vm3, %v18157_v8 }
 0x3d9   : > { %15896 = vmatmul.mubr.msk.f32.gmra.mxu1 %vm629_vm3, %v18413_v24  ;;  %15848 = vmatprep.mubr.msk.f32.mxu0 %vm629_vm3, %v18172_v35  ;;  %v10922_v35 = vld [vmem:[#allocation4 + $0x87] sm:$0xff] }
 0x3da   : > { %15898 = vmatprep.mubr.msk.f32.mxu1 %vm629_vm3, %v18419_v5  ;;  %v8253_v5 = vld [vmem:[#allocation5 + $0x48] sm:$0xff] }
 0x3dc   : > { %15849 = vmatmul.mubr.msk.f32.gmra.mxu0 %vm629_vm3, %v18183_v47  ;;  %v11373_v47 = vld [vmem:[#allocation4 + $0x88] sm:$0xff] }
 0x3dd   : > { %15899 = vmatmul.mubr.msk.f32.gmra.mxu1 %vm629_vm3, %v18425_v0  ;;  %15851 = vmatprep.mubr.msk.f32.mxu0 %vm629_vm3, %v18197_v61  ;;  %v8246_v61 = vld [vmem:[#allocation5 + $0x10] sm:$0xff] }
 0x3de   : > { %15901 = vmatprep.mubr.msk.f32.mxu1 %vm629_vm3, %v18431_v30 }
 0x3e0   : > { %15852 = vmatmul.mubr.msk.f32.gmra.mxu0 %vm629_vm3, %v18207_v9 }
 0x3e1   : > { %15902 = vmatmul.mubr.msk.f32.gmra.mxu1 %vm629_vm3, %v18437_v37  ;;  %15854 = vmatprep.mubr.msk.f32.mxu0 %vm629_vm3, %v18221_v36  ;;  %v10927_v37 = vld [vmem:[#allocation4 + $0xcf] sm:$0xff] }
 0x3e2   : > { %15904 = vmatprep.mubr.msk.f32.mxu1 %vm629_vm3, %v18443_v3  ;;  %v11378_v3 = vld [vmem:[#allocation4 + $0xd0] sm:$0xff] }
 0x3e4   : > { %15855 = vmatmul.mubr.msk.f32.gmra.mxu0 %vm629_vm3, %v19257_v49 }
 0x3e5   : > { %15905 = vmatmul.mubr.msk.f32.gmra.mxu1 %vm629_vm3, %v18449_v63  ;;  %15857 = vmatprep.mubr.msk.f32.mxu0 %vm629_vm3, %v19258_v54  ;;  %v10928_v63 = vld [vmem:[#allocation4 + $0xe7] sm:$0xff] }
 0x3e6   : > { %15907 = vmatprep.mubr.msk.f32.mxu1 %vm629_vm3, %v18455_v29 }
 0x3e8   : > { %15858 = vmatmul.mubr.msk.f32.gmra.mxu0 %vm629_vm3, %v19259_v7 }
 0x3e9   : > { %15908 = vmatmul.mubr.msk.f32.gmra.mxu1 %vm629_vm3, %v18461_v43  ;;  %15860 = vmatprep.mubr.msk.f32.mxu0 %vm629_vm3, %v19260_v14 }
 0x3ea   : > { %15910 = vmatprep.mubr.msk.f32.mxu1 %vm629_vm3, %v18467_v59 }
 0x3ec   : > { %15861 = vmatmul.mubr.msk.f32.gmra.mxu0 %vm629_vm3, %v19261_v27 }
 0x3ed   : > { %15911 = vmatmul.mubr.msk.f32.gmra.mxu1 %vm629_vm3, %v18475_v10  ;;  %15863 = vmatprep.mubr.msk.f32.mxu0 %vm629_vm3, %v18611_v34  ;;  %v11379_v10 = vld [vmem:[#allocation4 + $0xe8] sm:$0xff] }
 0x3ee   : > { %15913 = vmatprep.mubr.msk.f32.mxu1 %vm629_vm3, %v10496_v50  ;;  %v8255_v50 = vld [vmem:[#allocation5 + $0x58] sm:$0xff] }
 0x3f0   : > { %15864 = vmatmul.mubr.msk.f32.gmra.mxu0 %vm629_vm3, %v18616_v58 }
 0x3f1   : > { %15914 = vmatmul.mubr.msk.f32.gmra.mxu1 %vm629_vm3, %v10497_v18  ;;  %15918 = vmatprep.mubr.msk.f32.mxu0 %vm629_vm3, %v10918_v16 }
 0x3f2   : > { %15968 = vmatprep.mubr.msk.f32.mxu1 %vm629_vm3, %v11369_v40  ;;  %v10929_v40 = vld [vmem:[#allocation4 + $0xef] sm:$0xff] }
 0x3f4   : > { %15919 = vmatmul.mubr.msk.f32.vlgmr.msra.gmra.mxu0 %vm629_vm3, %v10919_v23  ;;  %v11380_v23 = vld [vmem:[#allocation4 + $0xf0] sm:$0xff] }
 0x3f5   : > { %15969 = vmatmul.mubr.msk.f32.vlgmr.msra.gmra.mxu1 %vm629_vm3, %v11370_v2  ;;  %16017 = vmatpush3.msra.mxu0 %v18494_v15  ;;  %v8252_v15 = vld [vmem:[#allocation5 + $0x40] sm:$0xff] }
 0x3f6   : > { %15921 = vmatprep.mubr.msk.f32.mxu0 %vm629_vm3, %v10920_v20  ;;  %15971 = vmatprep.mubr.msk.f32.mxu1 %vm629_vm3, %v11371_v22  ;;  %v10930_v2 = vld [vmem:[#allocation4 + $0x107] sm:$0xff] }
 0x3f8   : > { %v15623_v60 = vpop.f32.mrf.mxu0  ;;  %15922 = vmatmul.mubr.msk.f32.gmra.mxu0 %vm629_vm3, %v10921_v11  ;;  %v11381_v11 = vld [vmem:[#allocation4 + $0x108] sm:$0xff] }
 0x3f9   : > { %v15673_v8 = vpop.f32.mrf.mxu1  ;;  %15972 = vmatmul.mubr.msk.f32.gmra.mxu1 %vm629_vm3, %v11372_v25  ;;  %v8601_v9 = vadd.f32 %v15623_v60, %v8247_v51  ;;  %15924 = vmatprep.mubr.msk.f32.mxu0 %vm629_vm3, %v10922_v35  ;;  %v8254_v25 = vld [vmem:[#allocation5 + $0x50] sm:$0xff] }
 0x3fa   : > { %15974 = vmatprep.mubr.msk.f32.mxu1 %vm629_vm3, %v11373_v47  ;;  %v8449_v36 = vpop.f32.mrf.mxu0 }
 0x3fb   : > { %v8900_v21 = vpop.f32.mrf.mxu1  ;;  %8633 = vst.msk [vmem:[#allocation5 + $0x18] sm:$0xff] %vm629_vm3, %v8601_v9  ;;  %v8600_v46 = vadd.f32 %v8449_v36, %v8246_v61  ;;  %v8257_v9 = vld [vmem:[#allocation5 + $0x68] sm:$0xff] }
 0x3fc   : > { %v15626_v6 = vpop.f32.mrf.mxu0  ;;  %15925 = vmatmul.mubr.msk.f32.gmra.mxu0 %vm629_vm3, %v10923_v55  ;;  %v10932_v55 = vld [vmem:[#allocation4 + $0x127] sm:$0xff] }
 0x3fd   : > { %v15676_v62 = vpop.f32.mrf.mxu1  ;;  %15975 = vmatmul.mubr.msk.f32.gmra.mxu1 %vm629_vm3, %v11374_v52  ;;  %8632 = vst.msk [vmem:[#allocation5 + $0x10] sm:$0xff] %vm629_vm3, %v8600_v46  ;;  %v8603_v42 = vadd.f32 %v15626_v6, %v8249_v48  ;;  %15927 = vmatprep.mubr.msk.f32.mxu0 %vm629_vm3, %v10924_v4  ;;  %v10931_v48 = vld [vmem:[#allocation4 + $0x10f] sm:$0xff] }
 0x3fe   : > { %15977 = vmatprep.mubr.msk.f32.mxu1 %vm629_vm3, %v11375_v26  ;;  %v8459_v53 = vpop.f32.mrf.mxu0  ;;  %v11382_v46 = vld [vmem:[#allocation4 + $0x110] sm:$0xff]  ;;  %v11383_v4 = vld [vmem:[#allocation4 + $0x128] sm:$0xff]  ;;  %v8256_v26 = vld [vmem:[#allocation5 + $0x60] sm:$0xff] }
 0x3ff   : > { %v8910_v31 = vpop.f32.mrf.mxu1  ;;  %8635 = vst.msk [vmem:[#allocation5 + $0x28] sm:$0xff] %vm629_vm3, %v8603_v42  ;;  %v8602_v57 = vadd.f32 %v8459_v53, %v8248_v28 }
 0x400   : > { %v15629_v33 = vpop.f32.mrf.mxu0  ;;  %15928 = vmatmul.mubr.msk.f32.gmra.mxu0 %vm629_vm3, %v10925_v56 }
 0x401   : > { %v15679_v39 = vpop.f32.mrf.mxu1  ;;  %15978 = vmatmul.mubr.msk.f32.gmra.mxu1 %vm629_vm3, %v11376_v17  ;;  %8634 = vst.msk [vmem:[#allocation5 + $0x20] sm:$0xff] %vm629_vm3, %v8602_v57  ;;  %v8605_v38 = vadd.f32 %v15629_v33, %v8251_v45  ;;  %15930 = vmatprep.mubr.msk.f32.mxu0 %vm629_vm3, %v10926_v41  ;;  %v8259_v57 = vld [vmem:[#allocation5 + $0x78] sm:$0xff]  ;;  %v10933_v33 = vld [vmem:[#allocation4 + $0x12f] sm:$0xff]  ;;  %v10934_v41 = vld [vmem:[#allocation4 + $0x147] sm:$0xff] }
 0x402   : > { %15980 = vmatprep.mubr.msk.f32.mxu1 %vm629_vm3, %v11377_v1  ;;  %v8697_v44 = vld [vmem:[#allocation5 + $0x18] sm:$0xff]  ;;  %v8469_v32 = vpop.f32.mrf.mxu0 }
 0x403   : > { %v18644_v24 = vpop.f32.mrf.mxu1  ;;  %v9052_v0 = vadd.f32 %v15673_v8, %v8697_v44  ;;  %8637 = vst.msk [vmem:[#allocation5 + $0x38] sm:$0xff] %vm629_vm3, %v8605_v38  ;;  %v8604_v30 = vadd.f32 %v8469_v32, %v8250_v19  ;;  %v11385_v44 = vld [vmem:[#allocation4 + $0x148] sm:$0xff]  ;;  %v8258_v32 = vld [vmem:[#allocation5 + $0x70] sm:$0xff] }
 0x404   : > { %v8696_v29 = vld [vmem:[#allocation5 + $0x10] sm:$0xff]  ;;  %v15632_v43 = vpop.f32.mrf.mxu0  ;;  %15931 = vmatmul.mubr.msk.f32.gmra.mxu0 %vm629_vm3, %v10927_v37 }
 0x405   : > { %v18647_v59 = vpop.f32.mrf.mxu1  ;;  %15981 = vmatmul.mubr.msk.f32.gmra.mxu1 %vm629_vm3, %v11378_v3  ;;  %9084 = vst.msk [vmem:[#allocation5 + $0x18] sm:$0xff] %vm629_vm3, %v9052_v0  ;;  %v9051_v49 = vadd.f32 %v8900_v21, %v8696_v29  ;;  %8636 = vst.msk [vmem:[#allocation5 + $0x30] sm:$0xff] %vm629_vm3, %v8604_v30  ;;  %v8607_v54 = vadd.f32 %v15632_v43, %v8253_v5  ;;  %15933 = vmatprep.mubr.msk.f32.mxu0 %vm629_vm3, %v10928_v63  ;;  %v8261_v3 = vld [vmem:[#allocation5 + $0x88] sm:$0xff] }
 0x406   : > { %15983 = vmatprep.mubr.msk.f32.mxu1 %vm629_vm3, %v11379_v10  ;;  %v8699_v7 = vld [vmem:[#allocation5 + $0x28] sm:$0xff]  ;;  %v8479_v14 = vpop.f32.mrf.mxu0 }
 0x407   : > { %v18655_v27 = vpop.f32.mrf.mxu1  ;;  %9083 = vst.msk [vmem:[#allocation5 + $0x10] sm:$0xff] %vm629_vm3, %v9051_v49  ;;  %v9054_v18 = vadd.f32 %v15676_v62, %v8699_v7  ;;  %8639 = vst.msk [vmem:[#allocation5 + $0x48] sm:$0xff] %vm629_vm3, %v8607_v54  ;;  %v8606_v16 = vadd.f32 %v8479_v14, %v8252_v15  ;;  %v10935_v43 = vld [vmem:[#allocation4 + $0x14f] sm:$0xff]  ;;  %v10936_v10 = vld [vmem:[#allocation4 + $0x167] sm:$0xff] }
 0x408   : > { %v8698_v20 = vld [vmem:[#allocation5 + $0x20] sm:$0xff]  ;;  %v15635_v22 = vpop.f32.mrf.mxu0  ;;  %15934 = vmatmul.mubr.msk.f32.gmra.mxu0 %vm629_vm3, %v10929_v40  ;;  %v11387_v7 = vld [vmem:[#allocation4 + $0x168] sm:$0xff] }
 0x409   : > { %v18659_v51 = vpop.f32.mrf.mxu1  ;;  %15984 = vmatmul.mubr.msk.f32.gmra.mxu1 %vm629_vm3, %v11380_v23  ;;  %9086 = vst.msk [vmem:[#allocation5 + $0x28] sm:$0xff] %vm629_vm3, %v9054_v18  ;;  %v9053_v60 = vadd.f32 %v8910_v31, %v8698_v20  ;;  %8638 = vst.msk [vmem:[#allocation5 + $0x40] sm:$0xff] %vm629_vm3, %v8606_v16  ;;  %v8609_v8 = vadd.f32 %v15635_v22, %v8255_v50  ;;  %15936 = vmatprep.mubr.msk.f32.mxu0 %vm629_vm3, %v10930_v2  ;;  %v8260_v14 = vld [vmem:[#allocation5 + $0x80] sm:$0xff]  ;;  %v8263_v23 = vld [vmem:[#allocation5 + $0x98] sm:$0xff] }
 0x40a   : > { %15986 = vmatprep.mubr.msk.f32.mxu1 %vm629_vm3, %v11381_v11  ;;  %v8701_v35 = vld [vmem:[#allocation5 + $0x38] sm:$0xff]  ;;  %v8489_v47 = vpop.f32.mrf.mxu0  ;;  %v10937_v22 = vld [vmem:[#allocation4 + $0x16f] sm:$0xff]  ;;  %v10938_v11 = vld [vmem:[#allocation4 + $0x187] sm:$0xff] }
 0x40b   : > { %v18667_v61 = vpop.f32.mrf.mxu1  ;;  %9085 = vst.msk [vmem:[#allocation5 + $0x20] sm:$0xff] %vm629_vm3, %v9053_v60  ;;  %v9056_v36 = vadd.f32 %v15679_v39, %v8701_v35  ;;  %8641 = vst.msk [vmem:[#allocation5 + $0x58] sm:$0xff] %vm629_vm3, %v8609_v8  ;;  %v8608_v21 = vadd.f32 %v8489_v47, %v8254_v25  ;;  %v11384_v39 = vld [vmem:[#allocation4 + $0x130] sm:$0xff]  ;;  %v11389_v35 = vld [vmem:[#allocation4 + $0x188] sm:$0xff] }
 0x40c   : > { %v8700_v52 = vld [vmem:[#allocation5 + $0x30] sm:$0xff]  ;;  %v15638_v6 = vpop.f32.mrf.mxu0  ;;  %15937 = vmatmul.mubr.msk.f32.gmra.mxu0 %vm629_vm3, %v10931_v48 }
 0x40d   : > { %v18671_v62 = vpop.f32.mrf.mxu1  ;;  %15987 = vmatmul.mubr.msk.f32.gmra.mxu1 %vm629_vm3, %v11382_v46  ;;  %9088 = vst.msk [vmem:[#allocation5 + $0x38] sm:$0xff] %vm629_vm3, %v9056_v36  ;;  %v9055_v28 = vadd.f32 %v18644_v24, %v8700_v52  ;;  %8640 = vst.msk [vmem:[#allocation5 + $0x50] sm:$0xff] %vm629_vm3, %v8608_v21  ;;  %v8611_v42 = vadd.f32 %v15638_v6, %v8257_v9  ;;  %15939 = vmatprep.mubr.msk.f32.mxu0 %vm629_vm3, %v10932_v55  ;;  %v8262_v47 = vld [vmem:[#allocation5 + $0x90] sm:$0xff]  ;;  %v8265_v46 = vld [vmem:[#allocation5 + $0xa8] sm:$0xff] }
 0x40e   : > { %15989 = vmatprep.mubr.msk.f32.mxu1 %vm629_vm3, %v11383_v4  ;;  %v8703_v53 = vld [vmem:[#allocation5 + $0x48] sm:$0xff]  ;;  %v8499_v31 = vpop.f32.mrf.mxu0 }
 0x40f   : > { %v18680_v45 = vpop.f32.mrf.mxu1  ;;  %9087 = vst.msk [vmem:[#allocation5 + $0x30] sm:$0xff] %vm629_vm3, %v9055_v28  ;;  %v9058_v56 = vadd.f32 %v18647_v59, %v8703_v53  ;;  %8643 = vst.msk [vmem:[#allocation5 + $0x68] sm:$0xff] %vm629_vm3, %v8611_v42  ;;  %v8610_v17 = vadd.f32 %v8499_v31, %v8256_v26  ;;  %v11386_v59 = vld [vmem:[#allocation4 + $0x150] sm:$0xff]  ;;  %v10940_v4 = vld [vmem:[#allocation4 + $0x1a7] sm:$0xff] }
 0x410   : > { %v8702_v1 = vld [vmem:[#allocation5 + $0x40] sm:$0xff]  ;;  %v15641_v19 = vpop.f32.mrf.mxu0  ;;  %15940 = vmatmul.mubr.msk.f32.gmra.mxu0 %vm629_vm3, %v10933_v33  ;;  %v10939_v6 = vld [vmem:[#allocation4 + $0x18f] sm:$0xff] }
 0x411   : > { %v18685_v38 = vpop.f32.mrf.mxu1  ;;  %15990 = vmatmul.mubr.msk.f32.gmra.mxu1 %vm629_vm3, %v11384_v39  ;;  %9090 = vst.msk [vmem:[#allocation5 + $0x48] sm:$0xff] %vm629_vm3, %v9058_v56  ;;  %v9057_v24 = vadd.f32 %v18655_v27, %v8702_v1  ;;  %8642 = vst.msk [vmem:[#allocation5 + $0x60] sm:$0xff] %vm629_vm3, %v8610_v17  ;;  %v8613_v5 = vadd.f32 %v15641_v19, %v8259_v57  ;;  %15942 = vmatprep.mubr.msk.f32.mxu0 %vm629_vm3, %v10934_v41  ;;  %v11391_v53 = vld [vmem:[#allocation4 + $0x1a8] sm:$0xff]  ;;  %v8264_v31 = vld [vmem:[#allocation5 + $0xa0] sm:$0xff] }
 0x412   : > { %15992 = vmatprep.mubr.msk.f32.mxu1 %vm629_vm3, %v11385_v44  ;;  %v8705_v0 = vld [vmem:[#allocation5 + $0x58] sm:$0xff]  ;;  %v8509_v30 = vpop.f32.mrf.mxu0  ;;  %v10941_v19 = vld [vmem:[#allocation4 + $0x1af] sm:$0xff]  ;;  %v10942_v44 = vld [vmem:[#allocation4 + $0x1c7] sm:$0xff] }
 0x413   : > { %v18694_v37 = vpop.f32.mrf.mxu1  ;;  %9089 = vst.msk [vmem:[#allocation5 + $0x40] sm:$0xff] %vm629_vm3, %v9057_v24  ;;  %v9060_v63 = vadd.f32 %v18659_v51, %v8705_v0  ;;  %8645 = vst.msk [vmem:[#allocation5 + $0x78] sm:$0xff] %vm629_vm3, %v8613_v5  ;;  %v8612_v29 = vadd.f32 %v8509_v30, %v8258_v32  ;;  %v11388_v51 = vld [vmem:[#allocation4 + $0x170] sm:$0xff]  ;;  %v8267_v39 = vld [vmem:[#allocation5 + $0xb8] sm:$0xff] }
 0x414   : > { %v8704_v15 = vld [vmem:[#allocation5 + $0x50] sm:$0xff]  ;;  %v15644_v49 = vpop.f32.mrf.mxu0  ;;  %15943 = vmatmul.mubr.msk.f32.gmra.mxu0 %vm629_vm3, %v10935_v43  ;;  %v11393_v0 = vld [vmem:[#allocation4 + $0x1c8] sm:$0xff] }
 0x415   : > { %v18699_v54 = vpop.f32.mrf.mxu1  ;;  %15993 = vmatmul.mubr.msk.f32.gmra.mxu1 %vm629_vm3, %v11386_v59  ;;  %9092 = vst.msk [vmem:[#allocation5 + $0x58] sm:$0xff] %vm629_vm3, %v9060_v63  ;;  %v9059_v27 = vadd.f32 %v18667_v61, %v8704_v15  ;;  %8644 = vst.msk [vmem:[#allocation5 + $0x70] sm:$0xff] %vm629_vm3, %v8612_v29  ;;  %v8615_v50 = vadd.f32 %v15644_v49, %v8261_v3  ;;  %15945 = vmatprep.mubr.msk.f32.mxu0 %vm629_vm3, %v10936_v10  ;;  %v8266_v30 = vld [vmem:[#allocation5 + $0xb0] sm:$0xff]  ;;  %v8269_v59 = vld [vmem:[#allocation5 + $0xc8] sm:$0xff] }
 0x416   : > { %15995 = vmatprep.mubr.msk.f32.mxu1 %vm629_vm3, %v11387_v7  ;;  %v8707_v18 = vld [vmem:[#allocation5 + $0x68] sm:$0xff]  ;;  %v8519_v16 = vpop.f32.mrf.mxu0 }
 0x417   : > { %v18708_v40 = vpop.f32.mrf.mxu1  ;;  %9091 = vst.msk [vmem:[#allocation5 + $0x50] sm:$0xff] %vm629_vm3, %v9059_v27  ;;  %v9062_v2 = vadd.f32 %v18671_v62, %v8707_v18  ;;  %8647 = vst.msk [vmem:[#allocation5 + $0x88] sm:$0xff] %vm629_vm3, %v8615_v50  ;;  %v8614_v20 = vadd.f32 %v8519_v16, %v8260_v14  ;;  %v11390_v62 = vld [vmem:[#allocation4 + $0x190] sm:$0xff]  ;;  %v10944_v7 = vld [vmem:[#allocation4 + $0x1e7] sm:$0xff] }
 0x418   : > { %v8706_v25 = vld [vmem:[#allocation5 + $0x60] sm:$0xff]  ;;  %v15647_v60 = vpop.f32.mrf.mxu0  ;;  %15946 = vmatmul.mubr.msk.f32.gmra.mxu0 %vm629_vm3, %v10937_v22  ;;  %v10943_v49 = vld [vmem:[#allocation4 + $0x1cf] sm:$0xff] }
 0x419   : > { %v18713_v8 = vpop.f32.mrf.mxu1  ;;  %15996 = vmatmul.mubr.msk.f32.gmra.mxu1 %vm629_vm3, %v11388_v51  ;;  %9094 = vst.msk [vmem:[#allocation5 + $0x68] sm:$0xff] %vm629_vm3, %v9062_v2  ;;  %v9061_v61 = vadd.f32 %v18680_v45, %v8706_v25  ;;  %8646 = vst.msk [vmem:[#allocation5 + $0x80] sm:$0xff] %vm629_vm3, %v8614_v20  ;;  %v8617_v9 = vadd.f32 %v15647_v60, %v8263_v23  ;;  %15948 = vmatprep.mubr.msk.f32.mxu0 %vm629_vm3, %v10938_v11  ;;  %v11395_v18 = vld [vmem:[#allocation4 + $0x1e8] sm:$0xff]  ;;  %v8268_v16 = vld [vmem:[#allocation5 + $0xc0] sm:$0xff] }
 0x41a   : > { %15998 = vmatprep.mubr.msk.f32.mxu1 %vm629_vm3, %v11389_v35  ;;  %v8709_v36 = vld [vmem:[#allocation5 + $0x78] sm:$0xff]  ;;  %v8529_v21 = vpop.f32.mrf.mxu0  ;;  %v10945_v60 = vld [vmem:[#allocation4 + $0x1ef] sm:$0xff] }
 0x41b   : > { %v18722_v48 = vpop.f32.mrf.mxu1  ;;  %9093 = vst.msk [vmem:[#allocation5 + $0x60] sm:$0xff] %vm629_vm3, %v9061_v61  ;;  %v9064_v55 = vadd.f32 %v18685_v38, %v8709_v36  ;;  %8649 = vst.msk [vmem:[#allocation5 + $0x98] sm:$0xff] %vm629_vm3, %v8617_v9  ;;  %v8616_v52 = vadd.f32 %v8529_v21, %v8262_v47  ;;  %v11392_v38 = vld [vmem:[#allocation4 + $0x1b0] sm:$0xff]  ;;  %v8271_v51 = vld [vmem:[#allocation5 + $0xd8] sm:$0xff] }
 0x41c   : > { %v8708_v26 = vld [vmem:[#allocation5 + $0x70] sm:$0xff]  ;;  %v15650_v28 = vpop.f32.mrf.mxu0  ;;  %15949 = vmatmul.mubr.msk.f32.gmra.mxu0 %vm629_vm3, %v10939_v6  ;;  %v10948_v6 = vld [vmem:[#allocation4 + $0x227] sm:$0xff] }
 0x41d   : > { %v18727_v42 = vpop.f32.mrf.mxu1  ;;  %15999 = vmatmul.mubr.msk.f32.gmra.mxu1 %vm629_vm3, %v11390_v62  ;;  %9096 = vst.msk [vmem:[#allocation5 + $0x78] sm:$0xff] %vm629_vm3, %v9064_v55  ;;  %v9063_v45 = vadd.f32 %v18694_v37, %v8708_v26  ;;  %8648 = vst.msk [vmem:[#allocation5 + $0x90] sm:$0xff] %vm629_vm3, %v8616_v52  ;;  %v8619_v57 = vadd.f32 %v15650_v28, %v8265_v46  ;;  %15951 = vmatprep.mubr.msk.f32.mxu0 %vm629_vm3, %v10940_v4  ;;  %v8270_v9 = vld [vmem:[#allocation5 + $0xd0] sm:$0xff]  ;;  %v11399_v62 = vld [vmem:[#allocation4 + $0x228] sm:$0xff] }
 0x41e   : > { %16001 = vmatprep.mubr.msk.f32.mxu1 %vm629_vm3, %v11391_v53  ;;  %v8711_v56 = vld [vmem:[#allocation5 + $0x88] sm:$0xff]  ;;  %v8539_v17 = vpop.f32.mrf.mxu0 }
 0x41f   : > { %v18736_v33 = vpop.f32.mrf.mxu1  ;;  %9095 = vst.msk [vmem:[#allocation5 + $0x70] sm:$0xff] %vm629_vm3, %v9063_v45  ;;  %v9066_v41 = vadd.f32 %v18699_v54, %v8711_v56  ;;  %8651 = vst.msk [vmem:[#allocation5 + $0xa8] sm:$0xff] %vm629_vm3, %v8619_v57  ;;  %v8618_v1 = vadd.f32 %v8539_v17, %v8264_v31  ;;  %v11394_v54 = vld [vmem:[#allocation4 + $0x1d0] sm:$0xff] }
 0x420   : > { %v8710_v32 = vld [vmem:[#allocation5 + $0x80] sm:$0xff]  ;;  %v15653_v24 = vpop.f32.mrf.mxu0  ;;  %15952 = vmatmul.mubr.msk.f32.gmra.mxu0 %vm629_vm3, %v10941_v19  ;;  %v10949_v45 = vld [vmem:[#allocation4 + $0x22f] sm:$0xff] }
 0x421   : > { %v18741_v5 = vpop.f32.mrf.mxu1  ;;  %16002 = vmatmul.mubr.msk.f32.gmra.mxu1 %vm629_vm3, %v11392_v38  ;;  %9098 = vst.msk [vmem:[#allocation5 + $0x88] sm:$0xff] %vm629_vm3, %v9066_v41  ;;  %v9065_v37 = vadd.f32 %v18708_v40, %v8710_v32  ;;  %8650 = vst.msk [vmem:[#allocation5 + $0xa0] sm:$0xff] %vm629_vm3, %v8618_v1  ;;  %v8621_v3 = vadd.f32 %v15653_v24, %v8267_v39  ;;  %15954 = vmatprep.mubr.msk.f32.mxu0 %vm629_vm3, %v10942_v44  ;;  %v11400_v57 = vld [vmem:[#allocation4 + $0x230] sm:$0xff] }
 0x422   : > { %16004 = vmatprep.mubr.msk.f32.mxu1 %vm629_vm3, %v11393_v0  ;;  %v8713_v63 = vld [vmem:[#allocation5 + $0x98] sm:$0xff]  ;;  %v8549_v29 = vpop.f32.mrf.mxu0  ;;  %v11820_v38 = vld [vmem:[#allocation4 + $0x49] sm:$0xff] }
 0x423   : > { %v9000_v43 = vpop.f32.mrf.mxu1  ;;  %9097 = vst.msk [vmem:[#allocation5 + $0x80] sm:$0xff] %vm629_vm3, %v9065_v37  ;;  %v9068_v10 = vadd.f32 %v18713_v8, %v8713_v63  ;;  %8653 = vst.msk [vmem:[#allocation5 + $0xb8] sm:$0xff] %vm629_vm3, %v8621_v3  ;;  %v8620_v15 = vadd.f32 %v8549_v29, %v8266_v30  ;;  %v11396_v8 = vld [vmem:[#allocation4 + $0x1f0] sm:$0xff] }
 0x424   : > { %v8712_v14 = vld [vmem:[#allocation5 + $0x90] sm:$0xff]  ;;  %v15656_v27 = vpop.f32.mrf.mxu0  ;;  %15955 = vmatmul.mubr.msk.f32.gmra.mxu0 %vm629_vm3, %v10943_v49 }
 0x425   : > { %v15706_v50 = vpop.f32.mrf.mxu1  ;;  %16005 = vmatmul.mubr.msk.f32.gmra.mxu1 %vm629_vm3, %v11394_v54  ;;  %9100 = vst.msk [vmem:[#allocation5 + $0x98] sm:$0xff] %vm629_vm3, %v9068_v10  ;;  %v9067_v40 = vadd.f32 %v18722_v48, %v8712_v14  ;;  %8652 = vst.msk [vmem:[#allocation5 + $0xb0] sm:$0xff] %vm629_vm3, %v8620_v15  ;;  %v8623_v23 = vadd.f32 %v15656_v27, %v8269_v59  ;;  %15957 = vmatprep.mubr.msk.f32.mxu0 %vm629_vm3, %v10944_v7  ;;  %v8273_v48 = vld [vmem:[#allocation5 + $0xe8] sm:$0xff]  ;;  %v8274_v44 = vld [vmem:[#allocation5 + $0xf0] sm:$0xff] }
 0x426   : > { %16007 = vmatprep.mubr.msk.f32.mxu1 %vm629_vm3, %v11395_v18  ;;  %v8715_v2 = vld [vmem:[#allocation5 + $0xa8] sm:$0xff]  ;;  %v8559_v20 = vpop.f32.mrf.mxu0  ;;  %v11821_v63 = vld [vmem:[#allocation4 + $0x51] sm:$0xff]  ;;  %v9145_v14 = vld [vmem:[#allocation5] sm:$0xff] }
 0x427   : > { %v9010_v22 = vpop.f32.mrf.mxu1  ;;  %9099 = vst.msk [vmem:[#allocation5 + $0x90] sm:$0xff] %vm629_vm3, %v9067_v40  ;;  %v9070_v11 = vadd.f32 %v18727_v42, %v8715_v2  ;;  %8655 = vst.msk [vmem:[#allocation5 + $0xc8] sm:$0xff] %vm629_vm3, %v8623_v23  ;;  %v8622_v25 = vadd.f32 %v8559_v20, %v8268_v16  ;;  %v11822_v15 = vld [vmem:[#allocation4 + $0x69] sm:$0xff]  ;;  %v11823_v40 = vld [vmem:[#allocation4 + $0x71] sm:$0xff] }
 0x428   : > { %v8714_v35 = vld [vmem:[#allocation5 + $0xa0] sm:$0xff]  ;;  %v15659_v47 = vpop.f32.mrf.mxu0  ;;  %15958 = vmatmul.mubr.msk.f32.gmra.mxu0 %vm629_vm3, %v10945_v60  ;;  %v9148_v2 = vld [vmem:[#allocation5 + $0x18] sm:$0xff] }
 0x429   : > { %v15709_v61 = vpop.f32.mrf.mxu1  ;;  %16008 = vmatmul.mubr.msk.f32.gmra.mxu1 %vm629_vm3, %v11396_v8  ;;  %9102 = vst.msk [vmem:[#allocation5 + $0xa8] sm:$0xff] %vm629_vm3, %v9070_v11  ;;  %v9069_v36 = vadd.f32 %v18736_v33, %v8714_v35  ;;  %8654 = vst.msk [vmem:[#allocation5 + $0xc0] sm:$0xff] %vm629_vm3, %v8622_v25  ;;  %v8625_v21 = vadd.f32 %v15659_v47, %v8271_v51  ;;  %15960 = vmatprep.mubr.msk.f32.mxu0 %vm629_vm3, %v18469_v13  ;;  %v8272_v13 = vld [vmem:[#allocation5 + $0xe0] sm:$0xff]  ;;  %v11824_v51 = vld [vmem:[#allocation4 + $0x89] sm:$0xff] }
 0x42a   : > { %16010 = vmatprep.mubr.msk.f32.mxu1 %vm629_vm3, %v18611_v34  ;;  %v8717_v46 = vld [vmem:[#allocation5 + $0xb8] sm:$0xff]  ;;  %v8569_v55 = vpop.f32.mrf.mxu0  ;;  %v9147_v8 = vld [vmem:[#allocation5 + $0x10] sm:$0xff] }
 0x42b   : > { %v9020_v52 = vpop.f32.mrf.mxu1  ;;  %9101 = vst.msk [vmem:[#allocation5 + $0xa0] sm:$0xff] %vm629_vm3, %v9069_v36  ;;  %v9072_v4 = vadd.f32 %v18741_v5, %v8717_v46  ;;  %8657 = vst.msk [vmem:[#allocation5 + $0xd8] sm:$0xff] %vm629_vm3, %v8625_v21  ;;  %v8624_v26 = vadd.f32 %v8569_v55, %v8270_v9  ;;  %v11825_v36 = vld [vmem:[#allocation4 + $0x91] sm:$0xff] }
 0x42c   : > { %v8716_v28 = vld [vmem:[#allocation5 + $0xb0] sm:$0xff]  ;;  %v15662_v42 = vpop.f32.mrf.mxu0  ;;  %15961 = vmatmul.mubr.msk.f32.gmra.mxu0 %vm629_vm3, %v18477_v12  ;;  %v8275_v12 = vld [vmem:[#allocation5 + $0xf8] sm:$0xff] }
 0x42d   : > { %v15712_v53 = vpop.f32.mrf.mxu1  ;;  %16011 = vmatmul.mubr.msk.f32.gmra.mxu1 %vm629_vm3, %v18616_v58  ;;  %9104 = vst.msk [vmem:[#allocation5 + $0xb8] sm:$0xff] %vm629_vm3, %v9072_v4  ;;  %v9071_v34 = vadd.f32 %v9000_v43, %v8716_v28  ;;  %8656 = vst.msk [vmem:[#allocation5 + $0xd0] sm:$0xff] %vm629_vm3, %v8624_v26  ;;  %v8627_v31 = vadd.f32 %v15662_v42, %v8273_v48  ;;  %15963 = vmatprep.mubr.msk.f32.mxu0 %vm629_vm3, %v10948_v6  ;;  %v9146_v43 = vld [vmem:[#allocation5 + $0x8] sm:$0xff]  ;;  %v9149_v26 = vld [vmem:[#allocation5 + $0x20] sm:$0xff] }
 0x42e   : > { %16013 = vmatprep.mubr.msk.f32.mxu1 %vm629_vm3, %v11399_v62  ;;  %v8719_v56 = vld [vmem:[#allocation5 + $0xc8] sm:$0xff]  ;;  %v8579_v17 = vpop.f32.mrf.mxu0 }
 0x42f   : > { %v9030_v33 = vpop.f32.mrf.mxu1  ;;  %9103 = vst.msk [vmem:[#allocation5 + $0xb0] sm:$0xff] %vm629_vm3, %v9071_v34  ;;  %v9074_v58 = vadd.f32 %v15706_v50, %v8719_v56  ;;  %8659 = vst.msk [vmem:[#allocation5 + $0xe8] sm:$0xff] %vm629_vm3, %v8627_v31  ;;  %v8626_v39 = vadd.f32 %v8579_v17, %v8272_v13  ;;  %v9150_v48 = vld [vmem:[#allocation5 + $0x28] sm:$0xff]  ;;  %v11827_v34 = vld [vmem:[#allocation4 + $0xb1] sm:$0xff] }
 0x430   : > { %v8718_v41 = vld [vmem:[#allocation5 + $0xc0] sm:$0xff]  ;;  %v15665_v1 = vpop.f32.mrf.mxu0  ;;  %15964 = vmatmul.mubr.msk.f32.gmra.mxu0 %vm629_vm3, %v10949_v45  ;;  %v9152_v45 = vld [vmem:[#allocation5 + $0x38] sm:$0xff]  ;;  %v11828_v17 = vld [vmem:[#allocation4 + $0xc9] sm:$0xff] }
 0x431   : > { %v15715_v19 = vpop.f32.mrf.mxu1  ;;  %16014 = vmatmul.mubr.msk.f32.gmra.mxu1 %vm629_vm3, %v11400_v57  ;;  %9106 = vst.msk [vmem:[#allocation5 + $0xc8] sm:$0xff] %vm629_vm3, %v9074_v58  ;;  %v9073_v32 = vadd.f32 %v9010_v22, %v8718_v41  ;;  %8658 = vst.msk [vmem:[#allocation5 + $0xe0] sm:$0xff] %vm629_vm3, %v8626_v39  ;;  %v8629_v24 = vadd.f32 %v15665_v1, %v8275_v12  ;;  %16018 = vmatprep.mubr.msk.f32.mxu0 %vm629_vm3, %v11820_v38  ;;  %v9151_v39 = vld [vmem:[#allocation5 + $0x30] sm:$0xff] }
 0x432   : > { %v8721_v5 = vld [vmem:[#allocation5 + $0xd8] sm:$0xff]  ;;  %v8589_v0 = vpop.f32.mrf.mxu0 }
 0x433   : > { %v9040_v30 = vpop.f32.mrf.mxu1  ;;  %9105 = vst.msk [vmem:[#allocation5 + $0xc0] sm:$0xff] %vm629_vm3, %v9073_v32  ;;  %v9076_v37 = vadd.f32 %v15709_v61, %v8721_v5  ;;  %8661 = vst.msk [vmem:[#allocation5 + $0xf8] sm:$0xff] %vm629_vm3, %v8629_v24  ;;  %v8628_v3 = vadd.f32 %v8589_v0, %v8274_v44  ;;  %v11829_v44 = vld [vmem:[#allocation4 + $0xd1] sm:$0xff]  ;;  %v9154_v24 = vld [vmem:[#allocation5 + $0x48] sm:$0xff] }
 0x434   : > { %v8720_v29 = vld [vmem:[#allocation5 + $0xd0] sm:$0xff]  ;;  %v15720_v59 = vpop.f32.mrf.mxu0  ;;  %16019 = vmatmul.mubr.msk.f32.vlgmr.msra.gmra.mxu0 %vm629_vm3, %v11821_v63 }
 0x435   : > { %v15770_v10 = vpop.f32.mrf.mxu1  ;;  %9108 = vst.msk [vmem:[#allocation5 + $0xd8] sm:$0xff] %vm629_vm3, %v9076_v37  ;;  %v9075_v49 = vadd.f32 %v9020_v52, %v8720_v29  ;;  %8660 = vst.msk [vmem:[#allocation5 + $0xf0] sm:$0xff] %vm629_vm3, %v8628_v3  ;;  %v9501_v54 = vadd.f32 %v15720_v59, %v9146_v43  ;;  %16021 = vmatprep.mubr.msk.f32.mxu0 %vm629_vm3, %v11822_v15  ;;  %v11826_v52 = vld [vmem:[#allocation4 + $0xa9] sm:$0xff]  ;;  %v9153_v29 = vld [vmem:[#allocation5 + $0x40] sm:$0xff] }
 0x436   : > { %v8723_v7 = vld [vmem:[#allocation5 + $0xe8] sm:$0xff]  ;;  %v9341_v27 = vpop.f32.mrf.mxu0 }
 0x437   : > { %v9792_v50 = vpop.f32.mrf.mxu1  ;;  %9107 = vst.msk [vmem:[#allocation5 + $0xd0] sm:$0xff] %vm629_vm3, %v9075_v49  ;;  %v9078_v18 = vadd.f32 %v15712_v53, %v8723_v7  ;;  %9533 = vst.msk [vmem:[#allocation5 + $0x8] sm:$0xff] %vm629_vm3, %v9501_v54  ;;  %v9500_v16 = vadd.f32 %v9341_v27, %v9145_v14  ;;  %v11831_v49 = vld [vmem:[#allocation4 + $0xf1] sm:$0xff] }
 0x438   : > { %v8722_v23 = vld [vmem:[#allocation5 + $0xe0] sm:$0xff]  ;;  %v15723_v20 = vpop.f32.mrf.mxu0  ;;  %16022 = vmatmul.mubr.msk.f32.gmra.mxu0 %vm629_vm3, %v11823_v40  ;;  %v9156_v7 = vld [vmem:[#allocation5 + $0x58] sm:$0xff] }
 0x439   : > { %v15773_v22 = vpop.f32.mrf.mxu1  ;;  %9110 = vst.msk [vmem:[#allocation5 + $0xe8] sm:$0xff] %vm629_vm3, %v9078_v18  ;;  %v9077_v11 = vadd.f32 %v9030_v33, %v8722_v23  ;;  %9532 = vst.msk [vmem:[#allocation5] sm:$0xff] %vm629_vm3, %v9500_v16  ;;  %v9503_v25 = vadd.f32 %v15723_v20, %v9148_v2  ;;  %16024 = vmatprep.mubr.msk.f32.mxu0 %vm629_vm3, %v11824_v51  ;;  %v9155_v23 = vld [vmem:[#allocation5 + $0x50] sm:$0xff] }
 0x43a   : > { %v8725_v60 = vld [vmem:[#allocation5 + $0xf8] sm:$0xff]  ;;  %v9351_v35 = vpop.f32.mrf.mxu0 }
 0x43b   : > { %v9802_v47 = vpop.f32.mrf.mxu1  ;;  %9109 = vst.msk [vmem:[#allocation5 + $0xe0] sm:$0xff] %vm629_vm3, %v9077_v11  ;;  %v9080_v61 = vadd.f32 %v15715_v19, %v8725_v60  ;;  %9535 = vst.msk [vmem:[#allocation5 + $0x18] sm:$0xff] %vm629_vm3, %v9503_v25  ;;  %v9502_v9 = vadd.f32 %v9351_v35, %v9147_v8  ;;  %v11833_v11 = vld [vmem:[#allocation4 + $0x111] sm:$0xff]  ;;  %v9158_v60 = vld [vmem:[#allocation5 + $0x68] sm:$0xff] }
 0x43c   : > { %v8724_v21 = vld [vmem:[#allocation5 + $0xf0] sm:$0xff]  ;;  %v15726_v46 = vpop.f32.mrf.mxu0  ;;  %16025 = vmatmul.mubr.msk.f32.gmra.mxu0 %vm629_vm3, %v11825_v36 }
 0x43d   : > { %v15776_v55 = vpop.f32.mrf.mxu1  ;;  %9112 = vst.msk [vmem:[#allocation5 + $0xf8] sm:$0xff] %vm629_vm3, %v9080_v61  ;;  %v9079_v6 = vadd.f32 %v9040_v30, %v8724_v21  ;;  %9534 = vst.msk [vmem:[#allocation5 + $0x10] sm:$0xff] %vm629_vm3, %v9502_v9  ;;  %v9505_v62 = vadd.f32 %v15726_v46, %v9150_v48  ;;  %16027 = vmatprep.mubr.msk.f32.mxu0 %vm629_vm3, %v11826_v52  ;;  %v11830_v30 = vld [vmem:[#allocation4 + $0xe9] sm:$0xff]  ;;  %v9157_v21 = vld [vmem:[#allocation5 + $0x60] sm:$0xff] }
 0x43e   : > { %v9597_v4 = vld [vmem:[#allocation5 + $0x8] sm:$0xff]  ;;  %v9361_v28 = vpop.f32.mrf.mxu0 }
 0x43f   : > { %v9812_v42 = vpop.f32.mrf.mxu1  ;;  %9111 = vst.msk [vmem:[#allocation5 + $0xf0] sm:$0xff] %vm629_vm3, %v9079_v6  ;;  %v9952_v53 = vadd.f32 %v15770_v10, %v9597_v4  ;;  %9537 = vst.msk [vmem:[#allocation5 + $0x28] sm:$0xff] %vm629_vm3, %v9505_v62  ;;  %v9504_v13 = vadd.f32 %v9361_v28, %v9149_v26  ;;  %v11835_v6 = vld [vmem:[#allocation4 + $0x131] sm:$0xff] }
 0x440   : > { %v9596_v31 = vld [vmem:[#allocation5] sm:$0xff]  ;;  %v15729_v57 = vpop.f32.mrf.mxu0  ;;  %16028 = vmatmul.mubr.msk.f32.gmra.mxu0 %vm629_vm3, %v11827_v34  ;;  %v9160_v4 = vld [vmem:[#allocation5 + $0x78] sm:$0xff] }
 0x441   : > { %v15779_v56 = vpop.f32.mrf.mxu1  ;;  %9984 = vst.msk [vmem:[#allocation5 + $0x8] sm:$0xff] %vm629_vm3, %v9952_v53  ;;  %v9951_v33 = vadd.f32 %v9792_v50, %v9596_v31  ;;  %9536 = vst.msk [vmem:[#allocation5 + $0x20] sm:$0xff] %vm629_vm3, %v9504_v13  ;;  %v9507_v12 = vadd.f32 %v15729_v57, %v9152_v45  ;;  %16030 = vmatprep.mubr.msk.f32.mxu0 %vm629_vm3, %v11828_v17  ;;  %v11832_v50 = vld [vmem:[#allocation4 + $0x109] sm:$0xff]  ;;  %v12374_v34 = vld [vmem:[%s19243_s7] sm:$0xff] }
 0x442   : > { %v9599_v58 = vld [vmem:[#allocation5 + $0x18] sm:$0xff]  ;;  %v9371_v41 = vpop.f32.mrf.mxu0  ;;  %v9159_v45 = vld [vmem:[#allocation5 + $0x70] sm:$0xff]  ;;  %16066 = vmatprep.subr.mxu1 %v12374_v34 }
 0x443   : > { %v9822_v1 = vpop.f32.mrf.mxu1  ;;  %9983 = vst.msk [vmem:[#allocation5] sm:$0xff] %vm629_vm3, %v9951_v33  ;;  %v9954_v19 = vadd.f32 %v15773_v22, %v9599_v58  ;;  %9539 = vst.msk [vmem:[#allocation5 + $0x38] sm:$0xff] %vm629_vm3, %v9507_v12  ;;  %v9506_v38 = vadd.f32 %v9371_v41, %v9151_v39  ;;  %v11837_v12 = vld [vmem:[#allocation4 + $0x151] sm:$0xff]  ;;  %16067 = vmatpush3.msra.mxu1 %v12374_v34  ;;  %v9162_v39 = vld [vmem:[#allocation5 + $0x88] sm:$0xff] }
 0x444   : > { %v9598_v32 = vld [vmem:[#allocation5 + $0x10] sm:$0xff]  ;;  %v15732_v5 = vpop.f32.mrf.mxu0  ;;  %16031 = vmatmul.mubr.msk.f32.gmra.mxu0 %vm629_vm3, %v11829_v44 }
 0x445   : > { %v15782_v0 = vpop.f32.mrf.mxu1  ;;  %9986 = vst.msk [vmem:[#allocation5 + $0x18] sm:$0xff] %vm629_vm3, %v9954_v19  ;;  %v9953_v37 = vadd.f32 %v9802_v47, %v9598_v32  ;;  %9538 = vst.msk [vmem:[#allocation5 + $0x30] sm:$0xff] %vm629_vm3, %v9506_v38  ;;  %v9509_v3 = vadd.f32 %v15732_v5, %v9154_v24  ;;  %16033 = vmatprep.mubr.msk.f32.mxu0 %vm629_vm3, %v11830_v30  ;;  %v11834_v47 = vld [vmem:[#allocation4 + $0x129] sm:$0xff]  ;;  %v9161_v24 = vld [vmem:[#allocation5 + $0x80] sm:$0xff] }
 0x446   : > { %v9601_v63 = vld [vmem:[#allocation5 + $0x28] sm:$0xff]  ;;  %v9381_v43 = vpop.f32.mrf.mxu0 }
 0x447   : > { %v9832_v59 = vpop.f32.mrf.mxu1  ;;  %9985 = vst.msk [vmem:[#allocation5 + $0x10] sm:$0xff] %vm629_vm3, %v9953_v37  ;;  %v9956_v10 = vadd.f32 %v15776_v55, %v9601_v63  ;;  %9541 = vst.msk [vmem:[#allocation5 + $0x48] sm:$0xff] %vm629_vm3, %v9509_v3  ;;  %v9508_v15 = vadd.f32 %v9381_v43, %v9153_v29  ;;  %v11838_v19 = vld [vmem:[#allocation4 + $0x169] sm:$0xff]  ;;  %v11839_v3 = vld [vmem:[#allocation4 + $0x171] sm:$0xff] }
 0x448   : > { %v9600_v54 = vld [vmem:[#allocation5 + $0x20] sm:$0xff]  ;;  %v15735_v14 = vpop.f32.mrf.mxu0  ;;  %16034 = vmatmul.mubr.msk.f32.gmra.mxu0 %vm629_vm3, %v11831_v49  ;;  %v9164_v29 = vld [vmem:[#allocation5 + $0x98] sm:$0xff] }
 0x449   : > { %v15785_v27 = vpop.f32.mrf.mxu1  ;;  %9988 = vst.msk [vmem:[#allocation5 + $0x28] sm:$0xff] %vm629_vm3, %v9956_v10  ;;  %v9955_v18 = vadd.f32 %v9812_v42, %v9600_v54  ;;  %9540 = vst.msk [vmem:[#allocation5 + $0x40] sm:$0xff] %vm629_vm3, %v9508_v15  ;;  %v9511_v16 = vadd.f32 %v15735_v14, %v9156_v7  ;;  %16036 = vmatprep.mubr.msk.f32.mxu0 %vm629_vm3, %v11832_v50  ;;  %v11836_v42 = vld [vmem:[#allocation4 + $0x149] sm:$0xff] }
 0x44a   : > { %v9603_v40 = vld [vmem:[#allocation5 + $0x38] sm:$0xff]  ;;  %v9391_v2 = vpop.f32.mrf.mxu0  ;;  %v11840_v10 = vld [vmem:[#allocation4 + $0x189] sm:$0xff] }
 0x44b   : > { %v9842_v20 = vpop.f32.mrf.mxu1  ;;  %9987 = vst.msk [vmem:[#allocation5 + $0x20] sm:$0xff] %vm629_vm3, %v9955_v18  ;;  %v9958_v22 = vadd.f32 %v15779_v56, %v9603_v40  ;;  %9543 = vst.msk [vmem:[#allocation5 + $0x58] sm:$0xff] %vm629_vm3, %v9511_v16  ;;  %v9510_v51 = vadd.f32 %v9391_v2, %v9155_v23  ;;  %v9163_v7 = vld [vmem:[#allocation5 + $0x90] sm:$0xff]  ;;  %v9166_v23 = vld [vmem:[#allocation5 + $0xa8] sm:$0xff] }
 0x44c   : > { %v9602_v25 = vld [vmem:[#allocation5 + $0x30] sm:$0xff]  ;;  %v15738_v8 = vpop.f32.mrf.mxu0  ;;  %16037 = vmatmul.mubr.msk.f32.gmra.mxu0 %vm629_vm3, %v11833_v11 }
 0x44d   : > { %v15788_v35 = vpop.f32.mrf.mxu1  ;;  %9990 = vst.msk [vmem:[#allocation5 + $0x38] sm:$0xff] %vm629_vm3, %v9958_v22  ;;  %v9957_v61 = vadd.f32 %v9822_v1, %v9602_v25  ;;  %9542 = vst.msk [vmem:[#allocation5 + $0x50] sm:$0xff] %vm629_vm3, %v9510_v51  ;;  %v9513_v9 = vadd.f32 %v15738_v8, %v9158_v60  ;;  %16039 = vmatprep.mubr.msk.f32.mxu0 %vm629_vm3, %v11834_v47  ;;  %v11841_v16 = vld [vmem:[#allocation4 + $0x191] sm:$0xff]  ;;  %v11842_v22 = vld [vmem:[#allocation4 + $0x1a9] sm:$0xff] }
 0x44e   : > { %v9605_v36 = vld [vmem:[#allocation5 + $0x48] sm:$0xff]  ;;  %v9401_v48 = vpop.f32.mrf.mxu0  ;;  %v9165_v60 = vld [vmem:[#allocation5 + $0xa0] sm:$0xff] }
 0x44f   : > { %v9852_v46 = vpop.f32.mrf.mxu1  ;;  %9989 = vst.msk [vmem:[#allocation5 + $0x30] sm:$0xff] %vm629_vm3, %v9957_v61  ;;  %v9960_v55 = vadd.f32 %v15782_v0, %v9605_v36  ;;  %9545 = vst.msk [vmem:[#allocation5 + $0x68] sm:$0xff] %vm629_vm3, %v9513_v9  ;;  %v9512_v52 = vadd.f32 %v9401_v48, %v9157_v21  ;;  %v11843_v9 = vld [vmem:[#allocation4 + $0x1b1] sm:$0xff] }
 0x450   : > { %v9604_v62 = vld [vmem:[#allocation5 + $0x40] sm:$0xff]  ;;  %v15741_v26 = vpop.f32.mrf.mxu0  ;;  %16040 = vmatmul.mubr.msk.f32.gmra.mxu0 %vm629_vm3, %v11835_v6  ;;  %v9168_v21 = vld [vmem:[#allocation5 + $0xb8] sm:$0xff] }
 0x451   : > { %v15791_v28 = vpop.f32.mrf.mxu1  ;;  %9992 = vst.msk [vmem:[#allocation5 + $0x48] sm:$0xff] %vm629_vm3, %v9960_v55  ;;  %v9959_v53 = vadd.f32 %v9832_v59, %v9604_v62  ;;  %9544 = vst.msk [vmem:[#allocation5 + $0x60] sm:$0xff] %vm629_vm3, %v9512_v52  ;;  %v9515_v13 = vadd.f32 %v15741_v26, %v9160_v4  ;;  %16042 = vmatprep.mubr.msk.f32.mxu0 %vm629_vm3, %v11836_v42  ;;  %v11844_v55 = vld [vmem:[#allocation4 + $0x1c9] sm:$0xff] }
 0x452   : > { %v9607_v31 = vld [vmem:[#allocation5 + $0x58] sm:$0xff]  ;;  %v9411_v57 = vpop.f32.mrf.mxu0  ;;  %v9167_v4 = vld [vmem:[#allocation5 + $0xb0] sm:$0xff] }
 0x453   : > { %v9862_v56 = vpop.f32.mrf.mxu1  ;;  %9991 = vst.msk [vmem:[#allocation5 + $0x40] sm:$0xff] %vm629_vm3, %v9959_v53  ;;  %v9962_v17 = vadd.f32 %v15785_v27, %v9607_v31  ;;  %9547 = vst.msk [vmem:[#allocation5 + $0x78] sm:$0xff] %vm629_vm3, %v9515_v13  ;;  %v9514_v33 = vadd.f32 %v9411_v57, %v9159_v45  ;;  %v11845_v13 = vld [vmem:[#allocation4 + $0x1d1] sm:$0xff]  ;;  %v9170_v31 = vld [vmem:[#allocation5 + $0xc8] sm:$0xff] }
 0x454   : > { %v9606_v58 = vld [vmem:[#allocation5 + $0x50] sm:$0xff]  ;;  %v15744_v41 = vpop.f32.mrf.mxu0  ;;  %16043 = vmatmul.mubr.msk.f32.gmra.mxu0 %vm629_vm3, %v11837_v12 }
 0x455   : > { %v15794_v1 = vpop.f32.mrf.mxu1  ;;  %9994 = vst.msk [vmem:[#allocation5 + $0x58] sm:$0xff] %vm629_vm3, %v9962_v17  ;;  %v9961_v38 = vadd.f32 %v9842_v20, %v9606_v58  ;;  %9546 = vst.msk [vmem:[#allocation5 + $0x70] sm:$0xff] %vm629_vm3, %v9514_v33  ;;  %v9517_v44 = vadd.f32 %v15744_v41, %v9162_v39  ;;  %16045 = vmatprep.mubr.msk.f32.mxu0 %vm629_vm3, %v11838_v19  ;;  %v9169_v58 = vld [vmem:[#allocation5 + $0xc0] sm:$0xff] }
 0x456   : > { %v9609_v32 = vld [vmem:[#allocation5 + $0x68] sm:$0xff]  ;;  %v9421_v5 = vpop.f32.mrf.mxu0 }
 0x457   : > { %v9872_v0 = vpop.f32.mrf.mxu1  ;;  %9993 = vst.msk [vmem:[#allocation5 + $0x50] sm:$0xff] %vm629_vm3, %v9961_v38  ;;  %v9964_v30 = vadd.f32 %v15788_v35, %v9609_v32  ;;  %9549 = vst.msk [vmem:[#allocation5 + $0x88] sm:$0xff] %vm629_vm3, %v9517_v44  ;;  %v9516_v37 = vadd.f32 %v9421_v5, %v9161_v24  ;;  %v11847_v38 = vld [vmem:[#allocation4 + $0x1f1] sm:$0xff] }
 0x458   : > { %v9608_v63 = vld [vmem:[#allocation5 + $0x60] sm:$0xff]  ;;  %v15747_v43 = vpop.f32.mrf.mxu0  ;;  %16046 = vmatmul.mubr.msk.f32.gmra.mxu0 %vm629_vm3, %v11839_v3  ;;  %v9172_v32 = vld [vmem:[#allocation5 + $0xd8] sm:$0xff] }
 0x459   : > { %v15797_v59 = vpop.f32.mrf.mxu1  ;;  %9996 = vst.msk [vmem:[#allocation5 + $0x68] sm:$0xff] %vm629_vm3, %v9964_v30  ;;  %v9963_v15 = vadd.f32 %v9852_v46, %v9608_v63  ;;  %9548 = vst.msk [vmem:[#allocation5 + $0x80] sm:$0xff] %vm629_vm3, %v9516_v37  ;;  %v9519_v49 = vadd.f32 %v15747_v43, %v9164_v29  ;;  %16048 = vmatprep.mubr.msk.f32.mxu0 %vm629_vm3, %v11840_v10  ;;  %v9171_v63 = vld [vmem:[#allocation5 + $0xd0] sm:$0xff] }
 0x45a   : > { %v9611_v54 = vld [vmem:[#allocation5 + $0x78] sm:$0xff]  ;;  %v9431_v14 = vpop.f32.mrf.mxu0 }
 0x45b   : > { %v9882_v27 = vpop.f32.mrf.mxu1  ;;  %9995 = vst.msk [vmem:[#allocation5 + $0x60] sm:$0xff] %vm629_vm3, %v9963_v15  ;;  %v9966_v50 = vadd.f32 %v15791_v28, %v9611_v54  ;;  %9551 = vst.msk [vmem:[#allocation5 + $0x98] sm:$0xff] %vm629_vm3, %v9519_v49  ;;  %v9518_v18 = vadd.f32 %v9431_v14, %v9163_v7  ;;  %v11849_v49 = vld [vmem:[#allocation4 + $0x211] sm:$0xff]  ;;  %v9174_v7 = vld [vmem:[#allocation5 + $0xe8] sm:$0xff] }
 0x45c   : > { %v9610_v40 = vld [vmem:[#allocation5 + $0x70] sm:$0xff]  ;;  %v15750_v2 = vpop.f32.mrf.mxu0  ;;  %16049 = vmatmul.mubr.msk.f32.gmra.mxu0 %vm629_vm3, %v11841_v16 }
 0x45d   : > { %v15800_v20 = vpop.f32.mrf.mxu1  ;;  %9998 = vst.msk [vmem:[#allocation5 + $0x78] sm:$0xff] %vm629_vm3, %v9966_v50  ;;  %v9965_v51 = vadd.f32 %v9862_v56, %v9610_v40  ;;  %9550 = vst.msk [vmem:[#allocation5 + $0x90] sm:$0xff] %vm629_vm3, %v9518_v18  ;;  %v9521_v11 = vadd.f32 %v15750_v2, %v9166_v23  ;;  %16051 = vmatprep.mubr.msk.f32.mxu0 %vm629_vm3, %v11842_v22  ;;  %v11846_v56 = vld [vmem:[#allocation4 + $0x1e9] sm:$0xff]  ;;  %v11851_v16 = vld [vmem:[#allocation4 + $0x231] sm:$0xff] }
 0x45e   : > { %v9613_v25 = vld [vmem:[#allocation5 + $0x88] sm:$0xff]  ;;  %v9441_v8 = vpop.f32.mrf.mxu0  ;;  %v9173_v23 = vld [vmem:[#allocation5 + $0xe0] sm:$0xff] }
 0x45f   : > { %v9892_v35 = vpop.f32.mrf.mxu1  ;;  %9997 = vst.msk [vmem:[#allocation5 + $0x70] sm:$0xff] %vm629_vm3, %v9965_v51  ;;  %v9968_v47 = vadd.f32 %v15794_v1, %v9613_v25  ;;  %9553 = vst.msk [vmem:[#allocation5 + $0xa8] sm:$0xff] %vm629_vm3, %v9521_v11  ;;  %v9520_v61 = vadd.f32 %v9441_v8, %v9165_v60  ;;  %v9176_v25 = vld [vmem:[#allocation5 + $0xf8] sm:$0xff] }
 0x460   : > { %v9612_v36 = vld [vmem:[#allocation5 + $0x80] sm:$0xff]  ;;  %v15753_v48 = vpop.f32.mrf.mxu0  ;;  %16052 = vmatmul.mubr.msk.f32.gmra.mxu0 %vm629_vm3, %v11843_v9  ;;  %v9175_v9 = vld [vmem:[#allocation5 + $0xf0] sm:$0xff] }
 0x461   : > { %v15803_v46 = vpop.f32.mrf.mxu1  ;;  %10000 = vst.msk [vmem:[#allocation5 + $0x88] sm:$0xff] %vm629_vm3, %v9968_v47  ;;  %v9967_v52 = vadd.f32 %v9872_v0, %v9612_v36  ;;  %9552 = vst.msk [vmem:[#allocation5 + $0xa0] sm:$0xff] %vm629_vm3, %v9520_v61  ;;  %v9523_v6 = vadd.f32 %v15753_v48, %v9168_v21  ;;  %16054 = vmatprep.mubr.msk.f32.mxu0 %vm629_vm3, %v11844_v55  ;;  %v11848_v0 = vld [vmem:[#allocation4 + $0x209] sm:$0xff] }
 0x462   : > { %v9615_v62 = vld [vmem:[#allocation5 + $0x98] sm:$0xff]  ;;  %v9451_v26 = vpop.f32.mrf.mxu0 }
 0x463   : > { %v9902_v28 = vpop.f32.mrf.mxu1  ;;  %9999 = vst.msk [vmem:[#allocation5 + $0x80] sm:$0xff] %vm629_vm3, %v9967_v52  ;;  %v9970_v42 = vadd.f32 %v15797_v59, %v9615_v62  ;;  %9555 = vst.msk [vmem:[#allocation5 + $0xb8] sm:$0xff] %vm629_vm3, %v9523_v6  ;;  %v9522_v53 = vadd.f32 %v9451_v26, %v9167_v4  ;;  %v11850_v59 = vld [vmem:[#allocation4 + $0x229] sm:$0xff] }
 0x464   : > { %v9614_v34 = vld [vmem:[#allocation5 + $0x90] sm:$0xff]  ;;  %v15756_v45 = vpop.f32.mrf.mxu0  ;;  %16055 = vmatmul.mubr.msk.f32.gmra.mxu0 %vm629_vm3, %v11845_v13  ;;  %v10048_v52 = vld [vmem:[#allocation5 + $0x8] sm:$0xff] }
 0x465   : > { %v15806_v57 = vpop.f32.mrf.mxu1  ;;  %10002 = vst.msk [vmem:[#allocation5 + $0x98] sm:$0xff] %vm629_vm3, %v9970_v42  ;;  %v9969_v17 = vadd.f32 %v9882_v27, %v9614_v34  ;;  %9554 = vst.msk [vmem:[#allocation5 + $0xb0] sm:$0xff] %vm629_vm3, %v9522_v53  ;;  %v9525_v33 = vadd.f32 %v15756_v45, %v9170_v31  ;;  %16057 = vmatprep.mubr.msk.f32.mxu0 %vm629_vm3, %v11846_v56  ;;  %v10047_v42 = vld [vmem:[#allocation5] sm:$0xff] }
 0x466   : > { %v9617_v12 = vld [vmem:[#allocation5 + $0xa8] sm:$0xff]  ;;  %v9461_v39 = vpop.f32.mrf.mxu0 }
 0x467   : > { %v9912_v41 = vpop.f32.mrf.mxu1  ;;  %10001 = vst.msk [vmem:[#allocation5 + $0x90] sm:$0xff] %vm629_vm3, %v9969_v17  ;;  %v9972_v1 = vadd.f32 %v15800_v20, %v9617_v12  ;;  %9557 = vst.msk [vmem:[#allocation5 + $0xc8] sm:$0xff] %vm629_vm3, %v9525_v33  ;;  %v9524_v19 = vadd.f32 %v9461_v39, %v9169_v58  ;;  %v10049_v39 = vld [vmem:[#allocation5 + $0x10] sm:$0xff] }
 0x468   : > { %v9616_v44 = vld [vmem:[#allocation5 + $0xa0] sm:$0xff]  ;;  %v15759_v24 = vpop.f32.mrf.mxu0  ;;  %16058 = vmatmul.mubr.msk.f32.gmra.mxu0 %vm629_vm3, %v11847_v38 }
 0x469   : > { %v15809_v5 = vpop.f32.mrf.mxu1  ;;  %10004 = vst.msk [vmem:[#allocation5 + $0xa8] sm:$0xff] %vm629_vm3, %v9972_v1  ;;  %v9971_v30 = vadd.f32 %v9892_v35, %v9616_v44  ;;  %9556 = vst.msk [vmem:[#allocation5 + $0xc0] sm:$0xff] %vm629_vm3, %v9524_v19  ;;  %v9527_v37 = vadd.f32 %v15759_v24, %v9172_v32  ;;  %16060 = vmatprep.mubr.msk.f32.mxu0 %vm629_vm3, %v11848_v0  ;;  %v10052_v32 = vld [vmem:[#allocation5 + $0x28] sm:$0xff] }
 0x46a   : > { %v9619_v3 = vld [vmem:[#allocation5 + $0xb8] sm:$0xff]  ;;  %v9471_v29 = vpop.f32.mrf.mxu0 }
 0x46b   : > { %v9922_v43 = vpop.f32.mrf.mxu1  ;;  %10003 = vst.msk [vmem:[#allocation5 + $0xa0] sm:$0xff] %vm629_vm3, %v9971_v30  ;;  %v9974_v10 = vadd.f32 %v15803_v46, %v9619_v3  ;;  %9559 = vst.msk [vmem:[#allocation5 + $0xd8] sm:$0xff] %vm629_vm3, %v9527_v37  ;;  %v9526_v15 = vadd.f32 %v9471_v29, %v9171_v63  ;;  %v10051_v3 = vld [vmem:[#allocation5 + $0x20] sm:$0xff] }
 0x46c   : > { %v9618_v54 = vld [vmem:[#allocation5 + $0xb0] sm:$0xff]  ;;  %v15762_v14 = vpop.f32.mrf.mxu0  ;;  %16061 = vmatmul.mubr.msk.f32.gmra.mxu0 %vm629_vm3, %v11849_v49 }
 0x46d   : > { %v15812_v27 = vpop.f32.mrf.mxu1  ;;  %10006 = vst.msk [vmem:[#allocation5 + $0xb8] sm:$0xff] %vm629_vm3, %v9974_v10  ;;  %v9973_v50 = vadd.f32 %v9902_v28, %v9618_v54  ;;  %9558 = vst.msk [vmem:[#allocation5 + $0xd0] sm:$0xff] %vm629_vm3, %v9526_v15  ;;  %v9529_v18 = vadd.f32 %v15762_v14, %v9174_v7  ;;  %16063 = vmatprep.mubr.msk.f32.mxu0 %vm629_vm3, %v11850_v59  ;;  %v10054_v15 = vld [vmem:[#allocation5 + $0x38] sm:$0xff] }
 0x46e   : > { %v9621_v40 = vld [vmem:[#allocation5 + $0xc8] sm:$0xff]  ;;  %v9481_v2 = vpop.f32.mrf.mxu0 }
 0x46f   : > { %v9932_v20 = vpop.f32.mrf.mxu1  ;;  %10005 = vst.msk [vmem:[#allocation5 + $0xb0] sm:$0xff] %vm629_vm3, %v9973_v50  ;;  %v9976_v22 = vadd.f32 %v15806_v57, %v9621_v40  ;;  %9561 = vst.msk [vmem:[#allocation5 + $0xe8] sm:$0xff] %vm629_vm3, %v9529_v18  ;;  %v9528_v51 = vadd.f32 %v9481_v2, %v9173_v23  ;;  %v10050_v57 = vld [vmem:[#allocation5 + $0x18] sm:$0xff]  ;;  %v10053_v50 = vld [vmem:[#allocation5 + $0x30] sm:$0xff] }
 0x470   : > { %v9620_v11 = vld [vmem:[#allocation5 + $0xc0] sm:$0xff]  ;;  %v15765_v60 = vpop.f32.mrf.mxu0  ;;  %16064 = vmatmul.mubr.msk.f32.gmra.mxu0 %vm629_vm3, %v11851_v16 }
 0x471   : > { %v15815_v8 = vpop.f32.mrf.mxu1  ;;  %10008 = vst.msk [vmem:[#allocation5 + $0xc8] sm:$0xff] %vm629_vm3, %v9976_v22  ;;  %v9975_v35 = vadd.f32 %v9912_v41, %v9620_v11  ;;  %9560 = vst.msk [vmem:[#allocation5 + $0xe0] sm:$0xff] %vm629_vm3, %v9528_v51  ;;  %v9531_v47 = vadd.f32 %v15765_v60, %v9176_v25 }
 0x472   : > { %v9623_v61 = vld [vmem:[#allocation5 + $0xd8] sm:$0xff]  ;;  %v9491_v36 = vpop.f32.mrf.mxu0 }
 0x473   : > { %v9942_v21 = vpop.f32.mrf.mxu1  ;;  %10007 = vst.msk [vmem:[#allocation5 + $0xc0] sm:$0xff] %vm629_vm3, %v9975_v35  ;;  %v9978_v48 = vadd.f32 %v15809_v5, %v9623_v61  ;;  %9563 = vst.msk [vmem:[#allocation5 + $0xf8] sm:$0xff] %vm629_vm3, %v9531_v47  ;;  %v9530_v46 = vadd.f32 %v9491_v36, %v9175_v9 }
 0x474   : > { %v9622_v55 = vld [vmem:[#allocation5 + $0xd0] sm:$0xff]  ;;  %v15820_v6 = vpop.f32.mrf.mxu0 }
 0x475   : > { %v15870_v62 = vpop.f32.mrf.mxu1  ;;  %10010 = vst.msk [vmem:[#allocation5 + $0xd8] sm:$0xff] %vm629_vm3, %v9978_v48  ;;  %v9977_v4 = vadd.f32 %v9922_v43, %v9622_v55  ;;  %9562 = vst.msk [vmem:[#allocation5 + $0xf0] sm:$0xff] %vm629_vm3, %v9530_v46  ;;  %v10403_v26 = vadd.f32 %v15820_v6, %v10048_v52 }
 0x476   : > { %v9625_v28 = vld [vmem:[#allocation5 + $0xe8] sm:$0xff]  ;;  %v10243_v53 = vpop.f32.mrf.mxu0 }
 0x477   : > { %v10694_v13 = vpop.f32.mrf.mxu1  ;;  %10009 = vst.msk [vmem:[#allocation5 + $0xd0] sm:$0xff] %vm629_vm3, %v9977_v4  ;;  %v9980_v34 = vadd.f32 %v15812_v27, %v9625_v28  ;;  %10435 = vst.msk [vmem:[#allocation5 + $0x8] sm:$0xff] %vm629_vm3, %v10403_v26  ;;  %v10402_v31 = vadd.f32 %v10243_v53, %v10047_v42 }
 0x478   : > { %v9624_v45 = vld [vmem:[#allocation5 + $0xe0] sm:$0xff]  ;;  %v15823_v56 = vpop.f32.mrf.mxu0 }
 0x479   : > { %v15873_v17 = vpop.f32.mrf.mxu1  ;;  %10012 = vst.msk [vmem:[#allocation5 + $0xe8] sm:$0xff] %vm629_vm3, %v9980_v34  ;;  %v9979_v33 = vadd.f32 %v9932_v20, %v9624_v45  ;;  %10434 = vst.msk [vmem:[#allocation5] sm:$0xff] %vm629_vm3, %v10402_v31  ;;  %v10405_v12 = vadd.f32 %v15823_v56, %v10050_v57  ;;  %v10056_v20 = vld [vmem:[#allocation5 + $0x48] sm:$0xff] }
 0x47a   : > { %v9627_v58 = vld [vmem:[#allocation5 + $0xf8] sm:$0xff]  ;;  %v10253_v41 = vpop.f32.mrf.mxu0 }
 0x47b   : > { %v10704_v1 = vpop.f32.mrf.mxu1  ;;  %10011 = vst.msk [vmem:[#allocation5 + $0xe0] sm:$0xff] %vm629_vm3, %v9979_v33  ;;  %v9982_v19 = vadd.f32 %v15815_v8, %v9627_v58  ;;  %10437 = vst.msk [vmem:[#allocation5 + $0x18] sm:$0xff] %vm629_vm3, %v10405_v12  ;;  %v10404_v38 = vadd.f32 %v10253_v41, %v10049_v39  ;;  %v10055_v8 = vld [vmem:[#allocation5 + $0x40] sm:$0xff] }
 0x47c   : > { %v9626_v44 = vld [vmem:[#allocation5 + $0xf0] sm:$0xff]  ;;  %v15826_v24 = vpop.f32.mrf.mxu0 }
 0x47d   : > { %v15876_v5 = vpop.f32.mrf.mxu1  ;;  %10014 = vst.msk [vmem:[#allocation5 + $0xf8] sm:$0xff] %vm629_vm3, %v9982_v19  ;;  %v9981_v0 = vadd.f32 %v9942_v21, %v9626_v44  ;;  %10436 = vst.msk [vmem:[#allocation5 + $0x10] sm:$0xff] %vm629_vm3, %v10404_v38  ;;  %v10407_v30 = vadd.f32 %v15826_v24, %v10052_v32  ;;  %v10058_v21 = vld [vmem:[#allocation5 + $0x58] sm:$0xff] }
 0x47e   : > { %v10499_v37 = vld [vmem:[#allocation5 + $0x8] sm:$0xff]  ;;  %v10263_v63 = vpop.f32.mrf.mxu0 }
 0x47f   : > { %v10714_v29 = vpop.f32.mrf.mxu1  ;;  %10013 = vst.msk [vmem:[#allocation5 + $0xf0] sm:$0xff] %vm629_vm3, %v9981_v0  ;;  %v10854_v43 = vadd.f32 %v15870_v62, %v10499_v37  ;;  %10439 = vst.msk [vmem:[#allocation5 + $0x28] sm:$0xff] %vm629_vm3, %v10407_v30  ;;  %v10406_v59 = vadd.f32 %v10263_v63, %v10051_v3  ;;  %v10057_v62 = vld [vmem:[#allocation5 + $0x50] sm:$0xff] }
 0x480   : > { %v10498_v10 = vld [vmem:[#allocation5] sm:$0xff]  ;;  %v15829_v49 = vpop.f32.mrf.mxu0 }
 0x481   : > { %v15879_v54 = vpop.f32.mrf.mxu1  ;;  %10886 = vst.msk [vmem:[#allocation5 + $0x8] sm:$0xff] %vm629_vm3, %v10854_v43  ;;  %v10853_v7 = vadd.f32 %v10694_v13, %v10498_v10  ;;  %10438 = vst.msk [vmem:[#allocation5 + $0x20] sm:$0xff] %vm629_vm3, %v10406_v59  ;;  %v10409_v14 = vadd.f32 %v15829_v49, %v10054_v15  ;;  %v10060_v13 = vld [vmem:[#allocation5 + $0x68] sm:$0xff] }
 0x482   : > { %v10501_v27 = vld [vmem:[#allocation5 + $0x18] sm:$0xff]  ;;  %v10273_v18 = vpop.f32.mrf.mxu0 }
 0x483   : > { %v10724_v16 = vpop.f32.mrf.mxu1  ;;  %10885 = vst.msk [vmem:[#allocation5] sm:$0xff] %vm629_vm3, %v10853_v7  ;;  %v10856_v40 = vadd.f32 %v15873_v17, %v10501_v27  ;;  %10441 = vst.msk [vmem:[#allocation5 + $0x38] sm:$0xff] %vm629_vm3, %v10409_v14  ;;  %v10408_v23 = vadd.f32 %v10273_v18, %v10053_v50  ;;  %v10059_v17 = vld [vmem:[#allocation5 + $0x60] sm:$0xff] }
 0x484   : > { %v10500_v2 = vld [vmem:[#allocation5 + $0x10] sm:$0xff]  ;;  %v15832_v22 = vpop.f32.mrf.mxu0 }
 0x485   : > { %v15882_v51 = vpop.f32.mrf.mxu1  ;;  %10888 = vst.msk [vmem:[#allocation5 + $0x18] sm:$0xff] %vm629_vm3, %v10856_v40  ;;  %v10855_v11 = vadd.f32 %v10704_v1, %v10500_v2  ;;  %10440 = vst.msk [vmem:[#allocation5 + $0x30] sm:$0xff] %vm629_vm3, %v10408_v23  ;;  %v10411_v25 = vadd.f32 %v15832_v22, %v10056_v20  ;;  %v10062_v1 = vld [vmem:[#allocation5 + $0x78] sm:$0xff] }
 0x486   : > { %v10503_v60 = vld [vmem:[#allocation5 + $0x28] sm:$0xff]  ;;  %v10283_v35 = vpop.f32.mrf.mxu0 }
 0x487   : > { %v10734_v47 = vpop.f32.mrf.mxu1  ;;  %10887 = vst.msk [vmem:[#allocation5 + $0x10] sm:$0xff] %vm629_vm3, %v10855_v11  ;;  %v10858_v61 = vadd.f32 %v15876_v5, %v10503_v60  ;;  %10443 = vst.msk [vmem:[#allocation5 + $0x48] sm:$0xff] %vm629_vm3, %v10411_v25  ;;  %v10410_v9 = vadd.f32 %v10283_v35, %v10055_v8  ;;  %v10061_v5 = vld [vmem:[#allocation5 + $0x70] sm:$0xff] }
 0x488   : > { %v10502_v36 = vld [vmem:[#allocation5 + $0x20] sm:$0xff]  ;;  %v15835_v48 = vpop.f32.mrf.mxu0 }
 0x489   : > { %v15885_v46 = vpop.f32.mrf.mxu1  ;;  %10890 = vst.msk [vmem:[#allocation5 + $0x28] sm:$0xff] %vm629_vm3, %v10858_v61  ;;  %v10857_v55 = vadd.f32 %v10714_v29, %v10502_v36  ;;  %10442 = vst.msk [vmem:[#allocation5 + $0x40] sm:$0xff] %vm629_vm3, %v10410_v9  ;;  %v10413_v52 = vadd.f32 %v15835_v48, %v10058_v21  ;;  %v10064_v29 = vld [vmem:[#allocation5 + $0x88] sm:$0xff] }
 0x48a   : > { %v10505_v6 = vld [vmem:[#allocation5 + $0x38] sm:$0xff]  ;;  %v10293_v4 = vpop.f32.mrf.mxu0 }
 0x48b   : > { %v10744_v26 = vpop.f32.mrf.mxu1  ;;  %10889 = vst.msk [vmem:[#allocation5 + $0x20] sm:$0xff] %vm629_vm3, %v10857_v55  ;;  %v10860_v28 = vadd.f32 %v15879_v54, %v10505_v6  ;;  %10445 = vst.msk [vmem:[#allocation5 + $0x58] sm:$0xff] %vm629_vm3, %v10413_v52  ;;  %v10412_v42 = vadd.f32 %v10293_v4, %v10057_v62  ;;  %v10063_v54 = vld [vmem:[#allocation5 + $0x80] sm:$0xff] }
 0x48c   : > { %v10504_v53 = vld [vmem:[#allocation5 + $0x30] sm:$0xff]  ;;  %v15838_v34 = vpop.f32.mrf.mxu0 }
 0x48d   : > { %v15888_v31 = vpop.f32.mrf.mxu1  ;;  %10892 = vst.msk [vmem:[#allocation5 + $0x38] sm:$0xff] %vm629_vm3, %v10860_v28  ;;  %v10859_v45 = vadd.f32 %v10724_v16, %v10504_v53  ;;  %10444 = vst.msk [vmem:[#allocation5 + $0x50] sm:$0xff] %vm629_vm3, %v10412_v42  ;;  %v10415_v57 = vadd.f32 %v15838_v34, %v10060_v13  ;;  %v10066_v16 = vld [vmem:[#allocation5 + $0x98] sm:$0xff] }
 0x48e   : > { %v10507_v56 = vld [vmem:[#allocation5 + $0x48] sm:$0xff]  ;;  %v10303_v33 = vpop.f32.mrf.mxu0 }
 0x48f   : > { %v10754_v12 = vpop.f32.mrf.mxu1  ;;  %10891 = vst.msk [vmem:[#allocation5 + $0x30] sm:$0xff] %vm629_vm3, %v10859_v45  ;;  %v10862_v58 = vadd.f32 %v15882_v51, %v10507_v56  ;;  %10447 = vst.msk [vmem:[#allocation5 + $0x68] sm:$0xff] %vm629_vm3, %v10415_v57  ;;  %v10414_v39 = vadd.f32 %v10303_v33, %v10059_v17  ;;  %v10065_v51 = vld [vmem:[#allocation5 + $0x90] sm:$0xff] }
 0x490   : > { %v10506_v41 = vld [vmem:[#allocation5 + $0x40] sm:$0xff]  ;;  %v15841_v19 = vpop.f32.mrf.mxu0 }
 0x491   : > { %v15891_v38 = vpop.f32.mrf.mxu1  ;;  %10894 = vst.msk [vmem:[#allocation5 + $0x48] sm:$0xff] %vm629_vm3, %v10862_v58  ;;  %v10861_v44 = vadd.f32 %v10734_v47, %v10506_v41  ;;  %10446 = vst.msk [vmem:[#allocation5 + $0x60] sm:$0xff] %vm629_vm3, %v10414_v39  ;;  %v10417_v32 = vadd.f32 %v15841_v19, %v10062_v1  ;;  %v10068_v47 = vld [vmem:[#allocation5 + $0xa8] sm:$0xff] }
 0x492   : > { %v10509_v24 = vld [vmem:[#allocation5 + $0x58] sm:$0xff]  ;;  %v10313_v0 = vpop.f32.mrf.mxu0 }
 0x493   : > { %v10764_v30 = vpop.f32.mrf.mxu1  ;;  %10893 = vst.msk [vmem:[#allocation5 + $0x40] sm:$0xff] %vm629_vm3, %v10861_v44  ;;  %v10864_v37 = vadd.f32 %v15885_v46, %v10509_v24  ;;  %10449 = vst.msk [vmem:[#allocation5 + $0x78] sm:$0xff] %vm629_vm3, %v10417_v32  ;;  %v10416_v3 = vadd.f32 %v10313_v0, %v10061_v5  ;;  %v10067_v46 = vld [vmem:[#allocation5 + $0xa0] sm:$0xff] }
 0x494   : > { %v10508_v63 = vld [vmem:[#allocation5 + $0x50] sm:$0xff]  ;;  %v15844_v43 = vpop.f32.mrf.mxu0 }
 0x495   : > { %v15894_v59 = vpop.f32.mrf.mxu1  ;;  %10896 = vst.msk [vmem:[#allocation5 + $0x58] sm:$0xff] %vm629_vm3, %v10864_v37  ;;  %v10863_v10 = vadd.f32 %v10744_v26, %v10508_v63  ;;  %10448 = vst.msk [vmem:[#allocation5 + $0x70] sm:$0xff] %vm629_vm3, %v10416_v3  ;;  %v10419_v15 = vadd.f32 %v15844_v43, %v10064_v29  ;;  %v10070_v26 = vld [vmem:[#allocation5 + $0xb8] sm:$0xff] }
 0x496   : > { %v10511_v49 = vld [vmem:[#allocation5 + $0x68] sm:$0xff]  ;;  %v10323_v7 = vpop.f32.mrf.mxu0 }
 0x497   : > { %v10774_v14 = vpop.f32.mrf.mxu1  ;;  %10895 = vst.msk [vmem:[#allocation5 + $0x50] sm:$0xff] %vm629_vm3, %v10863_v10  ;;  %v10866_v27 = vadd.f32 %v15888_v31, %v10511_v49  ;;  %10451 = vst.msk [vmem:[#allocation5 + $0x88] sm:$0xff] %vm629_vm3, %v10419_v15  ;;  %v10418_v50 = vadd.f32 %v10323_v7, %v10063_v54  ;;  %v10069_v31 = vld [vmem:[#allocation5 + $0xb0] sm:$0xff] }
 0x498   : > { %v10510_v18 = vld [vmem:[#allocation5 + $0x60] sm:$0xff]  ;;  %v15847_v40 = vpop.f32.mrf.mxu0 }
 0x499   : > { %v15897_v23 = vpop.f32.mrf.mxu1  ;;  %10898 = vst.msk [vmem:[#allocation5 + $0x68] sm:$0xff] %vm629_vm3, %v10866_v27  ;;  %v10865_v2 = vadd.f32 %v10754_v12, %v10510_v18  ;;  %10450 = vst.msk [vmem:[#allocation5 + $0x80] sm:$0xff] %vm629_vm3, %v10418_v50  ;;  %v10421_v20 = vadd.f32 %v15847_v40, %v10066_v16  ;;  %v10072_v12 = vld [vmem:[#allocation5 + $0xc8] sm:$0xff] }
 0x49a   : > { %v10513_v22 = vld [vmem:[#allocation5 + $0x78] sm:$0xff]  ;;  %v10333_v11 = vpop.f32.mrf.mxu0 }
 0x49b   : > { %v10784_v25 = vpop.f32.mrf.mxu1  ;;  %10897 = vst.msk [vmem:[#allocation5 + $0x60] sm:$0xff] %vm629_vm3, %v10865_v2  ;;  %v10868_v60 = vadd.f32 %v15891_v38, %v10513_v22  ;;  %10453 = vst.msk [vmem:[#allocation5 + $0x98] sm:$0xff] %vm629_vm3, %v10421_v20  ;;  %v10420_v8 = vadd.f32 %v10333_v11, %v10065_v51  ;;  %v10071_v38 = vld [vmem:[#allocation5 + $0xc0] sm:$0xff] }
 0x49c   : > { %v10512_v35 = vld [vmem:[#allocation5 + $0x70] sm:$0xff]  ;;  %v15850_v61 = vpop.f32.mrf.mxu0 }
 0x49d   : > { %v15900_v9 = vpop.f32.mrf.mxu1  ;;  %10900 = vst.msk [vmem:[#allocation5 + $0x78] sm:$0xff] %vm629_vm3, %v10868_v60  ;;  %v10867_v36 = vadd.f32 %v10764_v30, %v10512_v35  ;;  %10452 = vst.msk [vmem:[#allocation5 + $0x90] sm:$0xff] %vm629_vm3, %v10420_v8  ;;  %v10423_v21 = vadd.f32 %v15850_v61, %v10068_v47  ;;  %v10074_v30 = vld [vmem:[#allocation5 + $0xd8] sm:$0xff] }
 0x49e   : > { %v10515_v48 = vld [vmem:[#allocation5 + $0x88] sm:$0xff]  ;;  %v10343_v55 = vpop.f32.mrf.mxu0 }
 0x49f   : > { %v10794_v52 = vpop.f32.mrf.mxu1  ;;  %10899 = vst.msk [vmem:[#allocation5 + $0x70] sm:$0xff] %vm629_vm3, %v10867_v36  ;;  %v10870_v6 = vadd.f32 %v15894_v59, %v10515_v48  ;;  %10455 = vst.msk [vmem:[#allocation5 + $0xa8] sm:$0xff] %vm629_vm3, %v10423_v21  ;;  %v10422_v62 = vadd.f32 %v10343_v55, %v10067_v46  ;;  %v10073_v59 = vld [vmem:[#allocation5 + $0xd0] sm:$0xff] }
 0x4a0   : > { %v10514_v4 = vld [vmem:[#allocation5 + $0x80] sm:$0xff]  ;;  %v15853_v28 = vpop.f32.mrf.mxu0 }
 0x4a1   : > { %v15903_v42 = vpop.f32.mrf.mxu1  ;;  %10902 = vst.msk [vmem:[#allocation5 + $0x88] sm:$0xff] %vm629_vm3, %v10870_v6  ;;  %v10869_v53 = vadd.f32 %v10774_v14, %v10514_v4  ;;  %10454 = vst.msk [vmem:[#allocation5 + $0xa0] sm:$0xff] %vm629_vm3, %v10422_v62  ;;  %v10425_v13 = vadd.f32 %v15853_v28, %v10070_v26  ;;  %v10076_v14 = vld [vmem:[#allocation5 + $0xe8] sm:$0xff] }
 0x4a2   : > { %v10517_v34 = vld [vmem:[#allocation5 + $0x98] sm:$0xff]  ;;  %v10353_v45 = vpop.f32.mrf.mxu0 }
 0x4a3   : > { %v10804_v57 = vpop.f32.mrf.mxu1  ;;  %10901 = vst.msk [vmem:[#allocation5 + $0x80] sm:$0xff] %vm629_vm3, %v10869_v53  ;;  %v10872_v56 = vadd.f32 %v15897_v23, %v10517_v34  ;;  %10457 = vst.msk [vmem:[#allocation5 + $0xb8] sm:$0xff] %vm629_vm3, %v10425_v13  ;;  %v10424_v17 = vadd.f32 %v10353_v45, %v10069_v31  ;;  %v10075_v23 = vld [vmem:[#allocation5 + $0xe0] sm:$0xff] }
 0x4a4   : > { %v10516_v33 = vld [vmem:[#allocation5 + $0x90] sm:$0xff]  ;;  %v15856_v58 = vpop.f32.mrf.mxu0 }
 0x4a5   : > { %v15906_v39 = vpop.f32.mrf.mxu1  ;;  %10904 = vst.msk [vmem:[#allocation5 + $0x98] sm:$0xff] %vm629_vm3, %v10872_v56  ;;  %v10871_v41 = vadd.f32 %v10784_v25, %v10516_v33  ;;  %10456 = vst.msk [vmem:[#allocation5 + $0xb0] sm:$0xff] %vm629_vm3, %v10424_v17  ;;  %v10427_v1 = vadd.f32 %v15856_v58, %v10072_v12  ;;  %v10078_v25 = vld [vmem:[#allocation5 + $0xf8] sm:$0xff] }
 0x4a6   : > { %v10519_v19 = vld [vmem:[#allocation5 + $0xa8] sm:$0xff]  ;;  %v10363_v44 = vpop.f32.mrf.mxu0 }
 0x4a7   : > { %v10814_v32 = vpop.f32.mrf.mxu1  ;;  %10903 = vst.msk [vmem:[#allocation5 + $0x90] sm:$0xff] %vm629_vm3, %v10871_v41  ;;  %v10874_v24 = vadd.f32 %v15900_v9, %v10519_v19  ;;  %10459 = vst.msk [vmem:[#allocation5 + $0xc8] sm:$0xff] %vm629_vm3, %v10427_v1  ;;  %v10426_v5 = vadd.f32 %v10363_v44, %v10071_v38  ;;  %v10077_v9 = vld [vmem:[#allocation5 + $0xf0] sm:$0xff] }
 0x4a8   : > { %v10518_v0 = vld [vmem:[#allocation5 + $0xa0] sm:$0xff]  ;;  %v15859_v37 = vpop.f32.mrf.mxu0 }
 0x4a9   : > { %v15909_v3 = vpop.f32.mrf.mxu1  ;;  %10906 = vst.msk [vmem:[#allocation5 + $0xa8] sm:$0xff] %vm629_vm3, %v10874_v24  ;;  %v10873_v63 = vadd.f32 %v10794_v52, %v10518_v0  ;;  %10458 = vst.msk [vmem:[#allocation5 + $0xc0] sm:$0xff] %vm629_vm3, %v10426_v5  ;;  %v10429_v29 = vadd.f32 %v15859_v37, %v10074_v30  ;;  %v10951_v52 = vld [vmem:[#allocation5 + $0x8] sm:$0xff] }
 0x4aa   : > { %v10521_v43 = vld [vmem:[#allocation5 + $0xb8] sm:$0xff]  ;;  %v10373_v10 = vpop.f32.mrf.mxu0 }
 0x4ab   : > { %v10824_v15 = vpop.f32.mrf.mxu1  ;;  %10905 = vst.msk [vmem:[#allocation5 + $0xa0] sm:$0xff] %vm629_vm3, %v10873_v63  ;;  %v10876_v49 = vadd.f32 %v15903_v42, %v10521_v43  ;;  %10461 = vst.msk [vmem:[#allocation5 + $0xd8] sm:$0xff] %vm629_vm3, %v10429_v29  ;;  %v10428_v54 = vadd.f32 %v10373_v10, %v10073_v59  ;;  %v10950_v42 = vld [vmem:[#allocation5] sm:$0xff] }
 0x4ac   : > { %v10520_v7 = vld [vmem:[#allocation5 + $0xb0] sm:$0xff]  ;;  %v15862_v27 = vpop.f32.mrf.mxu0 }
 0x4ad   : > { %v15912_v50 = vpop.f32.mrf.mxu1  ;;  %10908 = vst.msk [vmem:[#allocation5 + $0xb8] sm:$0xff] %vm629_vm3, %v10876_v49  ;;  %v10875_v18 = vadd.f32 %v10804_v57, %v10520_v7  ;;  %10460 = vst.msk [vmem:[#allocation5 + $0xd0] sm:$0xff] %vm629_vm3, %v10428_v54  ;;  %v10431_v16 = vadd.f32 %v15862_v27, %v10076_v14  ;;  %v10953_v57 = vld [vmem:[#allocation5 + $0x18] sm:$0xff] }
 0x4ae   : > { %v10523_v40 = vld [vmem:[#allocation5 + $0xc8] sm:$0xff]  ;;  %v10383_v2 = vpop.f32.mrf.mxu0 }
 0x4af   : > { %v10834_v20 = vpop.f32.mrf.mxu1  ;;  %10907 = vst.msk [vmem:[#allocation5 + $0xb0] sm:$0xff] %vm629_vm3, %v10875_v18  ;;  %v10878_v22 = vadd.f32 %v15906_v39, %v10523_v40  ;;  %10463 = vst.msk [vmem:[#allocation5 + $0xe8] sm:$0xff] %vm629_vm3, %v10431_v16  ;;  %v10430_v51 = vadd.f32 %v10383_v2, %v10075_v23  ;;  %v10952_v39 = vld [vmem:[#allocation5 + $0x10] sm:$0xff] }
 0x4b0   : > { %v10522_v11 = vld [vmem:[#allocation5 + $0xc0] sm:$0xff]  ;;  %v15865_v60 = vpop.f32.mrf.mxu0 }
 0x4b1   : > { %v15915_v8 = vpop.f32.mrf.mxu1  ;;  %10910 = vst.msk [vmem:[#allocation5 + $0xc8] sm:$0xff] %vm629_vm3, %v10878_v22  ;;  %v10877_v35 = vadd.f32 %v10814_v32, %v10522_v11  ;;  %10462 = vst.msk [vmem:[#allocation5 + $0xe0] sm:$0xff] %vm629_vm3, %v10430_v51  ;;  %v10433_v47 = vadd.f32 %v15865_v60, %v10078_v25  ;;  %v10955_v32 = vld [vmem:[#allocation5 + $0x28] sm:$0xff] }
 0x4b2   : > { %v10525_v61 = vld [vmem:[#allocation5 + $0xd8] sm:$0xff]  ;;  %v10393_v36 = vpop.f32.mrf.mxu0 }
 0x4b3   : > { %v10844_v21 = vpop.f32.mrf.mxu1  ;;  %10909 = vst.msk [vmem:[#allocation5 + $0xc0] sm:$0xff] %vm629_vm3, %v10877_v35  ;;  %v10880_v48 = vadd.f32 %v15909_v3, %v10525_v61  ;;  %10465 = vst.msk [vmem:[#allocation5 + $0xf8] sm:$0xff] %vm629_vm3, %v10433_v47  ;;  %v10432_v46 = vadd.f32 %v10393_v36, %v10077_v9  ;;  %v10954_v3 = vld [vmem:[#allocation5 + $0x20] sm:$0xff] }
 0x4b4   : > { %v10524_v55 = vld [vmem:[#allocation5 + $0xd0] sm:$0xff]  ;;  %v15920_v6 = vpop.f32.mrf.mxu0 }
 0x4b5   : > { %v15970_v62 = vpop.f32.mrf.mxu1  ;;  %10912 = vst.msk [vmem:[#allocation5 + $0xd8] sm:$0xff] %vm629_vm3, %v10880_v48  ;;  %v10879_v4 = vadd.f32 %v10824_v15, %v10524_v55  ;;  %10464 = vst.msk [vmem:[#allocation5 + $0xf0] sm:$0xff] %vm629_vm3, %v10432_v46  ;;  %v11306_v26 = vadd.f32 %v15920_v6, %v10951_v52  ;;  %v10957_v15 = vld [vmem:[#allocation5 + $0x38] sm:$0xff] }
 0x4b6   : > { %v10527_v28 = vld [vmem:[#allocation5 + $0xe8] sm:$0xff]  ;;  %v11146_v53 = vpop.f32.mrf.mxu0 }
 0x4b7   : > { %v11597_v13 = vpop.f32.mrf.mxu1  ;;  %10911 = vst.msk [vmem:[#allocation5 + $0xd0] sm:$0xff] %vm629_vm3, %v10879_v4  ;;  %v10882_v34 = vadd.f32 %v15912_v50, %v10527_v28  ;;  %11338 = vst.msk [vmem:[#allocation5 + $0x8] sm:$0xff] %vm629_vm3, %v11306_v26  ;;  %v11305_v31 = vadd.f32 %v11146_v53, %v10950_v42  ;;  %v10956_v50 = vld [vmem:[#allocation5 + $0x30] sm:$0xff] }
 0x4b8   : > { %v10526_v45 = vld [vmem:[#allocation5 + $0xe0] sm:$0xff]  ;;  %v15923_v56 = vpop.f32.mrf.mxu0 }
 0x4b9   : > { %v15973_v17 = vpop.f32.mrf.mxu1  ;;  %10914 = vst.msk [vmem:[#allocation5 + $0xe8] sm:$0xff] %vm629_vm3, %v10882_v34  ;;  %v10881_v33 = vadd.f32 %v10834_v20, %v10526_v45  ;;  %11337 = vst.msk [vmem:[#allocation5] sm:$0xff] %vm629_vm3, %v11305_v31  ;;  %v11308_v12 = vadd.f32 %v15923_v56, %v10953_v57  ;;  %v10959_v20 = vld [vmem:[#allocation5 + $0x48] sm:$0xff] }
 0x4ba   : > { %v10529_v58 = vld [vmem:[#allocation5 + $0xf8] sm:$0xff]  ;;  %v11156_v41 = vpop.f32.mrf.mxu0 }
 0x4bb   : > { %v11607_v1 = vpop.f32.mrf.mxu1  ;;  %10913 = vst.msk [vmem:[#allocation5 + $0xe0] sm:$0xff] %vm629_vm3, %v10881_v33  ;;  %v10884_v19 = vadd.f32 %v15915_v8, %v10529_v58  ;;  %11340 = vst.msk [vmem:[#allocation5 + $0x18] sm:$0xff] %vm629_vm3, %v11308_v12  ;;  %v11307_v38 = vadd.f32 %v11156_v41, %v10952_v39  ;;  %v10958_v8 = vld [vmem:[#allocation5 + $0x40] sm:$0xff] }
 0x4bc   : > { %v10528_v44 = vld [vmem:[#allocation5 + $0xf0] sm:$0xff]  ;;  %v15926_v24 = vpop.f32.mrf.mxu0 }
 0x4bd   : > { %v15976_v5 = vpop.f32.mrf.mxu1  ;;  %10916 = vst.msk [vmem:[#allocation5 + $0xf8] sm:$0xff] %vm629_vm3, %v10884_v19  ;;  %v10883_v0 = vadd.f32 %v10844_v21, %v10528_v44  ;;  %11339 = vst.msk [vmem:[#allocation5 + $0x10] sm:$0xff] %vm629_vm3, %v11307_v38  ;;  %v11310_v30 = vadd.f32 %v15926_v24, %v10955_v32  ;;  %v10961_v21 = vld [vmem:[#allocation5 + $0x58] sm:$0xff] }
 0x4be   : > { %v11402_v37 = vld [vmem:[#allocation5 + $0x8] sm:$0xff]  ;;  %v11166_v63 = vpop.f32.mrf.mxu0 }
 0x4bf   : > { %v11617_v29 = vpop.f32.mrf.mxu1  ;;  %10915 = vst.msk [vmem:[#allocation5 + $0xf0] sm:$0xff] %vm629_vm3, %v10883_v0  ;;  %v11757_v43 = vadd.f32 %v15970_v62, %v11402_v37  ;;  %11342 = vst.msk [vmem:[#allocation5 + $0x28] sm:$0xff] %vm629_vm3, %v11310_v30  ;;  %v11309_v59 = vadd.f32 %v11166_v63, %v10954_v3  ;;  %v10960_v62 = vld [vmem:[#allocation5 + $0x50] sm:$0xff] }
 0x4c0   : > { %v11401_v10 = vld [vmem:[#allocation5] sm:$0xff]  ;;  %v15929_v49 = vpop.f32.mrf.mxu0 }
 0x4c1   : > { %v15979_v54 = vpop.f32.mrf.mxu1  ;;  %11789 = vst.msk [vmem:[#allocation5 + $0x8] sm:$0xff] %vm629_vm3, %v11757_v43  ;;  %v11756_v7 = vadd.f32 %v11597_v13, %v11401_v10  ;;  %11341 = vst.msk [vmem:[#allocation5 + $0x20] sm:$0xff] %vm629_vm3, %v11309_v59  ;;  %v11312_v14 = vadd.f32 %v15929_v49, %v10957_v15  ;;  %v10963_v13 = vld [vmem:[#allocation5 + $0x68] sm:$0xff] }
 0x4c2   : > { %v11404_v27 = vld [vmem:[#allocation5 + $0x18] sm:$0xff]  ;;  %v11176_v18 = vpop.f32.mrf.mxu0 }
 0x4c3   : > { %v11627_v16 = vpop.f32.mrf.mxu1  ;;  %11788 = vst.msk [vmem:[#allocation5] sm:$0xff] %vm629_vm3, %v11756_v7  ;;  %v11759_v40 = vadd.f32 %v15973_v17, %v11404_v27  ;;  %11344 = vst.msk [vmem:[#allocation5 + $0x38] sm:$0xff] %vm629_vm3, %v11312_v14  ;;  %v11311_v23 = vadd.f32 %v11176_v18, %v10956_v50  ;;  %v10962_v17 = vld [vmem:[#allocation5 + $0x60] sm:$0xff] }
 0x4c4   : > { %v11403_v2 = vld [vmem:[#allocation5 + $0x10] sm:$0xff]  ;;  %v15932_v22 = vpop.f32.mrf.mxu0 }
 0x4c5   : > { %v15982_v51 = vpop.f32.mrf.mxu1  ;;  %11791 = vst.msk [vmem:[#allocation5 + $0x18] sm:$0xff] %vm629_vm3, %v11759_v40  ;;  %v11758_v11 = vadd.f32 %v11607_v1, %v11403_v2  ;;  %11343 = vst.msk [vmem:[#allocation5 + $0x30] sm:$0xff] %vm629_vm3, %v11311_v23  ;;  %v11314_v25 = vadd.f32 %v15932_v22, %v10959_v20  ;;  %v10965_v1 = vld [vmem:[#allocation5 + $0x78] sm:$0xff] }
 0x4c6   : > { %v11406_v60 = vld [vmem:[#allocation5 + $0x28] sm:$0xff]  ;;  %v11186_v35 = vpop.f32.mrf.mxu0 }
 0x4c7   : > { %v11637_v47 = vpop.f32.mrf.mxu1  ;;  %11790 = vst.msk [vmem:[#allocation5 + $0x10] sm:$0xff] %vm629_vm3, %v11758_v11  ;;  %v11761_v61 = vadd.f32 %v15976_v5, %v11406_v60  ;;  %11346 = vst.msk [vmem:[#allocation5 + $0x48] sm:$0xff] %vm629_vm3, %v11314_v25  ;;  %v11313_v9 = vadd.f32 %v11186_v35, %v10958_v8  ;;  %v10964_v5 = vld [vmem:[#allocation5 + $0x70] sm:$0xff] }
 0x4c8   : > { %v11405_v36 = vld [vmem:[#allocation5 + $0x20] sm:$0xff]  ;;  %v15935_v48 = vpop.f32.mrf.mxu0 }
 0x4c9   : > { %v15985_v46 = vpop.f32.mrf.mxu1  ;;  %11793 = vst.msk [vmem:[#allocation5 + $0x28] sm:$0xff] %vm629_vm3, %v11761_v61  ;;  %v11760_v55 = vadd.f32 %v11617_v29, %v11405_v36  ;;  %11345 = vst.msk [vmem:[#allocation5 + $0x40] sm:$0xff] %vm629_vm3, %v11313_v9  ;;  %v11316_v52 = vadd.f32 %v15935_v48, %v10961_v21  ;;  %v10967_v29 = vld [vmem:[#allocation5 + $0x88] sm:$0xff] }
 0x4ca   : > { %v11408_v6 = vld [vmem:[#allocation5 + $0x38] sm:$0xff]  ;;  %v11196_v4 = vpop.f32.mrf.mxu0 }
 0x4cb   : > { %v11647_v26 = vpop.f32.mrf.mxu1  ;;  %11792 = vst.msk [vmem:[#allocation5 + $0x20] sm:$0xff] %vm629_vm3, %v11760_v55  ;;  %v11763_v28 = vadd.f32 %v15979_v54, %v11408_v6  ;;  %11348 = vst.msk [vmem:[#allocation5 + $0x58] sm:$0xff] %vm629_vm3, %v11316_v52  ;;  %v11315_v42 = vadd.f32 %v11196_v4, %v10960_v62  ;;  %v10966_v54 = vld [vmem:[#allocation5 + $0x80] sm:$0xff] }
 0x4cc   : > { %v11407_v53 = vld [vmem:[#allocation5 + $0x30] sm:$0xff]  ;;  %v15938_v34 = vpop.f32.mrf.mxu0 }
 0x4cd   : > { %v15988_v31 = vpop.f32.mrf.mxu1  ;;  %11795 = vst.msk [vmem:[#allocation5 + $0x38] sm:$0xff] %vm629_vm3, %v11763_v28  ;;  %v11762_v45 = vadd.f32 %v11627_v16, %v11407_v53  ;;  %11347 = vst.msk [vmem:[#allocation5 + $0x50] sm:$0xff] %vm629_vm3, %v11315_v42  ;;  %v11318_v57 = vadd.f32 %v15938_v34, %v10963_v13  ;;  %v10969_v16 = vld [vmem:[#allocation5 + $0x98] sm:$0xff] }
 0x4ce   : > { %v11410_v56 = vld [vmem:[#allocation5 + $0x48] sm:$0xff]  ;;  %v11206_v33 = vpop.f32.mrf.mxu0 }
 0x4cf   : > { %v11657_v12 = vpop.f32.mrf.mxu1  ;;  %11794 = vst.msk [vmem:[#allocation5 + $0x30] sm:$0xff] %vm629_vm3, %v11762_v45  ;;  %v11765_v58 = vadd.f32 %v15982_v51, %v11410_v56  ;;  %11350 = vst.msk [vmem:[#allocation5 + $0x68] sm:$0xff] %vm629_vm3, %v11318_v57  ;;  %v11317_v39 = vadd.f32 %v11206_v33, %v10962_v17  ;;  %v10968_v51 = vld [vmem:[#allocation5 + $0x90] sm:$0xff] }
 0x4d0   : > { %v11409_v41 = vld [vmem:[#allocation5 + $0x40] sm:$0xff]  ;;  %v15941_v19 = vpop.f32.mrf.mxu0 }
 0x4d1   : > { %v15991_v38 = vpop.f32.mrf.mxu1  ;;  %11797 = vst.msk [vmem:[#allocation5 + $0x48] sm:$0xff] %vm629_vm3, %v11765_v58  ;;  %v11764_v44 = vadd.f32 %v11637_v47, %v11409_v41  ;;  %11349 = vst.msk [vmem:[#allocation5 + $0x60] sm:$0xff] %vm629_vm3, %v11317_v39  ;;  %v11320_v32 = vadd.f32 %v15941_v19, %v10965_v1  ;;  %v10971_v47 = vld [vmem:[#allocation5 + $0xa8] sm:$0xff] }
 0x4d2   : > { %v11412_v24 = vld [vmem:[#allocation5 + $0x58] sm:$0xff]  ;;  %v11216_v0 = vpop.f32.mrf.mxu0 }
 0x4d3   : > { %v11667_v30 = vpop.f32.mrf.mxu1  ;;  %11796 = vst.msk [vmem:[#allocation5 + $0x40] sm:$0xff] %vm629_vm3, %v11764_v44  ;;  %v11767_v37 = vadd.f32 %v15985_v46, %v11412_v24  ;;  %11352 = vst.msk [vmem:[#allocation5 + $0x78] sm:$0xff] %vm629_vm3, %v11320_v32  ;;  %v11319_v3 = vadd.f32 %v11216_v0, %v10964_v5  ;;  %v10970_v46 = vld [vmem:[#allocation5 + $0xa0] sm:$0xff] }
 0x4d4   : > { %v11411_v63 = vld [vmem:[#allocation5 + $0x50] sm:$0xff]  ;;  %v15944_v43 = vpop.f32.mrf.mxu0 }
 0x4d5   : > { %v15994_v59 = vpop.f32.mrf.mxu1  ;;  %11799 = vst.msk [vmem:[#allocation5 + $0x58] sm:$0xff] %vm629_vm3, %v11767_v37  ;;  %v11766_v10 = vadd.f32 %v11647_v26, %v11411_v63  ;;  %11351 = vst.msk [vmem:[#allocation5 + $0x70] sm:$0xff] %vm629_vm3, %v11319_v3  ;;  %v11322_v15 = vadd.f32 %v15944_v43, %v10967_v29  ;;  %v10973_v26 = vld [vmem:[#allocation5 + $0xb8] sm:$0xff] }
 0x4d6   : > { %v11414_v49 = vld [vmem:[#allocation5 + $0x68] sm:$0xff]  ;;  %v11226_v7 = vpop.f32.mrf.mxu0 }
 0x4d7   : > { %v11677_v14 = vpop.f32.mrf.mxu1  ;;  %11798 = vst.msk [vmem:[#allocation5 + $0x50] sm:$0xff] %vm629_vm3, %v11766_v10  ;;  %v11769_v27 = vadd.f32 %v15988_v31, %v11414_v49  ;;  %11354 = vst.msk [vmem:[#allocation5 + $0x88] sm:$0xff] %vm629_vm3, %v11322_v15  ;;  %v11321_v50 = vadd.f32 %v11226_v7, %v10966_v54  ;;  %v10972_v31 = vld [vmem:[#allocation5 + $0xb0] sm:$0xff] }
 0x4d8   : > { %v11413_v18 = vld [vmem:[#allocation5 + $0x60] sm:$0xff]  ;;  %v15947_v40 = vpop.f32.mrf.mxu0 }
 0x4d9   : > { %v15997_v23 = vpop.f32.mrf.mxu1  ;;  %11801 = vst.msk [vmem:[#allocation5 + $0x68] sm:$0xff] %vm629_vm3, %v11769_v27  ;;  %v11768_v2 = vadd.f32 %v11657_v12, %v11413_v18  ;;  %11353 = vst.msk [vmem:[#allocation5 + $0x80] sm:$0xff] %vm629_vm3, %v11321_v50  ;;  %v11324_v20 = vadd.f32 %v15947_v40, %v10969_v16  ;;  %v10975_v12 = vld [vmem:[#allocation5 + $0xc8] sm:$0xff]  ;;  %v10978_v40 = vld [vmem:[#allocation5 + $0xe0] sm:$0xff] }
 0x4da   : > { %v11416_v22 = vld [vmem:[#allocation5 + $0x78] sm:$0xff]  ;;  %v11236_v11 = vpop.f32.mrf.mxu0 }
 0x4db   : > { %v11687_v25 = vpop.f32.mrf.mxu1  ;;  %11800 = vst.msk [vmem:[#allocation5 + $0x60] sm:$0xff] %vm629_vm3, %v11768_v2  ;;  %v11771_v60 = vadd.f32 %v15991_v38, %v11416_v22  ;;  %11356 = vst.msk [vmem:[#allocation5 + $0x98] sm:$0xff] %vm629_vm3, %v11324_v20  ;;  %v11323_v8 = vadd.f32 %v11236_v11, %v10968_v51  ;;  %v10974_v38 = vld [vmem:[#allocation5 + $0xc0] sm:$0xff]  ;;  %v10981_v11 = vld [vmem:[#allocation5 + $0xf8] sm:$0xff] }
 0x4dc   : > { %v11415_v35 = vld [vmem:[#allocation5 + $0x70] sm:$0xff]  ;;  %v15950_v61 = vpop.f32.mrf.mxu0 }
 0x4dd   : > { %v16000_v9 = vpop.f32.mrf.mxu1  ;;  %11803 = vst.msk [vmem:[#allocation5 + $0x78] sm:$0xff] %vm629_vm3, %v11771_v60  ;;  %v11770_v36 = vadd.f32 %v11667_v30, %v11415_v35  ;;  %11355 = vst.msk [vmem:[#allocation5 + $0x90] sm:$0xff] %vm629_vm3, %v11323_v8  ;;  %v11326_v21 = vadd.f32 %v15950_v61, %v10971_v47  ;;  %v10977_v30 = vld [vmem:[#allocation5 + $0xd8] sm:$0xff]  ;;  %v10980_v47 = vld [vmem:[#allocation5 + $0xf0] sm:$0xff] }
 0x4de   : > { %v11418_v48 = vld [vmem:[#allocation5 + $0x88] sm:$0xff]  ;;  %v11246_v55 = vpop.f32.mrf.mxu0 }
 0x4df   : > { %v11697_v52 = vpop.f32.mrf.mxu1  ;;  %11802 = vst.msk [vmem:[#allocation5 + $0x70] sm:$0xff] %vm629_vm3, %v11770_v36  ;;  %v11773_v6 = vadd.f32 %v15994_v59, %v11418_v48  ;;  %11358 = vst.msk [vmem:[#allocation5 + $0xa8] sm:$0xff] %vm629_vm3, %v11326_v21  ;;  %v11325_v62 = vadd.f32 %v11246_v55, %v10970_v46  ;;  %v10976_v59 = vld [vmem:[#allocation5 + $0xd0] sm:$0xff]  ;;  %v11853_v46 = vld [vmem:[#allocation5 + $0x8] sm:$0xff] }
 0x4e0   : > { %v11417_v4 = vld [vmem:[#allocation5 + $0x80] sm:$0xff]  ;;  %v15953_v28 = vpop.f32.mrf.mxu0 }
 0x4e1   : > { %v16003_v42 = vpop.f32.mrf.mxu1  ;;  %11805 = vst.msk [vmem:[#allocation5 + $0x88] sm:$0xff] %vm629_vm3, %v11773_v6  ;;  %v11772_v53 = vadd.f32 %v11677_v14, %v11417_v4  ;;  %11357 = vst.msk [vmem:[#allocation5 + $0xa0] sm:$0xff] %vm629_vm3, %v11325_v62  ;;  %v11328_v13 = vadd.f32 %v15953_v28, %v10973_v26  ;;  %v10979_v14 = vld [vmem:[#allocation5 + $0xe8] sm:$0xff]  ;;  %v11852_v4 = vld [vmem:[#allocation5] sm:$0xff] }
 0x4e2   : > { %v11420_v34 = vld [vmem:[#allocation5 + $0x98] sm:$0xff]  ;;  %v11256_v45 = vpop.f32.mrf.mxu0 }
 0x4e3   : > { %v11707_v57 = vpop.f32.mrf.mxu1  ;;  %11804 = vst.msk [vmem:[#allocation5 + $0x80] sm:$0xff] %vm629_vm3, %v11772_v53  ;;  %v11775_v56 = vadd.f32 %v15997_v23, %v11420_v34  ;;  %11360 = vst.msk [vmem:[#allocation5 + $0xb8] sm:$0xff] %vm629_vm3, %v11328_v13  ;;  %v11327_v17 = vadd.f32 %v11256_v45, %v10972_v31  ;;  %v11855_v34 = vld [vmem:[#allocation5 + $0x18] sm:$0xff] }
 0x4e4   : > { %v11419_v33 = vld [vmem:[#allocation5 + $0x90] sm:$0xff]  ;;  %v15956_v58 = vpop.f32.mrf.mxu0 }
 0x4e5   : > { %v16006_v39 = vpop.f32.mrf.mxu1  ;;  %11807 = vst.msk [vmem:[#allocation5 + $0x98] sm:$0xff] %vm629_vm3, %v11775_v56  ;;  %v11774_v41 = vadd.f32 %v11687_v25, %v11419_v33  ;;  %11359 = vst.msk [vmem:[#allocation5 + $0xb0] sm:$0xff] %vm629_vm3, %v11327_v17  ;;  %v11330_v1 = vadd.f32 %v15956_v58, %v10975_v12  ;;  %v11854_v17 = vld [vmem:[#allocation5 + $0x10] sm:$0xff] }
 0x4e6   : > { %v11422_v19 = vld [vmem:[#allocation5 + $0xa8] sm:$0xff]  ;;  %v11266_v44 = vpop.f32.mrf.mxu0 }
 0x4e7   : > { %v11717_v32 = vpop.f32.mrf.mxu1  ;;  %11806 = vst.msk [vmem:[#allocation5 + $0x90] sm:$0xff] %vm629_vm3, %v11774_v41  ;;  %v11777_v24 = vadd.f32 %v16000_v9, %v11422_v19  ;;  %11362 = vst.msk [vmem:[#allocation5 + $0xc8] sm:$0xff] %vm629_vm3, %v11330_v1  ;;  %v11329_v5 = vadd.f32 %v11266_v44, %v10974_v38  ;;  %v11857_v1 = vld [vmem:[#allocation5 + $0x28] sm:$0xff] }
 0x4e8   : > { %v11421_v0 = vld [vmem:[#allocation5 + $0xa0] sm:$0xff]  ;;  %v15959_v37 = vpop.f32.mrf.mxu0 }
 0x4e9   : > { %v16009_v3 = vpop.f32.mrf.mxu1  ;;  %11809 = vst.msk [vmem:[#allocation5 + $0xa8] sm:$0xff] %vm629_vm3, %v11777_v24  ;;  %v11776_v63 = vadd.f32 %v11697_v52, %v11421_v0  ;;  %11361 = vst.msk [vmem:[#allocation5 + $0xc0] sm:$0xff] %vm629_vm3, %v11329_v5  ;;  %v11332_v29 = vadd.f32 %v15959_v37, %v10977_v30  ;;  %v11856_v24 = vld [vmem:[#allocation5 + $0x20] sm:$0xff]  ;;  %v11859_v37 = vld [vmem:[#allocation5 + $0x38] sm:$0xff] }
 0x4ea   : > { %v11424_v43 = vld [vmem:[#allocation5 + $0xb8] sm:$0xff]  ;;  %v11276_v10 = vpop.f32.mrf.mxu0 }
 0x4eb   : > { %11808 = vst.msk [vmem:[#allocation5 + $0xa0] sm:$0xff] %vm629_vm3, %v11776_v63  ;;  %v11779_v15 = vadd.f32 %v16003_v42, %v11424_v43  ;;  %11364 = vst.msk [vmem:[#allocation5 + $0xd8] sm:$0xff] %vm629_vm3, %v11332_v29  ;;  %v11331_v49 = vadd.f32 %v11276_v10, %v10976_v59  ;;  %v11727_v7 = vpop.f32.mrf.mxu1  ;;  %v11858_v10 = vld [vmem:[#allocation5 + $0x30] sm:$0xff] }
 0x4ec   : > { %v11423_v54 = vld [vmem:[#allocation5 + $0xb0] sm:$0xff]  ;;  %v15962_v27 = vpop.f32.mrf.mxu0 }
 0x4ed   : > { %11811 = vst.msk [vmem:[#allocation5 + $0xb8] sm:$0xff] %vm629_vm3, %v11779_v15  ;;  %v11778_v50 = vadd.f32 %v11707_v57, %v11423_v54  ;;  %11363 = vst.msk [vmem:[#allocation5 + $0xd0] sm:$0xff] %vm629_vm3, %v11331_v49  ;;  %v11334_v18 = vadd.f32 %v15962_v27, %v10979_v14  ;;  %v16012_v51 = vpop.f32.mrf.mxu1  ;;  %v11861_v14 = vld [vmem:[#allocation5 + $0x48] sm:$0xff] }
 0x4ee   : > { %v11426_v16 = vld [vmem:[#allocation5 + $0xc8] sm:$0xff]  ;;  %v11286_v23 = vpop.f32.mrf.mxu0 }
 0x4ef   : > { %11810 = vst.msk [vmem:[#allocation5 + $0xb0] sm:$0xff] %vm629_vm3, %v11778_v50  ;;  %v11781_v2 = vadd.f32 %v16006_v39, %v11426_v16  ;;  %11366 = vst.msk [vmem:[#allocation5 + $0xe8] sm:$0xff] %vm629_vm3, %v11334_v18  ;;  %v11333_v20 = vadd.f32 %v11286_v23, %v10978_v40  ;;  %v11737_v48 = vpop.f32.mrf.mxu1 }
 0x4f0   : > { %v11425_v22 = vld [vmem:[#allocation5 + $0xc0] sm:$0xff]  ;;  %v15965_v25 = vpop.f32.mrf.mxu0 }
 0x4f1   : > { %11813 = vst.msk [vmem:[#allocation5 + $0xc8] sm:$0xff] %vm629_vm3, %v11781_v2  ;;  %v11780_v60 = vadd.f32 %v11717_v32, %v11425_v22  ;;  %11365 = vst.msk [vmem:[#allocation5 + $0xe0] sm:$0xff] %vm629_vm3, %v11333_v20  ;;  %v11336_v8 = vadd.f32 %v15965_v25, %v10981_v11  ;;  %v16015_v28 = vpop.f32.mrf.mxu1  ;;  %v19031_v32 = vld [vmem:[%s19242_s6] ss:$0 sm:$0xff]  ;;  %v11863_v25 = vld [vmem:[#allocation5 + $0x58] sm:$0xff] }
 0x4f2   : > { %v11428_v35 = vld [vmem:[#allocation5 + $0xd8] sm:$0xff]  ;;  %v11296_v61 = vpop.f32.mrf.mxu0  ;;  %v11860_v2 = vld [vmem:[#allocation5 + $0x40] sm:$0xff] }
 0x4f3   : > { %11812 = vst.msk [vmem:[#allocation5 + $0xc0] sm:$0xff] %vm629_vm3, %v11780_v60  ;;  %v11783_v9 = vadd.f32 %v16009_v3, %v11428_v35  ;;  %11368 = vst.msk [vmem:[#allocation5 + $0xf8] sm:$0xff] %vm629_vm3, %v11336_v8  ;;  %v11335_v36 = vadd.f32 %v11296_v61, %v10980_v47  ;;  %v11747_v12 = vpop.f32.mrf.mxu1 }
 0x4f4   : > { %v11427_v21 = vld [vmem:[#allocation5 + $0xd0] sm:$0xff]  ;;  %v16020_v55 = vpop.f32.mrf.mxu0 }
 0x4f5   : > { %11815 = vst.msk [vmem:[#allocation5 + $0xd8] sm:$0xff] %vm629_vm3, %v11783_v9  ;;  %v11782_v52 = vadd.f32 %v11727_v7, %v11427_v21  ;;  %11367 = vst.msk [vmem:[#allocation5 + $0xf0] sm:$0xff] %vm629_vm3, %v11335_v36  ;;  %v12208_v6 = vadd.f32 %v16020_v55, %v11853_v46  ;;  %v11862_v36 = vld [vmem:[#allocation5 + $0x50] sm:$0xff] }
 0x4f6   : > { %v11430_v62 = vld [vmem:[#allocation5 + $0xe8] sm:$0xff]  ;;  %v12048_v26 = vpop.f32.mrf.mxu0 }
 0x4f7   : > { %11814 = vst.msk [vmem:[#allocation5 + $0xd0] sm:$0xff] %vm629_vm3, %v11782_v52  ;;  %v11785_v42 = vadd.f32 %v16012_v51, %v11430_v62  ;;  %12240 = vst.msk [vmem:[#allocation5 + $0x8] sm:$0xff] %vm629_vm3, %v12208_v6  ;;  %v12207_v53 = vadd.f32 %v12048_v26, %v11852_v4  ;;  %v11865_v52 = vld [vmem:[#allocation5 + $0x68] sm:$0xff] }
 0x4f8   : > { %v11429_v13 = vld [vmem:[#allocation5 + $0xe0] sm:$0xff]  ;;  %v16023_v31 = vpop.f32.mrf.mxu0 }
 0x4f9   : > { %11817 = vst.msk [vmem:[#allocation5 + $0xe8] sm:$0xff] %vm629_vm3, %v11785_v42  ;;  %v11784_v45 = vadd.f32 %v11737_v48, %v11429_v13  ;;  %12239 = vst.msk [vmem:[#allocation5] sm:$0xff] %vm629_vm3, %v12207_v53  ;;  %v12210_v57 = vadd.f32 %v16023_v31, %v11855_v34  ;;  %v11864_v53 = vld [vmem:[#allocation5 + $0x60] sm:$0xff] }
 0x4fa   : > { %v11432_v56 = vld [vmem:[#allocation5 + $0xf8] sm:$0xff]  ;;  %v12058_v33 = vpop.f32.mrf.mxu0 }
 0x4fb   : > { %11816 = vst.msk [vmem:[#allocation5 + $0xe0] sm:$0xff] %vm629_vm3, %v11784_v45  ;;  %12242 = vst.msk [vmem:[#allocation5 + $0x18] sm:$0xff] %vm629_vm3, %v12210_v57  ;;  %v11787_v58 = vadd.f32 %v16015_v28, %v11432_v56  ;;  %v12209_v39 = vadd.f32 %v12058_v33, %v11854_v17  ;;  %v11867_v57 = vld [vmem:[#allocation5 + $0x78] sm:$0xff] }
 0x4fc   : > { %v11431_v41 = vld [vmem:[#allocation5 + $0xf0] sm:$0xff]  ;;  %v16026_v19 = vpop.f32.mrf.mxu0 }
 0x4fd   : > { %11819 = vst.msk [vmem:[#allocation5 + $0xf8] sm:$0xff] %vm629_vm3, %v11787_v58  ;;  %12241 = vst.msk [vmem:[#allocation5 + $0x10] sm:$0xff] %vm629_vm3, %v12209_v39  ;;  %v11786_v38 = vadd.f32 %v11747_v12, %v11431_v41  ;;  %v12212_v44 = vadd.f32 %v16026_v19, %v11857_v1  ;;  %v11866_v41 = vld [vmem:[#allocation5 + $0x70] sm:$0xff] }
 0x4fe   : > { %v12068_v5 = vpop.f32.mrf.mxu0  ;;  %v12272_v0 = vld [vmem:[#allocation5 + $0x8] sm:$0xff] }
 0x4ff   : > { %11818 = vst.msk [vmem:[#allocation5 + $0xf0] sm:$0xff] %vm629_vm3, %v11786_v38  ;;  %12244 = vst.msk [vmem:[#allocation5 + $0x28] sm:$0xff] %vm629_vm3, %v12212_v44  ;;  %v12211_v30 = vadd.f32 %v12068_v5, %v11856_v24  ;;  %v12311_v29 = vadd.f32 %v19031_v32, %v12272_v0  ;;  %v11869_v24 = vld [vmem:[#allocation5 + $0x88] sm:$0xff] }
 0x500   : > { %v16029_v3 = vpop.f32.mrf.mxu0  ;;  %v12271_v63 = vld [vmem:[#allocation5] sm:$0xff] }
 0x501   : > { %12243 = vst.msk [vmem:[#allocation5 + $0x20] sm:$0xff] %vm629_vm3, %v12211_v30  ;;  %v12214_v43 = vadd.f32 %v16029_v3, %v11859_v37  ;;  %v12310_v59 = vadd.f32 %v19031_v32, %v12271_v63  ;;  %v12343_v50 = vmax.f32 %v12311_v29, 0.0  ;;  %v11868_v29 = vld [vmem:[#allocation5 + $0x80] sm:$0xff] }
 0x502   : > { %v12078_v15 = vpop.f32.mrf.mxu0  ;;  %v12274_v49 = vld [vmem:[#allocation5 + $0x18] sm:$0xff] }
 0x503   : > { %12246 = vst.msk [vmem:[#allocation5 + $0x38] sm:$0xff] %vm629_vm3, %v12214_v43  ;;  %v12213_v54 = vadd.f32 %v12078_v15, %v11858_v10  ;;  %v12342_v7 = vmax.f32 %v12310_v59, 0.0  ;;  %v12313_v16 = vadd.f32 %v19031_v32, %v12274_v49  ;;  %v11871_v49 = vld [vmem:[#allocation5 + $0x98] sm:$0xff] }
 0x504   : > { %v16032_v27 = vpop.f32.mrf.mxu0  ;;  %v12273_v18 = vld [vmem:[#allocation5 + $0x10] sm:$0xff] }
 0x505   : > { %12245 = vst.msk [vmem:[#allocation5 + $0x30] sm:$0xff] %vm629_vm3, %v12213_v54  ;;  %v12216_v40 = vadd.f32 %v16032_v27, %v11861_v14  ;;  %16068 = vmatprep.mubr.msk.f32.mxu1 %vm629_vm3, %v12342_v7  ;;  %v12312_v23 = vadd.f32 %v19031_v32, %v12273_v18  ;;  %v12345_v8 = vmax.f32 %v12313_v16, 0.0  ;;  %v11870_v16 = vld [vmem:[#allocation5 + $0x90] sm:$0xff] }
 0x506   : > { %v12088_v20 = vpop.f32.mrf.mxu0  ;;  %16069 = vmatmul.mubr.msk.f32.vlgmr.msra.gmra.mxu1 %vm629_vm3, %v12343_v50  ;;  %v12276_v22 = vld [vmem:[#allocation5 + $0x28] sm:$0xff] }
 0x507   : > { %12248 = vst.msk [vmem:[#allocation5 + $0x48] sm:$0xff] %vm629_vm3, %v12216_v40  ;;  %v12215_v51 = vadd.f32 %v12088_v20, %v11860_v2  ;;  %v12344_v11 = vmax.f32 %v12312_v23, 0.0  ;;  %v12315_v47 = vadd.f32 %v19031_v32, %v12276_v22  ;;  %v11873_v22 = vld [vmem:[#allocation5 + $0xa8] sm:$0xff] }
 0x508   : > { %v16035_v60 = vpop.f32.mrf.mxu0  ;;  %v12275_v35 = vld [vmem:[#allocation5 + $0x20] sm:$0xff] }
 0x509   : > { %12247 = vst.msk [vmem:[#allocation5 + $0x40] sm:$0xff] %vm629_vm3, %v12215_v51  ;;  %v12218_v61 = vadd.f32 %v16035_v60, %v11863_v25  ;;  %16071 = vmatprep.mubr.msk.f32.mxu1 %vm629_vm3, %v12344_v11  ;;  %v12314_v9 = vadd.f32 %v19031_v32, %v12275_v35  ;;  %v12347_v62 = vmax.f32 %v12315_v47, 0.0  ;;  %v11872_v47 = vld [vmem:[#allocation5 + $0xa0] sm:$0xff] }
 0x50a   : > { %v12098_v21 = vpop.f32.mrf.mxu0  ;;  %16072 = vmatmul.mubr.msk.f32.gmra.mxu1 %vm629_vm3, %v12345_v8  ;;  %v12278_v48 = vld [vmem:[#allocation5 + $0x38] sm:$0xff] }
 0x50b   : > { %12250 = vst.msk [vmem:[#allocation5 + $0x58] sm:$0xff] %vm629_vm3, %v12218_v61  ;;  %v12217_v46 = vadd.f32 %v12098_v21, %v11862_v36  ;;  %v12346_v55 = vmax.f32 %v12314_v9, 0.0  ;;  %v12317_v26 = vadd.f32 %v19031_v32, %v12278_v48  ;;  %v11875_v48 = vld [vmem:[#allocation5 + $0xb8] sm:$0xff] }
 0x50c   : > { %v16038_v6 = vpop.f32.mrf.mxu0  ;;  %v12277_v4 = vld [vmem:[#allocation5 + $0x30] sm:$0xff] }
 0x50d   : > { %12249 = vst.msk [vmem:[#allocation5 + $0x50] sm:$0xff] %vm629_vm3, %v12217_v46  ;;  %v12220_v28 = vadd.f32 %v16038_v6, %v11865_v52  ;;  %16074 = vmatprep.mubr.msk.f32.mxu1 %vm629_vm3, %v12346_v55  ;;  %v12316_v42 = vadd.f32 %v19031_v32, %v12277_v4  ;;  %v12349_v17 = vmax.f32 %v12317_v26, 0.0  ;;  %v11874_v26 = vld [vmem:[#allocation5 + $0xb0] sm:$0xff] }
 0x50e   : > { %v12108_v13 = vpop.f32.mrf.mxu0  ;;  %16075 = vmatmul.mubr.msk.f32.gmra.mxu1 %vm629_vm3, %v12347_v62  ;;  %v12280_v34 = vld [vmem:[#allocation5 + $0x48] sm:$0xff] }
 0x50f   : > { %12252 = vst.msk [vmem:[#allocation5 + $0x68] sm:$0xff] %vm629_vm3, %v12220_v28  ;;  %v12219_v31 = vadd.f32 %v12108_v13, %v11864_v53  ;;  %v12348_v45 = vmax.f32 %v12316_v42, 0.0  ;;  %v12319_v12 = vadd.f32 %v19031_v32, %v12280_v34  ;;  %v11877_v34 = vld [vmem:[#allocation5 + $0xc8] sm:$0xff] }
 0x510   : > { %v16041_v56 = vpop.f32.mrf.mxu0  ;;  %v12279_v33 = vld [vmem:[#allocation5 + $0x40] sm:$0xff] }
 0x511   : > { %12251 = vst.msk [vmem:[#allocation5 + $0x60] sm:$0xff] %vm629_vm3, %v12219_v31  ;;  %v12222_v58 = vadd.f32 %v16041_v56, %v11867_v57  ;;  %16077 = vmatprep.mubr.msk.f32.mxu1 %vm629_vm3, %v12348_v45  ;;  %v12318_v39 = vadd.f32 %v19031_v32, %v12279_v33  ;;  %v12351_v0 = vmax.f32 %v12319_v12, 0.0  ;;  %v11876_v12 = vld [vmem:[#allocation5 + $0xc0] sm:$0xff] }
 0x512   : > { %v12118_v1 = vpop.f32.mrf.mxu0  ;;  %16078 = vmatmul.mubr.msk.f32.gmra.mxu1 %vm629_vm3, %v12349_v17  ;;  %v12282_v19 = vld [vmem:[#allocation5 + $0x58] sm:$0xff] }
 0x513   : > { %12254 = vst.msk [vmem:[#allocation5 + $0x78] sm:$0xff] %vm629_vm3, %v12222_v58  ;;  %v12221_v38 = vadd.f32 %v12118_v1, %v11866_v41  ;;  %v12350_v44 = vmax.f32 %v12318_v39, 0.0  ;;  %v12321_v37 = vadd.f32 %v19031_v32, %v12282_v19  ;;  %v11879_v19 = vld [vmem:[#allocation5 + $0xd8] sm:$0xff] }
 0x514   : > { %v16044_v5 = vpop.f32.mrf.mxu0  ;;  %v12281_v30 = vld [vmem:[#allocation5 + $0x50] sm:$0xff] }
 0x515   : > { %12253 = vst.msk [vmem:[#allocation5 + $0x70] sm:$0xff] %vm629_vm3, %v12221_v38  ;;  %v12224_v3 = vadd.f32 %v16044_v5, %v11869_v24  ;;  %16080 = vmatprep.mubr.msk.f32.mxu1 %vm629_vm3, %v12350_v44  ;;  %v12320_v63 = vadd.f32 %v19031_v32, %v12281_v30  ;;  %v12353_v7 = vmax.f32 %v12321_v37, 0.0  ;;  %v11878_v37 = vld [vmem:[#allocation5 + $0xd0] sm:$0xff] }
 0x516   : > { %v12128_v43 = vpop.f32.mrf.mxu0  ;;  %16081 = vmatmul.mubr.msk.f32.gmra.mxu1 %vm629_vm3, %v12351_v0  ;;  %v12284_v59 = vld [vmem:[#allocation5 + $0x68] sm:$0xff] }
 0x517   : > { %12256 = vst.msk [vmem:[#allocation5 + $0x88] sm:$0xff] %vm629_vm3, %v12224_v3  ;;  %v12223_v10 = vadd.f32 %v12128_v43, %v11868_v29  ;;  %v12352_v15 = vmax.f32 %v12320_v63, 0.0  ;;  %v12323_v27 = vadd.f32 %v19031_v32, %v12284_v59  ;;  %v11881_v59 = vld [vmem:[#allocation5 + $0xe8] sm:$0xff] }
 0x518   : > { %v16047_v54 = vpop.f32.mrf.mxu0  ;;  %v12283_v14 = vld [vmem:[#allocation5 + $0x60] sm:$0xff] }
 0x519   : > { %12255 = vst.msk [vmem:[#allocation5 + $0x80] sm:$0xff] %vm629_vm3, %v12223_v10  ;;  %v12226_v50 = vadd.f32 %v16047_v54, %v11871_v49  ;;  %16083 = vmatprep.mubr.msk.f32.mxu1 %vm629_vm3, %v12352_v15  ;;  %v12322_v18 = vadd.f32 %v19031_v32, %v12283_v14  ;;  %v12355_v11 = vmax.f32 %v12323_v27, 0.0  ;;  %v11880_v27 = vld [vmem:[#allocation5 + $0xe0] sm:$0xff] }
 0x51a   : > { %v12138_v40 = vpop.f32.mrf.mxu0  ;;  %16084 = vmatmul.mubr.msk.f32.gmra.mxu1 %vm629_vm3, %v12353_v7  ;;  %v12286_v23 = vld [vmem:[#allocation5 + $0x78] sm:$0xff] }
 0x51b   : > { %12258 = vst.msk [vmem:[#allocation5 + $0x98] sm:$0xff] %vm629_vm3, %v12226_v50  ;;  %v12225_v2 = vadd.f32 %v12138_v40, %v11870_v16  ;;  %v12354_v20 = vmax.f32 %v12322_v18, 0.0  ;;  %v12325_v60 = vadd.f32 %v19031_v32, %v12286_v23  ;;  %v11883_v23 = vld [vmem:[#allocation5 + $0xf8] sm:$0xff] }
 0x51c   : > { %v16050_v51 = vpop.f32.mrf.mxu0  ;;  %v12285_v25 = vld [vmem:[#allocation5 + $0x70] sm:$0xff] }
 0x51d   : > { %12257 = vst.msk [vmem:[#allocation5 + $0x90] sm:$0xff] %vm629_vm3, %v12225_v2  ;;  %v12228_v8 = vadd.f32 %v16050_v51, %v11873_v22  ;;  %16086 = vmatprep.mubr.msk.f32.mxu1 %vm629_vm3, %v12354_v20  ;;  %v12324_v35 = vadd.f32 %v19031_v32, %v12285_v25  ;;  %v12357_v55 = vmax.f32 %v12325_v60, 0.0  ;;  %v11882_v60 = vld [vmem:[#allocation5 + $0xf0] sm:$0xff] }
 0x51e   : > { %v12148_v61 = vpop.f32.mrf.mxu0  ;;  %16087 = vmatmul.mubr.msk.f32.gmra.mxu1 %vm629_vm3, %v12355_v11  ;;  %v12288_v9 = vld [vmem:[#allocation5 + $0x88] sm:$0xff] }
 0x51f   : > { %12260 = vst.msk [vmem:[#allocation5 + $0xa8] sm:$0xff] %vm629_vm3, %v12228_v8  ;;  %v12227_v36 = vadd.f32 %v12148_v61, %v11872_v47  ;;  %v12356_v21 = vmax.f32 %v12324_v35, 0.0  ;;  %v12327_v6 = vadd.f32 %v19031_v32, %v12288_v9 }
 0x520   : > { %v16053_v46 = vpop.f32.mrf.mxu0  ;;  %v12287_v52 = vld [vmem:[#allocation5 + $0x80] sm:$0xff] }
 0x521   : > { %12259 = vst.msk [vmem:[#allocation5 + $0xa0] sm:$0xff] %vm629_vm3, %v12227_v36  ;;  %v12230_v62 = vadd.f32 %v16053_v46, %v11875_v48  ;;  %16089 = vmatprep.mubr.msk.f32.mxu1 %vm629_vm3, %v12356_v21  ;;  %v12326_v4 = vadd.f32 %v19031_v32, %v12287_v52  ;;  %v12359_v45 = vmax.f32 %v12327_v6, 0.0 }
 0x522   : > { %v12158_v28 = vpop.f32.mrf.mxu0  ;;  %16090 = vmatmul.mubr.msk.f32.gmra.mxu1 %vm629_vm3, %v12357_v55  ;;  %v12290_v42 = vld [vmem:[#allocation5 + $0x98] sm:$0xff] }
 0x523   : > { %12262 = vst.msk [vmem:[#allocation5 + $0xb8] sm:$0xff] %vm629_vm3, %v12230_v62  ;;  %v12229_v53 = vadd.f32 %v12158_v28, %v11874_v26  ;;  %v12358_v13 = vmax.f32 %v12326_v4, 0.0  ;;  %v12329_v56 = vadd.f32 %v19031_v32, %v12290_v42 }
 0x524   : > { %v16056_v31 = vpop.f32.mrf.mxu0  ;;  %v12289_v57 = vld [vmem:[#allocation5 + $0x90] sm:$0xff] }
 0x525   : > { %12261 = vst.msk [vmem:[#allocation5 + $0xb0] sm:$0xff] %vm629_vm3, %v12229_v53  ;;  %v12232_v17 = vadd.f32 %v16056_v31, %v11877_v34  ;;  %16092 = vmatprep.mubr.msk.f32.mxu1 %vm629_vm3, %v12358_v13  ;;  %v12328_v33 = vadd.f32 %v19031_v32, %v12289_v57  ;;  %v12361_v44 = vmax.f32 %v12329_v56, 0.0  ;;  %v19129_v57 = vld [vmem:[%s19244_s8] ss:$0 sm:$0xff] }
 0x526   : > { %v12168_v58 = vpop.f32.mrf.mxu0  ;;  %16093 = vmatmul.mubr.msk.f32.gmra.mxu1 %vm629_vm3, %v12359_v45  ;;  %v12292_v39 = vld [vmem:[#allocation5 + $0xa8] sm:$0xff] }
 0x527   : > { %12264 = vst.msk [vmem:[#allocation5 + $0xc8] sm:$0xff] %vm629_vm3, %v12232_v17  ;;  %v12231_v41 = vadd.f32 %v12168_v58, %v11876_v12  ;;  %v12360_v1 = vmax.f32 %v12328_v33, 0.0  ;;  %v12331_v5 = vadd.f32 %v19031_v32, %v12292_v39 }
 0x528   : > { %v16059_v38 = vpop.f32.mrf.mxu0  ;;  %v12291_v24 = vld [vmem:[#allocation5 + $0xa0] sm:$0xff] }
 0x529   : > { %12263 = vst.msk [vmem:[#allocation5 + $0xc0] sm:$0xff] %vm629_vm3, %v12231_v41  ;;  %v12234_v0 = vadd.f32 %v16059_v38, %v11879_v19  ;;  %16095 = vmatprep.mubr.msk.f32.mxu1 %vm629_vm3, %v12360_v1  ;;  %v12330_v30 = vadd.f32 %v19031_v32, %v12291_v24  ;;  %v12363_v15 = vmax.f32 %v12331_v5, 0.0 }
 0x52a   : > { %v12178_v3 = vpop.f32.mrf.mxu0  ;;  %16096 = vmatmul.mubr.msk.f32.gmra.mxu1 %vm629_vm3, %v12361_v44  ;;  %v12294_v63 = vld [vmem:[#allocation5 + $0xb8] sm:$0xff] }
 0x52b   : > { %12266 = vst.msk [vmem:[#allocation5 + $0xd8] sm:$0xff] %vm629_vm3, %v12234_v0  ;;  %v12233_v29 = vadd.f32 %v12178_v3, %v11878_v37  ;;  %v12362_v43 = vmax.f32 %v12330_v30, 0.0  ;;  %v12333_v54 = vadd.f32 %v19031_v32, %v12294_v63 }
 0x52c   : > { %v16062_v10 = vpop.f32.mrf.mxu0  ;;  %v12293_v49 = vld [vmem:[#allocation5 + $0xb0] sm:$0xff] }
 0x52d   : > { %12265 = vst.msk [vmem:[#allocation5 + $0xd0] sm:$0xff] %vm629_vm3, %v12233_v29  ;;  %v12236_v7 = vadd.f32 %v16062_v10, %v11881_v59  ;;  %16098 = vmatprep.mubr.msk.f32.mxu1 %vm629_vm3, %v12362_v43  ;;  %v12332_v14 = vadd.f32 %v19031_v32, %v12293_v49  ;;  %v12365_v20 = vmax.f32 %v12333_v54, 0.0 }
 0x52e   : > { %v12188_v50 = vpop.f32.mrf.mxu0  ;;  %16099 = vmatmul.mubr.msk.f32.gmra.mxu1 %vm629_vm3, %v12363_v15  ;;  %v12296_v18 = vld [vmem:[#allocation5 + $0xc8] sm:$0xff] }
 0x52f   : > { %12268 = vst.msk [vmem:[#allocation5 + $0xe8] sm:$0xff] %vm629_vm3, %v12236_v7  ;;  %v12235_v16 = vadd.f32 %v12188_v50, %v11880_v27  ;;  %v12364_v40 = vmax.f32 %v12332_v14, 0.0  ;;  %v12335_v51 = vadd.f32 %v19031_v32, %v12296_v18 }
 0x530   : > { %v16065_v2 = vpop.f32.mrf.mxu0  ;;  %v12295_v22 = vld [vmem:[#allocation5 + $0xc0] sm:$0xff] }
 0x531   : > { %12267 = vst.msk [vmem:[#allocation5 + $0xe0] sm:$0xff] %vm629_vm3, %v12235_v16  ;;  %v12238_v11 = vadd.f32 %v16065_v2, %v11883_v23  ;;  %16101 = vmatprep.mubr.msk.f32.mxu1 %vm629_vm3, %v12364_v40  ;;  %v12334_v25 = vadd.f32 %v19031_v32, %v12295_v22  ;;  %v12367_v9 = vmax.f32 %v12335_v51, 0.0 }
 0x532   : > { %v12198_v8 = vpop.f32.mrf.mxu0  ;;  %16102 = vmatmul.mubr.msk.f32.gmra.mxu1 %vm629_vm3, %v12365_v20  ;;  %v12298_v35 = vld [vmem:[#allocation5 + $0xd8] sm:$0xff] }
 0x533   : > { %12270 = vst.msk [vmem:[#allocation5 + $0xf8] sm:$0xff] %vm629_vm3, %v12238_v11  ;;  %v12237_v47 = vadd.f32 %v12198_v8, %v11882_v60  ;;  %v12366_v61 = vmax.f32 %v12334_v25, 0.0  ;;  %v12337_v21 = vadd.f32 %v19031_v32, %v12298_v35 }
 0x534   : > { %v12297_v36 = vld [vmem:[#allocation5 + $0xd0] sm:$0xff] }
 0x535   : > { %12269 = vst.msk [vmem:[#allocation5 + $0xf0] sm:$0xff] %vm629_vm3, %v12237_v47  ;;  %16104 = vmatprep.mubr.msk.f32.mxu1 %vm629_vm3, %v12366_v61  ;;  %v12336_v48 = vadd.f32 %v19031_v32, %v12297_v36  ;;  %v12369_v52 = vmax.f32 %v12337_v21, 0.0 }
 0x536   : > { %16105 = vmatmul.mubr.msk.f32.gmra.mxu1 %vm629_vm3, %v12367_v9  ;;  %v12300_v46 = vld [vmem:[#allocation5 + $0xe8] sm:$0xff] }
 0x537   : > { %v12368_v55 = vmax.f32 %v12336_v48, 0.0  ;;  %v12339_v62 = vadd.f32 %v19031_v32, %v12300_v46 }
 0x538   : > { %v12299_v6 = vld [vmem:[#allocation5 + $0xe0] sm:$0xff] }
 0x539   : > { %16107 = vmatprep.mubr.msk.f32.mxu1 %vm629_vm3, %v12368_v55  ;;  %v12338_v4 = vadd.f32 %v19031_v32, %v12299_v6  ;;  %v12371_v42 = vmax.f32 %v12339_v62, 0.0 }
 0x53a   : > { %16108 = vmatmul.mubr.msk.f32.gmra.mxu1 %vm629_vm3, %v12369_v52  ;;  %v12302_v26 = vld [vmem:[#allocation5 + $0xf8] sm:$0xff] }
 0x53b   : > { %v12370_v28 = vmax.f32 %v12338_v4, 0.0  ;;  %v12341_v13 = vadd.f32 %v19031_v32, %v12302_v26 }
 0x53c   : > { %v12301_v53 = vld [vmem:[#allocation5 + $0xf0] sm:$0xff] }
 0x53d   : > { %16110 = vmatprep.mubr.msk.f32.mxu1 %vm629_vm3, %v12370_v28  ;;  %v12340_v34 = vadd.f32 %v19031_v32, %v12301_v53  ;;  %v12373_v45 = vmax.f32 %v12341_v13, 0.0 }
 0x53e   : > { %16111 = vmatmul.mubr.msk.f32.gmra.mxu1 %vm629_vm3, %v12371_v42 }
 0x53f   : > { %v12372_v31 = vmax.f32 %v12340_v34, 0.0 }
 0x541   : > { %16113 = vmatprep.mubr.msk.f32.mxu1 %vm629_vm3, %v12372_v31 }
 0x542   : > { %16114 = vmatmul.mubr.msk.f32.gmra.mxu1 %vm629_vm3, %v12373_v45 }
 0x5c6   : > { %v16070_v56 = vpop.f32.mrf.mxu1 }
 0x5c7   : > { %v12550_v17 = vadd.f32 %v16070_v56, %v19129_v57 }
 0x5c8   : > { %v12544_v32 = vpop.f32.mrf.mxu1 }
 0x5c9   : > { %v12704_v33 = vmax.f32 %v12550_v17, 0.0  ;;  %v12545_v12 = vadd.f32 %v19129_v57, %v12544_v32 }
 0x5ca   : > { %v16073_v58 = vpop.f32.mrf.mxu1 }
 0x5cb   : > { %12737 = vst.msk [vmem:[%s19136_s28 + $0x8] sm:$0xff] %vm12735_vm5, %v12704_v33  ;;  %v12703_v39 = vmax.f32 %v12545_v12, 0.0  ;;  %v12560_v41 = vadd.f32 %v16073_v58, %v19129_v57 }
 0x5cc   : > { %v12554_v1 = vpop.f32.mrf.mxu1 }
 0x5cd   : > { %12736 = vst.msk [vmem:[%s19136_s28] sm:$0xff] %vm12735_vm5, %v12703_v39  ;;  %v12706_v19 = vmax.f32 %v12560_v41, 0.0  ;;  %v12555_v38 = vadd.f32 %v19129_v57, %v12554_v1 }
 0x5ce   : > { %v16076_v44 = vpop.f32.mrf.mxu1 }
 0x5cf   : > { %12739 = vst.msk [vmem:[%s19136_s28 + $0x18] sm:$0xff] %vm12735_vm5, %v12706_v19  ;;  %v12705_v24 = vmax.f32 %v12555_v38, 0.0  ;;  %v12570_v5 = vadd.f32 %v16076_v44, %v19129_v57 }
 0x5d0   : > { %v12564_v0 = vpop.f32.mrf.mxu1 }
 0x5d1   : > { %12738 = vst.msk [vmem:[%s19136_s28 + $0x10] sm:$0xff] %vm12735_vm5, %v12705_v24  ;;  %v12708_v30 = vmax.f32 %v12570_v5, 0.0  ;;  %v12565_v37 = vadd.f32 %v19129_v57, %v12564_v0 }
 0x5d2   : > { %v16079_v3 = vpop.f32.mrf.mxu1 }
 0x5d3   : > { %12741 = vst.msk [vmem:[%s19136_s28 + $0x28] sm:$0xff] %vm12735_vm5, %v12708_v30  ;;  %v12707_v63 = vmax.f32 %v12565_v37, 0.0  ;;  %v12580_v29 = vadd.f32 %v16079_v3, %v19129_v57 }
 0x5d4   : > { %v12574_v43 = vpop.f32.mrf.mxu1 }
 0x5d5   : > { %12740 = vst.msk [vmem:[%s19136_s28 + $0x20] sm:$0xff] %vm12735_vm5, %v12707_v63  ;;  %v12710_v59 = vmax.f32 %v12580_v29, 0.0  ;;  %v12575_v10 = vadd.f32 %v19129_v57, %v12574_v43 }
 0x5d6   : > { %v16082_v15 = vpop.f32.mrf.mxu1 }
 0x5d7   : > { %12743 = vst.msk [vmem:[%s19136_s28 + $0x38] sm:$0xff] %vm12735_vm5, %v12710_v59  ;;  %v12709_v49 = vmax.f32 %v12575_v10, 0.0  ;;  %v12590_v54 = vadd.f32 %v16082_v15, %v19129_v57 }
 0x5d8   : > { %v12584_v7 = vpop.f32.mrf.mxu1 }
 0x5d9   : > { %12742 = vst.msk [vmem:[%s19136_s28 + $0x30] sm:$0xff] %vm12735_vm5, %v12709_v49  ;;  %v12712_v14 = vmax.f32 %v12590_v54, 0.0  ;;  %v12585_v27 = vadd.f32 %v19129_v57, %v12584_v7 }
 0x5da   : > { %v16085_v50 = vpop.f32.mrf.mxu1 }
 0x5db   : > { %12745 = vst.msk [vmem:[%s19136_s28 + $0x48] sm:$0xff] %vm12735_vm5, %v12712_v14  ;;  %v12711_v18 = vmax.f32 %v12585_v27, 0.0  ;;  %v12600_v16 = vadd.f32 %v16085_v50, %v19129_v57 }
 0x5dc   : > { %v12594_v40 = vpop.f32.mrf.mxu1 }
 0x5dd   : > { %12744 = vst.msk [vmem:[%s19136_s28 + $0x40] sm:$0xff] %vm12735_vm5, %v12711_v18  ;;  %v12714_v23 = vmax.f32 %v12600_v16, 0.0  ;;  %v12595_v2 = vadd.f32 %v19129_v57, %v12594_v40 }
 0x5de   : > { %v16088_v20 = vpop.f32.mrf.mxu1 }
 0x5df   : > { %12747 = vst.msk [vmem:[%s19136_s28 + $0x58] sm:$0xff] %vm12735_vm5, %v12714_v23  ;;  %v12713_v22 = vmax.f32 %v12595_v2, 0.0  ;;  %v12610_v51 = vadd.f32 %v16088_v20, %v19129_v57 }
 0x5e0   : > { %v12604_v11 = vpop.f32.mrf.mxu1 }
 0x5e1   : > { %12746 = vst.msk [vmem:[%s19136_s28 + $0x50] sm:$0xff] %vm12735_vm5, %v12713_v22  ;;  %v12716_v25 = vmax.f32 %v12610_v51, 0.0  ;;  %v12605_v60 = vadd.f32 %v19129_v57, %v12604_v11 }
 0x5e2   : > { %v16091_v8 = vpop.f32.mrf.mxu1 }
 0x5e3   : > { %12749 = vst.msk [vmem:[%s19136_s28 + $0x68] sm:$0xff] %vm12735_vm5, %v12716_v25  ;;  %v12715_v35 = vmax.f32 %v12605_v60, 0.0  ;;  %v12620_v47 = vadd.f32 %v16091_v8, %v19129_v57 }
 0x5e4   : > { %v12614_v61 = vpop.f32.mrf.mxu1 }
 0x5e5   : > { %12748 = vst.msk [vmem:[%s19136_s28 + $0x60] sm:$0xff] %vm12735_vm5, %v12715_v35  ;;  %v12718_v9 = vmax.f32 %v12620_v47, 0.0  ;;  %v12615_v36 = vadd.f32 %v19129_v57, %v12614_v61 }
 0x5e6   : > { %v16094_v21 = vpop.f32.mrf.mxu1 }
 0x5e7   : > { %12751 = vst.msk [vmem:[%s19136_s28 + $0x78] sm:$0xff] %vm12735_vm5, %v12718_v9  ;;  %v12717_v48 = vmax.f32 %v12615_v36, 0.0  ;;  %v12630_v46 = vadd.f32 %v16094_v21, %v19129_v57 }
 0x5e8   : > { %v12624_v55 = vpop.f32.mrf.mxu1 }
 0x5e9   : > { %12750 = vst.msk [vmem:[%s19136_s28 + $0x70] sm:$0xff] %vm12735_vm5, %v12717_v48  ;;  %v12720_v52 = vmax.f32 %v12630_v46, 0.0  ;;  %v12625_v6 = vadd.f32 %v19129_v57, %v12624_v55 }
 0x5ea   : > { %v16097_v62 = vpop.f32.mrf.mxu1 }
 0x5eb   : > { %12753 = vst.msk [vmem:[%s19136_s28 + $0x88] sm:$0xff] %vm12735_vm5, %v12720_v52  ;;  %v12719_v4 = vmax.f32 %v12625_v6, 0.0  ;;  %v12640_v26 = vadd.f32 %v16097_v62, %v19129_v57 }
 0x5ec   : > { %v12634_v28 = vpop.f32.mrf.mxu1 }
 0x5ed   : > { %12752 = vst.msk [vmem:[%s19136_s28 + $0x80] sm:$0xff] %vm12735_vm5, %v12719_v4  ;;  %v12722_v42 = vmax.f32 %v12640_v26, 0.0  ;;  %v12635_v53 = vadd.f32 %v19129_v57, %v12634_v28 }
 0x5ee   : > { %v16100_v13 = vpop.f32.mrf.mxu1 }
 0x5ef   : > { %12755 = vst.msk [vmem:[%s19136_s28 + $0x98] sm:$0xff] %vm12735_vm5, %v12722_v42  ;;  %v12721_v34 = vmax.f32 %v12635_v53, 0.0  ;;  %v12650_v31 = vadd.f32 %v16100_v13, %v19129_v57 }
 0x5f0   : > { %v12644_v45 = vpop.f32.mrf.mxu1 }
 0x5f1   : > { %12754 = vst.msk [vmem:[%s19136_s28 + $0x90] sm:$0xff] %vm12735_vm5, %v12721_v34  ;;  %v12724_v56 = vmax.f32 %v12650_v31, 0.0  ;;  %v12645_v17 = vadd.f32 %v19129_v57, %v12644_v45 }
 0x5f2   : > { %v16103_v32 = vpop.f32.mrf.mxu1 }
 0x5f3   : > { %12757 = vst.msk [vmem:[%s19136_s28 + $0xa8] sm:$0xff] %vm12735_vm5, %v12724_v56  ;;  %v12723_v33 = vmax.f32 %v12645_v17, 0.0  ;;  %v12660_v12 = vadd.f32 %v16103_v32, %v19129_v57 }
 0x5f4   : > { %v12654_v58 = vpop.f32.mrf.mxu1 }
 0x5f5   : > { %12756 = vst.msk [vmem:[%s19136_s28 + $0xa0] sm:$0xff] %vm12735_vm5, %v12723_v33  ;;  %v12726_v39 = vmax.f32 %v12660_v12, 0.0  ;;  %v12655_v41 = vadd.f32 %v19129_v57, %v12654_v58 }
 0x5f6   : > { %v16106_v1 = vpop.f32.mrf.mxu1 }
 0x5f7   : > { %12759 = vst.msk [vmem:[%s19136_s28 + $0xb8] sm:$0xff] %vm12735_vm5, %v12726_v39  ;;  %v12725_v19 = vmax.f32 %v12655_v41, 0.0  ;;  %v12670_v38 = vadd.f32 %v16106_v1, %v19129_v57 }
 0x5f8   : > { %v12664_v44 = vpop.f32.mrf.mxu1 }
 0x5f9   : > { %12758 = vst.msk [vmem:[%s19136_s28 + $0xb0] sm:$0xff] %vm12735_vm5, %v12725_v19  ;;  %v12728_v24 = vmax.f32 %v12670_v38, 0.0  ;;  %v12665_v5 = vadd.f32 %v19129_v57, %v12664_v44 }
 0x5fa   : > { %v16109_v0 = vpop.f32.mrf.mxu1 }
 0x5fb   : > { %12761 = vst.msk [vmem:[%s19136_s28 + $0xc8] sm:$0xff] %vm12735_vm5, %v12728_v24  ;;  %v12727_v30 = vmax.f32 %v12665_v5, 0.0  ;;  %v12680_v37 = vadd.f32 %v16109_v0, %v19129_v57 }
 0x5fc   : > { %v12674_v3 = vpop.f32.mrf.mxu1 }
 0x5fd   : > { %12760 = vst.msk [vmem:[%s19136_s28 + $0xc0] sm:$0xff] %vm12735_vm5, %v12727_v30  ;;  %v12730_v63 = vmax.f32 %v12680_v37, 0.0  ;;  %v12675_v29 = vadd.f32 %v19129_v57, %v12674_v3 }
 0x5fe   : > { %v16112_v43 = vpop.f32.mrf.mxu1 }
 0x5ff   : > { %12763 = vst.msk [vmem:[%s19136_s28 + $0xd8] sm:$0xff] %vm12735_vm5, %v12730_v63  ;;  %v12729_v59 = vmax.f32 %v12675_v29, 0.0  ;;  %v12690_v10 = vadd.f32 %v16112_v43, %v19129_v57 }
 0x600   : > { %v12684_v15 = vpop.f32.mrf.mxu1 }
 0x601   : > { %12762 = vst.msk [vmem:[%s19136_s28 + $0xd0] sm:$0xff] %vm12735_vm5, %v12729_v59  ;;  %v12732_v49 = vmax.f32 %v12690_v10, 0.0  ;;  %v12685_v54 = vadd.f32 %v19129_v57, %v12684_v15 }
 0x602   : > { %v16115_v7 = vpop.f32.mrf.mxu1 }
 0x603   : > { %12765 = vst.msk [vmem:[%s19136_s28 + $0xe8] sm:$0xff] %vm12735_vm5, %v12732_v49  ;;  %v12731_v14 = vmax.f32 %v12685_v54, 0.0  ;;  %v12700_v27 = vadd.f32 %v16115_v7, %v19129_v57 }
 0x604   : > { %v12694_v50 = vpop.f32.mrf.mxu1 }
 0x605   : > { %12764 = vst.msk [vmem:[%s19136_s28 + $0xe0] sm:$0xff] %vm12735_vm5, %v12731_v14  ;;  %v12734_v18 = vmax.f32 %v12700_v27, 0.0  ;;  %v12695_v16 = vadd.f32 %v19129_v57, %v12694_v50 }
 0x607   : > { %12767 = vst.msk [vmem:[%s19136_s28 + $0xf8] sm:$0xff] %vm12735_vm5, %v12734_v18  ;;  %v12733_v40 = vmax.f32 %v12695_v16, 0.0 }
 0x609   : > { %12766 = vst.msk [vmem:[%s19136_s28 + $0xf0] sm:$0xff] %vm12735_vm5, %v12733_v40 }
 0x60a PF: > { %s19_s30 = sadd.s32 1, %s16132_s30  }
 0x60b   : > { %p16_p4 = scmp.ge.s32.totalorder %s19_s30, 4  }
 0x60d   :  { %18 = sbr.rel (!%p16_p4) target bundleno = 1 (0x1), region = 119 }

</bundles_post_ra>
